<compile_context>
chip_gen: v5e
topology: v5e:2x2
jax: 0.10.0
libtpu: 0.0.40
codegen_flags: <defaults>
</compile_context>

<pallas_src>
import random

import jax
import jax.numpy as jnp
from jax.experimental import pallas as pl
from jax.experimental.pallas import tpu as pltpu

LANE = 128       # lane width (last-dim granularity)
SUBLANE = 8      # f32 sublane count (second-to-last-dim granularity)
NEG_BIG = -1e30  # pad value for fc bias columns (never wins argmax)


def _round_up(x, m):
    return (x + m - 1) // m * m


# ----------------------------- Pallas kernel --------------------------------

def _lstm_gate_math(gates, c, Hp):
    """Fused-gate LSTM math on the padded [*, 4*Hp] layout (gate order i,f,g,o)."""
    i = jax.nn.sigmoid(gates[:, 0 * Hp:1 * Hp])
    f = jax.nn.sigmoid(gates[:, 1 * Hp:2 * Hp])
    g = jnp.tanh(gates[:, 2 * Hp:3 * Hp])
    o = jax.nn.sigmoid(gates[:, 3 * Hp:4 * Hp])
    c_new = f * c + i * g
    h_new = o * jnp.tanh(c_new)
    return h_new, c_new


def _seq2seq_kernel(flags_ref, trg_ids_ref,              # SMEM scalar prefetch
                    x_ref,                                # [S, Bp, Ep] src embeddings
                    ew_ih_ref, ew_hh_ref, eb_ref,         # encoder LSTM (resident)
                    demb_w_ref, dw_hh_ref, db_ref,        # decoder LSTM, emb folded into w_ih
                    wfc_ref, bfc_ref,                     # output projection (resident)
                    out_ref):                             # [T-1, Bp, Vp] logits
    S = x_ref.shape[0]
    steps, Bp, Vp = out_ref.shape
    Hp = dw_hh_ref.shape[0]

    # ---- hoisted loads / broadcasts / iotas (outside the unrolled time loops) ----
    ew_ih = ew_ih_ref[...]                                # [Ep, 4Hp]
    ew_hh = ew_hh_ref[...]                                # [Hp, 4Hp]
    enc_b = jnp.broadcast_to(eb_ref[...], (Bp, 4 * Hp))
    demb_w = demb_w_ref[...]                              # [Vp, 4Hp]
    dw_hh = dw_hh_ref[...]                                # [Hp, 4Hp]
    dec_b = jnp.broadcast_to(db_ref[...], (Bp, 4 * Hp))
    w_fc = wfc_ref[...]                                   # [Hp, Vp]
    fc_b = jnp.broadcast_to(bfc_ref[...], (Bp, Vp))
    row = jax.lax.broadcasted_iota(jnp.int32, (Bp, Vp), 0)
    col = jax.lax.broadcasted_iota(jnp.int32, (Bp, Vp), 1)
    colf = col.astype(jnp.float32)

    h = jnp.zeros((Bp, Hp), jnp.float32)
    c = jnp.zeros((Bp, Hp), jnp.float32)

    # ---- encoder: fully unrolled recurrence over the source sequence ----
    for t in range(S):
        gates = (jnp.dot(x_ref[t], ew_ih, preferred_element_type=jnp.float32)
                 + jnp.dot(h, ew_hh, preferred_element_type=jnp.float32)
                 + enc_b)
        h, c = _lstm_gate_math(gates, c, Hp)

    # ---- decoder: fully unrolled, with in-kernel argmax feedback ----
    top1_oh = jnp.zeros((Bp, Vp), jnp.float32)
    for s in range(steps):
        # Teacher one-hot built in-kernel from SMEM token ids (no HBM one-hot stream).
        tok = jnp.zeros((Bp, Vp), jnp.int32)
        for b in range(Bp):
            tok = jnp.where(row == b, trg_ids_ref[s, b], tok)
        trg_oh = (col == tok).astype(jnp.float32)

        # flags[s] in {0,1}: 1 -> teacher-forced target, 0 -> previous step's argmax.
        # Exact select because the flag is exactly 0 or 1.
        w = (flags_ref[s] != 0).astype(jnp.float32)
        inp_oh = w * trg_oh + (1.0 - w) * top1_oh         # [Bp, Vp]

        # Embedding lookup folded into the gate matmul: onehot @ (emb @ w_ih).
        gates = (jnp.dot(inp_oh, demb_w, preferred_element_type=jnp.float32)
                 + jnp.dot(h, dw_hh, preferred_element_type=jnp.float32)
                 + dec_b)
        h, c = _lstm_gate_math(gates, c, Hp)

        logits = jnp.dot(h, w_fc, preferred_element_type=jnp.float32) + fc_b
        out_ref[s] = logits                               # [Bp, Vp] (pads ~ -1e30)

        # Lane-dim argmax as a one-hot (first-occurrence tie-break, like argmax).
        m = jnp.max(logits, axis=-1, keepdims=True)
        first = jnp.min(jnp.where(logits >= m, colf, float(Vp)),
                        axis=-1, keepdims=True)
        top1_oh = (colf == first).astype(jnp.float32)


# ------------------------------- wrapper -------------------------------------

def seq2seq_fused(flags, trg_ids, x_seq, enc_w_ih, enc_w_hh, enc_b,
                  dec_emb_w, dec_w_hh, dec_b, w_fc, b_fc):
    """One fused encoder+decoder call.  Returns logits [T-1, Bp, Vp]."""
    S, Bp, Ep = x_seq.shape
    steps = trg_ids.shape[0]
    Vp = w_fc.shape[1]

    def resident(shape):
        # Full-array VMEM-resident block (index_map gets (grid_i, *prefetch_refs)).
        return pl.BlockSpec(shape, lambda i, _flags, _trg, _n=len(shape): (0,) * _n)

    return pl.pallas_call(
        _seq2seq_kernel,
        out_shape=jax.ShapeDtypeStruct((steps, Bp, Vp), jnp.float32),
        grid_spec=pltpu.PrefetchScalarGridSpec(
            num_scalar_prefetch=2,                        # flags, trg_ids -> SMEM
            grid=(1,),                                    # time loop lives inside the kernel
            in_specs=[
                resident(x_seq.shape),                    # src embeddings, resident
                resident(enc_w_ih.shape),                 # encoder LSTM weights
                resident(enc_w_hh.shape),
                resident(enc_b.shape),
                resident(dec_emb_w.shape),                # folded decoder emb*w_ih
                resident(dec_w_hh.shape),
                resident(dec_b.shape),
                resident(w_fc.shape),                     # output projection
                resident(b_fc.shape),
            ],
            out_specs=resident((steps, Bp, Vp)),
        ),
        compiler_params=pltpu.CompilerParams(dimension_semantics=("arbitrary",)),
    )(flags, trg_ids, x_seq, enc_w_ih, enc_w_hh, enc_b,
      dec_emb_w, dec_w_hh, dec_b, w_fc, b_fc)


# ------------------------------ parameters -----------------------------------

def init_params(key, input_dim, output_dim, emb_dim, hid_dim):
    ks = jax.random.split(key, 10)
    s = 0.1
    return {
        # encoder
        'enc_emb':  s * jax.random.normal(ks[0], (input_dim, emb_dim), jnp.float32),
        'enc_w_ih': s * jax.random.normal(ks[1], (emb_dim, 4 * hid_dim), jnp.float32),
        'enc_w_hh': s * jax.random.normal(ks[2], (hid_dim, 4 * hid_dim), jnp.float32),
        'enc_b':    s * jax.random.normal(ks[3], (1, 4 * hid_dim), jnp.float32),
        # decoder
        'dec_emb':  s * jax.random.normal(ks[4], (output_dim, emb_dim), jnp.float32),
        'dec_w_ih': s * jax.random.normal(ks[5], (emb_dim, 4 * hid_dim), jnp.float32),
        'dec_w_hh': s * jax.random.normal(ks[6], (hid_dim, 4 * hid_dim), jnp.float32),
        'dec_b':    s * jax.random.normal(ks[7], (1, 4 * hid_dim), jnp.float32),
        'dec_fc_w': s * jax.random.normal(ks[8], (hid_dim, output_dim), jnp.float32),
        'dec_fc_b': s * jax.random.normal(ks[9], (1, output_dim), jnp.float32),
    }


def _pad_gate_mat(w, rows_pad, H, Hp):
    """[rows, 4H] (gate order i,f,g,o) -> [rows_pad, 4*Hp] with zero pads per gate block."""
    rows = w.shape[0]
    w4 = w.reshape(rows, 4, H)
    w4 = jnp.pad(w4, ((0, rows_pad - rows), (0, 0), (0, Hp - H)))
    return w4.reshape(rows_pad, 4 * Hp)


def prepare_padded(params, emb_dim, hid_dim, out_dim):
    """Pad/stack/fold weights once, outside the kernel (lane-dense layout).

    Invariant: per-gate weight/bias pads are ZERO so padded h/c lanes stay exactly 0;
    fc-bias pads are -1e30 so padded vocab columns never win the in-kernel argmax.
    (Keep f32 here for exact parity with the f32 reference; at scale store bf16.)
    """
    Ep = _round_up(emb_dim, LANE)
    Hp = _round_up(hid_dim, LANE)
    Vp = _round_up(out_dim, LANE)

    enc_w_ih = _pad_gate_mat(params['enc_w_ih'], Ep, hid_dim, Hp)         # [Ep, 4Hp]
    enc_w_hh = _pad_gate_mat(params['enc_w_hh'], Hp, hid_dim, Hp)         # [Hp, 4Hp]
    enc_b = _pad_gate_mat(params['enc_b'], 1, hid_dim, Hp)                # [1, 4Hp]

    # Fold the decoder embedding into the input->gate weight (one matmul saved per step).
    dec_emb_w = _pad_gate_mat(params['dec_emb'] @ params['dec_w_ih'],
                              Vp, hid_dim, Hp)                            # [Vp, 4Hp]
    dec_w_hh = _pad_gate_mat(params['dec_w_hh'], Hp, hid_dim, Hp)         # [Hp, 4Hp]
    dec_b = _pad_gate_mat(params['dec_b'], 1, hid_dim, Hp)                # [1, 4Hp]

    w_fc = jnp.pad(params['dec_fc_w'],
                   ((0, Hp - hid_dim), (0, Vp - out_dim)))                # [Hp, Vp]
    b_fc = jnp.pad(params['dec_fc_b'], ((0, 0), (0, Vp - out_dim)),
                   constant_values=NEG_BIG)                               # [1, Vp]

    return {'enc_w_ih': enc_w_ih, 'enc_w_hh': enc_w_hh, 'enc_b': enc_b,
            'dec_emb_w': dec_emb_w, 'dec_w_hh': dec_w_hh, 'dec_b': dec_b,
            'w_fc': w_fc, 'b_fc': b_fc}


# ------------------------------ Seq2Seq model --------------------------------

def seq2seq_forward(params, padded, src, trg, flags):
    """Mirrors Seq2Seq.forward. src, trg: [seq_len, batch] int32.
    flags[s] (int32, in {0,1}) gates the input of decoder step s (flags[0] == 1 => trg[0])."""
    trg_len, batch = trg.shape
    emb_dim = params['enc_emb'].shape[1]
    out_dim = params['dec_fc_w'].shape[1]
    Ep = padded['enc_w_ih'].shape[0]
    Bp = _round_up(batch, SUBLANE)
    steps = trg_len - 1

    # Encoder embeddings pre-gathered and padded once (XLA gather outside the kernel).
    x_seq = jnp.take(params['enc_emb'], src, axis=0)                      # [S, B, E]
    x_seq = jnp.pad(x_seq, ((0, 0), (0, Bp - batch), (0, Ep - emb_dim)))  # [S, Bp, Ep]

    # Teacher token ids for decoder steps 0..T-2 (int32, SMEM via scalar prefetch).
    trg_ids = jnp.pad(trg[:steps], ((0, 0), (0, Bp - batch))).astype(jnp.int32)  # [T-1, Bp]

    logits = seq2seq_fused(flags, trg_ids, x_seq,
                           padded['enc_w_ih'], padded['enc_w_hh'], padded['enc_b'],
                           padded['dec_emb_w'], padded['dec_w_hh'], padded['dec_b'],
                           padded['w_fc'], padded['b_fc'])                # [T-1, Bp, Vp]

    out = logits[:, :batch, :out_dim]
    zeros0 = jnp.zeros((1, batch, out_dim), jnp.float32)                  # outputs[0] stays 0
    return jnp.concatenate([zeros0, out], axis=0)                         # [T, B, V]


# --------------------------- pure-JAX reference ------------------------------

def seq2seq_reference(params, src, trg, draws):
    """Unpadded float32 reference mirroring the PyTorch module step-by-step."""
    trg_len, batch = trg.shape
    hid = params['enc_w_hh'].shape[0]
    out_dim = params['dec_fc_w'].shape[1]

    def cell(x, h, c, w_ih, w_hh, b):
        H = h.shape[-1]
        gates = x @ w_ih + h @ w_hh + b
        i = jax.nn.sigmoid(gates[:, 0:H])
        f = jax.nn.sigmoid(gates[:, H:2 * H])
        g = jnp.tanh(gates[:, 2 * H:3 * H])
        o = jax.nn.sigmoid(gates[:, 3 * H:4 * H])
        c = f * c + i * g
        return o * jnp.tanh(c), c

    h = jnp.zeros((batch, hid), jnp.float32)
    c = jnp.zeros((batch, hid), jnp.float32)
    for t in range(src.shape[0]):
        x = jnp.take(params['enc_emb'], src[t], axis=0)
        h, c = cell(x, h, c, params['enc_w_ih'], params['enc_w_hh'], params['enc_b'])

    outputs = [jnp.zeros((batch, out_dim), jnp.float32)]
    inp = trg[0]
    for t in range(1, trg_len):
        x = jnp.take(params['dec_emb'], inp, axis=0)
        h, c = cell(x, h, c, params['dec_w_ih'], params['dec_w_hh'], params['dec_b'])
        logits = h @ params['dec_fc_w'] + params['dec_fc_b']
        outputs.append(logits)
        top1 = jnp.argmax(logits, axis=1).astype(trg.dtype)
        inp = trg[t] if draws[t - 1] else top1
    return jnp.stack(outputs, axis=0)


# ---------------------------------- main -------------------------------------

if __name__ == "__main__":
    INPUT_DIM = 16     # encoder vocab
    OUTPUT_DIM = 16    # decoder vocab (trg_vocab_size)
    EMB_DIM = 32
    HID_DIM = 32
    SRC_LEN = 8
    TRG_LEN = 8
    BATCH = 2
    TEACHER_FORCING_RATIO = 0.5

    key = jax.random.PRNGKey(0)
    kp, ks, kt = jax.random.split(key, 3)
    params = init_params(kp, INPUT_DIM, OUTPUT_DIM, EMB_DIM, HID_DIM)
    padded = prepare_padded(params, EMB_DIM, HID_DIM, OUTPUT_DIM)

    src = jax.random.randint(ks, (SRC_LEN, BATCH), 0, INPUT_DIM, dtype=jnp.int32)
    trg = jax.random.randint(kt, (TRG_LEN, BATCH), 0, OUTPUT_DIM, dtype=jnp.int32)

    # Python-level teacher-forcing draws, as in the PyTorch module (random.random()).
    random.seed(0)
    draws = [random.random() < TEACHER_FORCING_RATIO for _ in range(1, TRG_LEN)]
    # flags[s] gates the *input* of decoder step s: step 0 always uses trg[0];
    # step s>=1 uses the draw made in PyTorch loop iteration t=s (draws[s-1]).
    flags = jnp.array([1] + [int(d) for d in draws[:-1]], dtype=jnp.int32)

    fwd = jax.jit(seq2seq_forward)
    outputs = jax.block_until_ready(fwd(params, padded, src, trg, flags))

    outputs_ref = jax.block_until_ready(seq2seq_reference(params, src, trg, draws))
    assert outputs.shape == (TRG_LEN, BATCH, OUTPUT_DIM)
    assert jnp.allclose(outputs, outputs_ref, atol=1e-4, rtol=1e-4), \
        float(jnp.max(jnp.abs(outputs - outputs_ref)))

    print("KERNEL_OK")
</pallas_src>

<mosaic_0001>
module attributes {stable_mosaic.version = 11 : i64} {
  func.func @_seq2seq_kernel(%arg0: i32, %arg1: memref<7xi32, #tpu.memory_space<smem>>, %arg2: memref<7x8xi32, #tpu.memory_space<smem>>, %arg3: memref<8x8x128xf32, #tpu.memory_space<vmem>>, %arg4: memref<128x512xf32, #tpu.memory_space<vmem>>, %arg5: memref<128x512xf32, #tpu.memory_space<vmem>>, %arg6: memref<1x512xf32, #tpu.memory_space<vmem>>, %arg7: memref<128x512xf32, #tpu.memory_space<vmem>>, %arg8: memref<128x512xf32, #tpu.memory_space<vmem>>, %arg9: memref<1x512xf32, #tpu.memory_space<vmem>>, %arg10: memref<128x128xf32, #tpu.memory_space<vmem>>, %arg11: memref<1x128xf32, #tpu.memory_space<vmem>>, %arg12: memref<7x8x128xf32, #tpu.memory_space<vmem>>) attributes {dimension_semantics = [#tpu.dimension_semantics<arbitrary>], iteration_bounds = array<i64: 1>, scalar_prefetch = 2 : i64, scratch_operands = 0 : i64, tpu.core_type = #tpu.core_type<tc>, window_params = [{pipeline_mode = #tpu.pipeline_mode<synchronous>, transform_indices = @transform_0, window_bounds = array<i64: 8, 8, 128>}, {pipeline_mode = #tpu.pipeline_mode<synchronous>, transform_indices = @transform_1, window_bounds = array<i64: 128, 512>}, {pipeline_mode = #tpu.pipeline_mode<synchronous>, transform_indices = @transform_2, window_bounds = array<i64: 128, 512>}, {pipeline_mode = #tpu.pipeline_mode<synchronous>, transform_indices = @transform_3, window_bounds = array<i64: 1, 512>}, {pipeline_mode = #tpu.pipeline_mode<synchronous>, transform_indices = @transform_4, window_bounds = array<i64: 128, 512>}, {pipeline_mode = #tpu.pipeline_mode<synchronous>, transform_indices = @transform_5, window_bounds = array<i64: 128, 512>}, {pipeline_mode = #tpu.pipeline_mode<synchronous>, transform_indices = @transform_6, window_bounds = array<i64: 1, 512>}, {pipeline_mode = #tpu.pipeline_mode<synchronous>, transform_indices = @transform_7, window_bounds = array<i64: 128, 128>}, {pipeline_mode = #tpu.pipeline_mode<synchronous>, transform_indices = @transform_8, window_bounds = array<i64: 1, 128>}, {pipeline_mode = #tpu.pipeline_mode<synchronous>, transform_indices = @transform_9, window_bounds = array<i64: 7, 8, 128>}]} {
    %c0 = arith.constant 0 : index
    %c0_0 = arith.constant 0 : index
    %0 = vector.load %arg4[%c0, %c0_0] : memref<128x512xf32, #tpu.memory_space<vmem>>, vector<128x512xf32>
    %c0_1 = arith.constant 0 : index
    %c0_2 = arith.constant 0 : index
    %1 = vector.load %arg5[%c0_1, %c0_2] : memref<128x512xf32, #tpu.memory_space<vmem>>, vector<128x512xf32>
    %c0_3 = arith.constant 0 : index
    %c0_4 = arith.constant 0 : index
    %2 = vector.load %arg6[%c0_3, %c0_4] : memref<1x512xf32, #tpu.memory_space<vmem>>, vector<1x512xf32>
    %3 = vector.shape_cast %2 : vector<1x512xf32> to vector<1x512xf32>
    %4 = vector.broadcast %3 : vector<1x512xf32> to vector<8x512xf32>
    %c0_5 = arith.constant 0 : index
    %c0_6 = arith.constant 0 : index
    %5 = vector.load %arg7[%c0_5, %c0_6] : memref<128x512xf32, #tpu.memory_space<vmem>>, vector<128x512xf32>
    %c0_7 = arith.constant 0 : index
    %c0_8 = arith.constant 0 : index
    %6 = vector.load %arg8[%c0_7, %c0_8] : memref<128x512xf32, #tpu.memory_space<vmem>>, vector<128x512xf32>
    %c0_9 = arith.constant 0 : index
    %c0_10 = arith.constant 0 : index
    %7 = vector.load %arg9[%c0_9, %c0_10] : memref<1x512xf32, #tpu.memory_space<vmem>>, vector<1x512xf32>
    %8 = vector.shape_cast %7 : vector<1x512xf32> to vector<1x512xf32>
    %9 = vector.broadcast %8 : vector<1x512xf32> to vector<8x512xf32>
    %c0_11 = arith.constant 0 : index
    %c0_12 = arith.constant 0 : index
    %10 = vector.load %arg10[%c0_11, %c0_12] : memref<128x128xf32, #tpu.memory_space<vmem>>, vector<128x128xf32>
    %c0_13 = arith.constant 0 : index
    %c0_14 = arith.constant 0 : index
    %11 = vector.load %arg11[%c0_13, %c0_14] : memref<1x128xf32, #tpu.memory_space<vmem>>, vector<1x128xf32>
    %12 = vector.shape_cast %11 : vector<1x128xf32> to vector<1x128xf32>
    %13 = vector.broadcast %12 : vector<1x128xf32> to vector<8x128xf32>
    %14 = tpu.iota {dimensions = array<i32: 0>} : vector<8x128xi32>
    %15 = tpu.iota {dimensions = array<i32: 1>} : vector<8x128xi32>
    %16 = arith.sitofp %15 : vector<8x128xi32> to vector<8x128xf32>
    %cst = arith.constant 0.000000e+00 : f32
    %17 = vector.broadcast %cst : f32 to vector<8x128xf32>
    %cst_15 = arith.constant 0.000000e+00 : f32
    %18 = vector.broadcast %cst_15 : f32 to vector<8x128xf32>
    %c0_16 = arith.constant 0 : index
    %c0_17 = arith.constant 0 : index
    %c0_18 = arith.constant 0 : index
    %19 = vector.load %arg3[%c0_16, %c0_17, %c0_18] : memref<8x8x128xf32, #tpu.memory_space<vmem>>, vector<1x8x128xf32>
    %20 = vector.shape_cast %19 : vector<1x8x128xf32> to vector<8x128xf32>
    %cst_19 = arith.constant dense<0.000000e+00> : vector<8x512xf32>
    %21 = tpu.matmul %20, %0, %cst_19 {dimension_numbers = #tpu.dot_dimension_numbers<[1], [0], [0], [1], [0, 0, 1, 1], [], []>} : vector<8x128xf32>, vector<128x512xf32>, vector<8x512xf32> -> vector<8x512xf32>
    %cst_20 = arith.constant dense<0.000000e+00> : vector<8x512xf32>
    %22 = tpu.matmul %17, %1, %cst_20 {dimension_numbers = #tpu.dot_dimension_numbers<[1], [0], [0], [1], [0, 0, 1, 1], [], []>} : vector<8x128xf32>, vector<128x512xf32>, vector<8x512xf32> -> vector<8x512xf32>
    %23 = arith.addf %21, %22 : vector<8x512xf32>
    %24 = arith.addf %23, %4 : vector<8x512xf32>
    %25 = vector.extract_strided_slice %24 {offsets = [0, 0], sizes = [8, 128], strides = [1, 1]} : vector<8x512xf32> to vector<8x128xf32>
    %26 = arith.negf %25 : vector<8x128xf32>
    %27 = math.exp %26 : vector<8x128xf32>
    %cst_21 = arith.constant 1.000000e+00 : f32
    %28 = vector.broadcast %cst_21 : f32 to vector<8x128xf32>
    %29 = arith.addf %28, %27 : vector<8x128xf32>
    %30 = arith.divf %28, %29 : vector<8x128xf32>
    %31 = vector.extract_strided_slice %24 {offsets = [0, 128], sizes = [8, 128], strides = [1, 1]} : vector<8x512xf32> to vector<8x128xf32>
    %32 = arith.negf %31 : vector<8x128xf32>
    %33 = math.exp %32 : vector<8x128xf32>
    %cst_22 = arith.constant 1.000000e+00 : f32
    %34 = vector.broadcast %cst_22 : f32 to vector<8x128xf32>
    %35 = arith.addf %34, %33 : vector<8x128xf32>
    %36 = arith.divf %34, %35 : vector<8x128xf32>
    %37 = vector.extract_strided_slice %24 {offsets = [0, 256], sizes = [8, 128], strides = [1, 1]} : vector<8x512xf32> to vector<8x128xf32>
    %38 = math.tanh %37 : vector<8x128xf32>
    %39 = vector.extract_strided_slice %24 {offsets = [0, 384], sizes = [8, 128], strides = [1, 1]} : vector<8x512xf32> to vector<8x128xf32>
    %40 = arith.negf %39 : vector<8x128xf32>
    %41 = math.exp %40 : vector<8x128xf32>
    %cst_23 = arith.constant 1.000000e+00 : f32
    %42 = vector.broadcast %cst_23 : f32 to vector<8x128xf32>
    %43 = arith.addf %42, %41 : vector<8x128xf32>
    %44 = arith.divf %42, %43 : vector<8x128xf32>
    %45 = arith.mulf %36, %18 : vector<8x128xf32>
    %46 = arith.mulf %30, %38 : vector<8x128xf32>
    %47 = arith.addf %45, %46 : vector<8x128xf32>
    %48 = math.tanh %47 : vector<8x128xf32>
    %49 = arith.mulf %44, %48 : vector<8x128xf32>
    %c1 = arith.constant 1 : index
    %c0_24 = arith.constant 0 : index
    %c0_25 = arith.constant 0 : index
    %50 = vector.load %arg3[%c1, %c0_24, %c0_25] : memref<8x8x128xf32, #tpu.memory_space<vmem>>, vector<1x8x128xf32>
    %51 = vector.shape_cast %50 : vector<1x8x128xf32> to vector<8x128xf32>
    %cst_26 = arith.constant dense<0.000000e+00> : vector<8x512xf32>
    %52 = tpu.matmul %51, %0, %cst_26 {dimension_numbers = #tpu.dot_dimension_numbers<[1], [0], [0], [1], [0, 0, 1, 1], [], []>} : vector<8x128xf32>, vector<128x512xf32>, vector<8x512xf32> -> vector<8x512xf32>
    %cst_27 = arith.constant dense<0.000000e+00> : vector<8x512xf32>
    %53 = tpu.matmul %49, %1, %cst_27 {dimension_numbers = #tpu.dot_dimension_numbers<[1], [0], [0], [1], [0, 0, 1, 1], [], []>} : vector<8x128xf32>, vector<128x512xf32>, vector<8x512xf32> -> vector<8x512xf32>
    %54 = arith.addf %52, %53 : vector<8x512xf32>
    %55 = arith.addf %54, %4 : vector<8x512xf32>
    %56 = vector.extract_strided_slice %55 {offsets = [0, 0], sizes = [8, 128], strides = [1, 1]} : vector<8x512xf32> to vector<8x128xf32>
    %57 = arith.negf %56 : vector<8x128xf32>
    %58 = math.exp %57 : vector<8x128xf32>
    %cst_28 = arith.constant 1.000000e+00 : f32
    %59 = vector.broadcast %cst_28 : f32 to vector<8x128xf32>
    %60 = arith.addf %59, %58 : vector<8x128xf32>
    %61 = arith.divf %59, %60 : vector<8x128xf32>
    %62 = vector.extract_strided_slice %55 {offsets = [0, 128], sizes = [8, 128], strides = [1, 1]} : vector<8x512xf32> to vector<8x128xf32>
    %63 = arith.negf %62 : vector<8x128xf32>
    %64 = math.exp %63 : vector<8x128xf32>
    %cst_29 = arith.constant 1.000000e+00 : f32
    %65 = vector.broadcast %cst_29 : f32 to vector<8x128xf32>
    %66 = arith.addf %65, %64 : vector<8x128xf32>
    %67 = arith.divf %65, %66 : vector<8x128xf32>
    %68 = vector.extract_strided_slice %55 {offsets = [0, 256], sizes = [8, 128], strides = [1, 1]} : vector<8x512xf32> to vector<8x128xf32>
    %69 = math.tanh %68 : vector<8x128xf32>
    %70 = vector.extract_strided_slice %55 {offsets = [0, 384], sizes = [8, 128], strides = [1, 1]} : vector<8x512xf32> to vector<8x128xf32>
    %71 = arith.negf %70 : vector<8x128xf32>
    %72 = math.exp %71 : vector<8x128xf32>
    %cst_30 = arith.constant 1.000000e+00 : f32
    %73 = vector.broadcast %cst_30 : f32 to vector<8x128xf32>
    %74 = arith.addf %73, %72 : vector<8x128xf32>
    %75 = arith.divf %73, %74 : vector<8x128xf32>
    %76 = arith.mulf %67, %47 : vector<8x128xf32>
    %77 = arith.mulf %61, %69 : vector<8x128xf32>
    %78 = arith.addf %76, %77 : vector<8x128xf32>
    %79 = math.tanh %78 : vector<8x128xf32>
    %80 = arith.mulf %75, %79 : vector<8x128xf32>
    %c2 = arith.constant 2 : index
    %c0_31 = arith.constant 0 : index
    %c0_32 = arith.constant 0 : index
    %81 = vector.load %arg3[%c2, %c0_31, %c0_32] : memref<8x8x128xf32, #tpu.memory_space<vmem>>, vector<1x8x128xf32>
    %82 = vector.shape_cast %81 : vector<1x8x128xf32> to vector<8x128xf32>
    %cst_33 = arith.constant dense<0.000000e+00> : vector<8x512xf32>
    %83 = tpu.matmul %82, %0, %cst_33 {dimension_numbers = #tpu.dot_dimension_numbers<[1], [0], [0], [1], [0, 0, 1, 1], [], []>} : vector<8x128xf32>, vector<128x512xf32>, vector<8x512xf32> -> vector<8x512xf32>
    %cst_34 = arith.constant dense<0.000000e+00> : vector<8x512xf32>
    %84 = tpu.matmul %80, %1, %cst_34 {dimension_numbers = #tpu.dot_dimension_numbers<[1], [0], [0], [1], [0, 0, 1, 1], [], []>} : vector<8x128xf32>, vector<128x512xf32>, vector<8x512xf32> -> vector<8x512xf32>
    %85 = arith.addf %83, %84 : vector<8x512xf32>
    %86 = arith.addf %85, %4 : vector<8x512xf32>
    %87 = vector.extract_strided_slice %86 {offsets = [0, 0], sizes = [8, 128], strides = [1, 1]} : vector<8x512xf32> to vector<8x128xf32>
    %88 = arith.negf %87 : vector<8x128xf32>
    %89 = math.exp %88 : vector<8x128xf32>
    %cst_35 = arith.constant 1.000000e+00 : f32
    %90 = vector.broadcast %cst_35 : f32 to vector<8x128xf32>
    %91 = arith.addf %90, %89 : vector<8x128xf32>
    %92 = arith.divf %90, %91 : vector<8x128xf32>
    %93 = vector.extract_strided_slice %86 {offsets = [0, 128], sizes = [8, 128], strides = [1, 1]} : vector<8x512xf32> to vector<8x128xf32>
    %94 = arith.negf %93 : vector<8x128xf32>
    %95 = math.exp %94 : vector<8x128xf32>
    %cst_36 = arith.constant 1.000000e+00 : f32
    %96 = vector.broadcast %cst_36 : f32 to vector<8x128xf32>
    %97 = arith.addf %96, %95 : vector<8x128xf32>
    %98 = arith.divf %96, %97 : vector<8x128xf32>
    %99 = vector.extract_strided_slice %86 {offsets = [0, 256], sizes = [8, 128], strides = [1, 1]} : vector<8x512xf32> to vector<8x128xf32>
    %100 = math.tanh %99 : vector<8x128xf32>
    %101 = vector.extract_strided_slice %86 {offsets = [0, 384], sizes = [8, 128], strides = [1, 1]} : vector<8x512xf32> to vector<8x128xf32>
    %102 = arith.negf %101 : vector<8x128xf32>
    %103 = math.exp %102 : vector<8x128xf32>
    %cst_37 = arith.constant 1.000000e+00 : f32
    %104 = vector.broadcast %cst_37 : f32 to vector<8x128xf32>
    %105 = arith.addf %104, %103 : vector<8x128xf32>
    %106 = arith.divf %104, %105 : vector<8x128xf32>
    %107 = arith.mulf %98, %78 : vector<8x128xf32>
    %108 = arith.mulf %92, %100 : vector<8x128xf32>
    %109 = arith.addf %107, %108 : vector<8x128xf32>
    %110 = math.tanh %109 : vector<8x128xf32>
    %111 = arith.mulf %106, %110 : vector<8x128xf32>
    %c3 = arith.constant 3 : index
    %c0_38 = arith.constant 0 : index
    %c0_39 = arith.constant 0 : index
    %112 = vector.load %arg3[%c3, %c0_38, %c0_39] : memref<8x8x128xf32, #tpu.memory_space<vmem>>, vector<1x8x128xf32>
    %113 = vector.shape_cast %112 : vector<1x8x128xf32> to vector<8x128xf32>
    %cst_40 = arith.constant dense<0.000000e+00> : vector<8x512xf32>
    %114 = tpu.matmul %113, %0, %cst_40 {dimension_numbers = #tpu.dot_dimension_numbers<[1], [0], [0], [1], [0, 0, 1, 1], [], []>} : vector<8x128xf32>, vector<128x512xf32>, vector<8x512xf32> -> vector<8x512xf32>
    %cst_41 = arith.constant dense<0.000000e+00> : vector<8x512xf32>
    %115 = tpu.matmul %111, %1, %cst_41 {dimension_numbers = #tpu.dot_dimension_numbers<[1], [0], [0], [1], [0, 0, 1, 1], [], []>} : vector<8x128xf32>, vector<128x512xf32>, vector<8x512xf32> -> vector<8x512xf32>
    %116 = arith.addf %114, %115 : vector<8x512xf32>
    %117 = arith.addf %116, %4 : vector<8x512xf32>
    %118 = vector.extract_strided_slice %117 {offsets = [0, 0], sizes = [8, 128], strides = [1, 1]} : vector<8x512xf32> to vector<8x128xf32>
    %119 = arith.negf %118 : vector<8x128xf32>
    %120 = math.exp %119 : vector<8x128xf32>
    %cst_42 = arith.constant 1.000000e+00 : f32
    %121 = vector.broadcast %cst_42 : f32 to vector<8x128xf32>
    %122 = arith.addf %121, %120 : vector<8x128xf32>
    %123 = arith.divf %121, %122 : vector<8x128xf32>
    %124 = vector.extract_strided_slice %117 {offsets = [0, 128], sizes = [8, 128], strides = [1, 1]} : vector<8x512xf32> to vector<8x128xf32>
    %125 = arith.negf %124 : vector<8x128xf32>
    %126 = math.exp %125 : vector<8x128xf32>
    %cst_43 = arith.constant 1.000000e+00 : f32
    %127 = vector.broadcast %cst_43 : f32 to vector<8x128xf32>
    %128 = arith.addf %127, %126 : vector<8x128xf32>
    %129 = arith.divf %127, %128 : vector<8x128xf32>
    %130 = vector.extract_strided_slice %117 {offsets = [0, 256], sizes = [8, 128], strides = [1, 1]} : vector<8x512xf32> to vector<8x128xf32>
    %131 = math.tanh %130 : vector<8x128xf32>
    %132 = vector.extract_strided_slice %117 {offsets = [0, 384], sizes = [8, 128], strides = [1, 1]} : vector<8x512xf32> to vector<8x128xf32>
    %133 = arith.negf %132 : vector<8x128xf32>
    %134 = math.exp %133 : vector<8x128xf32>
    %cst_44 = arith.constant 1.000000e+00 : f32
    %135 = vector.broadcast %cst_44 : f32 to vector<8x128xf32>
    %136 = arith.addf %135, %134 : vector<8x128xf32>
    %137 = arith.divf %135, %136 : vector<8x128xf32>
    %138 = arith.mulf %129, %109 : vector<8x128xf32>
    %139 = arith.mulf %123, %131 : vector<8x128xf32>
    %140 = arith.addf %138, %139 : vector<8x128xf32>
    %141 = math.tanh %140 : vector<8x128xf32>
    %142 = arith.mulf %137, %141 : vector<8x128xf32>
    %c4 = arith.constant 4 : index
    %c0_45 = arith.constant 0 : index
    %c0_46 = arith.constant 0 : index
    %143 = vector.load %arg3[%c4, %c0_45, %c0_46] : memref<8x8x128xf32, #tpu.memory_space<vmem>>, vector<1x8x128xf32>
    %144 = vector.shape_cast %143 : vector<1x8x128xf32> to vector<8x128xf32>
    %cst_47 = arith.constant dense<0.000000e+00> : vector<8x512xf32>
    %145 = tpu.matmul %144, %0, %cst_47 {dimension_numbers = #tpu.dot_dimension_numbers<[1], [0], [0], [1], [0, 0, 1, 1], [], []>} : vector<8x128xf32>, vector<128x512xf32>, vector<8x512xf32> -> vector<8x512xf32>
    %cst_48 = arith.constant dense<0.000000e+00> : vector<8x512xf32>
    %146 = tpu.matmul %142, %1, %cst_48 {dimension_numbers = #tpu.dot_dimension_numbers<[1], [0], [0], [1], [0, 0, 1, 1], [], []>} : vector<8x128xf32>, vector<128x512xf32>, vector<8x512xf32> -> vector<8x512xf32>
    %147 = arith.addf %145, %146 : vector<8x512xf32>
    %148 = arith.addf %147, %4 : vector<8x512xf32>
    %149 = vector.extract_strided_slice %148 {offsets = [0, 0], sizes = [8, 128], strides = [1, 1]} : vector<8x512xf32> to vector<8x128xf32>
    %150 = arith.negf %149 : vector<8x128xf32>
    %151 = math.exp %150 : vector<8x128xf32>
    %cst_49 = arith.constant 1.000000e+00 : f32
    %152 = vector.broadcast %cst_49 : f32 to vector<8x128xf32>
    %153 = arith.addf %152, %151 : vector<8x128xf32>
    %154 = arith.divf %152, %153 : vector<8x128xf32>
    %155 = vector.extract_strided_slice %148 {offsets = [0, 128], sizes = [8, 128], strides = [1, 1]} : vector<8x512xf32> to vector<8x128xf32>
    %156 = arith.negf %155 : vector<8x128xf32>
    %157 = math.exp %156 : vector<8x128xf32>
    %cst_50 = arith.constant 1.000000e+00 : f32
    %158 = vector.broadcast %cst_50 : f32 to vector<8x128xf32>
    %159 = arith.addf %158, %157 : vector<8x128xf32>
    %160 = arith.divf %158, %159 : vector<8x128xf32>
    %161 = vector.extract_strided_slice %148 {offsets = [0, 256], sizes = [8, 128], strides = [1, 1]} : vector<8x512xf32> to vector<8x128xf32>
    %162 = math.tanh %161 : vector<8x128xf32>
    %163 = vector.extract_strided_slice %148 {offsets = [0, 384], sizes = [8, 128], strides = [1, 1]} : vector<8x512xf32> to vector<8x128xf32>
    %164 = arith.negf %163 : vector<8x128xf32>
    %165 = math.exp %164 : vector<8x128xf32>
    %cst_51 = arith.constant 1.000000e+00 : f32
    %166 = vector.broadcast %cst_51 : f32 to vector<8x128xf32>
    %167 = arith.addf %166, %165 : vector<8x128xf32>
    %168 = arith.divf %166, %167 : vector<8x128xf32>
    %169 = arith.mulf %160, %140 : vector<8x128xf32>
    %170 = arith.mulf %154, %162 : vector<8x128xf32>
    %171 = arith.addf %169, %170 : vector<8x128xf32>
    %172 = math.tanh %171 : vector<8x128xf32>
    %173 = arith.mulf %168, %172 : vector<8x128xf32>
    %c5 = arith.constant 5 : index
    %c0_52 = arith.constant 0 : index
    %c0_53 = arith.constant 0 : index
    %174 = vector.load %arg3[%c5, %c0_52, %c0_53] : memref<8x8x128xf32, #tpu.memory_space<vmem>>, vector<1x8x128xf32>
    %175 = vector.shape_cast %174 : vector<1x8x128xf32> to vector<8x128xf32>
    %cst_54 = arith.constant dense<0.000000e+00> : vector<8x512xf32>
    %176 = tpu.matmul %175, %0, %cst_54 {dimension_numbers = #tpu.dot_dimension_numbers<[1], [0], [0], [1], [0, 0, 1, 1], [], []>} : vector<8x128xf32>, vector<128x512xf32>, vector<8x512xf32> -> vector<8x512xf32>
    %cst_55 = arith.constant dense<0.000000e+00> : vector<8x512xf32>
    %177 = tpu.matmul %173, %1, %cst_55 {dimension_numbers = #tpu.dot_dimension_numbers<[1], [0], [0], [1], [0, 0, 1, 1], [], []>} : vector<8x128xf32>, vector<128x512xf32>, vector<8x512xf32> -> vector<8x512xf32>
    %178 = arith.addf %176, %177 : vector<8x512xf32>
    %179 = arith.addf %178, %4 : vector<8x512xf32>
    %180 = vector.extract_strided_slice %179 {offsets = [0, 0], sizes = [8, 128], strides = [1, 1]} : vector<8x512xf32> to vector<8x128xf32>
    %181 = arith.negf %180 : vector<8x128xf32>
    %182 = math.exp %181 : vector<8x128xf32>
    %cst_56 = arith.constant 1.000000e+00 : f32
    %183 = vector.broadcast %cst_56 : f32 to vector<8x128xf32>
    %184 = arith.addf %183, %182 : vector<8x128xf32>
    %185 = arith.divf %183, %184 : vector<8x128xf32>
    %186 = vector.extract_strided_slice %179 {offsets = [0, 128], sizes = [8, 128], strides = [1, 1]} : vector<8x512xf32> to vector<8x128xf32>
    %187 = arith.negf %186 : vector<8x128xf32>
    %188 = math.exp %187 : vector<8x128xf32>
    %cst_57 = arith.constant 1.000000e+00 : f32
    %189 = vector.broadcast %cst_57 : f32 to vector<8x128xf32>
    %190 = arith.addf %189, %188 : vector<8x128xf32>
    %191 = arith.divf %189, %190 : vector<8x128xf32>
    %192 = vector.extract_strided_slice %179 {offsets = [0, 256], sizes = [8, 128], strides = [1, 1]} : vector<8x512xf32> to vector<8x128xf32>
    %193 = math.tanh %192 : vector<8x128xf32>
    %194 = vector.extract_strided_slice %179 {offsets = [0, 384], sizes = [8, 128], strides = [1, 1]} : vector<8x512xf32> to vector<8x128xf32>
    %195 = arith.negf %194 : vector<8x128xf32>
    %196 = math.exp %195 : vector<8x128xf32>
    %cst_58 = arith.constant 1.000000e+00 : f32
    %197 = vector.broadcast %cst_58 : f32 to vector<8x128xf32>
    %198 = arith.addf %197, %196 : vector<8x128xf32>
    %199 = arith.divf %197, %198 : vector<8x128xf32>
    %200 = arith.mulf %191, %171 : vector<8x128xf32>
    %201 = arith.mulf %185, %193 : vector<8x128xf32>
    %202 = arith.addf %200, %201 : vector<8x128xf32>
    %203 = math.tanh %202 : vector<8x128xf32>
    %204 = arith.mulf %199, %203 : vector<8x128xf32>
    %c6 = arith.constant 6 : index
    %c0_59 = arith.constant 0 : index
    %c0_60 = arith.constant 0 : index
    %205 = vector.load %arg3[%c6, %c0_59, %c0_60] : memref<8x8x128xf32, #tpu.memory_space<vmem>>, vector<1x8x128xf32>
    %206 = vector.shape_cast %205 : vector<1x8x128xf32> to vector<8x128xf32>
    %cst_61 = arith.constant dense<0.000000e+00> : vector<8x512xf32>
    %207 = tpu.matmul %206, %0, %cst_61 {dimension_numbers = #tpu.dot_dimension_numbers<[1], [0], [0], [1], [0, 0, 1, 1], [], []>} : vector<8x128xf32>, vector<128x512xf32>, vector<8x512xf32> -> vector<8x512xf32>
    %cst_62 = arith.constant dense<0.000000e+00> : vector<8x512xf32>
    %208 = tpu.matmul %204, %1, %cst_62 {dimension_numbers = #tpu.dot_dimension_numbers<[1], [0], [0], [1], [0, 0, 1, 1], [], []>} : vector<8x128xf32>, vector<128x512xf32>, vector<8x512xf32> -> vector<8x512xf32>
    %209 = arith.addf %207, %208 : vector<8x512xf32>
    %210 = arith.addf %209, %4 : vector<8x512xf32>
    %211 = vector.extract_strided_slice %210 {offsets = [0, 0], sizes = [8, 128], strides = [1, 1]} : vector<8x512xf32> to vector<8x128xf32>
    %212 = arith.negf %211 : vector<8x128xf32>
    %213 = math.exp %212 : vector<8x128xf32>
    %cst_63 = arith.constant 1.000000e+00 : f32
    %214 = vector.broadcast %cst_63 : f32 to vector<8x128xf32>
    %215 = arith.addf %214, %213 : vector<8x128xf32>
    %216 = arith.divf %214, %215 : vector<8x128xf32>
    %217 = vector.extract_strided_slice %210 {offsets = [0, 128], sizes = [8, 128], strides = [1, 1]} : vector<8x512xf32> to vector<8x128xf32>
    %218 = arith.negf %217 : vector<8x128xf32>
    %219 = math.exp %218 : vector<8x128xf32>
    %cst_64 = arith.constant 1.000000e+00 : f32
    %220 = vector.broadcast %cst_64 : f32 to vector<8x128xf32>
    %221 = arith.addf %220, %219 : vector<8x128xf32>
    %222 = arith.divf %220, %221 : vector<8x128xf32>
    %223 = vector.extract_strided_slice %210 {offsets = [0, 256], sizes = [8, 128], strides = [1, 1]} : vector<8x512xf32> to vector<8x128xf32>
    %224 = math.tanh %223 : vector<8x128xf32>
    %225 = vector.extract_strided_slice %210 {offsets = [0, 384], sizes = [8, 128], strides = [1, 1]} : vector<8x512xf32> to vector<8x128xf32>
    %226 = arith.negf %225 : vector<8x128xf32>
    %227 = math.exp %226 : vector<8x128xf32>
    %cst_65 = arith.constant 1.000000e+00 : f32
    %228 = vector.broadcast %cst_65 : f32 to vector<8x128xf32>
    %229 = arith.addf %228, %227 : vector<8x128xf32>
    %230 = arith.divf %228, %229 : vector<8x128xf32>
    %231 = arith.mulf %222, %202 : vector<8x128xf32>
    %232 = arith.mulf %216, %224 : vector<8x128xf32>
    %233 = arith.addf %231, %232 : vector<8x128xf32>
    %234 = math.tanh %233 : vector<8x128xf32>
    %235 = arith.mulf %230, %234 : vector<8x128xf32>
    %c7 = arith.constant 7 : index
    %c0_66 = arith.constant 0 : index
    %c0_67 = arith.constant 0 : index
    %236 = vector.load %arg3[%c7, %c0_66, %c0_67] : memref<8x8x128xf32, #tpu.memory_space<vmem>>, vector<1x8x128xf32>
    %237 = vector.shape_cast %236 : vector<1x8x128xf32> to vector<8x128xf32>
    %cst_68 = arith.constant dense<0.000000e+00> : vector<8x512xf32>
    %238 = tpu.matmul %237, %0, %cst_68 {dimension_numbers = #tpu.dot_dimension_numbers<[1], [0], [0], [1], [0, 0, 1, 1], [], []>} : vector<8x128xf32>, vector<128x512xf32>, vector<8x512xf32> -> vector<8x512xf32>
    %cst_69 = arith.constant dense<0.000000e+00> : vector<8x512xf32>
    %239 = tpu.matmul %235, %1, %cst_69 {dimension_numbers = #tpu.dot_dimension_numbers<[1], [0], [0], [1], [0, 0, 1, 1], [], []>} : vector<8x128xf32>, vector<128x512xf32>, vector<8x512xf32> -> vector<8x512xf32>
    %240 = arith.addf %238, %239 : vector<8x512xf32>
    %241 = arith.addf %240, %4 : vector<8x512xf32>
    %242 = vector.extract_strided_slice %241 {offsets = [0, 0], sizes = [8, 128], strides = [1, 1]} : vector<8x512xf32> to vector<8x128xf32>
    %243 = arith.negf %242 : vector<8x128xf32>
    %244 = math.exp %243 : vector<8x128xf32>
    %cst_70 = arith.constant 1.000000e+00 : f32
    %245 = vector.broadcast %cst_70 : f32 to vector<8x128xf32>
    %246 = arith.addf %245, %244 : vector<8x128xf32>
    %247 = arith.divf %245, %246 : vector<8x128xf32>
    %248 = vector.extract_strided_slice %241 {offsets = [0, 128], sizes = [8, 128], strides = [1, 1]} : vector<8x512xf32> to vector<8x128xf32>
    %249 = arith.negf %248 : vector<8x128xf32>
    %250 = math.exp %249 : vector<8x128xf32>
    %cst_71 = arith.constant 1.000000e+00 : f32
    %251 = vector.broadcast %cst_71 : f32 to vector<8x128xf32>
    %252 = arith.addf %251, %250 : vector<8x128xf32>
    %253 = arith.divf %251, %252 : vector<8x128xf32>
    %254 = vector.extract_strided_slice %241 {offsets = [0, 256], sizes = [8, 128], strides = [1, 1]} : vector<8x512xf32> to vector<8x128xf32>
    %255 = math.tanh %254 : vector<8x128xf32>
    %256 = vector.extract_strided_slice %241 {offsets = [0, 384], sizes = [8, 128], strides = [1, 1]} : vector<8x512xf32> to vector<8x128xf32>
    %257 = arith.negf %256 : vector<8x128xf32>
    %258 = math.exp %257 : vector<8x128xf32>
    %cst_72 = arith.constant 1.000000e+00 : f32
    %259 = vector.broadcast %cst_72 : f32 to vector<8x128xf32>
    %260 = arith.addf %259, %258 : vector<8x128xf32>
    %261 = arith.divf %259, %260 : vector<8x128xf32>
    %262 = arith.mulf %253, %233 : vector<8x128xf32>
    %263 = arith.mulf %247, %255 : vector<8x128xf32>
    %264 = arith.addf %262, %263 : vector<8x128xf32>
    %265 = math.tanh %264 : vector<8x128xf32>
    %266 = arith.mulf %261, %265 : vector<8x128xf32>
    %cst_73 = arith.constant 0.000000e+00 : f32
    %267 = vector.broadcast %cst_73 : f32 to vector<8x128xf32>
    %c0_i32 = arith.constant 0 : i32
    %268 = vector.broadcast %c0_i32 : i32 to vector<8x128xi32>
    %c0_i32_74 = arith.constant 0 : i32
    %269 = vector.broadcast %c0_i32_74 : i32 to vector<8x128xi32>
    %270 = arith.cmpi eq, %14, %269 : vector<8x128xi32>
    %c0_75 = arith.constant 0 : index
    %c0_76 = arith.constant 0 : index
    %271 = memref.load %arg2[%c0_75, %c0_76] : memref<7x8xi32, #tpu.memory_space<smem>>
    %272 = vector.broadcast %271 : i32 to vector<8x128xi32>
    %273 = arith.select %270, %272, %268 : vector<8x128xi1>, vector<8x128xi32>
    %c1_i32 = arith.constant 1 : i32
    %274 = vector.broadcast %c1_i32 : i32 to vector<8x128xi32>
    %275 = arith.cmpi eq, %14, %274 : vector<8x128xi32>
    %c0_77 = arith.constant 0 : index
    %c1_78 = arith.constant 1 : index
    %276 = memref.load %arg2[%c0_77, %c1_78] : memref<7x8xi32, #tpu.memory_space<smem>>
    %277 = vector.broadcast %276 : i32 to vector<8x128xi32>
    %278 = arith.select %275, %277, %273 : vector<8x128xi1>, vector<8x128xi32>
    %c2_i32 = arith.constant 2 : i32
    %279 = vector.broadcast %c2_i32 : i32 to vector<8x128xi32>
    %280 = arith.cmpi eq, %14, %279 : vector<8x128xi32>
    %c0_79 = arith.constant 0 : index
    %c2_80 = arith.constant 2 : index
    %281 = memref.load %arg2[%c0_79, %c2_80] : memref<7x8xi32, #tpu.memory_space<smem>>
    %282 = vector.broadcast %281 : i32 to vector<8x128xi32>
    %283 = arith.select %280, %282, %278 : vector<8x128xi1>, vector<8x128xi32>
    %c3_i32 = arith.constant 3 : i32
    %284 = vector.broadcast %c3_i32 : i32 to vector<8x128xi32>
    %285 = arith.cmpi eq, %14, %284 : vector<8x128xi32>
    %c0_81 = arith.constant 0 : index
    %c3_82 = arith.constant 3 : index
    %286 = memref.load %arg2[%c0_81, %c3_82] : memref<7x8xi32, #tpu.memory_space<smem>>
    %287 = vector.broadcast %286 : i32 to vector<8x128xi32>
    %288 = arith.select %285, %287, %283 : vector<8x128xi1>, vector<8x128xi32>
    %c4_i32 = arith.constant 4 : i32
    %289 = vector.broadcast %c4_i32 : i32 to vector<8x128xi32>
    %290 = arith.cmpi eq, %14, %289 : vector<8x128xi32>
    %c0_83 = arith.constant 0 : index
    %c4_84 = arith.constant 4 : index
    %291 = memref.load %arg2[%c0_83, %c4_84] : memref<7x8xi32, #tpu.memory_space<smem>>
    %292 = vector.broadcast %291 : i32 to vector<8x128xi32>
    %293 = arith.select %290, %292, %288 : vector<8x128xi1>, vector<8x128xi32>
    %c5_i32 = arith.constant 5 : i32
    %294 = vector.broadcast %c5_i32 : i32 to vector<8x128xi32>
    %295 = arith.cmpi eq, %14, %294 : vector<8x128xi32>
    %c0_85 = arith.constant 0 : index
    %c5_86 = arith.constant 5 : index
    %296 = memref.load %arg2[%c0_85, %c5_86] : memref<7x8xi32, #tpu.memory_space<smem>>
    %297 = vector.broadcast %296 : i32 to vector<8x128xi32>
    %298 = arith.select %295, %297, %293 : vector<8x128xi1>, vector<8x128xi32>
    %c6_i32 = arith.constant 6 : i32
    %299 = vector.broadcast %c6_i32 : i32 to vector<8x128xi32>
    %300 = arith.cmpi eq, %14, %299 : vector<8x128xi32>
    %c0_87 = arith.constant 0 : index
    %c6_88 = arith.constant 6 : index
    %301 = memref.load %arg2[%c0_87, %c6_88] : memref<7x8xi32, #tpu.memory_space<smem>>
    %302 = vector.broadcast %301 : i32 to vector<8x128xi32>
    %303 = arith.select %300, %302, %298 : vector<8x128xi1>, vector<8x128xi32>
    %c7_i32 = arith.constant 7 : i32
    %304 = vector.broadcast %c7_i32 : i32 to vector<8x128xi32>
    %305 = arith.cmpi eq, %14, %304 : vector<8x128xi32>
    %c0_89 = arith.constant 0 : index
    %c7_90 = arith.constant 7 : index
    %306 = memref.load %arg2[%c0_89, %c7_90] : memref<7x8xi32, #tpu.memory_space<smem>>
    %307 = vector.broadcast %306 : i32 to vector<8x128xi32>
    %308 = arith.select %305, %307, %303 : vector<8x128xi1>, vector<8x128xi32>
    %309 = arith.cmpi eq, %15, %308 : vector<8x128xi32>
    %310 = arith.extui %309 : vector<8x128xi1> to vector<8x128xi32>
    %311 = arith.sitofp %310 : vector<8x128xi32> to vector<8x128xf32>
    %c0_91 = arith.constant 0 : index
    %312 = memref.load %arg1[%c0_91] : memref<7xi32, #tpu.memory_space<smem>>
    %c0_i32_92 = arith.constant 0 : i32
    %313 = arith.cmpi ne, %312, %c0_i32_92 : i32
    %314 = arith.extui %313 : i1 to i32
    %315 = arith.sitofp %314 : i32 to f32
    %316 = vector.broadcast %315 : f32 to vector<8x128xf32>
    %317 = arith.mulf %316, %311 : vector<8x128xf32>
    %cst_93 = arith.constant 1.000000e+00 : f32
    %318 = arith.subf %cst_93, %315 : f32
    %319 = vector.broadcast %318 : f32 to vector<8x128xf32>
    %320 = arith.mulf %319, %267 : vector<8x128xf32>
    %321 = arith.addf %317, %320 : vector<8x128xf32>
    %cst_94 = arith.constant dense<0.000000e+00> : vector<8x512xf32>
    %322 = tpu.matmul %321, %5, %cst_94 {dimension_numbers = #tpu.dot_dimension_numbers<[1], [0], [0], [1], [0, 0, 1, 1], [], []>} : vector<8x128xf32>, vector<128x512xf32>, vector<8x512xf32> -> vector<8x512xf32>
    %cst_95 = arith.constant dense<0.000000e+00> : vector<8x512xf32>
    %323 = tpu.matmul %266, %6, %cst_95 {dimension_numbers = #tpu.dot_dimension_numbers<[1], [0], [0], [1], [0, 0, 1, 1], [], []>} : vector<8x128xf32>, vector<128x512xf32>, vector<8x512xf32> -> vector<8x512xf32>
    %324 = arith.addf %322, %323 : vector<8x512xf32>
    %325 = arith.addf %324, %9 : vector<8x512xf32>
    %326 = vector.extract_strided_slice %325 {offsets = [0, 0], sizes = [8, 128], strides = [1, 1]} : vector<8x512xf32> to vector<8x128xf32>
    %327 = arith.negf %326 : vector<8x128xf32>
    %328 = math.exp %327 : vector<8x128xf32>
    %cst_96 = arith.constant 1.000000e+00 : f32
    %329 = vector.broadcast %cst_96 : f32 to vector<8x128xf32>
    %330 = arith.addf %329, %328 : vector<8x128xf32>
    %331 = arith.divf %329, %330 : vector<8x128xf32>
    %332 = vector.extract_strided_slice %325 {offsets = [0, 128], sizes = [8, 128], strides = [1, 1]} : vector<8x512xf32> to vector<8x128xf32>
    %333 = arith.negf %332 : vector<8x128xf32>
    %334 = math.exp %333 : vector<8x128xf32>
    %cst_97 = arith.constant 1.000000e+00 : f32
    %335 = vector.broadcast %cst_97 : f32 to vector<8x128xf32>
    %336 = arith.addf %335, %334 : vector<8x128xf32>
    %337 = arith.divf %335, %336 : vector<8x128xf32>
    %338 = vector.extract_strided_slice %325 {offsets = [0, 256], sizes = [8, 128], strides = [1, 1]} : vector<8x512xf32> to vector<8x128xf32>
    %339 = math.tanh %338 : vector<8x128xf32>
    %340 = vector.extract_strided_slice %325 {offsets = [0, 384], sizes = [8, 128], strides = [1, 1]} : vector<8x512xf32> to vector<8x128xf32>
    %341 = arith.negf %340 : vector<8x128xf32>
    %342 = math.exp %341 : vector<8x128xf32>
    %cst_98 = arith.constant 1.000000e+00 : f32
    %343 = vector.broadcast %cst_98 : f32 to vector<8x128xf32>
    %344 = arith.addf %343, %342 : vector<8x128xf32>
    %345 = arith.divf %343, %344 : vector<8x128xf32>
    %346 = arith.mulf %337, %264 : vector<8x128xf32>
    %347 = arith.mulf %331, %339 : vector<8x128xf32>
    %348 = arith.addf %346, %347 : vector<8x128xf32>
    %349 = math.tanh %348 : vector<8x128xf32>
    %350 = arith.mulf %345, %349 : vector<8x128xf32>
    %cst_99 = arith.constant dense<0.000000e+00> : vector<8x128xf32>
    %351 = tpu.matmul %350, %10, %cst_99 {dimension_numbers = #tpu.dot_dimension_numbers<[1], [0], [0], [1], [0, 0, 1, 1], [], []>} : vector<8x128xf32>, vector<128x128xf32>, vector<8x128xf32> -> vector<8x128xf32>
    %352 = arith.addf %351, %13 : vector<8x128xf32>
    %c0_100 = arith.constant 0 : index
    %c0_101 = arith.constant 0 : index
    %c0_102 = arith.constant 0 : index
    %353 = vector.load %arg12[%c0_100, %c0_101, %c0_102] : memref<7x8x128xf32, #tpu.memory_space<vmem>>, vector<1x8x128xf32>
    %354 = vector.shape_cast %353 : vector<1x8x128xf32> to vector<8x128xf32>
    %355 = vector.shape_cast %352 : vector<8x128xf32> to vector<1x8x128xf32>
    tpu.vector_store %arg12[%c0_100, %c0_101, %c0_102], %355 {strides = array<i32>} : memref<7x8x128xf32, #tpu.memory_space<vmem>>, vector<1x8x128xf32>,
    %cst_103 = arith.constant dense<0xFF800000> : vector<8xf32>
    %356 = vector.multi_reduction <maximumf>, %352, %cst_103 [1] : vector<8x128xf32> to vector<8xf32>
    %357 = vector.shape_cast %356 : vector<8xf32> to vector<8x1xf32>
    %358 = vector.broadcast %357 : vector<8x1xf32> to vector<8x128xf32>
    %359 = arith.cmpf oge, %352, %358 : vector<8x128xf32>
    %cst_104 = arith.constant 1.280000e+02 : f32
    %360 = vector.broadcast %cst_104 : f32 to vector<8x128xf32>
    %361 = arith.select %359, %16, %360 : vector<8x128xi1>, vector<8x128xf32>
    %cst_105 = arith.constant dense<0x7F800000> : vector<8xf32>
    %362 = vector.multi_reduction <minimumf>, %361, %cst_105 [1] : vector<8x128xf32> to vector<8xf32>
    %363 = vector.shape_cast %362 : vector<8xf32> to vector<8x1xf32>
    %364 = vector.broadcast %363 : vector<8x1xf32> to vector<8x128xf32>
    %365 = arith.cmpf oeq, %16, %364 : vector<8x128xf32>
    %366 = arith.extui %365 : vector<8x128xi1> to vector<8x128xi32>
    %367 = arith.sitofp %366 : vector<8x128xi32> to vector<8x128xf32>
    %c0_i32_106 = arith.constant 0 : i32
    %368 = vector.broadcast %c0_i32_106 : i32 to vector<8x128xi32>
    %c0_i32_107 = arith.constant 0 : i32
    %369 = vector.broadcast %c0_i32_107 : i32 to vector<8x128xi32>
    %370 = arith.cmpi eq, %14, %369 : vector<8x128xi32>
    %c1_108 = arith.constant 1 : index
    %c0_109 = arith.constant 0 : index
    %371 = memref.load %arg2[%c1_108, %c0_109] : memref<7x8xi32, #tpu.memory_space<smem>>
    %372 = vector.broadcast %371 : i32 to vector<8x128xi32>
    %373 = arith.select %370, %372, %368 : vector<8x128xi1>, vector<8x128xi32>
    %c1_i32_110 = arith.constant 1 : i32
    %374 = vector.broadcast %c1_i32_110 : i32 to vector<8x128xi32>
    %375 = arith.cmpi eq, %14, %374 : vector<8x128xi32>
    %c1_111 = arith.constant 1 : index
    %c1_112 = arith.constant 1 : index
    %376 = memref.load %arg2[%c1_111, %c1_112] : memref<7x8xi32, #tpu.memory_space<smem>>
    %377 = vector.broadcast %376 : i32 to vector<8x128xi32>
    %378 = arith.select %375, %377, %373 : vector<8x128xi1>, vector<8x128xi32>
    %c2_i32_113 = arith.constant 2 : i32
    %379 = vector.broadcast %c2_i32_113 : i32 to vector<8x128xi32>
    %380 = arith.cmpi eq, %14, %379 : vector<8x128xi32>
    %c1_114 = arith.constant 1 : index
    %c2_115 = arith.constant 2 : index
    %381 = memref.load %arg2[%c1_114, %c2_115] : memref<7x8xi32, #tpu.memory_space<smem>>
    %382 = vector.broadcast %381 : i32 to vector<8x128xi32>
    %383 = arith.select %380, %382, %378 : vector<8x128xi1>, vector<8x128xi32>
    %c3_i32_116 = arith.constant 3 : i32
    %384 = vector.broadcast %c3_i32_116 : i32 to vector<8x128xi32>
    %385 = arith.cmpi eq, %14, %384 : vector<8x128xi32>
    %c1_117 = arith.constant 1 : index
    %c3_118 = arith.constant 3 : index
    %386 = memref.load %arg2[%c1_117, %c3_118] : memref<7x8xi32, #tpu.memory_space<smem>>
    %387 = vector.broadcast %386 : i32 to vector<8x128xi32>
    %388 = arith.select %385, %387, %383 : vector<8x128xi1>, vector<8x128xi32>
    %c4_i32_119 = arith.constant 4 : i32
    %389 = vector.broadcast %c4_i32_119 : i32 to vector<8x128xi32>
    %390 = arith.cmpi eq, %14, %389 : vector<8x128xi32>
    %c1_120 = arith.constant 1 : index
    %c4_121 = arith.constant 4 : index
    %391 = memref.load %arg2[%c1_120, %c4_121] : memref<7x8xi32, #tpu.memory_space<smem>>
    %392 = vector.broadcast %391 : i32 to vector<8x128xi32>
    %393 = arith.select %390, %392, %388 : vector<8x128xi1>, vector<8x128xi32>
    %c5_i32_122 = arith.constant 5 : i32
    %394 = vector.broadcast %c5_i32_122 : i32 to vector<8x128xi32>
    %395 = arith.cmpi eq, %14, %394 : vector<8x128xi32>
    %c1_123 = arith.constant 1 : index
    %c5_124 = arith.constant 5 : index
    %396 = memref.load %arg2[%c1_123, %c5_124] : memref<7x8xi32, #tpu.memory_space<smem>>
    %397 = vector.broadcast %396 : i32 to vector<8x128xi32>
    %398 = arith.select %395, %397, %393 : vector<8x128xi1>, vector<8x128xi32>
    %c6_i32_125 = arith.constant 6 : i32
    %399 = vector.broadcast %c6_i32_125 : i32 to vector<8x128xi32>
    %400 = arith.cmpi eq, %14, %399 : vector<8x128xi32>
    %c1_126 = arith.constant 1 : index
    %c6_127 = arith.constant 6 : index
    %401 = memref.load %arg2[%c1_126, %c6_127] : memref<7x8xi32, #tpu.memory_space<smem>>
    %402 = vector.broadcast %401 : i32 to vector<8x128xi32>
    %403 = arith.select %400, %402, %398 : vector<8x128xi1>, vector<8x128xi32>
    %c7_i32_128 = arith.constant 7 : i32
    %404 = vector.broadcast %c7_i32_128 : i32 to vector<8x128xi32>
    %405 = arith.cmpi eq, %14, %404 : vector<8x128xi32>
    %c1_129 = arith.constant 1 : index
    %c7_130 = arith.constant 7 : index
    %406 = memref.load %arg2[%c1_129, %c7_130] : memref<7x8xi32, #tpu.memory_space<smem>>
    %407 = vector.broadcast %406 : i32 to vector<8x128xi32>
    %408 = arith.select %405, %407, %403 : vector<8x128xi1>, vector<8x128xi32>
    %409 = arith.cmpi eq, %15, %408 : vector<8x128xi32>
    %410 = arith.extui %409 : vector<8x128xi1> to vector<8x128xi32>
    %411 = arith.sitofp %410 : vector<8x128xi32> to vector<8x128xf32>
    %c1_131 = arith.constant 1 : index
    %412 = memref.load %arg1[%c1_131] : memref<7xi32, #tpu.memory_space<smem>>
    %c0_i32_132 = arith.constant 0 : i32
    %413 = arith.cmpi ne, %412, %c0_i32_132 : i32
    %414 = arith.extui %413 : i1 to i32
    %415 = arith.sitofp %414 : i32 to f32
    %416 = vector.broadcast %415 : f32 to vector<8x128xf32>
    %417 = arith.mulf %416, %411 : vector<8x128xf32>
    %cst_133 = arith.constant 1.000000e+00 : f32
    %418 = arith.subf %cst_133, %415 : f32
    %419 = vector.broadcast %418 : f32 to vector<8x128xf32>
    %420 = arith.mulf %419, %367 : vector<8x128xf32>
    %421 = arith.addf %417, %420 : vector<8x128xf32>
    %cst_134 = arith.constant dense<0.000000e+00> : vector<8x512xf32>
    %422 = tpu.matmul %421, %5, %cst_134 {dimension_numbers = #tpu.dot_dimension_numbers<[1], [0], [0], [1], [0, 0, 1, 1], [], []>} : vector<8x128xf32>, vector<128x512xf32>, vector<8x512xf32> -> vector<8x512xf32>
    %cst_135 = arith.constant dense<0.000000e+00> : vector<8x512xf32>
    %423 = tpu.matmul %350, %6, %cst_135 {dimension_numbers = #tpu.dot_dimension_numbers<[1], [0], [0], [1], [0, 0, 1, 1], [], []>} : vector<8x128xf32>, vector<128x512xf32>, vector<8x512xf32> -> vector<8x512xf32>
    %424 = arith.addf %422, %423 : vector<8x512xf32>
    %425 = arith.addf %424, %9 : vector<8x512xf32>
    %426 = vector.extract_strided_slice %425 {offsets = [0, 0], sizes = [8, 128], strides = [1, 1]} : vector<8x512xf32> to vector<8x128xf32>
    %427 = arith.negf %426 : vector<8x128xf32>
    %428 = math.exp %427 : vector<8x128xf32>
    %cst_136 = arith.constant 1.000000e+00 : f32
    %429 = vector.broadcast %cst_136 : f32 to vector<8x128xf32>
    %430 = arith.addf %429, %428 : vector<8x128xf32>
    %431 = arith.divf %429, %430 : vector<8x128xf32>
    %432 = vector.extract_strided_slice %425 {offsets = [0, 128], sizes = [8, 128], strides = [1, 1]} : vector<8x512xf32> to vector<8x128xf32>
    %433 = arith.negf %432 : vector<8x128xf32>
    %434 = math.exp %433 : vector<8x128xf32>
    %cst_137 = arith.constant 1.000000e+00 : f32
    %435 = vector.broadcast %cst_137 : f32 to vector<8x128xf32>
    %436 = arith.addf %435, %434 : vector<8x128xf32>
    %437 = arith.divf %435, %436 : vector<8x128xf32>
    %438 = vector.extract_strided_slice %425 {offsets = [0, 256], sizes = [8, 128], strides = [1, 1]} : vector<8x512xf32> to vector<8x128xf32>
    %439 = math.tanh %438 : vector<8x128xf32>
    %440 = vector.extract_strided_slice %425 {offsets = [0, 384], sizes = [8, 128], strides = [1, 1]} : vector<8x512xf32> to vector<8x128xf32>
    %441 = arith.negf %440 : vector<8x128xf32>
    %442 = math.exp %441 : vector<8x128xf32>
    %cst_138 = arith.constant 1.000000e+00 : f32
    %443 = vector.broadcast %cst_138 : f32 to vector<8x128xf32>
    %444 = arith.addf %443, %442 : vector<8x128xf32>
    %445 = arith.divf %443, %444 : vector<8x128xf32>
    %446 = arith.mulf %437, %348 : vector<8x128xf32>
    %447 = arith.mulf %431, %439 : vector<8x128xf32>
    %448 = arith.addf %446, %447 : vector<8x128xf32>
    %449 = math.tanh %448 : vector<8x128xf32>
    %450 = arith.mulf %445, %449 : vector<8x128xf32>
    %cst_139 = arith.constant dense<0.000000e+00> : vector<8x128xf32>
    %451 = tpu.matmul %450, %10, %cst_139 {dimension_numbers = #tpu.dot_dimension_numbers<[1], [0], [0], [1], [0, 0, 1, 1], [], []>} : vector<8x128xf32>, vector<128x128xf32>, vector<8x128xf32> -> vector<8x128xf32>
    %452 = arith.addf %451, %13 : vector<8x128xf32>
    %c1_140 = arith.constant 1 : index
    %c0_141 = arith.constant 0 : index
    %c0_142 = arith.constant 0 : index
    %453 = vector.load %arg12[%c1_140, %c0_141, %c0_142] : memref<7x8x128xf32, #tpu.memory_space<vmem>>, vector<1x8x128xf32>
    %454 = vector.shape_cast %453 : vector<1x8x128xf32> to vector<8x128xf32>
    %455 = vector.shape_cast %452 : vector<8x128xf32> to vector<1x8x128xf32>
    tpu.vector_store %arg12[%c1_140, %c0_141, %c0_142], %455 {strides = array<i32>} : memref<7x8x128xf32, #tpu.memory_space<vmem>>, vector<1x8x128xf32>,
    %cst_143 = arith.constant dense<0xFF800000> : vector<8xf32>
    %456 = vector.multi_reduction <maximumf>, %452, %cst_143 [1] : vector<8x128xf32> to vector<8xf32>
    %457 = vector.shape_cast %456 : vector<8xf32> to vector<8x1xf32>
    %458 = vector.broadcast %457 : vector<8x1xf32> to vector<8x128xf32>
    %459 = arith.cmpf oge, %452, %458 : vector<8x128xf32>
    %cst_144 = arith.constant 1.280000e+02 : f32
    %460 = vector.broadcast %cst_144 : f32 to vector<8x128xf32>
    %461 = arith.select %459, %16, %460 : vector<8x128xi1>, vector<8x128xf32>
    %cst_145 = arith.constant dense<0x7F800000> : vector<8xf32>
    %462 = vector.multi_reduction <minimumf>, %461, %cst_145 [1] : vector<8x128xf32> to vector<8xf32>
    %463 = vector.shape_cast %462 : vector<8xf32> to vector<8x1xf32>
    %464 = vector.broadcast %463 : vector<8x1xf32> to vector<8x128xf32>
    %465 = arith.cmpf oeq, %16, %464 : vector<8x128xf32>
    %466 = arith.extui %465 : vector<8x128xi1> to vector<8x128xi32>
    %467 = arith.sitofp %466 : vector<8x128xi32> to vector<8x128xf32>
    %c0_i32_146 = arith.constant 0 : i32
    %468 = vector.broadcast %c0_i32_146 : i32 to vector<8x128xi32>
    %c0_i32_147 = arith.constant 0 : i32
    %469 = vector.broadcast %c0_i32_147 : i32 to vector<8x128xi32>
    %470 = arith.cmpi eq, %14, %469 : vector<8x128xi32>
    %c2_148 = arith.constant 2 : index
    %c0_149 = arith.constant 0 : index
    %471 = memref.load %arg2[%c2_148, %c0_149] : memref<7x8xi32, #tpu.memory_space<smem>>
    %472 = vector.broadcast %471 : i32 to vector<8x128xi32>
    %473 = arith.select %470, %472, %468 : vector<8x128xi1>, vector<8x128xi32>
    %c1_i32_150 = arith.constant 1 : i32
    %474 = vector.broadcast %c1_i32_150 : i32 to vector<8x128xi32>
    %475 = arith.cmpi eq, %14, %474 : vector<8x128xi32>
    %c2_151 = arith.constant 2 : index
    %c1_152 = arith.constant 1 : index
    %476 = memref.load %arg2[%c2_151, %c1_152] : memref<7x8xi32, #tpu.memory_space<smem>>
    %477 = vector.broadcast %476 : i32 to vector<8x128xi32>
    %478 = arith.select %475, %477, %473 : vector<8x128xi1>, vector<8x128xi32>
    %c2_i32_153 = arith.constant 2 : i32
    %479 = vector.broadcast %c2_i32_153 : i32 to vector<8x128xi32>
    %480 = arith.cmpi eq, %14, %479 : vector<8x128xi32>
    %c2_154 = arith.constant 2 : index
    %c2_155 = arith.constant 2 : index
    %481 = memref.load %arg2[%c2_154, %c2_155] : memref<7x8xi32, #tpu.memory_space<smem>>
    %482 = vector.broadcast %481 : i32 to vector<8x128xi32>
    %483 = arith.select %480, %482, %478 : vector<8x128xi1>, vector<8x128xi32>
    %c3_i32_156 = arith.constant 3 : i32
    %484 = vector.broadcast %c3_i32_156 : i32 to vector<8x128xi32>
    %485 = arith.cmpi eq, %14, %484 : vector<8x128xi32>
    %c2_157 = arith.constant 2 : index
    %c3_158 = arith.constant 3 : index
    %486 = memref.load %arg2[%c2_157, %c3_158] : memref<7x8xi32, #tpu.memory_space<smem>>
    %487 = vector.broadcast %486 : i32 to vector<8x128xi32>
    %488 = arith.select %485, %487, %483 : vector<8x128xi1>, vector<8x128xi32>
    %c4_i32_159 = arith.constant 4 : i32
    %489 = vector.broadcast %c4_i32_159 : i32 to vector<8x128xi32>
    %490 = arith.cmpi eq, %14, %489 : vector<8x128xi32>
    %c2_160 = arith.constant 2 : index
    %c4_161 = arith.constant 4 : index
    %491 = memref.load %arg2[%c2_160, %c4_161] : memref<7x8xi32, #tpu.memory_space<smem>>
    %492 = vector.broadcast %491 : i32 to vector<8x128xi32>
    %493 = arith.select %490, %492, %488 : vector<8x128xi1>, vector<8x128xi32>
    %c5_i32_162 = arith.constant 5 : i32
    %494 = vector.broadcast %c5_i32_162 : i32 to vector<8x128xi32>
    %495 = arith.cmpi eq, %14, %494 : vector<8x128xi32>
    %c2_163 = arith.constant 2 : index
    %c5_164 = arith.constant 5 : index
    %496 = memref.load %arg2[%c2_163, %c5_164] : memref<7x8xi32, #tpu.memory_space<smem>>
    %497 = vector.broadcast %496 : i32 to vector<8x128xi32>
    %498 = arith.select %495, %497, %493 : vector<8x128xi1>, vector<8x128xi32>
    %c6_i32_165 = arith.constant 6 : i32
    %499 = vector.broadcast %c6_i32_165 : i32 to vector<8x128xi32>
    %500 = arith.cmpi eq, %14, %499 : vector<8x128xi32>
    %c2_166 = arith.constant 2 : index
    %c6_167 = arith.constant 6 : index
    %501 = memref.load %arg2[%c2_166, %c6_167] : memref<7x8xi32, #tpu.memory_space<smem>>
    %502 = vector.broadcast %501 : i32 to vector<8x128xi32>
    %503 = arith.select %500, %502, %498 : vector<8x128xi1>, vector<8x128xi32>
    %c7_i32_168 = arith.constant 7 : i32
    %504 = vector.broadcast %c7_i32_168 : i32 to vector<8x128xi32>
    %505 = arith.cmpi eq, %14, %504 : vector<8x128xi32>
    %c2_169 = arith.constant 2 : index
    %c7_170 = arith.constant 7 : index
    %506 = memref.load %arg2[%c2_169, %c7_170] : memref<7x8xi32, #tpu.memory_space<smem>>
    %507 = vector.broadcast %506 : i32 to vector<8x128xi32>
    %508 = arith.select %505, %507, %503 : vector<8x128xi1>, vector<8x128xi32>
    %509 = arith.cmpi eq, %15, %508 : vector<8x128xi32>
    %510 = arith.extui %509 : vector<8x128xi1> to vector<8x128xi32>
    %511 = arith.sitofp %510 : vector<8x128xi32> to vector<8x128xf32>
    %c2_171 = arith.constant 2 : index
    %512 = memref.load %arg1[%c2_171] : memref<7xi32, #tpu.memory_space<smem>>
    %c0_i32_172 = arith.constant 0 : i32
    %513 = arith.cmpi ne, %512, %c0_i32_172 : i32
    %514 = arith.extui %513 : i1 to i32
    %515 = arith.sitofp %514 : i32 to f32
    %516 = vector.broadcast %515 : f32 to vector<8x128xf32>
    %517 = arith.mulf %516, %511 : vector<8x128xf32>
    %cst_173 = arith.constant 1.000000e+00 : f32
    %518 = arith.subf %cst_173, %515 : f32
    %519 = vector.broadcast %518 : f32 to vector<8x128xf32>
    %520 = arith.mulf %519, %467 : vector<8x128xf32>
    %521 = arith.addf %517, %520 : vector<8x128xf32>
    %cst_174 = arith.constant dense<0.000000e+00> : vector<8x512xf32>
    %522 = tpu.matmul %521, %5, %cst_174 {dimension_numbers = #tpu.dot_dimension_numbers<[1], [0], [0], [1], [0, 0, 1, 1], [], []>} : vector<8x128xf32>, vector<128x512xf32>, vector<8x512xf32> -> vector<8x512xf32>
    %cst_175 = arith.constant dense<0.000000e+00> : vector<8x512xf32>
    %523 = tpu.matmul %450, %6, %cst_175 {dimension_numbers = #tpu.dot_dimension_numbers<[1], [0], [0], [1], [0, 0, 1, 1], [], []>} : vector<8x128xf32>, vector<128x512xf32>, vector<8x512xf32> -> vector<8x512xf32>
    %524 = arith.addf %522, %523 : vector<8x512xf32>
    %525 = arith.addf %524, %9 : vector<8x512xf32>
    %526 = vector.extract_strided_slice %525 {offsets = [0, 0], sizes = [8, 128], strides = [1, 1]} : vector<8x512xf32> to vector<8x128xf32>
    %527 = arith.negf %526 : vector<8x128xf32>
    %528 = math.exp %527 : vector<8x128xf32>
    %cst_176 = arith.constant 1.000000e+00 : f32
    %529 = vector.broadcast %cst_176 : f32 to vector<8x128xf32>
    %530 = arith.addf %529, %528 : vector<8x128xf32>
    %531 = arith.divf %529, %530 : vector<8x128xf32>
    %532 = vector.extract_strided_slice %525 {offsets = [0, 128], sizes = [8, 128], strides = [1, 1]} : vector<8x512xf32> to vector<8x128xf32>
    %533 = arith.negf %532 : vector<8x128xf32>
    %534 = math.exp %533 : vector<8x128xf32>
    %cst_177 = arith.constant 1.000000e+00 : f32
    %535 = vector.broadcast %cst_177 : f32 to vector<8x128xf32>
    %536 = arith.addf %535, %534 : vector<8x128xf32>
    %537 = arith.divf %535, %536 : vector<8x128xf32>
    %538 = vector.extract_strided_slice %525 {offsets = [0, 256], sizes = [8, 128], strides = [1, 1]} : vector<8x512xf32> to vector<8x128xf32>
    %539 = math.tanh %538 : vector<8x128xf32>
    %540 = vector.extract_strided_slice %525 {offsets = [0, 384], sizes = [8, 128], strides = [1, 1]} : vector<8x512xf32> to vector<8x128xf32>
    %541 = arith.negf %540 : vector<8x128xf32>
    %542 = math.exp %541 : vector<8x128xf32>
    %cst_178 = arith.constant 1.000000e+00 : f32
    %543 = vector.broadcast %cst_178 : f32 to vector<8x128xf32>
    %544 = arith.addf %543, %542 : vector<8x128xf32>
    %545 = arith.divf %543, %544 : vector<8x128xf32>
    %546 = arith.mulf %537, %448 : vector<8x128xf32>
    %547 = arith.mulf %531, %539 : vector<8x128xf32>
    %548 = arith.addf %546, %547 : vector<8x128xf32>
    %549 = math.tanh %548 : vector<8x128xf32>
    %550 = arith.mulf %545, %549 : vector<8x128xf32>
    %cst_179 = arith.constant dense<0.000000e+00> : vector<8x128xf32>
    %551 = tpu.matmul %550, %10, %cst_179 {dimension_numbers = #tpu.dot_dimension_numbers<[1], [0], [0], [1], [0, 0, 1, 1], [], []>} : vector<8x128xf32>, vector<128x128xf32>, vector<8x128xf32> -> vector<8x128xf32>
    %552 = arith.addf %551, %13 : vector<8x128xf32>
    %c2_180 = arith.constant 2 : index
    %c0_181 = arith.constant 0 : index
    %c0_182 = arith.constant 0 : index
    %553 = vector.load %arg12[%c2_180, %c0_181, %c0_182] : memref<7x8x128xf32, #tpu.memory_space<vmem>>, vector<1x8x128xf32>
    %554 = vector.shape_cast %553 : vector<1x8x128xf32> to vector<8x128xf32>
    %555 = vector.shape_cast %552 : vector<8x128xf32> to vector<1x8x128xf32>
    tpu.vector_store %arg12[%c2_180, %c0_181, %c0_182], %555 {strides = array<i32>} : memref<7x8x128xf32, #tpu.memory_space<vmem>>, vector<1x8x128xf32>,
    %cst_183 = arith.constant dense<0xFF800000> : vector<8xf32>
    %556 = vector.multi_reduction <maximumf>, %552, %cst_183 [1] : vector<8x128xf32> to vector<8xf32>
    %557 = vector.shape_cast %556 : vector<8xf32> to vector<8x1xf32>
    %558 = vector.broadcast %557 : vector<8x1xf32> to vector<8x128xf32>
    %559 = arith.cmpf oge, %552, %558 : vector<8x128xf32>
    %cst_184 = arith.constant 1.280000e+02 : f32
    %560 = vector.broadcast %cst_184 : f32 to vector<8x128xf32>
    %561 = arith.select %559, %16, %560 : vector<8x128xi1>, vector<8x128xf32>
    %cst_185 = arith.constant dense<0x7F800000> : vector<8xf32>
    %562 = vector.multi_reduction <minimumf>, %561, %cst_185 [1] : vector<8x128xf32> to vector<8xf32>
    %563 = vector.shape_cast %562 : vector<8xf32> to vector<8x1xf32>
    %564 = vector.broadcast %563 : vector<8x1xf32> to vector<8x128xf32>
    %565 = arith.cmpf oeq, %16, %564 : vector<8x128xf32>
    %566 = arith.extui %565 : vector<8x128xi1> to vector<8x128xi32>
    %567 = arith.sitofp %566 : vector<8x128xi32> to vector<8x128xf32>
    %c0_i32_186 = arith.constant 0 : i32
    %568 = vector.broadcast %c0_i32_186 : i32 to vector<8x128xi32>
    %c0_i32_187 = arith.constant 0 : i32
    %569 = vector.broadcast %c0_i32_187 : i32 to vector<8x128xi32>
    %570 = arith.cmpi eq, %14, %569 : vector<8x128xi32>
    %c3_188 = arith.constant 3 : index
    %c0_189 = arith.constant 0 : index
    %571 = memref.load %arg2[%c3_188, %c0_189] : memref<7x8xi32, #tpu.memory_space<smem>>
    %572 = vector.broadcast %571 : i32 to vector<8x128xi32>
    %573 = arith.select %570, %572, %568 : vector<8x128xi1>, vector<8x128xi32>
    %c1_i32_190 = arith.constant 1 : i32
    %574 = vector.broadcast %c1_i32_190 : i32 to vector<8x128xi32>
    %575 = arith.cmpi eq, %14, %574 : vector<8x128xi32>
    %c3_191 = arith.constant 3 : index
    %c1_192 = arith.constant 1 : index
    %576 = memref.load %arg2[%c3_191, %c1_192] : memref<7x8xi32, #tpu.memory_space<smem>>
    %577 = vector.broadcast %576 : i32 to vector<8x128xi32>
    %578 = arith.select %575, %577, %573 : vector<8x128xi1>, vector<8x128xi32>
    %c2_i32_193 = arith.constant 2 : i32
    %579 = vector.broadcast %c2_i32_193 : i32 to vector<8x128xi32>
    %580 = arith.cmpi eq, %14, %579 : vector<8x128xi32>
    %c3_194 = arith.constant 3 : index
    %c2_195 = arith.constant 2 : index
    %581 = memref.load %arg2[%c3_194, %c2_195] : memref<7x8xi32, #tpu.memory_space<smem>>
    %582 = vector.broadcast %581 : i32 to vector<8x128xi32>
    %583 = arith.select %580, %582, %578 : vector<8x128xi1>, vector<8x128xi32>
    %c3_i32_196 = arith.constant 3 : i32
    %584 = vector.broadcast %c3_i32_196 : i32 to vector<8x128xi32>
    %585 = arith.cmpi eq, %14, %584 : vector<8x128xi32>
    %c3_197 = arith.constant 3 : index
    %c3_198 = arith.constant 3 : index
    %586 = memref.load %arg2[%c3_197, %c3_198] : memref<7x8xi32, #tpu.memory_space<smem>>
    %587 = vector.broadcast %586 : i32 to vector<8x128xi32>
    %588 = arith.select %585, %587, %583 : vector<8x128xi1>, vector<8x128xi32>
    %c4_i32_199 = arith.constant 4 : i32
    %589 = vector.broadcast %c4_i32_199 : i32 to vector<8x128xi32>
    %590 = arith.cmpi eq, %14, %589 : vector<8x128xi32>
    %c3_200 = arith.constant 3 : index
    %c4_201 = arith.constant 4 : index
    %591 = memref.load %arg2[%c3_200, %c4_201] : memref<7x8xi32, #tpu.memory_space<smem>>
    %592 = vector.broadcast %591 : i32 to vector<8x128xi32>
    %593 = arith.select %590, %592, %588 : vector<8x128xi1>, vector<8x128xi32>
    %c5_i32_202 = arith.constant 5 : i32
    %594 = vector.broadcast %c5_i32_202 : i32 to vector<8x128xi32>
    %595 = arith.cmpi eq, %14, %594 : vector<8x128xi32>
    %c3_203 = arith.constant 3 : index
    %c5_204 = arith.constant 5 : index
    %596 = memref.load %arg2[%c3_203, %c5_204] : memref<7x8xi32, #tpu.memory_space<smem>>
    %597 = vector.broadcast %596 : i32 to vector<8x128xi32>
    %598 = arith.select %595, %597, %593 : vector<8x128xi1>, vector<8x128xi32>
    %c6_i32_205 = arith.constant 6 : i32
    %599 = vector.broadcast %c6_i32_205 : i32 to vector<8x128xi32>
    %600 = arith.cmpi eq, %14, %599 : vector<8x128xi32>
    %c3_206 = arith.constant 3 : index
    %c6_207 = arith.constant 6 : index
    %601 = memref.load %arg2[%c3_206, %c6_207] : memref<7x8xi32, #tpu.memory_space<smem>>
    %602 = vector.broadcast %601 : i32 to vector<8x128xi32>
    %603 = arith.select %600, %602, %598 : vector<8x128xi1>, vector<8x128xi32>
    %c7_i32_208 = arith.constant 7 : i32
    %604 = vector.broadcast %c7_i32_208 : i32 to vector<8x128xi32>
    %605 = arith.cmpi eq, %14, %604 : vector<8x128xi32>
    %c3_209 = arith.constant 3 : index
    %c7_210 = arith.constant 7 : index
    %606 = memref.load %arg2[%c3_209, %c7_210] : memref<7x8xi32, #tpu.memory_space<smem>>
    %607 = vector.broadcast %606 : i32 to vector<8x128xi32>
    %608 = arith.select %605, %607, %603 : vector<8x128xi1>, vector<8x128xi32>
    %609 = arith.cmpi eq, %15, %608 : vector<8x128xi32>
    %610 = arith.extui %609 : vector<8x128xi1> to vector<8x128xi32>
    %611 = arith.sitofp %610 : vector<8x128xi32> to vector<8x128xf32>
    %c3_211 = arith.constant 3 : index
    %612 = memref.load %arg1[%c3_211] : memref<7xi32, #tpu.memory_space<smem>>
    %c0_i32_212 = arith.constant 0 : i32
    %613 = arith.cmpi ne, %612, %c0_i32_212 : i32
    %614 = arith.extui %613 : i1 to i32
    %615 = arith.sitofp %614 : i32 to f32
    %616 = vector.broadcast %615 : f32 to vector<8x128xf32>
    %617 = arith.mulf %616, %611 : vector<8x128xf32>
    %cst_213 = arith.constant 1.000000e+00 : f32
    %618 = arith.subf %cst_213, %615 : f32
    %619 = vector.broadcast %618 : f32 to vector<8x128xf32>
    %620 = arith.mulf %619, %567 : vector<8x128xf32>
    %621 = arith.addf %617, %620 : vector<8x128xf32>
    %cst_214 = arith.constant dense<0.000000e+00> : vector<8x512xf32>
    %622 = tpu.matmul %621, %5, %cst_214 {dimension_numbers = #tpu.dot_dimension_numbers<[1], [0], [0], [1], [0, 0, 1, 1], [], []>} : vector<8x128xf32>, vector<128x512xf32>, vector<8x512xf32> -> vector<8x512xf32>
    %cst_215 = arith.constant dense<0.000000e+00> : vector<8x512xf32>
    %623 = tpu.matmul %550, %6, %cst_215 {dimension_numbers = #tpu.dot_dimension_numbers<[1], [0], [0], [1], [0, 0, 1, 1], [], []>} : vector<8x128xf32>, vector<128x512xf32>, vector<8x512xf32> -> vector<8x512xf32>
    %624 = arith.addf %622, %623 : vector<8x512xf32>
    %625 = arith.addf %624, %9 : vector<8x512xf32>
    %626 = vector.extract_strided_slice %625 {offsets = [0, 0], sizes = [8, 128], strides = [1, 1]} : vector<8x512xf32> to vector<8x128xf32>
    %627 = arith.negf %626 : vector<8x128xf32>
    %628 = math.exp %627 : vector<8x128xf32>
    %cst_216 = arith.constant 1.000000e+00 : f32
    %629 = vector.broadcast %cst_216 : f32 to vector<8x128xf32>
    %630 = arith.addf %629, %628 : vector<8x128xf32>
    %631 = arith.divf %629, %630 : vector<8x128xf32>
    %632 = vector.extract_strided_slice %625 {offsets = [0, 128], sizes = [8, 128], strides = [1, 1]} : vector<8x512xf32> to vector<8x128xf32>
    %633 = arith.negf %632 : vector<8x128xf32>
    %634 = math.exp %633 : vector<8x128xf32>
    %cst_217 = arith.constant 1.000000e+00 : f32
    %635 = vector.broadcast %cst_217 : f32 to vector<8x128xf32>
    %636 = arith.addf %635, %634 : vector<8x128xf32>
    %637 = arith.divf %635, %636 : vector<8x128xf32>
    %638 = vector.extract_strided_slice %625 {offsets = [0, 256], sizes = [8, 128], strides = [1, 1]} : vector<8x512xf32> to vector<8x128xf32>
    %639 = math.tanh %638 : vector<8x128xf32>
    %640 = vector.extract_strided_slice %625 {offsets = [0, 384], sizes = [8, 128], strides = [1, 1]} : vector<8x512xf32> to vector<8x128xf32>
    %641 = arith.negf %640 : vector<8x128xf32>
    %642 = math.exp %641 : vector<8x128xf32>
    %cst_218 = arith.constant 1.000000e+00 : f32
    %643 = vector.broadcast %cst_218 : f32 to vector<8x128xf32>
    %644 = arith.addf %643, %642 : vector<8x128xf32>
    %645 = arith.divf %643, %644 : vector<8x128xf32>
    %646 = arith.mulf %637, %548 : vector<8x128xf32>
    %647 = arith.mulf %631, %639 : vector<8x128xf32>
    %648 = arith.addf %646, %647 : vector<8x128xf32>
    %649 = math.tanh %648 : vector<8x128xf32>
    %650 = arith.mulf %645, %649 : vector<8x128xf32>
    %cst_219 = arith.constant dense<0.000000e+00> : vector<8x128xf32>
    %651 = tpu.matmul %650, %10, %cst_219 {dimension_numbers = #tpu.dot_dimension_numbers<[1], [0], [0], [1], [0, 0, 1, 1], [], []>} : vector<8x128xf32>, vector<128x128xf32>, vector<8x128xf32> -> vector<8x128xf32>
    %652 = arith.addf %651, %13 : vector<8x128xf32>
    %c3_220 = arith.constant 3 : index
    %c0_221 = arith.constant 0 : index
    %c0_222 = arith.constant 0 : index
    %653 = vector.load %arg12[%c3_220, %c0_221, %c0_222] : memref<7x8x128xf32, #tpu.memory_space<vmem>>, vector<1x8x128xf32>
    %654 = vector.shape_cast %653 : vector<1x8x128xf32> to vector<8x128xf32>
    %655 = vector.shape_cast %652 : vector<8x128xf32> to vector<1x8x128xf32>
    tpu.vector_store %arg12[%c3_220, %c0_221, %c0_222], %655 {strides = array<i32>} : memref<7x8x128xf32, #tpu.memory_space<vmem>>, vector<1x8x128xf32>,
    %cst_223 = arith.constant dense<0xFF800000> : vector<8xf32>
    %656 = vector.multi_reduction <maximumf>, %652, %cst_223 [1] : vector<8x128xf32> to vector<8xf32>
    %657 = vector.shape_cast %656 : vector<8xf32> to vector<8x1xf32>
    %658 = vector.broadcast %657 : vector<8x1xf32> to vector<8x128xf32>
    %659 = arith.cmpf oge, %652, %658 : vector<8x128xf32>
    %cst_224 = arith.constant 1.280000e+02 : f32
    %660 = vector.broadcast %cst_224 : f32 to vector<8x128xf32>
    %661 = arith.select %659, %16, %660 : vector<8x128xi1>, vector<8x128xf32>
    %cst_225 = arith.constant dense<0x7F800000> : vector<8xf32>
    %662 = vector.multi_reduction <minimumf>, %661, %cst_225 [1] : vector<8x128xf32> to vector<8xf32>
    %663 = vector.shape_cast %662 : vector<8xf32> to vector<8x1xf32>
    %664 = vector.broadcast %663 : vector<8x1xf32> to vector<8x128xf32>
    %665 = arith.cmpf oeq, %16, %664 : vector<8x128xf32>
    %666 = arith.extui %665 : vector<8x128xi1> to vector<8x128xi32>
    %667 = arith.sitofp %666 : vector<8x128xi32> to vector<8x128xf32>
    %c0_i32_226 = arith.constant 0 : i32
    %668 = vector.broadcast %c0_i32_226 : i32 to vector<8x128xi32>
    %c0_i32_227 = arith.constant 0 : i32
    %669 = vector.broadcast %c0_i32_227 : i32 to vector<8x128xi32>
    %670 = arith.cmpi eq, %14, %669 : vector<8x128xi32>
    %c4_228 = arith.constant 4 : index
    %c0_229 = arith.constant 0 : index
    %671 = memref.load %arg2[%c4_228, %c0_229] : memref<7x8xi32, #tpu.memory_space<smem>>
    %672 = vector.broadcast %671 : i32 to vector<8x128xi32>
    %673 = arith.select %670, %672, %668 : vector<8x128xi1>, vector<8x128xi32>
    %c1_i32_230 = arith.constant 1 : i32
    %674 = vector.broadcast %c1_i32_230 : i32 to vector<8x128xi32>
    %675 = arith.cmpi eq, %14, %674 : vector<8x128xi32>
    %c4_231 = arith.constant 4 : index
    %c1_232 = arith.constant 1 : index
    %676 = memref.load %arg2[%c4_231, %c1_232] : memref<7x8xi32, #tpu.memory_space<smem>>
    %677 = vector.broadcast %676 : i32 to vector<8x128xi32>
    %678 = arith.select %675, %677, %673 : vector<8x128xi1>, vector<8x128xi32>
    %c2_i32_233 = arith.constant 2 : i32
    %679 = vector.broadcast %c2_i32_233 : i32 to vector<8x128xi32>
    %680 = arith.cmpi eq, %14, %679 : vector<8x128xi32>
    %c4_234 = arith.constant 4 : index
    %c2_235 = arith.constant 2 : index
    %681 = memref.load %arg2[%c4_234, %c2_235] : memref<7x8xi32, #tpu.memory_space<smem>>
    %682 = vector.broadcast %681 : i32 to vector<8x128xi32>
    %683 = arith.select %680, %682, %678 : vector<8x128xi1>, vector<8x128xi32>
    %c3_i32_236 = arith.constant 3 : i32
    %684 = vector.broadcast %c3_i32_236 : i32 to vector<8x128xi32>
    %685 = arith.cmpi eq, %14, %684 : vector<8x128xi32>
    %c4_237 = arith.constant 4 : index
    %c3_238 = arith.constant 3 : index
    %686 = memref.load %arg2[%c4_237, %c3_238] : memref<7x8xi32, #tpu.memory_space<smem>>
    %687 = vector.broadcast %686 : i32 to vector<8x128xi32>
    %688 = arith.select %685, %687, %683 : vector<8x128xi1>, vector<8x128xi32>
    %c4_i32_239 = arith.constant 4 : i32
    %689 = vector.broadcast %c4_i32_239 : i32 to vector<8x128xi32>
    %690 = arith.cmpi eq, %14, %689 : vector<8x128xi32>
    %c4_240 = arith.constant 4 : index
    %c4_241 = arith.constant 4 : index
    %691 = memref.load %arg2[%c4_240, %c4_241] : memref<7x8xi32, #tpu.memory_space<smem>>
    %692 = vector.broadcast %691 : i32 to vector<8x128xi32>
    %693 = arith.select %690, %692, %688 : vector<8x128xi1>, vector<8x128xi32>
    %c5_i32_242 = arith.constant 5 : i32
    %694 = vector.broadcast %c5_i32_242 : i32 to vector<8x128xi32>
    %695 = arith.cmpi eq, %14, %694 : vector<8x128xi32>
    %c4_243 = arith.constant 4 : index
    %c5_244 = arith.constant 5 : index
    %696 = memref.load %arg2[%c4_243, %c5_244] : memref<7x8xi32, #tpu.memory_space<smem>>
    %697 = vector.broadcast %696 : i32 to vector<8x128xi32>
    %698 = arith.select %695, %697, %693 : vector<8x128xi1>, vector<8x128xi32>
    %c6_i32_245 = arith.constant 6 : i32
    %699 = vector.broadcast %c6_i32_245 : i32 to vector<8x128xi32>
    %700 = arith.cmpi eq, %14, %699 : vector<8x128xi32>
    %c4_246 = arith.constant 4 : index
    %c6_247 = arith.constant 6 : index
    %701 = memref.load %arg2[%c4_246, %c6_247] : memref<7x8xi32, #tpu.memory_space<smem>>
    %702 = vector.broadcast %701 : i32 to vector<8x128xi32>
    %703 = arith.select %700, %702, %698 : vector<8x128xi1>, vector<8x128xi32>
    %c7_i32_248 = arith.constant 7 : i32
    %704 = vector.broadcast %c7_i32_248 : i32 to vector<8x128xi32>
    %705 = arith.cmpi eq, %14, %704 : vector<8x128xi32>
    %c4_249 = arith.constant 4 : index
    %c7_250 = arith.constant 7 : index
    %706 = memref.load %arg2[%c4_249, %c7_250] : memref<7x8xi32, #tpu.memory_space<smem>>
    %707 = vector.broadcast %706 : i32 to vector<8x128xi32>
    %708 = arith.select %705, %707, %703 : vector<8x128xi1>, vector<8x128xi32>
    %709 = arith.cmpi eq, %15, %708 : vector<8x128xi32>
    %710 = arith.extui %709 : vector<8x128xi1> to vector<8x128xi32>
    %711 = arith.sitofp %710 : vector<8x128xi32> to vector<8x128xf32>
    %c4_251 = arith.constant 4 : index
    %712 = memref.load %arg1[%c4_251] : memref<7xi32, #tpu.memory_space<smem>>
    %c0_i32_252 = arith.constant 0 : i32
    %713 = arith.cmpi ne, %712, %c0_i32_252 : i32
    %714 = arith.extui %713 : i1 to i32
    %715 = arith.sitofp %714 : i32 to f32
    %716 = vector.broadcast %715 : f32 to vector<8x128xf32>
    %717 = arith.mulf %716, %711 : vector<8x128xf32>
    %cst_253 = arith.constant 1.000000e+00 : f32
    %718 = arith.subf %cst_253, %715 : f32
    %719 = vector.broadcast %718 : f32 to vector<8x128xf32>
    %720 = arith.mulf %719, %667 : vector<8x128xf32>
    %721 = arith.addf %717, %720 : vector<8x128xf32>
    %cst_254 = arith.constant dense<0.000000e+00> : vector<8x512xf32>
    %722 = tpu.matmul %721, %5, %cst_254 {dimension_numbers = #tpu.dot_dimension_numbers<[1], [0], [0], [1], [0, 0, 1, 1], [], []>} : vector<8x128xf32>, vector<128x512xf32>, vector<8x512xf32> -> vector<8x512xf32>
    %cst_255 = arith.constant dense<0.000000e+00> : vector<8x512xf32>
    %723 = tpu.matmul %650, %6, %cst_255 {dimension_numbers = #tpu.dot_dimension_numbers<[1], [0], [0], [1], [0, 0, 1, 1], [], []>} : vector<8x128xf32>, vector<128x512xf32>, vector<8x512xf32> -> vector<8x512xf32>
    %724 = arith.addf %722, %723 : vector<8x512xf32>
    %725 = arith.addf %724, %9 : vector<8x512xf32>
    %726 = vector.extract_strided_slice %725 {offsets = [0, 0], sizes = [8, 128], strides = [1, 1]} : vector<8x512xf32> to vector<8x128xf32>
    %727 = arith.negf %726 : vector<8x128xf32>
    %728 = math.exp %727 : vector<8x128xf32>
    %cst_256 = arith.constant 1.000000e+00 : f32
    %729 = vector.broadcast %cst_256 : f32 to vector<8x128xf32>
    %730 = arith.addf %729, %728 : vector<8x128xf32>
    %731 = arith.divf %729, %730 : vector<8x128xf32>
    %732 = vector.extract_strided_slice %725 {offsets = [0, 128], sizes = [8, 128], strides = [1, 1]} : vector<8x512xf32> to vector<8x128xf32>
    %733 = arith.negf %732 : vector<8x128xf32>
    %734 = math.exp %733 : vector<8x128xf32>
    %cst_257 = arith.constant 1.000000e+00 : f32
    %735 = vector.broadcast %cst_257 : f32 to vector<8x128xf32>
    %736 = arith.addf %735, %734 : vector<8x128xf32>
    %737 = arith.divf %735, %736 : vector<8x128xf32>
    %738 = vector.extract_strided_slice %725 {offsets = [0, 256], sizes = [8, 128], strides = [1, 1]} : vector<8x512xf32> to vector<8x128xf32>
    %739 = math.tanh %738 : vector<8x128xf32>
    %740 = vector.extract_strided_slice %725 {offsets = [0, 384], sizes = [8, 128], strides = [1, 1]} : vector<8x512xf32> to vector<8x128xf32>
    %741 = arith.negf %740 : vector<8x128xf32>
    %742 = math.exp %741 : vector<8x128xf32>
    %cst_258 = arith.constant 1.000000e+00 : f32
    %743 = vector.broadcast %cst_258 : f32 to vector<8x128xf32>
    %744 = arith.addf %743, %742 : vector<8x128xf32>
    %745 = arith.divf %743, %744 : vector<8x128xf32>
    %746 = arith.mulf %737, %648 : vector<8x128xf32>
    %747 = arith.mulf %731, %739 : vector<8x128xf32>
    %748 = arith.addf %746, %747 : vector<8x128xf32>
    %749 = math.tanh %748 : vector<8x128xf32>
    %750 = arith.mulf %745, %749 : vector<8x128xf32>
    %cst_259 = arith.constant dense<0.000000e+00> : vector<8x128xf32>
    %751 = tpu.matmul %750, %10, %cst_259 {dimension_numbers = #tpu.dot_dimension_numbers<[1], [0], [0], [1], [0, 0, 1, 1], [], []>} : vector<8x128xf32>, vector<128x128xf32>, vector<8x128xf32> -> vector<8x128xf32>
    %752 = arith.addf %751, %13 : vector<8x128xf32>
    %c4_260 = arith.constant 4 : index
    %c0_261 = arith.constant 0 : index
    %c0_262 = arith.constant 0 : index
    %753 = vector.load %arg12[%c4_260, %c0_261, %c0_262] : memref<7x8x128xf32, #tpu.memory_space<vmem>>, vector<1x8x128xf32>
    %754 = vector.shape_cast %753 : vector<1x8x128xf32> to vector<8x128xf32>
    %755 = vector.shape_cast %752 : vector<8x128xf32> to vector<1x8x128xf32>
    tpu.vector_store %arg12[%c4_260, %c0_261, %c0_262], %755 {strides = array<i32>} : memref<7x8x128xf32, #tpu.memory_space<vmem>>, vector<1x8x128xf32>,
    %cst_263 = arith.constant dense<0xFF800000> : vector<8xf32>
    %756 = vector.multi_reduction <maximumf>, %752, %cst_263 [1] : vector<8x128xf32> to vector<8xf32>
    %757 = vector.shape_cast %756 : vector<8xf32> to vector<8x1xf32>
    %758 = vector.broadcast %757 : vector<8x1xf32> to vector<8x128xf32>
    %759 = arith.cmpf oge, %752, %758 : vector<8x128xf32>
    %cst_264 = arith.constant 1.280000e+02 : f32
    %760 = vector.broadcast %cst_264 : f32 to vector<8x128xf32>
    %761 = arith.select %759, %16, %760 : vector<8x128xi1>, vector<8x128xf32>
    %cst_265 = arith.constant dense<0x7F800000> : vector<8xf32>
    %762 = vector.multi_reduction <minimumf>, %761, %cst_265 [1] : vector<8x128xf32> to vector<8xf32>
    %763 = vector.shape_cast %762 : vector<8xf32> to vector<8x1xf32>
    %764 = vector.broadcast %763 : vector<8x1xf32> to vector<8x128xf32>
    %765 = arith.cmpf oeq, %16, %764 : vector<8x128xf32>
    %766 = arith.extui %765 : vector<8x128xi1> to vector<8x128xi32>
    %767 = arith.sitofp %766 : vector<8x128xi32> to vector<8x128xf32>
    %c0_i32_266 = arith.constant 0 : i32
    %768 = vector.broadcast %c0_i32_266 : i32 to vector<8x128xi32>
    %c0_i32_267 = arith.constant 0 : i32
    %769 = vector.broadcast %c0_i32_267 : i32 to vector<8x128xi32>
    %770 = arith.cmpi eq, %14, %769 : vector<8x128xi32>
    %c5_268 = arith.constant 5 : index
    %c0_269 = arith.constant 0 : index
    %771 = memref.load %arg2[%c5_268, %c0_269] : memref<7x8xi32, #tpu.memory_space<smem>>
    %772 = vector.broadcast %771 : i32 to vector<8x128xi32>
    %773 = arith.select %770, %772, %768 : vector<8x128xi1>, vector<8x128xi32>
    %c1_i32_270 = arith.constant 1 : i32
    %774 = vector.broadcast %c1_i32_270 : i32 to vector<8x128xi32>
    %775 = arith.cmpi eq, %14, %774 : vector<8x128xi32>
    %c5_271 = arith.constant 5 : index
    %c1_272 = arith.constant 1 : index
    %776 = memref.load %arg2[%c5_271, %c1_272] : memref<7x8xi32, #tpu.memory_space<smem>>
    %777 = vector.broadcast %776 : i32 to vector<8x128xi32>
    %778 = arith.select %775, %777, %773 : vector<8x128xi1>, vector<8x128xi32>
    %c2_i32_273 = arith.constant 2 : i32
    %779 = vector.broadcast %c2_i32_273 : i32 to vector<8x128xi32>
    %780 = arith.cmpi eq, %14, %779 : vector<8x128xi32>
    %c5_274 = arith.constant 5 : index
    %c2_275 = arith.constant 2 : index
    %781 = memref.load %arg2[%c5_274, %c2_275] : memref<7x8xi32, #tpu.memory_space<smem>>
    %782 = vector.broadcast %781 : i32 to vector<8x128xi32>
    %783 = arith.select %780, %782, %778 : vector<8x128xi1>, vector<8x128xi32>
    %c3_i32_276 = arith.constant 3 : i32
    %784 = vector.broadcast %c3_i32_276 : i32 to vector<8x128xi32>
    %785 = arith.cmpi eq, %14, %784 : vector<8x128xi32>
    %c5_277 = arith.constant 5 : index
    %c3_278 = arith.constant 3 : index
    %786 = memref.load %arg2[%c5_277, %c3_278] : memref<7x8xi32, #tpu.memory_space<smem>>
    %787 = vector.broadcast %786 : i32 to vector<8x128xi32>
    %788 = arith.select %785, %787, %783 : vector<8x128xi1>, vector<8x128xi32>
    %c4_i32_279 = arith.constant 4 : i32
    %789 = vector.broadcast %c4_i32_279 : i32 to vector<8x128xi32>
    %790 = arith.cmpi eq, %14, %789 : vector<8x128xi32>
    %c5_280 = arith.constant 5 : index
    %c4_281 = arith.constant 4 : index
    %791 = memref.load %arg2[%c5_280, %c4_281] : memref<7x8xi32, #tpu.memory_space<smem>>
    %792 = vector.broadcast %791 : i32 to vector<8x128xi32>
    %793 = arith.select %790, %792, %788 : vector<8x128xi1>, vector<8x128xi32>
    %c5_i32_282 = arith.constant 5 : i32
    %794 = vector.broadcast %c5_i32_282 : i32 to vector<8x128xi32>
    %795 = arith.cmpi eq, %14, %794 : vector<8x128xi32>
    %c5_283 = arith.constant 5 : index
    %c5_284 = arith.constant 5 : index
    %796 = memref.load %arg2[%c5_283, %c5_284] : memref<7x8xi32, #tpu.memory_space<smem>>
    %797 = vector.broadcast %796 : i32 to vector<8x128xi32>
    %798 = arith.select %795, %797, %793 : vector<8x128xi1>, vector<8x128xi32>
    %c6_i32_285 = arith.constant 6 : i32
    %799 = vector.broadcast %c6_i32_285 : i32 to vector<8x128xi32>
    %800 = arith.cmpi eq, %14, %799 : vector<8x128xi32>
    %c5_286 = arith.constant 5 : index
    %c6_287 = arith.constant 6 : index
    %801 = memref.load %arg2[%c5_286, %c6_287] : memref<7x8xi32, #tpu.memory_space<smem>>
    %802 = vector.broadcast %801 : i32 to vector<8x128xi32>
    %803 = arith.select %800, %802, %798 : vector<8x128xi1>, vector<8x128xi32>
    %c7_i32_288 = arith.constant 7 : i32
    %804 = vector.broadcast %c7_i32_288 : i32 to vector<8x128xi32>
    %805 = arith.cmpi eq, %14, %804 : vector<8x128xi32>
    %c5_289 = arith.constant 5 : index
    %c7_290 = arith.constant 7 : index
    %806 = memref.load %arg2[%c5_289, %c7_290] : memref<7x8xi32, #tpu.memory_space<smem>>
    %807 = vector.broadcast %806 : i32 to vector<8x128xi32>
    %808 = arith.select %805, %807, %803 : vector<8x128xi1>, vector<8x128xi32>
    %809 = arith.cmpi eq, %15, %808 : vector<8x128xi32>
    %810 = arith.extui %809 : vector<8x128xi1> to vector<8x128xi32>
    %811 = arith.sitofp %810 : vector<8x128xi32> to vector<8x128xf32>
    %c5_291 = arith.constant 5 : index
    %812 = memref.load %arg1[%c5_291] : memref<7xi32, #tpu.memory_space<smem>>
    %c0_i32_292 = arith.constant 0 : i32
    %813 = arith.cmpi ne, %812, %c0_i32_292 : i32
    %814 = arith.extui %813 : i1 to i32
    %815 = arith.sitofp %814 : i32 to f32
    %816 = vector.broadcast %815 : f32 to vector<8x128xf32>
    %817 = arith.mulf %816, %811 : vector<8x128xf32>
    %cst_293 = arith.constant 1.000000e+00 : f32
    %818 = arith.subf %cst_293, %815 : f32
    %819 = vector.broadcast %818 : f32 to vector<8x128xf32>
    %820 = arith.mulf %819, %767 : vector<8x128xf32>
    %821 = arith.addf %817, %820 : vector<8x128xf32>
    %cst_294 = arith.constant dense<0.000000e+00> : vector<8x512xf32>
    %822 = tpu.matmul %821, %5, %cst_294 {dimension_numbers = #tpu.dot_dimension_numbers<[1], [0], [0], [1], [0, 0, 1, 1], [], []>} : vector<8x128xf32>, vector<128x512xf32>, vector<8x512xf32> -> vector<8x512xf32>
    %cst_295 = arith.constant dense<0.000000e+00> : vector<8x512xf32>
    %823 = tpu.matmul %750, %6, %cst_295 {dimension_numbers = #tpu.dot_dimension_numbers<[1], [0], [0], [1], [0, 0, 1, 1], [], []>} : vector<8x128xf32>, vector<128x512xf32>, vector<8x512xf32> -> vector<8x512xf32>
    %824 = arith.addf %822, %823 : vector<8x512xf32>
    %825 = arith.addf %824, %9 : vector<8x512xf32>
    %826 = vector.extract_strided_slice %825 {offsets = [0, 0], sizes = [8, 128], strides = [1, 1]} : vector<8x512xf32> to vector<8x128xf32>
    %827 = arith.negf %826 : vector<8x128xf32>
    %828 = math.exp %827 : vector<8x128xf32>
    %cst_296 = arith.constant 1.000000e+00 : f32
    %829 = vector.broadcast %cst_296 : f32 to vector<8x128xf32>
    %830 = arith.addf %829, %828 : vector<8x128xf32>
    %831 = arith.divf %829, %830 : vector<8x128xf32>
    %832 = vector.extract_strided_slice %825 {offsets = [0, 128], sizes = [8, 128], strides = [1, 1]} : vector<8x512xf32> to vector<8x128xf32>
    %833 = arith.negf %832 : vector<8x128xf32>
    %834 = math.exp %833 : vector<8x128xf32>
    %cst_297 = arith.constant 1.000000e+00 : f32
    %835 = vector.broadcast %cst_297 : f32 to vector<8x128xf32>
    %836 = arith.addf %835, %834 : vector<8x128xf32>
    %837 = arith.divf %835, %836 : vector<8x128xf32>
    %838 = vector.extract_strided_slice %825 {offsets = [0, 256], sizes = [8, 128], strides = [1, 1]} : vector<8x512xf32> to vector<8x128xf32>
    %839 = math.tanh %838 : vector<8x128xf32>
    %840 = vector.extract_strided_slice %825 {offsets = [0, 384], sizes = [8, 128], strides = [1, 1]} : vector<8x512xf32> to vector<8x128xf32>
    %841 = arith.negf %840 : vector<8x128xf32>
    %842 = math.exp %841 : vector<8x128xf32>
    %cst_298 = arith.constant 1.000000e+00 : f32
    %843 = vector.broadcast %cst_298 : f32 to vector<8x128xf32>
    %844 = arith.addf %843, %842 : vector<8x128xf32>
    %845 = arith.divf %843, %844 : vector<8x128xf32>
    %846 = arith.mulf %837, %748 : vector<8x128xf32>
    %847 = arith.mulf %831, %839 : vector<8x128xf32>
    %848 = arith.addf %846, %847 : vector<8x128xf32>
    %849 = math.tanh %848 : vector<8x128xf32>
    %850 = arith.mulf %845, %849 : vector<8x128xf32>
    %cst_299 = arith.constant dense<0.000000e+00> : vector<8x128xf32>
    %851 = tpu.matmul %850, %10, %cst_299 {dimension_numbers = #tpu.dot_dimension_numbers<[1], [0], [0], [1], [0, 0, 1, 1], [], []>} : vector<8x128xf32>, vector<128x128xf32>, vector<8x128xf32> -> vector<8x128xf32>
    %852 = arith.addf %851, %13 : vector<8x128xf32>
    %c5_300 = arith.constant 5 : index
    %c0_301 = arith.constant 0 : index
    %c0_302 = arith.constant 0 : index
    %853 = vector.load %arg12[%c5_300, %c0_301, %c0_302] : memref<7x8x128xf32, #tpu.memory_space<vmem>>, vector<1x8x128xf32>
    %854 = vector.shape_cast %853 : vector<1x8x128xf32> to vector<8x128xf32>
    %855 = vector.shape_cast %852 : vector<8x128xf32> to vector<1x8x128xf32>
    tpu.vector_store %arg12[%c5_300, %c0_301, %c0_302], %855 {strides = array<i32>} : memref<7x8x128xf32, #tpu.memory_space<vmem>>, vector<1x8x128xf32>,
    %cst_303 = arith.constant dense<0xFF800000> : vector<8xf32>
    %856 = vector.multi_reduction <maximumf>, %852, %cst_303 [1] : vector<8x128xf32> to vector<8xf32>
    %857 = vector.shape_cast %856 : vector<8xf32> to vector<8x1xf32>
    %858 = vector.broadcast %857 : vector<8x1xf32> to vector<8x128xf32>
    %859 = arith.cmpf oge, %852, %858 : vector<8x128xf32>
    %cst_304 = arith.constant 1.280000e+02 : f32
    %860 = vector.broadcast %cst_304 : f32 to vector<8x128xf32>
    %861 = arith.select %859, %16, %860 : vector<8x128xi1>, vector<8x128xf32>
    %cst_305 = arith.constant dense<0x7F800000> : vector<8xf32>
    %862 = vector.multi_reduction <minimumf>, %861, %cst_305 [1] : vector<8x128xf32> to vector<8xf32>
    %863 = vector.shape_cast %862 : vector<8xf32> to vector<8x1xf32>
    %864 = vector.broadcast %863 : vector<8x1xf32> to vector<8x128xf32>
    %865 = arith.cmpf oeq, %16, %864 : vector<8x128xf32>
    %866 = arith.extui %865 : vector<8x128xi1> to vector<8x128xi32>
    %867 = arith.sitofp %866 : vector<8x128xi32> to vector<8x128xf32>
    %c0_i32_306 = arith.constant 0 : i32
    %868 = vector.broadcast %c0_i32_306 : i32 to vector<8x128xi32>
    %c0_i32_307 = arith.constant 0 : i32
    %869 = vector.broadcast %c0_i32_307 : i32 to vector<8x128xi32>
    %870 = arith.cmpi eq, %14, %869 : vector<8x128xi32>
    %c6_308 = arith.constant 6 : index
    %c0_309 = arith.constant 0 : index
    %871 = memref.load %arg2[%c6_308, %c0_309] : memref<7x8xi32, #tpu.memory_space<smem>>
    %872 = vector.broadcast %871 : i32 to vector<8x128xi32>
    %873 = arith.select %870, %872, %868 : vector<8x128xi1>, vector<8x128xi32>
    %c1_i32_310 = arith.constant 1 : i32
    %874 = vector.broadcast %c1_i32_310 : i32 to vector<8x128xi32>
    %875 = arith.cmpi eq, %14, %874 : vector<8x128xi32>
    %c6_311 = arith.constant 6 : index
    %c1_312 = arith.constant 1 : index
    %876 = memref.load %arg2[%c6_311, %c1_312] : memref<7x8xi32, #tpu.memory_space<smem>>
    %877 = vector.broadcast %876 : i32 to vector<8x128xi32>
    %878 = arith.select %875, %877, %873 : vector<8x128xi1>, vector<8x128xi32>
    %c2_i32_313 = arith.constant 2 : i32
    %879 = vector.broadcast %c2_i32_313 : i32 to vector<8x128xi32>
    %880 = arith.cmpi eq, %14, %879 : vector<8x128xi32>
    %c6_314 = arith.constant 6 : index
    %c2_315 = arith.constant 2 : index
    %881 = memref.load %arg2[%c6_314, %c2_315] : memref<7x8xi32, #tpu.memory_space<smem>>
    %882 = vector.broadcast %881 : i32 to vector<8x128xi32>
    %883 = arith.select %880, %882, %878 : vector<8x128xi1>, vector<8x128xi32>
    %c3_i32_316 = arith.constant 3 : i32
    %884 = vector.broadcast %c3_i32_316 : i32 to vector<8x128xi32>
    %885 = arith.cmpi eq, %14, %884 : vector<8x128xi32>
    %c6_317 = arith.constant 6 : index
    %c3_318 = arith.constant 3 : index
    %886 = memref.load %arg2[%c6_317, %c3_318] : memref<7x8xi32, #tpu.memory_space<smem>>
    %887 = vector.broadcast %886 : i32 to vector<8x128xi32>
    %888 = arith.select %885, %887, %883 : vector<8x128xi1>, vector<8x128xi32>
    %c4_i32_319 = arith.constant 4 : i32
    %889 = vector.broadcast %c4_i32_319 : i32 to vector<8x128xi32>
    %890 = arith.cmpi eq, %14, %889 : vector<8x128xi32>
    %c6_320 = arith.constant 6 : index
    %c4_321 = arith.constant 4 : index
    %891 = memref.load %arg2[%c6_320, %c4_321] : memref<7x8xi32, #tpu.memory_space<smem>>
    %892 = vector.broadcast %891 : i32 to vector<8x128xi32>
    %893 = arith.select %890, %892, %888 : vector<8x128xi1>, vector<8x128xi32>
    %c5_i32_322 = arith.constant 5 : i32
    %894 = vector.broadcast %c5_i32_322 : i32 to vector<8x128xi32>
    %895 = arith.cmpi eq, %14, %894 : vector<8x128xi32>
    %c6_323 = arith.constant 6 : index
    %c5_324 = arith.constant 5 : index
    %896 = memref.load %arg2[%c6_323, %c5_324] : memref<7x8xi32, #tpu.memory_space<smem>>
    %897 = vector.broadcast %896 : i32 to vector<8x128xi32>
    %898 = arith.select %895, %897, %893 : vector<8x128xi1>, vector<8x128xi32>
    %c6_i32_325 = arith.constant 6 : i32
    %899 = vector.broadcast %c6_i32_325 : i32 to vector<8x128xi32>
    %900 = arith.cmpi eq, %14, %899 : vector<8x128xi32>
    %c6_326 = arith.constant 6 : index
    %c6_327 = arith.constant 6 : index
    %901 = memref.load %arg2[%c6_326, %c6_327] : memref<7x8xi32, #tpu.memory_space<smem>>
    %902 = vector.broadcast %901 : i32 to vector<8x128xi32>
    %903 = arith.select %900, %902, %898 : vector<8x128xi1>, vector<8x128xi32>
    %c7_i32_328 = arith.constant 7 : i32
    %904 = vector.broadcast %c7_i32_328 : i32 to vector<8x128xi32>
    %905 = arith.cmpi eq, %14, %904 : vector<8x128xi32>
    %c6_329 = arith.constant 6 : index
    %c7_330 = arith.constant 7 : index
    %906 = memref.load %arg2[%c6_329, %c7_330] : memref<7x8xi32, #tpu.memory_space<smem>>
    %907 = vector.broadcast %906 : i32 to vector<8x128xi32>
    %908 = arith.select %905, %907, %903 : vector<8x128xi1>, vector<8x128xi32>
    %909 = arith.cmpi eq, %15, %908 : vector<8x128xi32>
    %910 = arith.extui %909 : vector<8x128xi1> to vector<8x128xi32>
    %911 = arith.sitofp %910 : vector<8x128xi32> to vector<8x128xf32>
    %c6_331 = arith.constant 6 : index
    %912 = memref.load %arg1[%c6_331] : memref<7xi32, #tpu.memory_space<smem>>
    %c0_i32_332 = arith.constant 0 : i32
    %913 = arith.cmpi ne, %912, %c0_i32_332 : i32
    %914 = arith.extui %913 : i1 to i32
    %915 = arith.sitofp %914 : i32 to f32
    %916 = vector.broadcast %915 : f32 to vector<8x128xf32>
    %917 = arith.mulf %916, %911 : vector<8x128xf32>
    %cst_333 = arith.constant 1.000000e+00 : f32
    %918 = arith.subf %cst_333, %915 : f32
    %919 = vector.broadcast %918 : f32 to vector<8x128xf32>
    %920 = arith.mulf %919, %867 : vector<8x128xf32>
    %921 = arith.addf %917, %920 : vector<8x128xf32>
    %cst_334 = arith.constant dense<0.000000e+00> : vector<8x512xf32>
    %922 = tpu.matmul %921, %5, %cst_334 {dimension_numbers = #tpu.dot_dimension_numbers<[1], [0], [0], [1], [0, 0, 1, 1], [], []>} : vector<8x128xf32>, vector<128x512xf32>, vector<8x512xf32> -> vector<8x512xf32>
    %cst_335 = arith.constant dense<0.000000e+00> : vector<8x512xf32>
    %923 = tpu.matmul %850, %6, %cst_335 {dimension_numbers = #tpu.dot_dimension_numbers<[1], [0], [0], [1], [0, 0, 1, 1], [], []>} : vector<8x128xf32>, vector<128x512xf32>, vector<8x512xf32> -> vector<8x512xf32>
    %924 = arith.addf %922, %923 : vector<8x512xf32>
    %925 = arith.addf %924, %9 : vector<8x512xf32>
    %926 = vector.extract_strided_slice %925 {offsets = [0, 0], sizes = [8, 128], strides = [1, 1]} : vector<8x512xf32> to vector<8x128xf32>
    %927 = arith.negf %926 : vector<8x128xf32>
    %928 = math.exp %927 : vector<8x128xf32>
    %cst_336 = arith.constant 1.000000e+00 : f32
    %929 = vector.broadcast %cst_336 : f32 to vector<8x128xf32>
    %930 = arith.addf %929, %928 : vector<8x128xf32>
    %931 = arith.divf %929, %930 : vector<8x128xf32>
    %932 = vector.extract_strided_slice %925 {offsets = [0, 128], sizes = [8, 128], strides = [1, 1]} : vector<8x512xf32> to vector<8x128xf32>
    %933 = arith.negf %932 : vector<8x128xf32>
    %934 = math.exp %933 : vector<8x128xf32>
    %cst_337 = arith.constant 1.000000e+00 : f32
    %935 = vector.broadcast %cst_337 : f32 to vector<8x128xf32>
    %936 = arith.addf %935, %934 : vector<8x128xf32>
    %937 = arith.divf %935, %936 : vector<8x128xf32>
    %938 = vector.extract_strided_slice %925 {offsets = [0, 256], sizes = [8, 128], strides = [1, 1]} : vector<8x512xf32> to vector<8x128xf32>
    %939 = math.tanh %938 : vector<8x128xf32>
    %940 = vector.extract_strided_slice %925 {offsets = [0, 384], sizes = [8, 128], strides = [1, 1]} : vector<8x512xf32> to vector<8x128xf32>
    %941 = arith.negf %940 : vector<8x128xf32>
    %942 = math.exp %941 : vector<8x128xf32>
    %cst_338 = arith.constant 1.000000e+00 : f32
    %943 = vector.broadcast %cst_338 : f32 to vector<8x128xf32>
    %944 = arith.addf %943, %942 : vector<8x128xf32>
    %945 = arith.divf %943, %944 : vector<8x128xf32>
    %946 = arith.mulf %937, %848 : vector<8x128xf32>
    %947 = arith.mulf %931, %939 : vector<8x128xf32>
    %948 = arith.addf %946, %947 : vector<8x128xf32>
    %949 = math.tanh %948 : vector<8x128xf32>
    %950 = arith.mulf %945, %949 : vector<8x128xf32>
    %cst_339 = arith.constant dense<0.000000e+00> : vector<8x128xf32>
    %951 = tpu.matmul %950, %10, %cst_339 {dimension_numbers = #tpu.dot_dimension_numbers<[1], [0], [0], [1], [0, 0, 1, 1], [], []>} : vector<8x128xf32>, vector<128x128xf32>, vector<8x128xf32> -> vector<8x128xf32>
    %952 = arith.addf %951, %13 : vector<8x128xf32>
    %c6_340 = arith.constant 6 : index
    %c0_341 = arith.constant 0 : index
    %c0_342 = arith.constant 0 : index
    %953 = vector.load %arg12[%c6_340, %c0_341, %c0_342] : memref<7x8x128xf32, #tpu.memory_space<vmem>>, vector<1x8x128xf32>
    %954 = vector.shape_cast %953 : vector<1x8x128xf32> to vector<8x128xf32>
    %955 = vector.shape_cast %952 : vector<8x128xf32> to vector<1x8x128xf32>
    tpu.vector_store %arg12[%c6_340, %c0_341, %c0_342], %955 {strides = array<i32>} : memref<7x8x128xf32, #tpu.memory_space<vmem>>, vector<1x8x128xf32>,
    return
  }
  func.func @transform_0(%arg0: i32, %arg1: memref<7xi32, #tpu.memory_space<smem>>, %arg2: memref<7x8xi32, #tpu.memory_space<smem>>) -> (i32, i32, i32) {
    %c0_i32 = arith.constant 0 : i32
    %c0_i32_0 = arith.constant 0 : i32
    %c0_i32_1 = arith.constant 0 : i32
    %c0_i32_2 = arith.constant 0 : i32
    return %c0_i32, %c0_i32_0, %c0_i32_1 : i32, i32, i32
  }
  func.func @transform_1(%arg0: i32, %arg1: memref<7xi32, #tpu.memory_space<smem>>, %arg2: memref<7x8xi32, #tpu.memory_space<smem>>) -> (i32, i32) {
    %c0_i32 = arith.constant 0 : i32
    %c0_i32_0 = arith.constant 0 : i32
    %c0_i32_1 = arith.constant 0 : i32
    return %c0_i32, %c0_i32_0 : i32, i32
  }
  func.func @transform_2(%arg0: i32, %arg1: memref<7xi32, #tpu.memory_space<smem>>, %arg2: memref<7x8xi32, #tpu.memory_space<smem>>) -> (i32, i32) {
    %c0_i32 = arith.constant 0 : i32
    %c0_i32_0 = arith.constant 0 : i32
    %c0_i32_1 = arith.constant 0 : i32
    return %c0_i32, %c0_i32_0 : i32, i32
  }
  func.func @transform_3(%arg0: i32, %arg1: memref<7xi32, #tpu.memory_space<smem>>, %arg2: memref<7x8xi32, #tpu.memory_space<smem>>) -> (i32, i32) {
    %c0_i32 = arith.constant 0 : i32
    %c0_i32_0 = arith.constant 0 : i32
    %c0_i32_1 = arith.constant 0 : i32
    return %c0_i32, %c0_i32_0 : i32, i32
  }
  func.func @transform_4(%arg0: i32, %arg1: memref<7xi32, #tpu.memory_space<smem>>, %arg2: memref<7x8xi32, #tpu.memory_space<smem>>) -> (i32, i32) {
    %c0_i32 = arith.constant 0 : i32
    %c0_i32_0 = arith.constant 0 : i32
    %c0_i32_1 = arith.constant 0 : i32
    return %c0_i32, %c0_i32_0 : i32, i32
  }
  func.func @transform_5(%arg0: i32, %arg1: memref<7xi32, #tpu.memory_space<smem>>, %arg2: memref<7x8xi32, #tpu.memory_space<smem>>) -> (i32, i32) {
    %c0_i32 = arith.constant 0 : i32
    %c0_i32_0 = arith.constant 0 : i32
    %c0_i32_1 = arith.constant 0 : i32
    return %c0_i32, %c0_i32_0 : i32, i32
  }
  func.func @transform_6(%arg0: i32, %arg1: memref<7xi32, #tpu.memory_space<smem>>, %arg2: memref<7x8xi32, #tpu.memory_space<smem>>) -> (i32, i32) {
    %c0_i32 = arith.constant 0 : i32
    %c0_i32_0 = arith.constant 0 : i32
    %c0_i32_1 = arith.constant 0 : i32
    return %c0_i32, %c0_i32_0 : i32, i32
  }
  func.func @transform_7(%arg0: i32, %arg1: memref<7xi32, #tpu.memory_space<smem>>, %arg2: memref<7x8xi32, #tpu.memory_space<smem>>) -> (i32, i32) {
    %c0_i32 = arith.constant 0 : i32
    %c0_i32_0 = arith.constant 0 : i32
    %c0_i32_1 = arith.constant 0 : i32
    return %c0_i32, %c0_i32_0 : i32, i32
  }
  func.func @transform_8(%arg0: i32, %arg1: memref<7xi32, #tpu.memory_space<smem>>, %arg2: memref<7x8xi32, #tpu.memory_space<smem>>) -> (i32, i32) {
    %c0_i32 = arith.constant 0 : i32
    %c0_i32_0 = arith.constant 0 : i32
    %c0_i32_1 = arith.constant 0 : i32
    return %c0_i32, %c0_i32_0 : i32, i32
  }
  func.func @transform_9(%arg0: i32, %arg1: memref<7xi32, #tpu.memory_space<smem>>, %arg2: memref<7x8xi32, #tpu.memory_space<smem>>) -> (i32, i32, i32) {
    %c0_i32 = arith.constant 0 : i32
    %c0_i32_0 = arith.constant 0 : i32
    %c0_i32_1 = arith.constant 0 : i32
    %c0_i32_2 = arith.constant 0 : i32
    return %c0_i32, %c0_i32_0, %c0_i32_1 : i32, i32, i32
  }
}

</mosaic_0001>

<bundles_post_ra>
// kernel: seq2seq_forward.1
= control target key start
LH: loop header
LB: loop body
LE: loop exit
PB: predicated region body
PF: predicated region fallthrough
CT: control target
= control target key end

     0   :  { %s5496_s23 = smov [#allocation3]   ;;  %s5497_s24 = smov [#allocation4]   ;;  %s9687_s0 = inlined_call_operand.vmem [shape: s32[7], index: 0, kind: input, shape index: {}]   ;;  %s9688_s2 = inlined_call_operand.vmem [shape: f32[8,8,128], index: 2, kind: input, shape index: {}]   ;;  %s9689_s3 = inlined_call_operand.hbm [shape: f32[128,512], index: 3, kind: input, shape index: {}]   ;;  %s9690_s4 = inlined_call_operand.hbm [shape: f32[128,512], index: 4, kind: input, shape index: {}]   ;;  %s9691_s5 = inlined_call_operand.vmem [shape: f32[1,512], index: 5, kind: input, shape index: {}]   ;;  %s9692_s6 = inlined_call_operand.hbm [shape: f32[128,512], index: 6, kind: input, shape index: {}]   ;;  %s9693_s7 = inlined_call_operand.hbm [shape: f32[128,512], index: 7, kind: input, shape index: {}]   ;;  %s9694_s8 = inlined_call_operand.vmem [shape: f32[1,512], index: 8, kind: input, shape index: {}]   ;;  %s9695_s9 = inlined_call_operand.vmem [shape: f32[128,128], index: 9, kind: input, shape index: {}]   ;;  %s9696_s10 = inlined_call_operand.vmem [shape: f32[1,128], index: 10, kind: input, shape index: {}]   ;;  %s9697_s11 = inlined_call_operand.vmem [shape: f32[7,8,128], index: 11, kind: output, shape index: {}]   ;;  %s9698_s1 = inlined_call_operand.vmem [shape: s32[7,8], index: 1, kind: input, shape index: {}]  }
   0x1   :  { %s17_s19 = sshll.u32 %s9687_s0, 4  ;;  %s22_s22 = sshll.u32 %s9698_s1, 4  ;;  %s18_s19 = int_to_ptr.vmem [resolvable:$true] %s17_s19  ;;  %s23_s22 = int_to_ptr.vmem [resolvable:$true] %s22_s22 }
   0x2   :  { %20 = dma.vmem_to_smem %s18_s19, 16, %s5496_s23, [#allocation2] }
   0x3   :  { %25 = dma.vmem_to_smem %s23_s22, 128, %s5497_s24, [#allocation2] }
   0x4   :  { %5488 = dma.done.wait [#allocation2], 144 }
   0x5   :  { %5489 = vsyncadd [#allocation2], 4294967152 }
   0x6   :  { %28 = sfence }
   0x7   :  { %29 = vsyncpa [#allocation6], 0 }
   0x8   :  { %30 = vsyncpa [#allocation8], 0 }
   0x9   :  { %31 = vsyncpa [#allocation11], 0  ;;  %s51_s0 = sshll.u32 %s9690_s4, 4  ;;  %s5498_s27 = smov [#allocation7]   ;;  %s52_s0 = int_to_ptr.hbm [resolvable:$true] %s51_s0 }
   0xa   :  { %s53_s28 = sshll.u32 %s5498_s27, 4  ;;  %s38_s30 = sshll.u32 %s9689_s3, 4  ;;  %s54_s28 = int_to_ptr.vmem [resolvable:$true] %s53_s28  ;;  %s39_s30 = int_to_ptr.hbm [resolvable:$true] %s38_s30 }
   0xb   :  { %s5499_s12 = smov 512   ;;  %s5500_s13 = smov 32  }
   0xc   :  { %59 = dma.hbm_to_vmem [thread:$0]  %s52_s0, 8192, %s54_s28, [#allocation8], %s5499_s12, %s5499_s12, %s5500_s13  }
   0xd   :  { %s5501_s14 = smov [#allocation5]   ;;  %s66_s18 = sshll.u32 %s9692_s6, 4  ;;  %s67_s18 = int_to_ptr.hbm [resolvable:$true] %s66_s18 }
   0xe   :  { %s40_s15 = sshll.u32 %s5501_s14, 4  ;;  %s79_s20 = sshll.u32 %s9693_s7, 4  ;;  %s41_s15 = int_to_ptr.vmem [resolvable:$true] %s40_s15  ;;  %s80_s20 = int_to_ptr.hbm [resolvable:$true] %s79_s20 }
   0xf   :  { %46 = dma.hbm_to_vmem [thread:$0]  %s39_s30, 8192, %s41_s15, [#allocation6], %s5499_s12, %s5499_s12, %s5500_s13  }
  0x10   :  { %s5502_s21 = smov [#allocation9]   ;;  %s5503_s3 = smov [#allocation10]  }
  0x11   :  { %s68_s22 = sshll.u32 %s5502_s21, 4  ;;  %s81_s23 = sshll.u32 %s5503_s3, 4  ;;  %s69_s22 = int_to_ptr.vmem [resolvable:$true] %s68_s22  ;;  %s82_s23 = int_to_ptr.vmem [resolvable:$true] %s81_s23 }
  0x12   :  { %74 = dma.hbm_to_vmem [thread:$0]  %s67_s18, 8192, %s69_s22, [#allocation8], %s5499_s12, %s5499_s12, %s5500_s13  }
  0x13   :  { %87 = dma.hbm_to_vmem [thread:$0]  %s80_s20, 8192, %s82_s23, [#allocation11], %s5499_s12, %s5499_s12, %s5500_s13  }
  0x14   :  { %5490 = dma.done.wait [#allocation6], 8192  }
  0x15   :  { %5491 = vsyncadd [#allocation6], 4294959104 }
  0x16   :  { %5492 = dma.done.wait [#allocation8], 16384  }
  0x17   :  { %5493 = vsyncadd [#allocation8], 4294950912 }
  0x18   :  { %5494 = dma.done.wait [#allocation11], 8192  }
  0x19   :  { %5495 = vsyncadd [#allocation11], 4294959104  ;;  %v5583_v0 = vld [vmem:[#allocation7 + $0x1e0] sm:$0xff]  ;;  %v5585_v1 = vld [vmem:[#allocation7 + $0x1e8] sm:$0xff]  ;;  %s7769_s18 = sld [smem:[#allocation4 + $0x1]] }
  0x1a   :  { %v5587_v2 = vld [vmem:[#allocation7 + $0x1f8] sm:$0xff]  ;;  %412 = vmatpush.msra.mxu0 %v5583_v0  ;;  %432 = vmatpush.msra.mxu1 %v5585_v1  ;;  %v5591_v3 = vld [vmem:[#allocation7 + $0x1c0] sm:$0xff]  ;;  %v5593_v4 = vld [vmem:[#allocation7 + $0x1c8] sm:$0xff]  ;;  %s7793_s4 = sld [smem:[#allocation4 + $0x2]] }
  0x1b   :  { %v5595_v5 = vld [vmem:[#allocation7 + $0x1d8] sm:$0xff]  ;;  %472 = vmatpush.msra.mxu3 %v5587_v2  ;;  %v5598_v6 = vld [vmem:[#allocation7 + $0x1a0] sm:$0xff]  ;;  %v5600_v7 = vld [vmem:[#allocation7 + $0x1a8] sm:$0xff]  ;;  %s7813_s19 = sld [smem:[#allocation4 + $0x3]] }
  0x1c   :  { %413 = vmatpush.msra.mxu0 %v5591_v3  ;;  %433 = vmatpush.msra.mxu1 %v5593_v4  ;;  %v5604_v8 = vld [vmem:[#allocation7 + $0x1b8] sm:$0xff]  ;;  %v5607_v9 = vld [vmem:[#allocation7 + $0x180] sm:$0xff]  ;;  %v5609_v10 = vld [vmem:[#allocation7 + $0x188] sm:$0xff]  ;;  %s7842_s20 = sld [smem:[#allocation4 + $0x4]] }
  0x1d   :  { %473 = vmatpush.msra.mxu3 %v5595_v5  ;;  %v5611_v11 = vld [vmem:[#allocation7 + $0x1f0] sm:$0xff]  ;;  %v5615_v12 = vld [vmem:[#allocation7 + $0x198] sm:$0xff]  ;;  %v5621_v14 = vld [vmem:[#allocation7 + $0x160] sm:$0xff]  ;;  %s7864_s21 = sld [smem:[#allocation4 + $0x5]] }
  0x1e   :  { %414 = vmatpush.msra.mxu0 %v5598_v6  ;;  %434 = vmatpush.msra.mxu1 %v5600_v7  ;;  %v5617_v13 = vld [vmem:[#allocation7 + $0x1d0] sm:$0xff]  ;;  %v5623_v15 = vld [vmem:[#allocation7 + $0x168] sm:$0xff]  ;;  %v5627_v16 = vld [vmem:[#allocation7 + $0x178] sm:$0xff]  ;;  %s7873_s22 = sld [smem:[#allocation3]] }
  0x1f   :  { %474 = vmatpush.msra.mxu3 %v5604_v8  ;;  %452 = vmatpush.msra.mxu2 %v5611_v11  ;;  %v5629_v17 = vld [vmem:[#allocation7 + $0x1b0] sm:$0xff]  ;;  %v5633_v18 = vld [vmem:[#allocation7 + $0x140] sm:$0xff]  ;;  %v5635_v19 = vld [vmem:[#allocation7 + $0x148] sm:$0xff]  ;;  %s7896_s3 = sld [smem:[#allocation4 + $0x6]] }
  0x20   :  { %415 = vmatpush.msra.mxu0 %v5607_v9  ;;  %435 = vmatpush.msra.mxu1 %v5609_v10  ;;  %v5639_v20 = vld [vmem:[#allocation7 + $0x158] sm:$0xff]  ;;  %v5641_v21 = vld [vmem:[#allocation7 + $0x190] sm:$0xff]  ;;  %v5645_v22 = vld [vmem:[#allocation7 + $0x120] sm:$0xff]  ;;  %s7907_s23 = sld [smem:[#allocation4 + $0x7]] }
  0x21   :  { %475 = vmatpush.msra.mxu3 %v5615_v12  ;;  %453 = vmatpush.msra.mxu2 %v5617_v13  ;;  %v5647_v23 = vld [vmem:[#allocation7 + $0x128] sm:$0xff]  ;;  %v5651_v24 = vld [vmem:[#allocation7 + $0x138] sm:$0xff]  ;;  %v5653_v25 = vld [vmem:[#allocation7 + $0x170] sm:$0xff]  ;;  %s4355_s13 = sld [smem:[#allocation4 + $0x80]] }
  0x22   :  { %416 = vmatpush.msra.mxu0 %v5621_v14  ;;  %436 = vmatpush.msra.mxu1 %v5623_v15  ;;  %v5657_v26 = vld [vmem:[#allocation7 + $0x100] sm:$0xff]  ;;  %v5659_v27 = vld [vmem:[#allocation7 + $0x108] sm:$0xff]  ;;  %v5663_v28 = vld [vmem:[#allocation7 + $0x118] sm:$0xff]  ;;  %s4356_s14 = sld [smem:[#allocation4 + $0x81]] }
  0x23   :  { %476 = vmatpush.msra.mxu3 %v5627_v16  ;;  %454 = vmatpush.msra.mxu2 %v5629_v17  ;;  %v5665_v29 = vld [vmem:[#allocation7 + $0x150] sm:$0xff]  ;;  %v5669_v30 = vld [vmem:[#allocation7 + $0xe0] sm:$0xff]  ;;  %v5671_v31 = vld [vmem:[#allocation7 + $0xe8] sm:$0xff]  ;;  %s4357_s15 = sld [smem:[#allocation4 + $0x82]] }
  0x24   :  { %417 = vmatpush.msra.mxu0 %v5633_v18  ;;  %437 = vmatpush.msra.mxu1 %v5635_v19  ;;  %v5675_v32 = vld [vmem:[#allocation7 + $0xf8] sm:$0xff]  ;;  %v5677_v33 = vld [vmem:[#allocation7 + $0x130] sm:$0xff]  ;;  %v5681_v34 = vld [vmem:[#allocation7 + $0xc0] sm:$0xff]  ;;  %p2278_p0 = scmp.ne.s32.totalorder %s7873_s22, 0  ;;  %s4358_s16 = sld [smem:[#allocation4 + $0x83]] }
  0x25   :  { %477 = vmatpush.msra.mxu3 %v5639_v20  ;;  %455 = vmatpush.msra.mxu2 %v5641_v21  ;;  %v5683_v35 = vld [vmem:[#allocation7 + $0xc8] sm:$0xff]  ;;  %v5687_v36 = vld [vmem:[#allocation7 + $0xd8] sm:$0xff]  ;;  %v5689_v37 = vld [vmem:[#allocation7 + $0x110] sm:$0xff]  ;;  %s4359_s17 = sld [smem:[#allocation4 + $0x84]] }
  0x26   :  { %418 = vmatpush.msra.mxu0 %v5645_v22  ;;  %438 = vmatpush.msra.mxu1 %v5647_v23  ;;  %10434 = vst [vmem:[#allocation16_spill] sm:$0xff] %v5687_v36  ;;  %v5693_v38 = vld [vmem:[#allocation7 + $0xa0] sm:$0xff]  ;;  %v5695_v39 = vld [vmem:[#allocation7 + $0xa8] sm:$0xff]  ;;  %v5699_v40 = vld [vmem:[#allocation7 + $0xb8] sm:$0xff]  ;;  %s2279_s6 = scalar_select %p2278_p0, 1, 0 }
  0x27   :  { %478 = vmatpush.msra.mxu3 %v5651_v24  ;;  %456 = vmatpush.msra.mxu2 %v5653_v25  ;;  %10435 = vst [vmem:[#allocation17_spill] sm:$0xff] %v5693_v38  ;;  %v5701_v41 = vld [vmem:[#allocation7 + $0xf0] sm:$0xff]  ;;  %v5705_v42 = vld [vmem:[#allocation7 + $0x80] sm:$0xff]  ;;  %v5707_v43 = vld [vmem:[#allocation7 + $0x88] sm:$0xff]  ;;  %s4373_s25 = sld [smem:[#allocation4 + $0x103]] }
  0x28   :  { %419 = vmatpush.msra.mxu0 %v5657_v26  ;;  %439 = vmatpush.msra.mxu1 %v5659_v27  ;;  %10436 = vst [vmem:[#allocation18_spill] sm:$0xff] %v5695_v39  ;;  %v5711_v44 = vld [vmem:[#allocation7 + $0x98] sm:$0xff]  ;;  %v5713_v45 = vld [vmem:[#allocation7 + $0xd0] sm:$0xff]  ;;  %v5717_v46 = vld [vmem:[#allocation7 + $0x60] sm:$0xff]  ;;  %s2280_s7 = scvt.s32.f32 %s2279_s6  ;;  %s4370_s6 = sld [smem:[#allocation4 + $0x100]] }
  0x29   :  { %479 = vmatpush.msra.mxu3 %v5663_v28  ;;  %457 = vmatpush.msra.mxu2 %v5665_v29  ;;  %10437 = vst [vmem:[#allocation19_spill] sm:$0xff] %v5699_v40  ;;  %v5719_v47 = vld [vmem:[#allocation7 + $0x68] sm:$0xff]  ;;  %v5723_v48 = vld [vmem:[#allocation7 + $0x78] sm:$0xff]  ;;  %v5725_v49 = vld [vmem:[#allocation7 + $0xb0] sm:$0xff]  ;;  %s4375_s26 = sld [smem:[#allocation4 + $0x105]] }
  0x2a   :  { %420 = vmatpush.msra.mxu0 %v5669_v30  ;;  %440 = vmatpush.msra.mxu1 %v5671_v31  ;;  %10438 = vst [vmem:[#allocation20_spill] sm:$0xff] %v5705_v42  ;;  %v5729_v50 = vld [vmem:[#allocation7 + $0x40] sm:$0xff]  ;;  %v5731_v51 = vld [vmem:[#allocation7 + $0x48] sm:$0xff]  ;;  %v5735_v52 = vld [vmem:[#allocation7 + $0x58] sm:$0xff]  ;;  %s2283_s24 = ssub.f32 1.0, %s2280_s7 }
  0x2b   :  { %480 = vmatpush.msra.mxu3 %v5675_v32  ;;  %458 = vmatpush.msra.mxu2 %v5677_v33  ;;  %10439 = vst [vmem:[#allocation21_spill] sm:$0xff] %v5707_v43  ;;  %v5737_v53 = vld [vmem:[#allocation7 + $0x90] sm:$0xff]  ;;  %v5741_v54 = vld [vmem:[#allocation7 + $0x20] sm:$0xff]  ;;  %v5743_v55 = vld [vmem:[#allocation7 + $0x28] sm:$0xff]  ;;  %s4379_s0 = sld [smem:[#allocation3 + $0x2]] }
  0x2c   :  { %421 = vmatpush.msra.mxu0 %v5681_v34  ;;  %441 = vmatpush.msra.mxu1 %v5683_v35  ;;  %10440 = vst [vmem:[#allocation22_spill] sm:$0xff] %v5711_v44  ;;  %v5747_v56 = vld [vmem:[#allocation7 + $0x38] sm:$0xff]  ;;  %v5749_v57 = vld [vmem:[#allocation7 + $0x70] sm:$0xff]  ;;  %v5753_v58 = vld [vmem:[#allocation7] sm:$0xff]  ;;  %s4376_s27 = sld [smem:[#allocation4 + $0x106]] }
  0x2d   :  { %481 = vmatpush.msra.mxu3 %v5687_v36  ;;  %459 = vmatpush.msra.mxu2 %v5689_v37  ;;  %10441 = vst [vmem:[#allocation23_spill] sm:$0xff] %v5713_v45  ;;  %v5755_v59 = vld [vmem:[#allocation7 + $0x8] sm:$0xff]  ;;  %v5759_v60 = vld [vmem:[#allocation7 + $0x18] sm:$0xff]  ;;  %v5761_v61 = vld [vmem:[#allocation5 + $0x1e0] sm:$0xff]  ;;  %s4377_s28 = sld [smem:[#allocation4 + $0x107]] }
  0x2e   :  { %422 = vmatpush.msra.mxu0 %v5693_v38  ;;  %442 = vmatpush.msra.mxu1 %v5695_v39  ;;  %10442 = vst [vmem:[#allocation24_spill] sm:$0xff] %v5717_v46  ;;  %v5765_v62 = vld [vmem:[#allocation5 + $0x1e8] sm:$0xff]  ;;  %v5767_v63 = vld [vmem:[#allocation5 + $0x1f8] sm:$0xff]  ;;  %s4409_s30 = sld [smem:[#allocation3 + $0x4]] }
  0x2f   :  { %482 = vmatpush.msra.mxu3 %v5699_v40  ;;  %460 = vmatpush.msra.mxu2 %v5701_v41  ;;  %10443 = vst [vmem:[#allocation25_spill] sm:$0xff] %v5719_v47  ;;  %s4406_s12 = sld [smem:[#allocation4 + $0x206]] }
  0x30   :  { %423 = vmatpush.msra.mxu0 %v5705_v42  ;;  %443 = vmatpush.msra.mxu1 %v5707_v43  ;;  %10444 = vst [vmem:[#allocation26_spill] sm:$0xff] %v5723_v48 }
  0x31   :  { %10445 = vst [vmem:[#allocation27_spill] sm:$0xff] %v5725_v49  ;;  %483 = vmatpush.msra.mxu3 %v5711_v44  ;;  %461 = vmatpush.msra.mxu2 %v5713_v45  ;;  %p2867_p2 = scmp.ne.s32.totalorder %s4379_s0, 0  ;;  %s4400_s0 = sld [smem:[#allocation4 + $0x200]] }
  0x32   :  { %10446 = vst [vmem:[#allocation28_spill] sm:$0xff] %v5729_v50  ;;  %424 = vmatpush.msra.mxu0 %v5717_v46  ;;  %444 = vmatpush.msra.mxu1 %v5719_v47 }
  0x33   :  { %10447 = vst [vmem:[#allocation29_spill] sm:$0xff] %v5731_v51  ;;  %484 = vmatpush.msra.mxu3 %v5723_v48  ;;  %462 = vmatpush.msra.mxu2 %v5725_v49  ;;  %s2868_s1 = scalar_select %p2867_p2, 1, 0 }
  0x34   :  { %10448 = vst [vmem:[#allocation30_spill] sm:$0xff] %v5735_v52  ;;  %425 = vmatpush.msra.mxu0 %v5729_v50  ;;  %445 = vmatpush.msra.mxu1 %v5731_v51  ;;  %p3457_p4 = scmp.ne.s32.totalorder %s4409_s30, 0  ;;  %s4432_s30 = sld [smem:[#allocation4 + $0x302]] }
  0x35   :  { %10449 = vst [vmem:[#allocation31_spill] sm:$0xff] %v5737_v53  ;;  %485 = vmatpush.msra.mxu3 %v5735_v52  ;;  %463 = vmatpush.msra.mxu2 %v5737_v53  ;;  %v5771_v53 = vld [vmem:[#allocation7 + $0x50] sm:$0xff] }
  0x36   :  { %10450 = vst [vmem:[#allocation32_spill] sm:$0xff] %v5741_v54  ;;  %426 = vmatpush.msra.mxu0 %v5741_v54  ;;  %446 = vmatpush.msra.mxu1 %v5743_v55  ;;  %v5773_v54 = vld [vmem:[#allocation5 + $0x1c0] sm:$0xff] }
  0x37   :  { %10451 = vst [vmem:[#allocation33_spill] sm:$0xff] %v5743_v55  ;;  %486 = vmatpush.msra.mxu3 %v5747_v56  ;;  %464 = vmatpush.msra.mxu2 %v5749_v57  ;;  %v5777_v55 = vld [vmem:[#allocation5 + $0x1c8] sm:$0xff] }
  0x38   :  { %10452 = vst [vmem:[#allocation34_spill] sm:$0xff] %v5747_v56  ;;  %427 = vmatpush.msra.mxu0 %v5753_v58  ;;  %447 = vmatpush.msra.mxu1 %v5755_v59  ;;  %v5779_v56 = vld [vmem:[#allocation5 + $0x1d8] sm:$0xff] }
  0x39   :  { %10453 = vst [vmem:[#allocation35_spill] sm:$0xff] %v5749_v57  ;;  %487 = vmatpush.msra.mxu3 %v5759_v60  ;;  %v5783_v57 = vld [vmem:[#allocation7 + $0x30] sm:$0xff]  ;;  %465 = vmatpush.msra.mxu2 %v5771_v53 }
  0x3a   :  { %10454 = vst [vmem:[#allocation36_spill] sm:$0xff] %v5753_v58  ;;  %492 = vmatpush.msrb.mxu0 %v5761_v61  ;;  %512 = vmatpush.msrb.mxu1 %v5765_v62  ;;  %v5785_v58 = vld [vmem:[#allocation5 + $0x1a0] sm:$0xff] }
  0x3b   :  { %10455 = vst [vmem:[#allocation37_spill] sm:$0xff] %v5755_v59  ;;  %552 = vmatpush.msrb.mxu3 %v5767_v63  ;;  %v5789_v59 = vld [vmem:[#allocation5 + $0x1a8] sm:$0xff]  ;;  %466 = vmatpush.msra.mxu2 %v5783_v57 }
  0x3c   :  { %10456 = vst [vmem:[#allocation38_spill] sm:$0xff] %v5759_v60  ;;  %493 = vmatpush.msrb.mxu0 %v5773_v54  ;;  %v5791_v60 = vld [vmem:[#allocation5 + $0x1b8] sm:$0xff]  ;;  %513 = vmatpush.msrb.mxu1 %v5777_v55 }
  0x3d   :  { %10457 = vst [vmem:[#allocation39_spill] sm:$0xff] %v5761_v61  ;;  %553 = vmatpush.msrb.mxu3 %v5779_v56  ;;  %v5795_v61 = vld [vmem:[#allocation7 + $0x10] sm:$0xff] }
  0x3e   :  { %10458 = vst [vmem:[#allocation40_spill] sm:$0xff] %v5765_v62  ;;  %v5797_v62 = vld [vmem:[#allocation5 + $0x180] sm:$0xff]  ;;  %494 = vmatpush.msrb.mxu0 %v5785_v58  ;;  %514 = vmatpush.msrb.mxu1 %v5789_v59 }
  0x3f   :  { %10459 = vst [vmem:[#allocation41_spill] sm:$0xff] %v5767_v63  ;;  %v5801_v63 = vld [vmem:[#allocation5 + $0x188] sm:$0xff]  ;;  %554 = vmatpush.msrb.mxu3 %v5791_v60  ;;  %467 = vmatpush.msra.mxu2 %v5795_v61 }
  0x40   :  { %10460 = vst [vmem:[#allocation42_spill] sm:$0xff] %v5771_v53  ;;  %v5803_v53 = vld [vmem:[#allocation5 + $0x198] sm:$0xff]  ;;  %495 = vmatpush.msrb.mxu0 %v5797_v62  ;;  %515 = vmatpush.msrb.mxu1 %v5801_v63 }
  0x41   :  { %10461 = vst [vmem:[#allocation43_spill] sm:$0xff] %v5773_v54  ;;  %v5807_v54 = vld [vmem:[#allocation5 + $0x1f0] sm:$0xff]  ;;  %555 = vmatpush.msrb.mxu3 %v5803_v53 }
  0x42   :  { %10462 = vst [vmem:[#allocation44_spill] sm:$0xff] %v5777_v55  ;;  %v5809_v55 = vld [vmem:[#allocation5 + $0x160] sm:$0xff]  ;;  %532 = vmatpush.msrb.mxu2 %v5807_v54 }
  0x43   :  { %10463 = vst [vmem:[#allocation45_spill] sm:$0xff] %v5779_v56  ;;  %v5813_v56 = vld [vmem:[#allocation5 + $0x168] sm:$0xff]  ;;  %496 = vmatpush.msrb.mxu0 %v5809_v55 }
  0x44   :  { %10464 = vst [vmem:[#allocation46_spill] sm:$0xff] %v5783_v57  ;;  %v5815_v57 = vld [vmem:[#allocation5 + $0x178] sm:$0xff]  ;;  %516 = vmatpush.msrb.mxu1 %v5813_v56 }
  0x45   :  { %10465 = vst [vmem:[#allocation47_spill] sm:$0xff] %v5785_v58  ;;  %v5819_v58 = vld [vmem:[#allocation5 + $0x1d0] sm:$0xff]  ;;  %556 = vmatpush.msrb.mxu3 %v5815_v57 }
  0x46   :  { %10466 = vst [vmem:[#allocation48_spill] sm:$0xff] %v5789_v59  ;;  %v5821_v59 = vld [vmem:[#allocation5 + $0x140] sm:$0xff]  ;;  %533 = vmatpush.msrb.mxu2 %v5819_v58 }
  0x47   :  { %10467 = vst [vmem:[#allocation49_spill] sm:$0xff] %v5791_v60  ;;  %v5825_v60 = vld [vmem:[#allocation5 + $0x148] sm:$0xff]  ;;  %497 = vmatpush.msrb.mxu0 %v5821_v59 }
  0x48   :  { %10468 = vst [vmem:[#allocation50_spill] sm:$0xff] %v5795_v61  ;;  %v5827_v61 = vld [vmem:[#allocation5 + $0x158] sm:$0xff]  ;;  %517 = vmatpush.msrb.mxu1 %v5825_v60 }
  0x49   :  { %10469 = vst [vmem:[#allocation51_spill] sm:$0xff] %v5797_v62  ;;  %v5831_v62 = vld [vmem:[#allocation5 + $0x1b0] sm:$0xff]  ;;  %557 = vmatpush.msrb.mxu3 %v5827_v61 }
  0x4a   :  { %10470 = vst [vmem:[#allocation52_spill] sm:$0xff] %v5801_v63  ;;  %v5833_v63 = vld [vmem:[#allocation5 + $0x120] sm:$0xff]  ;;  %534 = vmatpush.msrb.mxu2 %v5831_v62 }
  0x4b   :  { %10471 = vst [vmem:[#allocation53_spill] sm:$0xff] %v5803_v53  ;;  %v5837_v53 = vld [vmem:[#allocation5 + $0x128] sm:$0xff]  ;;  %498 = vmatpush.msrb.mxu0 %v5833_v63 }
  0x4c   :  { %10472 = vst [vmem:[#allocation54_spill] sm:$0xff] %v5807_v54  ;;  %v5839_v54 = vld [vmem:[#allocation5 + $0x138] sm:$0xff]  ;;  %518 = vmatpush.msrb.mxu1 %v5837_v53 }
  0x4d   :  { %10473 = vst [vmem:[#allocation55_spill] sm:$0xff] %v5809_v55  ;;  %v5843_v55 = vld [vmem:[#allocation5 + $0x190] sm:$0xff]  ;;  %558 = vmatpush.msrb.mxu3 %v5839_v54 }
  0x4e   :  { %10474 = vst [vmem:[#allocation56_spill] sm:$0xff] %v5813_v56  ;;  %v5845_v56 = vld [vmem:[#allocation5 + $0x100] sm:$0xff]  ;;  %535 = vmatpush.msrb.mxu2 %v5843_v55 }
  0x4f   :  { %10475 = vst [vmem:[#allocation57_spill] sm:$0xff] %v5815_v57  ;;  %v5849_v57 = vld [vmem:[#allocation5 + $0x108] sm:$0xff]  ;;  %499 = vmatpush.msrb.mxu0 %v5845_v56 }
  0x50   :  { %10476 = vst [vmem:[#allocation58_spill] sm:$0xff] %v5819_v58  ;;  %v5851_v58 = vld [vmem:[#allocation5 + $0x118] sm:$0xff]  ;;  %519 = vmatpush.msrb.mxu1 %v5849_v57 }
  0x51   :  { %10477 = vst [vmem:[#allocation59_spill] sm:$0xff] %v5821_v59  ;;  %v5855_v59 = vld [vmem:[#allocation5 + $0x170] sm:$0xff]  ;;  %559 = vmatpush.msrb.mxu3 %v5851_v58 }
  0x52   :  { %10478 = vst [vmem:[#allocation60_spill] sm:$0xff] %v5825_v60  ;;  %v5857_v60 = vld [vmem:[#allocation5 + $0xe0] sm:$0xff]  ;;  %536 = vmatpush.msrb.mxu2 %v5855_v59 }
  0x53   :  { %10479 = vst [vmem:[#allocation61_spill] sm:$0xff] %v5827_v61  ;;  %v5861_v61 = vld [vmem:[#allocation5 + $0xe8] sm:$0xff]  ;;  %500 = vmatpush.msrb.mxu0 %v5857_v60 }
  0x54   :  { %10480 = vst [vmem:[#allocation62_spill] sm:$0xff] %v5831_v62  ;;  %v5863_v62 = vld [vmem:[#allocation5 + $0xf8] sm:$0xff]  ;;  %520 = vmatpush.msrb.mxu1 %v5861_v61 }
  0x55   :  { %10481 = vst [vmem:[#allocation63_spill] sm:$0xff] %v5833_v63  ;;  %v5867_v63 = vld [vmem:[#allocation5 + $0x150] sm:$0xff]  ;;  %560 = vmatpush.msrb.mxu3 %v5863_v62 }
  0x56   :  { %10482 = vst [vmem:[#allocation64_spill] sm:$0xff] %v5837_v53  ;;  %v5869_v53 = vld [vmem:[#allocation5 + $0xc0] sm:$0xff]  ;;  %537 = vmatpush.msrb.mxu2 %v5867_v63 }
  0x57   :  { %10483 = vst [vmem:[#allocation65_spill] sm:$0xff] %v5839_v54  ;;  %v5873_v54 = vld [vmem:[#allocation5 + $0xc8] sm:$0xff]  ;;  %501 = vmatpush.msrb.mxu0 %v5869_v53 }
  0x58   :  { %10484 = vst [vmem:[#allocation66_spill] sm:$0xff] %v5843_v55  ;;  %v5875_v55 = vld [vmem:[#allocation5 + $0xd8] sm:$0xff]  ;;  %521 = vmatpush.msrb.mxu1 %v5873_v54 }
  0x59   :  { %10485 = vst [vmem:[#allocation67_spill] sm:$0xff] %v5845_v56  ;;  %v5879_v56 = vld [vmem:[#allocation5 + $0x130] sm:$0xff]  ;;  %561 = vmatpush.msrb.mxu3 %v5875_v55 }
  0x5a   :  { %10486 = vst [vmem:[#allocation68_spill] sm:$0xff] %v5849_v57  ;;  %v5881_v57 = vld [vmem:[#allocation5 + $0xa0] sm:$0xff]  ;;  %538 = vmatpush.msrb.mxu2 %v5879_v56 }
  0x5b   :  { %10487 = vst [vmem:[#allocation69_spill] sm:$0xff] %v5851_v58  ;;  %v5885_v58 = vld [vmem:[#allocation5 + $0xa8] sm:$0xff]  ;;  %502 = vmatpush.msrb.mxu0 %v5881_v57 }
  0x5c   :  { %10488 = vst [vmem:[#allocation70_spill] sm:$0xff] %v5855_v59  ;;  %v5887_v59 = vld [vmem:[#allocation5 + $0xb8] sm:$0xff]  ;;  %522 = vmatpush.msrb.mxu1 %v5885_v58 }
  0x5d   :  { %10489 = vst [vmem:[#allocation71_spill] sm:$0xff] %v5857_v60  ;;  %v5891_v60 = vld [vmem:[#allocation5 + $0x110] sm:$0xff]  ;;  %562 = vmatpush.msrb.mxu3 %v5887_v59 }
  0x5e   :  { %10490 = vst [vmem:[#allocation72_spill] sm:$0xff] %v5861_v61  ;;  %v5893_v61 = vld [vmem:[#allocation5 + $0x80] sm:$0xff]  ;;  %539 = vmatpush.msrb.mxu2 %v5891_v60 }
  0x5f   :  { %10491 = vst [vmem:[#allocation73_spill] sm:$0xff] %v5863_v62  ;;  %v5897_v62 = vld [vmem:[#allocation5 + $0x88] sm:$0xff]  ;;  %503 = vmatpush.msrb.mxu0 %v5893_v61 }
  0x60   :  { %10492 = vst [vmem:[#allocation74_spill] sm:$0xff] %v5867_v63  ;;  %v5899_v63 = vld [vmem:[#allocation5 + $0x98] sm:$0xff]  ;;  %523 = vmatpush.msrb.mxu1 %v5897_v62 }
  0x61   :  { %10493 = vst [vmem:[#allocation75_spill] sm:$0xff] %v5869_v53  ;;  %563 = vmatpush.msrb.mxu3 %v5899_v63  ;;  %v9809_v53 = vmov 0.0  }
  0x62   :  { %10494 = vst [vmem:[#allocation76_spill] sm:$0xff] %v5873_v54  ;;  %v5909_v54 = vld [vmem:[#allocation5 + $0x60] sm:$0xff]  ;;  %428 = vmatmul.f32.vlgmr.msra.gmra.mxu0 %v9809_v53  ;;  %448 = vmatmul.f32.vlgmr.msra.gmra.mxu1 %v9809_v53 }
  0x63   :  { %10495 = vst [vmem:[#allocation77_spill] sm:$0xff] %v5875_v55  ;;  %v5905_v55 = vld [vmem:[#allocation5 + $0xf0] sm:$0xff]  ;;  %488 = vmatmul.f32.vlgmr.msra.gmra.mxu3 %v9809_v53  ;;  %504 = vmatpush.msrb.mxu0 %v5909_v54  ;;  %v5935_v53 = vld [vmem:[#allocation5 + $0x28] sm:$0xff] }
  0x64   :  { %10496 = vst [vmem:[#allocation78_spill] sm:$0xff] %v5879_v56  ;;  %540 = vmatpush.msrb.mxu2 %v5905_v55  ;;  %v5933_v56 = vld [vmem:[#allocation5 + $0x20] sm:$0xff] }
  0x65   :  { %10497 = vst [vmem:[#allocation79_spill] sm:$0xff] %v5881_v57  ;;  %v5911_v57 = vld [vmem:[#allocation5 + $0x68] sm:$0xff] }
  0x66   :  { %10498 = vst [vmem:[#allocation80_spill] sm:$0xff] %v5885_v58  ;;  %v5917_v58 = vld [vmem:[#allocation5 + $0xd0] sm:$0xff]  ;;  %524 = vmatpush.msrb.mxu1 %v5911_v57 }
  0x67   :  { %10499 = vst [vmem:[#allocation81_spill] sm:$0xff] %v5887_v59  ;;  %v5915_v59 = vld [vmem:[#allocation5 + $0x78] sm:$0xff]  ;;  %541 = vmatpush.msrb.mxu2 %v5917_v58 }
  0x68   :  { %10500 = vst [vmem:[#allocation82_spill] sm:$0xff] %v5891_v60  ;;  %v5929_v60 = vld [vmem:[#allocation5 + $0xb0] sm:$0xff]  ;;  %564 = vmatpush.msrb.mxu3 %v5915_v59 }
  0x69   :  { %10501 = vst [vmem:[#allocation83_spill] sm:$0xff] %v5893_v61  ;;  %v5927_v61 = vld [vmem:[#allocation5 + $0x58] sm:$0xff]  ;;  %542 = vmatpush.msrb.mxu2 %v5929_v60 }
  0x6a   :  { %10502 = vst [vmem:[#allocation84_spill] sm:$0xff] %v5897_v62  ;;  %v5921_v62 = vld [vmem:[#allocation5 + $0x40] sm:$0xff]  ;;  %565 = vmatpush.msrb.mxu3 %v5927_v61 }
  0x6b   :  { %10503 = vst [vmem:[#allocation85_spill] sm:$0xff] %v5899_v63  ;;  %v5923_v63 = vld [vmem:[#allocation5 + $0x48] sm:$0xff]  ;;  %505 = vmatpush.msrb.mxu0 %v5921_v62 }
  0x6c   :  { %10504 = vst [vmem:[#allocation86_spill] sm:$0xff] %v5905_v55  ;;  %525 = vmatpush.msrb.mxu1 %v5923_v63  ;;  %v5939_v55 = vld [vmem:[#allocation5 + $0x38] sm:$0xff] }
  0x6d   :  { %10505 = vst [vmem:[#allocation87_spill] sm:$0xff] %v5909_v54  ;;  %v5941_v54 = vld [vmem:[#allocation5 + $0x90] sm:$0xff]  ;;  %506 = vmatpush.msrb.mxu0 %v5933_v56  ;;  %566 = vmatpush.msrb.mxu3 %v5939_v55 }
  0x6e   :  { %10506 = vst [vmem:[#allocation88_spill] sm:$0xff] %v5911_v57  ;;  %v5945_v57 = vld [vmem:[#allocation5] sm:$0xff]  ;;  %526 = vmatpush.msrb.mxu1 %v5935_v53  ;;  %543 = vmatpush.msrb.mxu2 %v5941_v54 }
  0x6f   :  { %10507 = vst [vmem:[#allocation89_spill] sm:$0xff] %v5915_v59  ;;  %v5949_v59 = vld [vmem:[#allocation5 + $0x8] sm:$0xff]  ;;  %507 = vmatpush.msrb.mxu0 %v5945_v57 }
  0x70   :  { %10508 = vst [vmem:[#allocation90_spill] sm:$0xff] %v5917_v58  ;;  %v5951_v58 = vld [vmem:[#allocation5 + $0x18] sm:$0xff]  ;;  %527 = vmatpush.msrb.mxu1 %v5949_v59 }
  0x71   :  { %10509 = vst [vmem:[#allocation91_spill] sm:$0xff] %v5921_v62  ;;  %v5960_v62 = vld [vmem:[#allocation5 + $0x70] sm:$0xff]  ;;  %567 = vmatpush.msrb.mxu3 %v5951_v58  ;;  %641 = vmatpush.msra.mxu0 %v5583_v0 }
  0x72   :  { %10510 = vst [vmem:[#allocation92_spill] sm:$0xff] %v5923_v63  ;;  %v10520_v63 = vmov 0.0   ;;  %544 = vmatpush.msrb.mxu2 %v5960_v62  ;;  %661 = vmatpush.msra.mxu1 %v5585_v1 }
  0x73   :  { %10511 = vst [vmem:[#allocation93_spill] sm:$0xff] %v5927_v61  ;;  %v411_v61 = vld [vmem:[%s9688_s2] sm:$0xff]  ;;  %468 = vmatmul.f32.vlgmr.msra.gmra.mxu2 %v10520_v63  ;;  %701 = vmatpush.msra.mxu3 %v5587_v2  ;;  %v5973_v63 = vld [vmem:[#allocation5 + $0x10] sm:$0xff] }
  0x74   :  { %10512 = vst [vmem:[#allocation94_spill] sm:$0xff] %v5929_v60  ;;  %508 = vmatmul.f32.vlgmr.msrb.gmra.mxu0 %v411_v61  ;;  %528 = vmatmul.f32.vlgmr.msrb.gmra.mxu1 %v411_v61 }
  0x75   :  { %10513 = vst [vmem:[#allocation95_spill] sm:$0xff] %v5933_v56  ;;  %568 = vmatmul.f32.vlgmr.msrb.gmra.mxu3 %v411_v61  ;;  %642 = vmatpush.msra.mxu0 %v5591_v3 }
  0x76   :  { %10514 = vst [vmem:[#allocation96_spill] sm:$0xff] %v5935_v53  ;;  %v5964_v53 = vld [vmem:[#allocation5 + $0x50] sm:$0xff]  ;;  %662 = vmatpush.msra.mxu1 %v5593_v4  ;;  %702 = vmatpush.msra.mxu3 %v5595_v5 }
  0x77   :  { %10515 = vst [vmem:[#allocation97_spill] sm:$0xff] %v5939_v55  ;;  %v5967_v55 = vld [vmem:[#allocation5 + $0x30] sm:$0xff]  ;;  %545 = vmatpush.msrb.mxu2 %v5964_v53  ;;  %643 = vmatpush.msra.mxu0 %v5598_v6 }
  0x78   :  { %10516 = vst [vmem:[#allocation98_spill] sm:$0xff] %v5941_v54  ;;  %663 = vmatpush.msra.mxu1 %v5600_v7  ;;  %703 = vmatpush.msra.mxu3 %v5604_v8 }
  0x79   :  { %10517 = vst [vmem:[#allocation99_spill] sm:$0xff] %v5945_v57  ;;  %546 = vmatpush.msrb.mxu2 %v5967_v55  ;;  %644 = vmatpush.msra.mxu0 %v5607_v9 }
  0x7a   :  { %10518 = vst [vmem:[#allocation100_spill] sm:$0xff] %v5949_v59  ;;  %664 = vmatpush.msra.mxu1 %v5609_v10  ;;  %704 = vmatpush.msra.mxu3 %v5615_v12 }
  0x7b   :  { %10519 = vst [vmem:[#allocation101_spill] sm:$0xff] %v5951_v58  ;;  %547 = vmatpush.msrb.mxu2 %v5973_v63  ;;  %645 = vmatpush.msra.mxu0 %v5621_v14 }
  0x7c   :  { %10521 = vst [vmem:[#allocation102_spill] sm:$0xff] %v5960_v62  ;;  %548 = vmatmul.f32.vlgmr.msrb.gmra.mxu2 %v411_v61  ;;  %665 = vmatpush.msra.mxu1 %v5623_v15  ;;  %v10525_v61 = vld [vmem:[#allocation32_spill] sm:$0xff] }
  0x7d   :  { %10522 = vst [vmem:[#allocation103_spill] sm:$0xff] %v5964_v53  ;;  %681 = vmatpush.msra.mxu2 %v5611_v11  ;;  %705 = vmatpush.msra.mxu3 %v5627_v16 }
  0x7e   :  { %10523 = vst [vmem:[#allocation104_spill] sm:$0xff] %v5967_v55  ;;  %646 = vmatpush.msra.mxu0 %v5633_v18  ;;  %666 = vmatpush.msra.mxu1 %v5635_v19 }
  0x7f   :  { %10524 = vst [vmem:[#allocation105_spill] sm:$0xff] %v5973_v63  ;;  %682 = vmatpush.msra.mxu2 %v5617_v13  ;;  %706 = vmatpush.msra.mxu3 %v5639_v20 }
  0x80   :  { %647 = vmatpush.msra.mxu0 %v5645_v22  ;;  %667 = vmatpush.msra.mxu1 %v5647_v23 }
  0x81   :  { %683 = vmatpush.msra.mxu2 %v5629_v17  ;;  %707 = vmatpush.msra.mxu3 %v5651_v24 }
  0x82   :  { %648 = vmatpush.msra.mxu0 %v5657_v26  ;;  %668 = vmatpush.msra.mxu1 %v5659_v27 }
  0x83   :  { %684 = vmatpush.msra.mxu2 %v5641_v21  ;;  %708 = vmatpush.msra.mxu3 %v5663_v28 }
  0x84   :  { %649 = vmatpush.msra.mxu0 %v5669_v30  ;;  %669 = vmatpush.msra.mxu1 %v5671_v31 }
  0x85   :  { %685 = vmatpush.msra.mxu2 %v5653_v25  ;;  %709 = vmatpush.msra.mxu3 %v5675_v32 }
  0x86   :  { %650 = vmatpush.msra.mxu0 %v5681_v34  ;;  %670 = vmatpush.msra.mxu1 %v5683_v35 }
  0x87   :  { %686 = vmatpush.msra.mxu2 %v5665_v29  ;;  %710 = vmatpush.msra.mxu3 %v5687_v36 }
  0x88   :  { %651 = vmatpush.msra.mxu0 %v5693_v38  ;;  %671 = vmatpush.msra.mxu1 %v5695_v39 }
  0x89   :  { %687 = vmatpush.msra.mxu2 %v5677_v33  ;;  %711 = vmatpush.msra.mxu3 %v5699_v40  ;;  %v10533_v40 = vld [vmem:[#allocation39_spill] sm:$0xff] }
  0x8a   :  { %652 = vmatpush.msra.mxu0 %v5705_v42  ;;  %672 = vmatpush.msra.mxu1 %v5707_v43  ;;  %v10526_v43 = vld [vmem:[#allocation31_spill] sm:$0xff]  ;;  %v10529_v42 = vld [vmem:[#allocation36_spill] sm:$0xff] }
  0x8b   :  { %688 = vmatpush.msra.mxu2 %v5689_v37  ;;  %712 = vmatpush.msra.mxu3 %v5711_v44  ;;  %v10527_v44 = vld [vmem:[#allocation33_spill] sm:$0xff] }
  0x8c   :  { %653 = vmatpush.msra.mxu0 %v5717_v46  ;;  %673 = vmatpush.msra.mxu1 %v5719_v47  ;;  %v10528_v46 = vld [vmem:[#allocation34_spill] sm:$0xff]  ;;  %v10530_v47 = vld [vmem:[#allocation35_spill] sm:$0xff] }
  0x8d   :  { %689 = vmatpush.msra.mxu2 %v5701_v41  ;;  %713 = vmatpush.msra.mxu3 %v5723_v48  ;;  %v10531_v48 = vld [vmem:[#allocation37_spill] sm:$0xff] }
  0x8e   :  { %654 = vmatpush.msra.mxu0 %v5729_v50  ;;  %674 = vmatpush.msra.mxu1 %v5731_v51  ;;  %v10532_v50 = vld [vmem:[#allocation38_spill] sm:$0xff] }
  0x8f   :  { %690 = vmatpush.msra.mxu2 %v5713_v45  ;;  %714 = vmatpush.msra.mxu3 %v5735_v52  ;;  %v10534_v51 = vld [vmem:[#allocation42_spill] sm:$0xff]  ;;  %v10535_v52 = vld [vmem:[#allocation40_spill] sm:$0xff] }
  0x90   :  { %655 = vmatpush.msra.mxu0 %v10525_v61  ;;  %675 = vmatpush.msra.mxu1 %v10527_v44  ;;  %v10536_v61 = vld [vmem:[#allocation41_spill] sm:$0xff]  ;;  %v10538_v44 = vld [vmem:[#allocation46_spill] sm:$0xff] }
  0x91   :  { %691 = vmatpush.msra.mxu2 %v5725_v49  ;;  %715 = vmatpush.msra.mxu3 %v10528_v46  ;;  %v10539_v46 = vld [vmem:[#allocation44_spill] sm:$0xff] }
  0x92   :  { %656 = vmatpush.msra.mxu0 %v10529_v42  ;;  %676 = vmatpush.msra.mxu1 %v10531_v48  ;;  %v10540_v42 = vld [vmem:[#allocation45_spill] sm:$0xff]  ;;  %v10542_v48 = vld [vmem:[#allocation50_spill] sm:$0xff] }
  0x93   :  { %692 = vmatpush.msra.mxu2 %v10526_v43  ;;  %716 = vmatpush.msra.mxu3 %v10532_v50  ;;  %v10537_v43 = vld [vmem:[#allocation43_spill] sm:$0xff]  ;;  %v10543_v50 = vld [vmem:[#allocation48_spill] sm:$0xff] }
  0x94   :  { %721 = vmatpush.msrb.mxu0 %v10533_v40  ;;  %741 = vmatpush.msrb.mxu1 %v10535_v52  ;;  %v10544_v40 = vld [vmem:[#allocation54_spill] sm:$0xff]  ;;  %v10546_v52 = vld [vmem:[#allocation51_spill] sm:$0xff] }
  0x95   :  { %693 = vmatpush.msra.mxu2 %v10530_v47  ;;  %781 = vmatpush.msrb.mxu3 %v10536_v61  ;;  %v10541_v47 = vld [vmem:[#allocation47_spill] sm:$0xff]  ;;  %v10547_v61 = vld [vmem:[#allocation52_spill] sm:$0xff] }
  0x96   :  { %722 = vmatpush.msrb.mxu0 %v10537_v43  ;;  %742 = vmatpush.msrb.mxu1 %v10539_v46  ;;  %v10548_v43 = vld [vmem:[#allocation58_spill] sm:$0xff]  ;;  %v10550_v46 = vld [vmem:[#allocation55_spill] sm:$0xff] }
  0x97   :  { %694 = vmatpush.msra.mxu2 %v10534_v51  ;;  %782 = vmatpush.msrb.mxu3 %v10540_v42  ;;  %v10545_v51 = vld [vmem:[#allocation49_spill] sm:$0xff]  ;;  %v10551_v42 = vld [vmem:[#allocation56_spill] sm:$0xff] }
  0x98   :  { %723 = vmatpush.msrb.mxu0 %v10541_v47  ;;  %743 = vmatpush.msrb.mxu1 %v10543_v50  ;;  %v10552_v47 = vld [vmem:[#allocation62_spill] sm:$0xff]  ;;  %v10554_v50 = vld [vmem:[#allocation59_spill] sm:$0xff] }
  0x99   :  { %695 = vmatpush.msra.mxu2 %v10538_v44  ;;  %783 = vmatpush.msrb.mxu3 %v10545_v51  ;;  %v10549_v44 = vld [vmem:[#allocation53_spill] sm:$0xff]  ;;  %v10556_v51 = vld [vmem:[#allocation66_spill] sm:$0xff] }
  0x9a   :  { %724 = vmatpush.msrb.mxu0 %v10546_v52  ;;  %744 = vmatpush.msrb.mxu1 %v10547_v61  ;;  %v10557_v52 = vld [vmem:[#allocation61_spill] sm:$0xff]  ;;  %v10558_v61 = vld [vmem:[#allocation63_spill] sm:$0xff] }
  0x9b   :  { %696 = vmatpush.msra.mxu2 %v10542_v48  ;;  %784 = vmatpush.msrb.mxu3 %v10549_v44  ;;  %v10553_v48 = vld [vmem:[#allocation57_spill] sm:$0xff]  ;;  %v10560_v44 = vld [vmem:[#allocation70_spill] sm:$0xff] }
  0x9c   :  { %725 = vmatpush.msrb.mxu0 %v10550_v46  ;;  %745 = vmatpush.msrb.mxu1 %v10551_v42  ;;  %v10561_v46 = vld [vmem:[#allocation65_spill] sm:$0xff]  ;;  %v10562_v42 = vld [vmem:[#allocation67_spill] sm:$0xff] }
  0x9d   :  { %761 = vmatpush.msrb.mxu2 %v10544_v40  ;;  %785 = vmatpush.msrb.mxu3 %v10553_v48  ;;  %v10555_v40 = vld [vmem:[#allocation60_spill] sm:$0xff]  ;;  %v10564_v48 = vld [vmem:[#allocation74_spill] sm:$0xff] }
  0x9e   :  { %726 = vmatpush.msrb.mxu0 %v10554_v50  ;;  %746 = vmatpush.msrb.mxu1 %v10555_v40  ;;  %v10565_v50 = vld [vmem:[#allocation69_spill] sm:$0xff]  ;;  %v10566_v40 = vld [vmem:[#allocation71_spill] sm:$0xff] }
  0x9f   :  { %762 = vmatpush.msrb.mxu2 %v10548_v43  ;;  %786 = vmatpush.msrb.mxu3 %v10557_v52  ;;  %v10559_v43 = vld [vmem:[#allocation64_spill] sm:$0xff]  ;;  %v10568_v52 = vld [vmem:[#allocation78_spill] sm:$0xff] }
  0xa0   :  { %727 = vmatpush.msrb.mxu0 %v10558_v61  ;;  %747 = vmatpush.msrb.mxu1 %v10559_v43  ;;  %v10569_v61 = vld [vmem:[#allocation73_spill] sm:$0xff]  ;;  %v10570_v43 = vld [vmem:[#allocation75_spill] sm:$0xff] }
  0xa1   :  { %763 = vmatpush.msrb.mxu2 %v10552_v47  ;;  %787 = vmatpush.msrb.mxu3 %v10561_v46  ;;  %v10563_v47 = vld [vmem:[#allocation68_spill] sm:$0xff]  ;;  %v10572_v46 = vld [vmem:[#allocation82_spill] sm:$0xff] }
  0xa2   :  { %728 = vmatpush.msrb.mxu0 %v10562_v42  ;;  %748 = vmatpush.msrb.mxu1 %v10563_v47  ;;  %v10573_v42 = vld [vmem:[#allocation77_spill] sm:$0xff]  ;;  %v10574_v47 = vld [vmem:[#allocation79_spill] sm:$0xff] }
  0xa3   :  { %764 = vmatpush.msrb.mxu2 %v10556_v51  ;;  %788 = vmatpush.msrb.mxu3 %v10565_v50  ;;  %v10567_v51 = vld [vmem:[#allocation72_spill] sm:$0xff]  ;;  %v10576_v50 = vld [vmem:[#allocation86_spill] sm:$0xff] }
  0xa4   :  { %729 = vmatpush.msrb.mxu0 %v10566_v40  ;;  %749 = vmatpush.msrb.mxu1 %v10567_v51  ;;  %v10577_v40 = vld [vmem:[#allocation81_spill] sm:$0xff]  ;;  %v10578_v51 = vld [vmem:[#allocation83_spill] sm:$0xff] }
  0xa5   :  { %765 = vmatpush.msrb.mxu2 %v10560_v44  ;;  %789 = vmatpush.msrb.mxu3 %v10569_v61  ;;  %v10571_v44 = vld [vmem:[#allocation76_spill] sm:$0xff]  ;;  %v10580_v61 = vld [vmem:[#allocation90_spill] sm:$0xff] }
  0xa6   :  { %730 = vmatpush.msrb.mxu0 %v10570_v43  ;;  %750 = vmatpush.msrb.mxu1 %v10571_v44  ;;  %v10581_v43 = vld [vmem:[#allocation85_spill] sm:$0xff]  ;;  %v10582_v44 = vld [vmem:[#allocation87_spill] sm:$0xff] }
  0xa7   :  { %766 = vmatpush.msrb.mxu2 %v10564_v48  ;;  %790 = vmatpush.msrb.mxu3 %v10573_v42  ;;  %v10575_v48 = vld [vmem:[#allocation80_spill] sm:$0xff] }
  0xa8   :  { %731 = vmatpush.msrb.mxu0 %v10574_v47  ;;  %751 = vmatpush.msrb.mxu1 %v10575_v48  ;;  %v10584_v47 = vld [vmem:[#allocation89_spill] sm:$0xff]  ;;  %v10585_v48 = vld [vmem:[#allocation91_spill] sm:$0xff]  ;;  %v10586_v42 = vld [vmem:[#allocation92_spill] sm:$0xff] }
  0xa9   :  { %767 = vmatpush.msrb.mxu2 %v10568_v52  ;;  %791 = vmatpush.msrb.mxu3 %v10577_v40  ;;  %v10579_v52 = vld [vmem:[#allocation84_spill] sm:$0xff] }
  0xaa   :  { %732 = vmatpush.msrb.mxu0 %v10578_v51  ;;  %752 = vmatpush.msrb.mxu1 %v10579_v52  ;;  %v10587_v51 = vld [vmem:[#allocation93_spill] sm:$0xff]  ;;  %v10588_v52 = vld [vmem:[#allocation96_spill] sm:$0xff] }
  0xab   :  { %768 = vmatpush.msrb.mxu2 %v10572_v46  ;;  %792 = vmatpush.msrb.mxu3 %v10581_v43  ;;  %v10583_v46 = vld [vmem:[#allocation88_spill] sm:$0xff] }
  0xac   :  { %733 = vmatpush.msrb.mxu0 %v10582_v44  ;;  %753 = vmatpush.msrb.mxu1 %v10583_v46  ;;  %v10589_v44 = vld [vmem:[#allocation97_spill] sm:$0xff] }
  0xad   :  { %769 = vmatpush.msrb.mxu2 %v10576_v50  ;;  %793 = vmatpush.msrb.mxu3 %v10584_v47 }
  0xae   :  { %734 = vmatpush.msrb.mxu0 %v10585_v48  ;;  %754 = vmatpush.msrb.mxu1 %v10586_v42 }
  0xaf   :  { %770 = vmatpush.msrb.mxu2 %v10580_v61  ;;  %794 = vmatpush.msrb.mxu3 %v10587_v51 }
  0xb0   :  { %735 = vmatpush.msrb.mxu0 %v5933_v56  ;;  %755 = vmatpush.msrb.mxu1 %v10588_v52  ;;  %v238_v52 = vld [vmem:[%s9691_s5] sm:$0xf]  ;;  %s4374_s5 = sld [smem:[#allocation4 + $0x104]] }
  0xb1   :  { %771 = vmatpush.msrb.mxu2 %v5929_v60  ;;  %795 = vmatpush.msrb.mxu3 %v10589_v44  ;;  %v6105_v44 = vperm.slane %v238_v52, 0  ;;  %v6111_v43 = vperm.slane %v238_v52, 3 }
  0xb2   :  { %736 = vmatpush.msrb.mxu0 %v5945_v57  ;;  %756 = vmatpush.msrb.mxu1 %v5949_v59  ;;  %v6107_v57 = vperm.slane %v238_v52, 1 }
  0xb3   :  { %772 = vmatpush.msrb.mxu2 %v5941_v54  ;;  %796 = vmatpush.msrb.mxu3 %v5951_v58  ;;  %10590 = vst [vmem:[#allocation106_spill] sm:$0xff] %v6105_v44 }
  0xb4   :  { %10591 = vst [vmem:[#allocation107_spill] sm:$0xff] %v6107_v57 }
  0xb5   :  { %773 = vmatpush.msrb.mxu2 %v5960_v62  ;;  %10592 = vst [vmem:[#allocation108_spill] sm:$0xff] %v6111_v43 }
  0xb7   :  { %774 = vmatpush.msrb.mxu2 %v5964_v53 }
  0xb9   :  { %775 = vmatpush.msrb.mxu2 %v5967_v55 }
  0xbb   :  { %776 = vmatpush.msrb.mxu2 %v5973_v63 }
  0xdf   :  { %v429_v51 = vpop.f32.mrf.mxu0  ;;  %v449_v56 = vpop.f32.mrf.mxu1 }
  0xe6   :  { %v489_v42 = vpop.f32.mrf.mxu3 }
  0xf1   :  { %v509_v59 = vpop.f32.mrf.mxu0  ;;  %v529_v48 = vpop.f32.mrf.mxu1 }
  0xf2   :  { %v510_v53 = vadd.f32 %v509_v59, %v429_v51  ;;  %v530_v47 = vadd.f32 %v529_v48, %v449_v56 }
  0xf4   :  { %v572_v58 = vadd.f32 %v510_v53, %v6105_v44  ;;  %v573_v55 = vadd.f32 %v530_v47, %v6107_v57  ;;  %v6114_v47 = vperm.slane %v238_v52, 2 }
  0xf6   :  { %v4312_v63 = vmul.f32 -1.442695, %v572_v58  ;;  %v4313_v62 = vmul.f32 -1.442695, %v573_v55  ;;  %v469_v46 = vpop.f32.mrf.mxu2  ;;  %10593 = vst [vmem:[#allocation109_spill] sm:$0xff] %v6114_v47 }
  0xf8   :  { %4454 = vpow2.f32 %v4312_v63  ;;  %v569_v54 = vpop.f32.mrf.mxu3 }
  0xf9   :  { %4456 = vpow2.f32 %v4313_v62  ;;  %v570_v40 = vadd.f32 %v569_v54, %v489_v42 }
  0xfb   :  { %v575_v60 = vadd.f32 %v570_v40, %v6111_v43 }
  0xfd   :  { %v4314_v61 = vmul.f32 -1.442695, %v575_v60 }
  0xfe   :  { %v4455_v50 = vpop.eup %4454 }
  0xff   :  { %v4457_v49 = vpop.eup %4456  ;;  %v579_v51 = vadd.f32 1.0, %v4455_v50  ;;  %4458 = vpow2.f32 %v4314_v61  ;;  %v549_v53 = vpop.f32.mrf.mxu2 }
 0x100   :  { %v598_v48 = vadd.f32 1.0, %v4457_v49  ;;  %v550_v55 = vadd.f32 %v549_v53, %v469_v46 }
 0x101   :  { %4460 = vrcp.f32 %v579_v51  ;;  %v591_v50 = vand.u32 2147483648, %v579_v51  ;;  %v589_v43 = vand.u32 2147483647, %v579_v51  ;;  %vm585_vm2 = vweird.f32 %v579_v51 }
 0x102   :  { %4462 = vrcp.f32 %v598_v48  ;;  %v574_v62 = vadd.f32 %v550_v55, %v6114_v47  ;;  %v610_v49 = vand.u32 2147483648, %v598_v48  ;;  %v608_v46 = vand.u32 2147483647, %v598_v48 }
 0x103   :  { %vm604_vm3 = vweird.f32 %v598_v48  ;;  %v592_v47 = vor.u32 1.1754944e-38, %v591_v50  ;;  %vm590_vm5 = vcmp.eq.f32.partialorder %v589_v43, 8.507059e+37 }
 0x104   :  { %v611_v44 = vor.u32 1.1754944e-38, %v610_v49  ;;  %vm609_vm7 = vcmp.eq.f32.partialorder %v608_v46, 8.507059e+37  ;;  %v10637_v49 = vld [vmem:[#allocation56_spill] sm:$0xff]  ;;  %v10639_v46 = vld [vmem:[#allocation57_spill] sm:$0xff] }
 0x105   :  { %v4459_v56 = vpop.eup %4458 }
 0x106   :  { %v618_v58 = vadd.f32 1.0, %v4459_v56 }
 0x107   :  { %v4461_v59 = vpop.eup %4460 }
 0x108   :  { %v4463_v42 = vpop.eup %4462  ;;  %v581_v54 = vmul.f32 %v4461_v59, %v579_v51  ;;  %4464 = vrcp.f32 %v618_v58  ;;  %vm586_vm0 = vweird.f32 %v4461_v59  ;;  %vm624_vm9 = vweird.f32 %v618_v58 }
 0x109   :  { %v600_v40 = vmul.f32 %v4463_v42, %v598_v48  ;;  %4466 = vtanh.f32 %v574_v62  ;;  %vm605_vm1 = vweird.f32 %v4463_v42  ;;  %vm587_vm4 = vmor %vm585_vm2, %vm586_vm0  ;;  %v630_v48 = vand.u32 2147483648, %v618_v58 }
 0x10a   :  { %v582_v60 = vsub.f32 1.0, %v581_v54  ;;  %vm606_vm6 = vmor %vm604_vm3, %vm605_vm1 }
 0x10b   :  { %v601_v63 = vsub.f32 1.0, %v600_v40  ;;  %v631_v50 = vor.u32 1.1754944e-38, %v630_v48  ;;  %v10649_v48 = vld [vmem:[#allocation68_spill] sm:$0xff] }
 0x10c   :  { %v583_v61 = vmul.f32 %v4461_v59, %v582_v60 }
 0x10d   :  { %v602_v52 = vmul.f32 %v4463_v42, %v601_v63 }
 0x10e   :  { %v4465_v53 = vpop.eup %4464  ;;  %v584_v56 = vadd.f32 %v4461_v59, %v583_v61 }
 0x10f   :  { %v620_v55 = vmul.f32 %v4465_v53, %v618_v58  ;;  %v603_v57 = vadd.f32 %v4463_v42, %v602_v52  ;;  %v4467_v62 = vpop.eup %4466  ;;  %vm625_vm8 = vweird.f32 %v4465_v53  ;;  %v10638_v52 = vld [vmem:[#allocation70_spill] sm:$0xff] }
 0x110   :  { %v588_v54 = vsel %vm587_vm4, %v4461_v59, %v584_v56  ;;  %v628_v59 = vand.u32 2147483647, %v618_v58  ;;  %vm626_vm10 = vmor %vm624_vm9, %vm625_vm8  ;;  %v10636_v58 = vld [vmem:[#allocation55_spill] sm:$0xff]  ;;  %v10641_v56 = vld [vmem:[#allocation60_spill] sm:$0xff] }
 0x111   :  { %v593_v40 = vsel %vm590_vm5, %v592_v47, %v588_v54  ;;  %v607_v60 = vsel %vm606_vm6, %v4463_v42, %v603_v57  ;;  %v621_v39 = vsub.f32 1.0, %v620_v55  ;;  %v10642_v55 = vld [vmem:[#allocation74_spill] sm:$0xff]  ;;  %v10643_v54 = vld [vmem:[#allocation61_spill] sm:$0xff] }
 0x112   :  { %v612_v63 = vsel %vm609_vm7, %v611_v44, %v607_v60  ;;  %v635_v38 = vmul.f32 %v4467_v62, %v593_v40  ;;  %vm629_vm11 = vcmp.eq.f32.partialorder %v628_v59, 8.507059e+37  ;;  %v10634_v44 = vld [vmem:[#allocation66_spill] sm:$0xff]  ;;  %v10644_v62 = vld [vmem:[#allocation63_spill] sm:$0xff]  ;;  %v10645_v40 = vld [vmem:[#allocation64_spill] sm:$0xff] }
 0x113   :  { %v634_v36 = vmul.f32 0.0, %v612_v63  ;;  %v622_v45 = vmul.f32 %v4465_v53, %v621_v39  ;;  %v10632_v39 = vld [vmem:[#allocation51_spill] sm:$0xff]  ;;  %v10646_v60 = vld [vmem:[#allocation78_spill] sm:$0xff]  ;;  %v10647_v63 = vld [vmem:[#allocation65_spill] sm:$0xff] }
 0x114   :  { %v10650_v59 = vld [vmem:[#allocation82_spill] sm:$0xff] }
 0x115   :  { %v6117_v61 = vadd.f32 %v635_v38, %v634_v36  ;;  %v623_v51 = vadd.f32 %v4465_v53, %v622_v45  ;;  %v4315_v36 = vld [vmem:[%s9688_s2 + $0x8] sm:$0xff] }
 0x116   :  { %v10631_v38 = vld [vmem:[#allocation49_spill] sm:$0xff] }
 0x117   :  { %4468 = vtanh.f32 %v6117_v61  ;;  %v627_v43 = vsel %vm626_vm10, %v4465_v53, %v623_v51  ;;  %v10635_v45 = vld [vmem:[#allocation53_spill] sm:$0xff]  ;;  %v10640_v53 = vld [vmem:[#allocation59_spill] sm:$0xff] }
 0x118   :  { %v632_v47 = vsel %vm629_vm11, %v631_v50, %v627_v43  ;;  %v10648_v51 = vld [vmem:[#allocation67_spill] sm:$0xff]  ;;  %v10651_v43 = vld [vmem:[#allocation69_spill] sm:$0xff] }
 0x119   :  { %v10652_v50 = vld [vmem:[#allocation71_spill] sm:$0xff] }
 0x11d   :  { %v4469_v57 = vpop.eup %4468 }
 0x11e   :  { %v638_v42 = vmul.f32 %v4469_v57, %v632_v47  ;;  %v10653_v57 = vld [vmem:[#allocation72_spill] sm:$0xff]  ;;  %v10654_v47 = vld [vmem:[#allocation86_spill] sm:$0xff] }
 0x120   :  { %657 = vmatmul.f32.vlgmr.msra.gmra.mxu0 %v638_v42  ;;  %677 = vmatmul.f32.vlgmr.msra.gmra.mxu1 %v638_v42 }
 0x121   :  { %697 = vmatmul.f32.vlgmr.msra.gmra.mxu2 %v638_v42  ;;  %717 = vmatmul.f32.vlgmr.msra.gmra.mxu3 %v638_v42  ;;  %v10655_v42 = vld [vmem:[#allocation73_spill] sm:$0xff] }
 0x122   :  { %870 = vmatpush.msra.mxu0 %v5583_v0  ;;  %890 = vmatpush.msra.mxu1 %v5585_v1  ;;  %v10594_v0 = vld [vmem:[#allocation23_spill] sm:$0xff]  ;;  %v10595_v1 = vld [vmem:[#allocation16_spill] sm:$0xff] }
 0x123   :  { %910 = vmatpush.msra.mxu2 %v5611_v11  ;;  %930 = vmatpush.msra.mxu3 %v5587_v2  ;;  %v10596_v2 = vld [vmem:[#allocation17_spill] sm:$0xff] }
 0x124   :  { %871 = vmatpush.msra.mxu0 %v5591_v3  ;;  %891 = vmatpush.msra.mxu1 %v5593_v4  ;;  %v10597_v3 = vld [vmem:[#allocation18_spill] sm:$0xff]  ;;  %v10598_v4 = vld [vmem:[#allocation27_spill] sm:$0xff]  ;;  %v10605_v11 = vld [vmem:[#allocation25_spill] sm:$0xff] }
 0x125   :  { %911 = vmatpush.msra.mxu2 %v5617_v13  ;;  %931 = vmatpush.msra.mxu3 %v5595_v5  ;;  %v10599_v5 = vld [vmem:[#allocation19_spill] sm:$0xff]  ;;  %v10607_v13 = vld [vmem:[#allocation26_spill] sm:$0xff] }
 0x126   :  { %872 = vmatpush.msra.mxu0 %v5598_v6  ;;  %892 = vmatpush.msra.mxu1 %v5600_v7  ;;  %v10600_v6 = vld [vmem:[#allocation20_spill] sm:$0xff]  ;;  %v10601_v7 = vld [vmem:[#allocation21_spill] sm:$0xff] }
 0x127   :  { %912 = vmatpush.msra.mxu2 %v5629_v17  ;;  %932 = vmatpush.msra.mxu3 %v5604_v8  ;;  %v10602_v8 = vld [vmem:[#allocation31_spill] sm:$0xff]  ;;  %v10611_v17 = vld [vmem:[#allocation30_spill] sm:$0xff] }
 0x128   :  { %737 = vmatmul.f32.vlgmr.msrb.gmra.mxu0 %v4315_v36  ;;  %757 = vmatmul.f32.vlgmr.msrb.gmra.mxu1 %v4315_v36 }
 0x129   :  { %777 = vmatmul.f32.vlgmr.msrb.gmra.mxu2 %v4315_v36  ;;  %797 = vmatmul.f32.vlgmr.msrb.gmra.mxu3 %v4315_v36  ;;  %v10656_v36 = vld [vmem:[#allocation75_spill] sm:$0xff] }
 0x12a   :  { %873 = vmatpush.msra.mxu0 %v5607_v9  ;;  %893 = vmatpush.msra.mxu1 %v5609_v10  ;;  %v10603_v9 = vld [vmem:[#allocation22_spill] sm:$0xff]  ;;  %v10604_v10 = vld [vmem:[#allocation24_spill] sm:$0xff] }
 0x12b   :  { %913 = vmatpush.msra.mxu2 %v5641_v21  ;;  %933 = vmatpush.msra.mxu3 %v5615_v12  ;;  %v10606_v12 = vld [vmem:[#allocation35_spill] sm:$0xff]  ;;  %v10615_v21 = vld [vmem:[#allocation34_spill] sm:$0xff] }
 0x12c   :  { %874 = vmatpush.msra.mxu0 %v5621_v14  ;;  %894 = vmatpush.msra.mxu1 %v5623_v15  ;;  %v10608_v14 = vld [vmem:[#allocation28_spill] sm:$0xff]  ;;  %v10609_v15 = vld [vmem:[#allocation29_spill] sm:$0xff] }
 0x12d   :  { %914 = vmatpush.msra.mxu2 %v5653_v25  ;;  %934 = vmatpush.msra.mxu3 %v5627_v16  ;;  %v10610_v16 = vld [vmem:[#allocation42_spill] sm:$0xff] }
 0x12e   :  { %875 = vmatpush.msra.mxu0 %v5633_v18  ;;  %895 = vmatpush.msra.mxu1 %v5635_v19  ;;  %v10612_v18 = vld [vmem:[#allocation32_spill] sm:$0xff]  ;;  %v10613_v19 = vld [vmem:[#allocation33_spill] sm:$0xff]  ;;  %v10619_v25 = vld [vmem:[#allocation38_spill] sm:$0xff] }
 0x12f   :  { %915 = vmatpush.msra.mxu2 %v5665_v29  ;;  %935 = vmatpush.msra.mxu3 %v5639_v20  ;;  %v10614_v20 = vld [vmem:[#allocation46_spill] sm:$0xff]  ;;  %v10623_v29 = vld [vmem:[#allocation41_spill] sm:$0xff] }
 0x130   :  { %876 = vmatpush.msra.mxu0 %v5645_v22  ;;  %896 = vmatpush.msra.mxu1 %v5647_v23  ;;  %v10616_v22 = vld [vmem:[#allocation36_spill] sm:$0xff]  ;;  %v10617_v23 = vld [vmem:[#allocation37_spill] sm:$0xff] }
 0x131   :  { %916 = vmatpush.msra.mxu2 %v5677_v33  ;;  %936 = vmatpush.msra.mxu3 %v5651_v24  ;;  %v10618_v24 = vld [vmem:[#allocation50_spill] sm:$0xff]  ;;  %v10627_v33 = vld [vmem:[#allocation45_spill] sm:$0xff] }
 0x132   :  { %877 = vmatpush.msra.mxu0 %v5657_v26  ;;  %897 = vmatpush.msra.mxu1 %v5659_v27  ;;  %v10620_v26 = vld [vmem:[#allocation39_spill] sm:$0xff]  ;;  %v10621_v27 = vld [vmem:[#allocation40_spill] sm:$0xff] }
 0x133   :  { %917 = vmatpush.msra.mxu2 %v5689_v37  ;;  %937 = vmatpush.msra.mxu3 %v5663_v28  ;;  %v10622_v28 = vld [vmem:[#allocation54_spill] sm:$0xff] }
 0x134   :  { %878 = vmatpush.msra.mxu0 %v5669_v30  ;;  %898 = vmatpush.msra.mxu1 %v5671_v31  ;;  %v10624_v30 = vld [vmem:[#allocation43_spill] sm:$0xff]  ;;  %v10625_v31 = vld [vmem:[#allocation44_spill] sm:$0xff]  ;;  %v10630_v37 = vld [vmem:[#allocation62_spill] sm:$0xff] }
 0x135   :  { %918 = vmatpush.msra.mxu2 %v5701_v41  ;;  %938 = vmatpush.msra.mxu3 %v5675_v32  ;;  %v10626_v32 = vld [vmem:[#allocation58_spill] sm:$0xff]  ;;  %v10633_v41 = vld [vmem:[#allocation52_spill] sm:$0xff] }
 0x136   :  { %879 = vmatpush.msra.mxu0 %v5681_v34  ;;  %899 = vmatpush.msra.mxu1 %v5683_v35  ;;  %v10628_v34 = vld [vmem:[#allocation47_spill] sm:$0xff]  ;;  %v10629_v35 = vld [vmem:[#allocation48_spill] sm:$0xff] }
 0x137   :  { %919 = vmatpush.msra.mxu2 %v10594_v0  ;;  %939 = vmatpush.msra.mxu3 %v10595_v1  ;;  %v10657_v0 = vld [vmem:[#allocation76_spill] sm:$0xff]  ;;  %v10658_v1 = vld [vmem:[#allocation90_spill] sm:$0xff] }
 0x138   :  { %880 = vmatpush.msra.mxu0 %v10596_v2  ;;  %900 = vmatpush.msra.mxu1 %v10597_v3  ;;  %v10659_v2 = vld [vmem:[#allocation77_spill] sm:$0xff]  ;;  %v10660_v3 = vld [vmem:[#allocation79_spill] sm:$0xff] }
 0x139   :  { %920 = vmatpush.msra.mxu2 %v10598_v4  ;;  %940 = vmatpush.msra.mxu3 %v10599_v5  ;;  %v10661_v4 = vld [vmem:[#allocation80_spill] sm:$0xff]  ;;  %v10662_v5 = vld [vmem:[#allocation94_spill] sm:$0xff] }
 0x13a   :  { %881 = vmatpush.msra.mxu0 %v10600_v6  ;;  %901 = vmatpush.msra.mxu1 %v10601_v7  ;;  %v10663_v6 = vld [vmem:[#allocation81_spill] sm:$0xff]  ;;  %v10664_v7 = vld [vmem:[#allocation83_spill] sm:$0xff] }
 0x13b   :  { %921 = vmatpush.msra.mxu2 %v10602_v8  ;;  %941 = vmatpush.msra.mxu3 %v10603_v9  ;;  %v10665_v8 = vld [vmem:[#allocation84_spill] sm:$0xff]  ;;  %v10666_v9 = vld [vmem:[#allocation98_spill] sm:$0xff] }
 0x13c   :  { %882 = vmatpush.msra.mxu0 %v10604_v10  ;;  %902 = vmatpush.msra.mxu1 %v10605_v11  ;;  %v10667_v10 = vld [vmem:[#allocation85_spill] sm:$0xff]  ;;  %v10668_v11 = vld [vmem:[#allocation87_spill] sm:$0xff] }
 0x13d   :  { %922 = vmatpush.msra.mxu2 %v10606_v12  ;;  %942 = vmatpush.msra.mxu3 %v10607_v13  ;;  %v10669_v12 = vld [vmem:[#allocation88_spill] sm:$0xff]  ;;  %v10670_v13 = vld [vmem:[#allocation102_spill] sm:$0xff] }
 0x13e   :  { %883 = vmatpush.msra.mxu0 %v10608_v14  ;;  %903 = vmatpush.msra.mxu1 %v10609_v15  ;;  %v10671_v14 = vld [vmem:[#allocation89_spill] sm:$0xff]  ;;  %v10672_v15 = vld [vmem:[#allocation91_spill] sm:$0xff] }
 0x13f   :  { %923 = vmatpush.msra.mxu2 %v10610_v16  ;;  %943 = vmatpush.msra.mxu3 %v10611_v17  ;;  %v10673_v16 = vld [vmem:[#allocation92_spill] sm:$0xff]  ;;  %v10674_v17 = vld [vmem:[#allocation103_spill] sm:$0xff] }
 0x140   :  { %884 = vmatpush.msra.mxu0 %v10612_v18  ;;  %904 = vmatpush.msra.mxu1 %v10613_v19  ;;  %v10675_v18 = vld [vmem:[#allocation93_spill] sm:$0xff]  ;;  %v10676_v19 = vld [vmem:[#allocation95_spill] sm:$0xff] }
 0x141   :  { %924 = vmatpush.msra.mxu2 %v10614_v20  ;;  %944 = vmatpush.msra.mxu3 %v10615_v21  ;;  %v10677_v20 = vld [vmem:[#allocation96_spill] sm:$0xff] }
 0x142   :  { %885 = vmatpush.msra.mxu0 %v10616_v22  ;;  %905 = vmatpush.msra.mxu1 %v10617_v23  ;;  %v10678_v21 = vld [vmem:[#allocation104_spill] sm:$0xff]  ;;  %v10679_v22 = vld [vmem:[#allocation97_spill] sm:$0xff]  ;;  %v10680_v23 = vld [vmem:[#allocation99_spill] sm:$0xff] }
 0x143   :  { %925 = vmatpush.msra.mxu2 %v10618_v24  ;;  %945 = vmatpush.msra.mxu3 %v10619_v25  ;;  %v10681_v24 = vld [vmem:[#allocation100_spill] sm:$0xff]  ;;  %v10682_v25 = vld [vmem:[#allocation105_spill] sm:$0xff] }
 0x144   :  { %950 = vmatpush.msrb.mxu0 %v10620_v26  ;;  %970 = vmatpush.msrb.mxu1 %v10621_v27  ;;  %v10683_v26 = vld [vmem:[#allocation101_spill] sm:$0xff] }
 0x145   :  { %990 = vmatpush.msrb.mxu2 %v10622_v28  ;;  %1010 = vmatpush.msrb.mxu3 %v10623_v29 }
 0x146   :  { %951 = vmatpush.msrb.mxu0 %v10624_v30  ;;  %971 = vmatpush.msrb.mxu1 %v10625_v31 }
 0x147   :  { %991 = vmatpush.msrb.mxu2 %v10626_v32  ;;  %1011 = vmatpush.msrb.mxu3 %v10627_v33 }
 0x148   :  { %952 = vmatpush.msrb.mxu0 %v10628_v34  ;;  %972 = vmatpush.msrb.mxu1 %v10629_v35  ;;  %v10684_v34 = vld [vmem:[#allocation106_spill] sm:$0xff] }
 0x149   :  { %992 = vmatpush.msrb.mxu2 %v10630_v37  ;;  %1012 = vmatpush.msrb.mxu3 %v10631_v38  ;;  %v10685_v37 = vld [vmem:[#allocation107_spill] sm:$0xff] }
 0x14a   :  { %953 = vmatpush.msrb.mxu0 %v10632_v39  ;;  %973 = vmatpush.msrb.mxu1 %v10633_v41 }
 0x14b   :  { %993 = vmatpush.msrb.mxu2 %v10634_v44  ;;  %1013 = vmatpush.msrb.mxu3 %v10635_v45 }
 0x14c   :  { %954 = vmatpush.msrb.mxu0 %v10636_v58  ;;  %974 = vmatpush.msrb.mxu1 %v10637_v49  ;;  %v10686_v49 = vld [vmem:[#allocation108_spill] sm:$0xff] }
 0x14d   :  { %994 = vmatpush.msrb.mxu2 %v10638_v52  ;;  %1014 = vmatpush.msrb.mxu3 %v10639_v46 }
 0x14e   :  { %955 = vmatpush.msrb.mxu0 %v10640_v53  ;;  %975 = vmatpush.msrb.mxu1 %v10641_v56 }
 0x14f   :  { %995 = vmatpush.msrb.mxu2 %v10642_v55  ;;  %1015 = vmatpush.msrb.mxu3 %v10643_v54 }
 0x150   :  { %956 = vmatpush.msrb.mxu0 %v10644_v62  ;;  %976 = vmatpush.msrb.mxu1 %v10645_v40 }
 0x151   :  { %996 = vmatpush.msrb.mxu2 %v10646_v60  ;;  %1016 = vmatpush.msrb.mxu3 %v10647_v63 }
 0x152   :  { %957 = vmatpush.msrb.mxu0 %v10648_v51  ;;  %977 = vmatpush.msrb.mxu1 %v10649_v48  ;;  %v10687_v48 = vld [vmem:[#allocation109_spill] sm:$0xff] }
 0x153   :  { %997 = vmatpush.msrb.mxu2 %v10650_v59  ;;  %1017 = vmatpush.msrb.mxu3 %v10651_v43 }
 0x154   :  { %958 = vmatpush.msrb.mxu0 %v10652_v50  ;;  %978 = vmatpush.msrb.mxu1 %v10653_v57 }
 0x155   :  { %998 = vmatpush.msrb.mxu2 %v10654_v47  ;;  %1018 = vmatpush.msrb.mxu3 %v10655_v42 }
 0x156   :  { %959 = vmatpush.msrb.mxu0 %v10656_v36  ;;  %979 = vmatpush.msrb.mxu1 %v10657_v0 }
 0x157   :  { %999 = vmatpush.msrb.mxu2 %v10658_v1  ;;  %1019 = vmatpush.msrb.mxu3 %v10659_v2 }
 0x158   :  { %960 = vmatpush.msrb.mxu0 %v10660_v3  ;;  %980 = vmatpush.msrb.mxu1 %v10661_v4 }
 0x159   :  { %1000 = vmatpush.msrb.mxu2 %v10662_v5  ;;  %1020 = vmatpush.msrb.mxu3 %v10663_v6 }
 0x15a   :  { %961 = vmatpush.msrb.mxu0 %v10664_v7  ;;  %981 = vmatpush.msrb.mxu1 %v10665_v8 }
 0x15b   :  { %1001 = vmatpush.msrb.mxu2 %v10666_v9  ;;  %1021 = vmatpush.msrb.mxu3 %v10667_v10 }
 0x15c   :  { %962 = vmatpush.msrb.mxu0 %v10668_v11  ;;  %982 = vmatpush.msrb.mxu1 %v10669_v12 }
 0x15d   :  { %1002 = vmatpush.msrb.mxu2 %v10670_v13  ;;  %1022 = vmatpush.msrb.mxu3 %v10671_v14 }
 0x15e   :  { %963 = vmatpush.msrb.mxu0 %v10672_v15  ;;  %983 = vmatpush.msrb.mxu1 %v10673_v16 }
 0x15f   :  { %1003 = vmatpush.msrb.mxu2 %v10674_v17  ;;  %1023 = vmatpush.msrb.mxu3 %v10675_v18 }
 0x160   :  { %964 = vmatpush.msrb.mxu0 %v10676_v19  ;;  %984 = vmatpush.msrb.mxu1 %v10677_v20 }
 0x161   :  { %1004 = vmatpush.msrb.mxu2 %v10678_v21  ;;  %1024 = vmatpush.msrb.mxu3 %v10679_v22 }
 0x162   :  { %965 = vmatpush.msrb.mxu0 %v10680_v23  ;;  %985 = vmatpush.msrb.mxu1 %v10681_v24 }
 0x163   :  { %1005 = vmatpush.msrb.mxu2 %v10682_v25  ;;  %1025 = vmatpush.msrb.mxu3 %v10683_v26 }
 0x19d   :  { %v658_v27 = vpop.f32.mrf.mxu0  ;;  %v678_v28 = vpop.f32.mrf.mxu1 }
 0x1a4   :  { %v718_v29 = vpop.f32.mrf.mxu3  ;;  %v698_v39 = vpop.f32.mrf.mxu2 }
 0x1a5   :  { %v738_v30 = vpop.f32.mrf.mxu0  ;;  %v758_v31 = vpop.f32.mrf.mxu1 }
 0x1a6   :  { %v739_v32 = vadd.f32 %v738_v30, %v658_v27  ;;  %v759_v33 = vadd.f32 %v758_v31, %v678_v28  ;;  %v6265_v30 = vld [vmem:[#allocation7 + $0x1f0] sm:$0xff]  ;;  %v6268_v31 = vld [vmem:[#allocation7 + $0x1f8] sm:$0xff] }
 0x1a8   :  { %v801_v35 = vadd.f32 %v739_v32, %v10684_v34  ;;  %v802_v38 = vadd.f32 %v759_v33, %v10685_v37  ;;  %v6271_v32 = vld [vmem:[#allocation7 + $0x1c0] sm:$0xff]  ;;  %v6274_v33 = vld [vmem:[#allocation7 + $0x1c8] sm:$0xff] }
 0x1aa   :  { %v4316_v41 = vmul.f32 -1.442695, %v801_v35  ;;  %v4317_v44 = vmul.f32 -1.442695, %v802_v38  ;;  %v4319_v35 = vld [vmem:[%s9688_s2 + $0x10] sm:$0xff] }
 0x1ab   :  { %v6280_v38 = vld [vmem:[#allocation7 + $0x1d0] sm:$0xff] }
 0x1ac   :  { %4470 = vpow2.f32 %v4316_v41  ;;  %v798_v45 = vpop.f32.mrf.mxu3  ;;  %v778_v62 = vpop.f32.mrf.mxu2  ;;  %v6286_v41 = vld [vmem:[#allocation7 + $0x1a0] sm:$0xff] }
 0x1ad   :  { %4472 = vpow2.f32 %v4317_v44  ;;  %v799_v58 = vadd.f32 %v798_v45, %v718_v29  ;;  %v779_v40 = vadd.f32 %v778_v62, %v698_v39  ;;  %v6262_v29 = vld [vmem:[#allocation7 + $0x1e8] sm:$0xff]  ;;  %v6283_v39 = vld [vmem:[#allocation7 + $0x1d8] sm:$0xff]  ;;  %v6292_v45 = vld [vmem:[#allocation7 + $0x1b0] sm:$0xff] }
 0x1ae   :  { %v6289_v44 = vld [vmem:[#allocation7 + $0x1a8] sm:$0xff]  ;;  %v6316_v62 = vld [vmem:[#allocation7 + $0x170] sm:$0xff] }
 0x1af   :  { %v804_v52 = vadd.f32 %v799_v58, %v10686_v49  ;;  %v803_v59 = vadd.f32 %v779_v40, %v10687_v48  ;;  %v6295_v58 = vld [vmem:[#allocation7 + $0x1b8] sm:$0xff] }
 0x1b0   :  { %v6319_v40 = vld [vmem:[#allocation7 + $0x178] sm:$0xff] }
 0x1b1   :  { %v4318_v46 = vmul.f32 -1.442695, %v804_v52  ;;  %v6298_v52 = vld [vmem:[#allocation7 + $0x180] sm:$0xff] }
 0x1b2   :  { %v4471_v53 = vpop.eup %4470 }
 0x1b3   :  { %v4473_v56 = vpop.eup %4472  ;;  %v808_v55 = vadd.f32 1.0, %v4471_v53  ;;  %4474 = vpow2.f32 %v4318_v46  ;;  %v6301_v46 = vld [vmem:[#allocation7 + $0x188] sm:$0xff]  ;;  %v6304_v53 = vld [vmem:[#allocation7 + $0x190] sm:$0xff] }
 0x1b4   :  { %v827_v54 = vadd.f32 1.0, %v4473_v56  ;;  %v6307_v56 = vld [vmem:[#allocation7 + $0x198] sm:$0xff] }
 0x1b5   :  { %4476 = vrcp.f32 %v808_v55  ;;  %v820_v36 = vand.u32 2147483648, %v808_v55  ;;  %v818_v2 = vand.u32 2147483647, %v808_v55  ;;  %vm814_vm14 = vweird.f32 %v808_v55 }
 0x1b6   :  { %4478 = vrcp.f32 %v827_v54  ;;  %v839_v0 = vand.u32 2147483648, %v827_v54  ;;  %v837_v4 = vand.u32 2147483647, %v827_v54  ;;  %vm833_vm15 = vweird.f32 %v827_v54 }
 0x1b7   :  { %v821_v7 = vor.u32 1.1754944e-38, %v820_v36  ;;  %vm819_vm2 = vcmp.eq.f32.partialorder %v818_v2, 8.507059e+37  ;;  %v6349_v36 = vld [vmem:[#allocation7 + $0x108] sm:$0xff]  ;;  %v6358_v2 = vld [vmem:[#allocation7 + $0xe0] sm:$0xff] }
 0x1b8   :  { %v840_v10 = vor.u32 1.1754944e-38, %v839_v0  ;;  %vm838_vm3 = vcmp.eq.f32.partialorder %v837_v4, 8.507059e+37  ;;  %v6352_v0 = vld [vmem:[#allocation7 + $0x110] sm:$0xff] }
 0x1b9   :  { %v4475_v60 = vpop.eup %4474  ;;  %v6364_v4 = vld [vmem:[#allocation7 + $0xf0] sm:$0xff] }
 0x1ba   :  { %v847_v63 = vadd.f32 1.0, %v4475_v60  ;;  %v6322_v60 = vld [vmem:[#allocation7 + $0x140] sm:$0xff] }
 0x1bb   :  { %v4477_v51 = vpop.eup %4476 }
 0x1bc   :  { %v4479_v43 = vpop.eup %4478  ;;  %v810_v50 = vmul.f32 %v4477_v51, %v808_v55  ;;  %4480 = vrcp.f32 %v847_v63  ;;  %vm815_vm12 = vweird.f32 %v4477_v51  ;;  %v859_v22 = vand.u32 2147483648, %v847_v63  ;;  %v6310_v55 = vld [vmem:[#allocation7 + $0x160] sm:$0xff] }
 0x1bd   :  { %v829_v57 = vmul.f32 %v4479_v43, %v827_v54  ;;  %4482 = vtanh.f32 %v803_v59  ;;  %vm834_vm13 = vweird.f32 %v4479_v43  ;;  %vm816_vm0 = vmor %vm814_vm14, %vm815_vm12  ;;  %vm853_vm5 = vweird.f32 %v847_v63  ;;  %v6313_v54 = vld [vmem:[#allocation7 + $0x168] sm:$0xff]  ;;  %v6331_v59 = vld [vmem:[#allocation7 + $0x158] sm:$0xff] }
 0x1be   :  { %v811_v47 = vsub.f32 1.0, %v810_v50  ;;  %vm835_vm1 = vmor %vm833_vm15, %vm834_vm13  ;;  %v857_v23 = vand.u32 2147483647, %v847_v63  ;;  %v860_v25 = vor.u32 1.1754944e-38, %v859_v22  ;;  %v6337_v50 = vld [vmem:[#allocation7 + $0x128] sm:$0xff]  ;;  %v6415_v22 = vld [vmem:[#allocation7 + $0x78] sm:$0xff] }
 0x1bf   :  { %v830_v42 = vsub.f32 1.0, %v829_v57  ;;  %v6340_v57 = vld [vmem:[#allocation7 + $0x130] sm:$0xff]  ;;  %10701 = vst [vmem:[#allocation26_spill] sm:$0xff] %v6415_v22 }
 0x1c0   :  { %v812_v1 = vmul.f32 %v4477_v51, %v811_v47  ;;  %vm858_vm7 = vcmp.eq.f32.partialorder %v857_v23, 8.507059e+37  ;;  %v6343_v47 = vld [vmem:[#allocation7 + $0x138] sm:$0xff]  ;;  %v6418_v23 = vld [vmem:[#allocation7 + $0x40] sm:$0xff] }
 0x1c1   :  { %v831_v3 = vmul.f32 %v4479_v43, %v830_v42  ;;  %v6346_v42 = vld [vmem:[#allocation7 + $0x100] sm:$0xff]  ;;  %10702 = vst [vmem:[#allocation28_spill] sm:$0xff] %v6418_v23 }
 0x1c2   :  { %v4481_v5 = vpop.eup %4480  ;;  %v813_v6 = vadd.f32 %v4477_v51, %v812_v1  ;;  %v6355_v1 = vld [vmem:[#allocation7 + $0x118] sm:$0xff] }
 0x1c3   :  { %v832_v8 = vadd.f32 %v4479_v43, %v831_v3  ;;  %v849_v9 = vmul.f32 %v4481_v5, %v847_v63  ;;  %v4483_v12 = vpop.eup %4482  ;;  %vm854_vm4 = vweird.f32 %v4481_v5  ;;  %v6325_v63 = vld [vmem:[#allocation7 + $0x148] sm:$0xff] }
 0x1c4   :  { %v817_v11 = vsel %vm816_vm0, %v4477_v51, %v813_v6  ;;  %vm855_vm6 = vmor %vm853_vm5, %vm854_vm4  ;;  %v6328_v51 = vld [vmem:[#allocation7 + $0x150] sm:$0xff]  ;;  %v6361_v3 = vld [vmem:[#allocation7 + $0xe8] sm:$0xff] }
 0x1c5   :  { %v822_v13 = vsel %vm819_vm2, %v821_v7, %v817_v11  ;;  %v836_v14 = vsel %vm835_vm1, %v4479_v43, %v832_v8  ;;  %v850_v15 = vsub.f32 1.0, %v849_v9  ;;  %v6334_v43 = vld [vmem:[#allocation7 + $0x120] sm:$0xff]  ;;  %v6373_v7 = vld [vmem:[#allocation7 + $0xc8] sm:$0xff]  ;;  %v6376_v8 = vld [vmem:[#allocation7 + $0xd0] sm:$0xff] }
 0x1c6   :  { %v841_v16 = vsel %vm838_vm3, %v840_v10, %v836_v14  ;;  %v864_v17 = vmul.f32 %v4483_v12, %v822_v13  ;;  %v6370_v6 = vld [vmem:[#allocation7 + $0xc0] sm:$0xff]  ;;  %10688 = vst [vmem:[#allocation23_spill] sm:$0xff] %v6376_v8  ;;  %v6379_v9 = vld [vmem:[#allocation7 + $0xd8] sm:$0xff]  ;;  %v6385_v11 = vld [vmem:[#allocation7 + $0xa8] sm:$0xff] }
 0x1c7   :  { %v863_v18 = vmul.f32 %v841_v16, %v6117_v61  ;;  %v851_v19 = vmul.f32 %v4481_v5, %v850_v15  ;;  %v6259_v61 = vld [vmem:[#allocation7 + $0x1e0] sm:$0xff]  ;;  %10689 = vst [vmem:[#allocation16_spill] sm:$0xff] %v6379_v9  ;;  %v6388_v12 = vld [vmem:[#allocation7 + $0xb0] sm:$0xff]  ;;  %v6391_v13 = vld [vmem:[#allocation7 + $0xb8] sm:$0xff] }
 0x1c8   :  { %v6382_v10 = vld [vmem:[#allocation7 + $0xa0] sm:$0xff]  ;;  %10691 = vst [vmem:[#allocation18_spill] sm:$0xff] %v6385_v11  ;;  %v6397_v15 = vld [vmem:[#allocation7 + $0x88] sm:$0xff]  ;;  %v6400_v16 = vld [vmem:[#allocation7 + $0x90] sm:$0xff] }
 0x1c9   :  { %v6256_v20 = vadd.f32 %v864_v17, %v863_v18  ;;  %v852_v21 = vadd.f32 %v4481_v5, %v851_v19  ;;  %10690 = vst [vmem:[#allocation17_spill] sm:$0xff] %v6382_v10  ;;  %v6394_v14 = vld [vmem:[#allocation7 + $0x80] sm:$0xff]  ;;  %v6403_v17 = vld [vmem:[#allocation7 + $0x98] sm:$0xff]  ;;  %v6409_v19 = vld [vmem:[#allocation7 + $0x68] sm:$0xff] }
 0x1ca   :  { %10692 = vst [vmem:[#allocation27_spill] sm:$0xff] %v6388_v12  ;;  %v6406_v18 = vld [vmem:[#allocation7 + $0x60] sm:$0xff] }
 0x1cb   :  { %4484 = vtanh.f32 %v6256_v20  ;;  %v856_v24 = vsel %vm855_vm6, %v4481_v5, %v852_v21  ;;  %v6367_v5 = vld [vmem:[#allocation7 + $0xf8] sm:$0xff]  ;;  %10693 = vst [vmem:[#allocation19_spill] sm:$0xff] %v6391_v13  ;;  %v6412_v21 = vld [vmem:[#allocation7 + $0x70] sm:$0xff] }
 0x1cc   :  { %v861_v27 = vsel %vm858_vm7, %v860_v25, %v856_v24  ;;  %10694 = vst [vmem:[#allocation20_spill] sm:$0xff] %v6394_v14  ;;  %v6421_v24 = vld [vmem:[#allocation7 + $0x48] sm:$0xff]  ;;  %v6424_v25 = vld [vmem:[#allocation7 + $0x50] sm:$0xff] }
 0x1cd   :  { %10695 = vst [vmem:[#allocation21_spill] sm:$0xff] %v6397_v15 }
 0x1ce   :  { %10696 = vst [vmem:[#allocation31_spill] sm:$0xff] %v6400_v16 }
 0x1cf   :  { %10697 = vst [vmem:[#allocation22_spill] sm:$0xff] %v6403_v17 }
 0x1d0   :  { %10698 = vst [vmem:[#allocation24_spill] sm:$0xff] %v6406_v18 }
 0x1d1   :  { %v4485_v26 = vpop.eup %4484  ;;  %10699 = vst [vmem:[#allocation25_spill] sm:$0xff] %v6409_v19 }
 0x1d2   :  { %v867_v28 = vmul.f32 %v4485_v26, %v861_v27  ;;  %10700 = vst [vmem:[#allocation35_spill] sm:$0xff] %v6412_v21  ;;  %v6427_v26 = vld [vmem:[#allocation7 + $0x58] sm:$0xff]  ;;  %v6430_v27 = vld [vmem:[#allocation7 + $0x20] sm:$0xff] }
 0x1d3   :  { %10703 = vst [vmem:[#allocation29_spill] sm:$0xff] %v6421_v24 }
 0x1d4   :  { %886 = vmatmul.f32.vlgmr.msra.gmra.mxu0 %v867_v28  ;;  %906 = vmatmul.f32.vlgmr.msra.gmra.mxu1 %v867_v28  ;;  %10704 = vst [vmem:[#allocation42_spill] sm:$0xff] %v6424_v25 }
 0x1d5   :  { %926 = vmatmul.f32.vlgmr.msra.gmra.mxu2 %v867_v28  ;;  %946 = vmatmul.f32.vlgmr.msra.gmra.mxu3 %v867_v28  ;;  %10705 = vst [vmem:[#allocation30_spill] sm:$0xff] %v6427_v26  ;;  %v6433_v28 = vld [vmem:[#allocation7 + $0x28] sm:$0xff] }
 0x1d6   :  { %1099 = vmatpush.msra.mxu0 %v6259_v61  ;;  %1119 = vmatpush.msra.mxu1 %v6262_v29  ;;  %10706 = vst [vmem:[#allocation32_spill] sm:$0xff] %v6430_v27 }
 0x1d7   :  { %1139 = vmatpush.msra.mxu2 %v6265_v30  ;;  %1159 = vmatpush.msra.mxu3 %v6268_v31  ;;  %10707 = vst [vmem:[#allocation33_spill] sm:$0xff] %v6433_v28 }
 0x1d8   :  { %1100 = vmatpush.msra.mxu0 %v6271_v32  ;;  %1120 = vmatpush.msra.mxu1 %v6274_v33 }
 0x1d9   :  { %1140 = vmatpush.msra.mxu2 %v6280_v38  ;;  %1160 = vmatpush.msra.mxu3 %v6283_v39 }
 0x1da   :  { %1101 = vmatpush.msra.mxu0 %v6286_v41  ;;  %1121 = vmatpush.msra.mxu1 %v6289_v44 }
 0x1db   :  { %1141 = vmatpush.msra.mxu2 %v6292_v45  ;;  %1161 = vmatpush.msra.mxu3 %v6295_v58 }
 0x1dc   :  { %966 = vmatmul.f32.vlgmr.msrb.gmra.mxu0 %v4319_v35  ;;  %986 = vmatmul.f32.vlgmr.msrb.gmra.mxu1 %v4319_v35 }
 0x1dd   :  { %1006 = vmatmul.f32.vlgmr.msrb.gmra.mxu2 %v4319_v35  ;;  %1026 = vmatmul.f32.vlgmr.msrb.gmra.mxu3 %v4319_v35  ;;  %v6436_v35 = vld [vmem:[#allocation7 + $0x30] sm:$0xff] }
 0x1de   :  { %1102 = vmatpush.msra.mxu0 %v6298_v52  ;;  %1122 = vmatpush.msra.mxu1 %v6301_v46  ;;  %10708 = vst [vmem:[#allocation46_spill] sm:$0xff] %v6436_v35 }
 0x1df   :  { %1142 = vmatpush.msra.mxu2 %v6304_v53  ;;  %1162 = vmatpush.msra.mxu3 %v6307_v56 }
 0x1e0   :  { %1103 = vmatpush.msra.mxu0 %v6310_v55  ;;  %1123 = vmatpush.msra.mxu1 %v6313_v54 }
 0x1e1   :  { %1143 = vmatpush.msra.mxu2 %v6316_v62  ;;  %1163 = vmatpush.msra.mxu3 %v6319_v40 }
 0x1e2   :  { %1104 = vmatpush.msra.mxu0 %v6322_v60  ;;  %1124 = vmatpush.msra.mxu1 %v6325_v63 }
 0x1e3   :  { %1144 = vmatpush.msra.mxu2 %v6328_v51  ;;  %1164 = vmatpush.msra.mxu3 %v6331_v59 }
 0x1e4   :  { %1105 = vmatpush.msra.mxu0 %v6334_v43  ;;  %1125 = vmatpush.msra.mxu1 %v6337_v50 }
 0x1e5   :  { %1145 = vmatpush.msra.mxu2 %v6340_v57  ;;  %1165 = vmatpush.msra.mxu3 %v6343_v47 }
 0x1e6   :  { %1106 = vmatpush.msra.mxu0 %v6346_v42  ;;  %1126 = vmatpush.msra.mxu1 %v6349_v36 }
 0x1e7   :  { %1146 = vmatpush.msra.mxu2 %v6352_v0  ;;  %1166 = vmatpush.msra.mxu3 %v6355_v1 }
 0x1e8   :  { %1107 = vmatpush.msra.mxu0 %v6358_v2  ;;  %1127 = vmatpush.msra.mxu1 %v6361_v3 }
 0x1e9   :  { %1147 = vmatpush.msra.mxu2 %v6364_v4  ;;  %1167 = vmatpush.msra.mxu3 %v6367_v5 }
 0x1ea   :  { %1108 = vmatpush.msra.mxu0 %v6370_v6  ;;  %1128 = vmatpush.msra.mxu1 %v6373_v7 }
 0x1eb   :  { %1148 = vmatpush.msra.mxu2 %v6376_v8  ;;  %1168 = vmatpush.msra.mxu3 %v6379_v9 }
 0x1ec   :  { %1109 = vmatpush.msra.mxu0 %v6382_v10  ;;  %1129 = vmatpush.msra.mxu1 %v6385_v11 }
 0x1ed   :  { %1149 = vmatpush.msra.mxu2 %v6388_v12  ;;  %1169 = vmatpush.msra.mxu3 %v6391_v13 }
 0x1ee   :  { %1110 = vmatpush.msra.mxu0 %v6394_v14  ;;  %1130 = vmatpush.msra.mxu1 %v6397_v15 }
 0x1ef   :  { %1150 = vmatpush.msra.mxu2 %v6400_v16  ;;  %1170 = vmatpush.msra.mxu3 %v6403_v17 }
 0x1f0   :  { %1111 = vmatpush.msra.mxu0 %v6406_v18  ;;  %1131 = vmatpush.msra.mxu1 %v6409_v19 }
 0x1f1   :  { %1151 = vmatpush.msra.mxu2 %v6412_v21  ;;  %1171 = vmatpush.msra.mxu3 %v6415_v22 }
 0x1f2   :  { %1112 = vmatpush.msra.mxu0 %v6418_v23  ;;  %1132 = vmatpush.msra.mxu1 %v6421_v24  ;;  %v6439_v24 = vld [vmem:[#allocation7 + $0x38] sm:$0xff] }
 0x1f3   :  { %1152 = vmatpush.msra.mxu2 %v6424_v25  ;;  %1172 = vmatpush.msra.mxu3 %v6427_v26  ;;  %10709 = vst [vmem:[#allocation34_spill] sm:$0xff] %v6439_v24  ;;  %v6442_v25 = vld [vmem:[#allocation7] sm:$0xff]  ;;  %v6445_v26 = vld [vmem:[#allocation7 + $0x8] sm:$0xff] }
 0x1f4   :  { %1113 = vmatpush.msra.mxu0 %v6430_v27  ;;  %1133 = vmatpush.msra.mxu1 %v6433_v28  ;;  %10710 = vst [vmem:[#allocation36_spill] sm:$0xff] %v6442_v25  ;;  %v6448_v27 = vld [vmem:[#allocation7 + $0x10] sm:$0xff]  ;;  %v6451_v28 = vld [vmem:[#allocation7 + $0x18] sm:$0xff] }
 0x1f5   :  { %1153 = vmatpush.msra.mxu2 %v6436_v35  ;;  %1173 = vmatpush.msra.mxu3 %v6439_v24  ;;  %10711 = vst [vmem:[#allocation37_spill] sm:$0xff] %v6445_v26  ;;  %v6454_v35 = vld [vmem:[#allocation5 + $0x1e0] sm:$0xff]  ;;  %v6457_v24 = vld [vmem:[#allocation5 + $0x1e8] sm:$0xff] }
 0x1f6   :  { %1114 = vmatpush.msra.mxu0 %v6442_v25  ;;  %1134 = vmatpush.msra.mxu1 %v6445_v26  ;;  %10712 = vst [vmem:[#allocation50_spill] sm:$0xff] %v6448_v27  ;;  %v6460_v25 = vld [vmem:[#allocation5 + $0x1f0] sm:$0xff]  ;;  %v6463_v26 = vld [vmem:[#allocation5 + $0x1f8] sm:$0xff] }
 0x1f7   :  { %1154 = vmatpush.msra.mxu2 %v6448_v27  ;;  %10713 = vst [vmem:[#allocation38_spill] sm:$0xff] %v6451_v28  ;;  %1174 = vmatpush.msra.mxu3 %v6451_v28  ;;  %v6466_v27 = vld [vmem:[#allocation5 + $0x1c0] sm:$0xff]  ;;  %v6469_v28 = vld [vmem:[#allocation5 + $0x1c8] sm:$0xff] }
 0x1f8   :  { %10714 = vst [vmem:[#allocation39_spill] sm:$0xff] %v6454_v35  ;;  %1179 = vmatpush.msrb.mxu0 %v6454_v35  ;;  %1199 = vmatpush.msrb.mxu1 %v6457_v24  ;;  %v6472_v35 = vld [vmem:[#allocation5 + $0x1d0] sm:$0xff] }
 0x1f9   :  { %10715 = vst [vmem:[#allocation40_spill] sm:$0xff] %v6457_v24  ;;  %1219 = vmatpush.msrb.mxu2 %v6460_v25  ;;  %1239 = vmatpush.msrb.mxu3 %v6463_v26  ;;  %v6475_v24 = vld [vmem:[#allocation5 + $0x1d8] sm:$0xff] }
 0x1fa   :  { %10716 = vst [vmem:[#allocation54_spill] sm:$0xff] %v6460_v25  ;;  %1180 = vmatpush.msrb.mxu0 %v6466_v27  ;;  %1200 = vmatpush.msrb.mxu1 %v6469_v28  ;;  %v6478_v25 = vld [vmem:[#allocation5 + $0x1a0] sm:$0xff] }
 0x1fb   :  { %10717 = vst [vmem:[#allocation41_spill] sm:$0xff] %v6463_v26  ;;  %1220 = vmatpush.msrb.mxu2 %v6472_v35  ;;  %1240 = vmatpush.msrb.mxu3 %v6475_v24  ;;  %v6481_v26 = vld [vmem:[#allocation5 + $0x1a8] sm:$0xff] }
 0x1fc   :  { %10718 = vst [vmem:[#allocation43_spill] sm:$0xff] %v6466_v27  ;;  %1181 = vmatpush.msrb.mxu0 %v6478_v25  ;;  %1201 = vmatpush.msrb.mxu1 %v6481_v26  ;;  %v6484_v27 = vld [vmem:[#allocation5 + $0x1b0] sm:$0xff] }
 0x1fd   :  { %10719 = vst [vmem:[#allocation44_spill] sm:$0xff] %v6469_v28  ;;  %1221 = vmatpush.msrb.mxu2 %v6484_v27  ;;  %v6487_v28 = vld [vmem:[#allocation5 + $0x1b8] sm:$0xff] }
 0x1fe   :  { %10720 = vst [vmem:[#allocation58_spill] sm:$0xff] %v6472_v35  ;;  %1241 = vmatpush.msrb.mxu3 %v6487_v28  ;;  %v6490_v35 = vld [vmem:[#allocation5 + $0x180] sm:$0xff] }
 0x1ff   :  { %10721 = vst [vmem:[#allocation45_spill] sm:$0xff] %v6475_v24  ;;  %1182 = vmatpush.msrb.mxu0 %v6490_v35  ;;  %v6493_v24 = vld [vmem:[#allocation5 + $0x188] sm:$0xff] }
 0x200   :  { %10722 = vst [vmem:[#allocation47_spill] sm:$0xff] %v6478_v25  ;;  %1202 = vmatpush.msrb.mxu1 %v6493_v24  ;;  %v6496_v25 = vld [vmem:[#allocation5 + $0x190] sm:$0xff] }
 0x201   :  { %10723 = vst [vmem:[#allocation48_spill] sm:$0xff] %v6481_v26  ;;  %1222 = vmatpush.msrb.mxu2 %v6496_v25  ;;  %v6499_v26 = vld [vmem:[#allocation5 + $0x198] sm:$0xff] }
 0x202   :  { %10724 = vst [vmem:[#allocation62_spill] sm:$0xff] %v6484_v27  ;;  %1242 = vmatpush.msrb.mxu3 %v6499_v26  ;;  %v6502_v27 = vld [vmem:[#allocation5 + $0x160] sm:$0xff] }
 0x203   :  { %10725 = vst [vmem:[#allocation49_spill] sm:$0xff] %v6487_v28  ;;  %1183 = vmatpush.msrb.mxu0 %v6502_v27  ;;  %v6505_v28 = vld [vmem:[#allocation5 + $0x168] sm:$0xff] }
 0x204   :  { %10726 = vst [vmem:[#allocation51_spill] sm:$0xff] %v6490_v35  ;;  %1203 = vmatpush.msrb.mxu1 %v6505_v28  ;;  %v6508_v35 = vld [vmem:[#allocation5 + $0x170] sm:$0xff] }
 0x205   :  { %10727 = vst [vmem:[#allocation52_spill] sm:$0xff] %v6493_v24  ;;  %1223 = vmatpush.msrb.mxu2 %v6508_v35  ;;  %v6511_v24 = vld [vmem:[#allocation5 + $0x178] sm:$0xff] }
 0x206   :  { %10728 = vst [vmem:[#allocation66_spill] sm:$0xff] %v6496_v25  ;;  %1243 = vmatpush.msrb.mxu3 %v6511_v24  ;;  %v6514_v25 = vld [vmem:[#allocation5 + $0x140] sm:$0xff] }
 0x207   :  { %10729 = vst [vmem:[#allocation53_spill] sm:$0xff] %v6499_v26  ;;  %1184 = vmatpush.msrb.mxu0 %v6514_v25  ;;  %v6517_v26 = vld [vmem:[#allocation5 + $0x148] sm:$0xff] }
 0x208   :  { %10730 = vst [vmem:[#allocation55_spill] sm:$0xff] %v6502_v27  ;;  %1204 = vmatpush.msrb.mxu1 %v6517_v26  ;;  %v6520_v27 = vld [vmem:[#allocation5 + $0x150] sm:$0xff] }
 0x209   :  { %10731 = vst [vmem:[#allocation56_spill] sm:$0xff] %v6505_v28  ;;  %1224 = vmatpush.msrb.mxu2 %v6520_v27  ;;  %v6523_v28 = vld [vmem:[#allocation5 + $0x158] sm:$0xff] }
 0x20a   :  { %10732 = vst [vmem:[#allocation70_spill] sm:$0xff] %v6508_v35  ;;  %1244 = vmatpush.msrb.mxu3 %v6523_v28  ;;  %v6526_v35 = vld [vmem:[#allocation5 + $0x120] sm:$0xff] }
 0x20b   :  { %10733 = vst [vmem:[#allocation57_spill] sm:$0xff] %v6511_v24  ;;  %1185 = vmatpush.msrb.mxu0 %v6526_v35  ;;  %v6529_v24 = vld [vmem:[#allocation5 + $0x128] sm:$0xff] }
 0x20c   :  { %10734 = vst [vmem:[#allocation59_spill] sm:$0xff] %v6514_v25  ;;  %1205 = vmatpush.msrb.mxu1 %v6529_v24  ;;  %v6532_v25 = vld [vmem:[#allocation5 + $0x130] sm:$0xff] }
 0x20d   :  { %10735 = vst [vmem:[#allocation60_spill] sm:$0xff] %v6517_v26  ;;  %1225 = vmatpush.msrb.mxu2 %v6532_v25  ;;  %v6535_v26 = vld [vmem:[#allocation5 + $0x138] sm:$0xff] }
 0x20e   :  { %10736 = vst [vmem:[#allocation74_spill] sm:$0xff] %v6520_v27  ;;  %1245 = vmatpush.msrb.mxu3 %v6535_v26  ;;  %v6538_v27 = vld [vmem:[#allocation5 + $0x100] sm:$0xff] }
 0x20f   :  { %10737 = vst [vmem:[#allocation61_spill] sm:$0xff] %v6523_v28  ;;  %1186 = vmatpush.msrb.mxu0 %v6538_v27  ;;  %v6541_v28 = vld [vmem:[#allocation5 + $0x108] sm:$0xff] }
 0x210   :  { %10738 = vst [vmem:[#allocation63_spill] sm:$0xff] %v6526_v35  ;;  %1206 = vmatpush.msrb.mxu1 %v6541_v28  ;;  %v6544_v35 = vld [vmem:[#allocation5 + $0x110] sm:$0xff] }
 0x211   :  { %10739 = vst [vmem:[#allocation64_spill] sm:$0xff] %v6529_v24  ;;  %1226 = vmatpush.msrb.mxu2 %v6544_v35  ;;  %v6547_v24 = vld [vmem:[#allocation5 + $0x118] sm:$0xff] }
 0x212   :  { %10740 = vst [vmem:[#allocation78_spill] sm:$0xff] %v6532_v25  ;;  %1246 = vmatpush.msrb.mxu3 %v6547_v24  ;;  %v6550_v25 = vld [vmem:[#allocation5 + $0xe0] sm:$0xff] }
 0x213   :  { %10741 = vst [vmem:[#allocation65_spill] sm:$0xff] %v6535_v26  ;;  %1187 = vmatpush.msrb.mxu0 %v6550_v25  ;;  %v6553_v26 = vld [vmem:[#allocation5 + $0xe8] sm:$0xff] }
 0x214   :  { %10742 = vst [vmem:[#allocation67_spill] sm:$0xff] %v6538_v27  ;;  %1207 = vmatpush.msrb.mxu1 %v6553_v26  ;;  %v6556_v27 = vld [vmem:[#allocation5 + $0xf0] sm:$0xff] }
 0x215   :  { %10743 = vst [vmem:[#allocation68_spill] sm:$0xff] %v6541_v28  ;;  %1227 = vmatpush.msrb.mxu2 %v6556_v27  ;;  %v6559_v28 = vld [vmem:[#allocation5 + $0xf8] sm:$0xff] }
 0x216   :  { %10744 = vst [vmem:[#allocation82_spill] sm:$0xff] %v6544_v35  ;;  %1247 = vmatpush.msrb.mxu3 %v6559_v28  ;;  %v6562_v35 = vld [vmem:[#allocation5 + $0xc0] sm:$0xff] }
 0x217   :  { %10745 = vst [vmem:[#allocation69_spill] sm:$0xff] %v6547_v24  ;;  %1188 = vmatpush.msrb.mxu0 %v6562_v35  ;;  %v6565_v24 = vld [vmem:[#allocation5 + $0xc8] sm:$0xff] }
 0x218   :  { %10746 = vst [vmem:[#allocation71_spill] sm:$0xff] %v6550_v25  ;;  %1208 = vmatpush.msrb.mxu1 %v6565_v24  ;;  %v6568_v25 = vld [vmem:[#allocation5 + $0xd0] sm:$0xff] }
 0x219   :  { %10747 = vst [vmem:[#allocation72_spill] sm:$0xff] %v6553_v26  ;;  %1228 = vmatpush.msrb.mxu2 %v6568_v25  ;;  %v6571_v26 = vld [vmem:[#allocation5 + $0xd8] sm:$0xff] }
 0x21a   :  { %10748 = vst [vmem:[#allocation86_spill] sm:$0xff] %v6556_v27  ;;  %1248 = vmatpush.msrb.mxu3 %v6571_v26  ;;  %v6574_v27 = vld [vmem:[#allocation5 + $0xa0] sm:$0xff] }
 0x21b   :  { %10749 = vst [vmem:[#allocation73_spill] sm:$0xff] %v6559_v28  ;;  %1189 = vmatpush.msrb.mxu0 %v6574_v27  ;;  %v6577_v28 = vld [vmem:[#allocation5 + $0xa8] sm:$0xff] }
 0x21c   :  { %10750 = vst [vmem:[#allocation75_spill] sm:$0xff] %v6562_v35  ;;  %1209 = vmatpush.msrb.mxu1 %v6577_v28  ;;  %v6580_v35 = vld [vmem:[#allocation5 + $0xb0] sm:$0xff] }
 0x21d   :  { %10751 = vst [vmem:[#allocation76_spill] sm:$0xff] %v6565_v24  ;;  %1229 = vmatpush.msrb.mxu2 %v6580_v35  ;;  %v6583_v24 = vld [vmem:[#allocation5 + $0xb8] sm:$0xff] }
 0x21e   :  { %10752 = vst [vmem:[#allocation90_spill] sm:$0xff] %v6568_v25  ;;  %1249 = vmatpush.msrb.mxu3 %v6583_v24  ;;  %v6586_v25 = vld [vmem:[#allocation5 + $0x80] sm:$0xff] }
 0x21f   :  { %10753 = vst [vmem:[#allocation77_spill] sm:$0xff] %v6571_v26  ;;  %1190 = vmatpush.msrb.mxu0 %v6586_v25  ;;  %v6589_v26 = vld [vmem:[#allocation5 + $0x88] sm:$0xff] }
 0x220   :  { %10754 = vst [vmem:[#allocation79_spill] sm:$0xff] %v6574_v27  ;;  %1210 = vmatpush.msrb.mxu1 %v6589_v26  ;;  %v6592_v27 = vld [vmem:[#allocation5 + $0x90] sm:$0xff] }
 0x221   :  { %10755 = vst [vmem:[#allocation80_spill] sm:$0xff] %v6577_v28  ;;  %1230 = vmatpush.msrb.mxu2 %v6592_v27  ;;  %v6595_v28 = vld [vmem:[#allocation5 + $0x98] sm:$0xff] }
 0x222   :  { %10756 = vst [vmem:[#allocation94_spill] sm:$0xff] %v6580_v35  ;;  %1250 = vmatpush.msrb.mxu3 %v6595_v28  ;;  %v6598_v35 = vld [vmem:[#allocation5 + $0x60] sm:$0xff] }
 0x223   :  { %10757 = vst [vmem:[#allocation81_spill] sm:$0xff] %v6583_v24  ;;  %1191 = vmatpush.msrb.mxu0 %v6598_v35  ;;  %v6601_v24 = vld [vmem:[#allocation5 + $0x68] sm:$0xff] }
 0x224   :  { %10758 = vst [vmem:[#allocation83_spill] sm:$0xff] %v6586_v25  ;;  %1211 = vmatpush.msrb.mxu1 %v6601_v24  ;;  %v6604_v25 = vld [vmem:[#allocation5 + $0x70] sm:$0xff] }
 0x225   :  { %10759 = vst [vmem:[#allocation84_spill] sm:$0xff] %v6589_v26  ;;  %1231 = vmatpush.msrb.mxu2 %v6604_v25  ;;  %v6607_v26 = vld [vmem:[#allocation5 + $0x78] sm:$0xff] }
 0x226   :  { %10760 = vst [vmem:[#allocation98_spill] sm:$0xff] %v6592_v27  ;;  %1251 = vmatpush.msrb.mxu3 %v6607_v26  ;;  %v6610_v27 = vld [vmem:[#allocation5 + $0x40] sm:$0xff] }
 0x227   :  { %10761 = vst [vmem:[#allocation85_spill] sm:$0xff] %v6595_v28  ;;  %1192 = vmatpush.msrb.mxu0 %v6610_v27  ;;  %v6613_v28 = vld [vmem:[#allocation5 + $0x48] sm:$0xff] }
 0x228   :  { %10762 = vst [vmem:[#allocation87_spill] sm:$0xff] %v6598_v35  ;;  %1212 = vmatpush.msrb.mxu1 %v6613_v28  ;;  %v6616_v35 = vld [vmem:[#allocation5 + $0x50] sm:$0xff] }
 0x229   :  { %10763 = vst [vmem:[#allocation88_spill] sm:$0xff] %v6601_v24  ;;  %1232 = vmatpush.msrb.mxu2 %v6616_v35  ;;  %v6619_v24 = vld [vmem:[#allocation5 + $0x58] sm:$0xff] }
 0x22a   :  { %10764 = vst [vmem:[#allocation102_spill] sm:$0xff] %v6604_v25  ;;  %1252 = vmatpush.msrb.mxu3 %v6619_v24  ;;  %v6622_v25 = vld [vmem:[#allocation5 + $0x20] sm:$0xff] }
 0x22b   :  { %10765 = vst [vmem:[#allocation89_spill] sm:$0xff] %v6607_v26  ;;  %1193 = vmatpush.msrb.mxu0 %v6622_v25  ;;  %v6625_v26 = vld [vmem:[#allocation5 + $0x28] sm:$0xff] }
 0x22c   :  { %10766 = vst [vmem:[#allocation91_spill] sm:$0xff] %v6610_v27  ;;  %1213 = vmatpush.msrb.mxu1 %v6625_v26  ;;  %v6628_v27 = vld [vmem:[#allocation5 + $0x30] sm:$0xff] }
 0x22d   :  { %10767 = vst [vmem:[#allocation92_spill] sm:$0xff] %v6613_v28  ;;  %1233 = vmatpush.msrb.mxu2 %v6628_v27  ;;  %v6631_v28 = vld [vmem:[#allocation5 + $0x38] sm:$0xff] }
 0x22e   :  { %10768 = vst [vmem:[#allocation103_spill] sm:$0xff] %v6616_v35  ;;  %1253 = vmatpush.msrb.mxu3 %v6631_v28  ;;  %v6634_v35 = vld [vmem:[#allocation5] sm:$0xff] }
 0x22f   :  { %10769 = vst [vmem:[#allocation93_spill] sm:$0xff] %v6619_v24  ;;  %1194 = vmatpush.msrb.mxu0 %v6634_v35  ;;  %v6637_v24 = vld [vmem:[#allocation5 + $0x8] sm:$0xff] }
 0x230   :  { %10770 = vst [vmem:[#allocation95_spill] sm:$0xff] %v6622_v25  ;;  %1214 = vmatpush.msrb.mxu1 %v6637_v24  ;;  %v6640_v25 = vld [vmem:[#allocation5 + $0x10] sm:$0xff] }
 0x231   :  { %10771 = vst [vmem:[#allocation96_spill] sm:$0xff] %v6625_v26  ;;  %1234 = vmatpush.msrb.mxu2 %v6640_v25  ;;  %v6643_v26 = vld [vmem:[#allocation5 + $0x18] sm:$0xff] }
 0x232   :  { %10772 = vst [vmem:[#allocation104_spill] sm:$0xff] %v6628_v27  ;;  %1254 = vmatpush.msrb.mxu3 %v6643_v26 }
 0x233   :  { %10773 = vst [vmem:[#allocation97_spill] sm:$0xff] %v6631_v28 }
 0x234   :  { %10774 = vst [vmem:[#allocation99_spill] sm:$0xff] %v6634_v35 }
 0x235   :  { %10775 = vst [vmem:[#allocation100_spill] sm:$0xff] %v6637_v24 }
 0x236   :  { %10776 = vst [vmem:[#allocation105_spill] sm:$0xff] %v6640_v25 }
 0x237   :  { %10777 = vst [vmem:[#allocation101_spill] sm:$0xff] %v6643_v26 }
 0x251   :  { %v887_v27 = vpop.f32.mrf.mxu0  ;;  %v907_v23 = vpop.f32.mrf.mxu1 }
 0x258   :  { %v947_v22 = vpop.f32.mrf.mxu3  ;;  %v927_v24 = vpop.f32.mrf.mxu2 }
 0x259   :  { %v967_v28 = vpop.f32.mrf.mxu0  ;;  %v987_v21 = vpop.f32.mrf.mxu1 }
 0x25a   :  { %v968_v19 = vadd.f32 %v967_v28, %v887_v27  ;;  %v988_v18 = vadd.f32 %v987_v21, %v907_v23 }
 0x25c   :  { %v1030_v35 = vadd.f32 %v968_v19, %v10684_v34  ;;  %v1031_v17 = vadd.f32 %v988_v18, %v10685_v37 }
 0x25e   :  { %v4320_v16 = vmul.f32 -1.442695, %v1030_v35  ;;  %v4321_v15 = vmul.f32 -1.442695, %v1031_v17 }
 0x260   :  { %4486 = vpow2.f32 %v4320_v16  ;;  %v1027_v25 = vpop.f32.mrf.mxu3  ;;  %v1007_v21 = vpop.f32.mrf.mxu2 }
 0x261   :  { %4488 = vpow2.f32 %v4321_v15  ;;  %v1028_v14 = vadd.f32 %v1027_v25, %v947_v22  ;;  %v1008_v19 = vadd.f32 %v1007_v21, %v927_v24 }
 0x263   :  { %v1033_v26 = vadd.f32 %v1028_v14, %v10686_v49  ;;  %v1032_v16 = vadd.f32 %v1008_v19, %v10687_v48 }
 0x265   :  { %v4322_v13 = vmul.f32 -1.442695, %v1033_v26 }
 0x266   :  { %v4487_v12 = vpop.eup %4486 }
 0x267   :  { %v4489_v11 = vpop.eup %4488  ;;  %v1037_v10 = vadd.f32 1.0, %v4487_v12  ;;  %4490 = vpow2.f32 %v4322_v13 }
 0x268   :  { %v1056_v27 = vadd.f32 1.0, %v4489_v11 }
 0x269   :  { %4492 = vrcp.f32 %v1037_v10  ;;  %v1049_v26 = vand.u32 2147483648, %v1037_v10  ;;  %v1047_v11 = vand.u32 2147483647, %v1037_v10  ;;  %vm1043_vm10 = vweird.f32 %v1037_v10 }
 0x26a   :  { %4494 = vrcp.f32 %v1056_v27  ;;  %v1068_v12 = vand.u32 2147483648, %v1056_v27  ;;  %v1066_v24 = vand.u32 2147483647, %v1056_v27  ;;  %vm1062_vm11 = vweird.f32 %v1056_v27 }
 0x26b   :  { %v1050_v19 = vor.u32 1.1754944e-38, %v1049_v26  ;;  %vm1048_vm14 = vcmp.eq.f32.partialorder %v1047_v11, 8.507059e+37 }
 0x26c   :  { %vm1067_vm15 = vcmp.eq.f32.partialorder %v1066_v24, 8.507059e+37  ;;  %v10784_v24 = vld [vmem:[#allocation20_spill] sm:$0xff] }
 0x26d   :  { %v4491_v18 = vpop.eup %4490 }
 0x26e   :  { %v1076_v23 = vadd.f32 1.0, %v4491_v18 }
 0x26f   :  { %v4493_v28 = vpop.eup %4492 }
 0x270   :  { %v4495_v17 = vpop.eup %4494  ;;  %v1039_v15 = vmul.f32 %v4493_v28, %v1037_v10  ;;  %4496 = vrcp.f32 %v1076_v23  ;;  %vm1044_vm8 = vweird.f32 %v4493_v28  ;;  %v1088_v26 = vand.u32 2147483648, %v1076_v23 }
 0x271   :  { %v1058_v22 = vmul.f32 %v4495_v17, %v1056_v27  ;;  %4498 = vtanh.f32 %v1032_v16  ;;  %vm1063_vm9 = vweird.f32 %v4495_v17  ;;  %vm1045_vm12 = vmor %vm1043_vm10, %vm1044_vm8  ;;  %vm1082_vm1 = vweird.f32 %v1076_v23 }
 0x272   :  { %v1040_v14 = vsub.f32 1.0, %v1039_v15  ;;  %vm1064_vm13 = vmor %vm1062_vm11, %vm1063_vm9  ;;  %v1069_v15 = vor.u32 1.1754944e-38, %v1068_v12  ;;  %v1089_v11 = vor.u32 1.1754944e-38, %v1088_v26  ;;  %v10795_v26 = vld [vmem:[#allocation30_spill] sm:$0xff] }
 0x273   :  { %v1059_v25 = vsub.f32 1.0, %v1058_v22 }
 0x274   :  { %v1041_v13 = vmul.f32 %v4493_v28, %v1040_v14 }
 0x275   :  { %v1060_v35 = vmul.f32 %v4495_v17, %v1059_v25 }
 0x276   :  { %v4497_v21 = vpop.eup %4496  ;;  %v1042_v18 = vadd.f32 %v4493_v28, %v1041_v13 }
 0x277   :  { %v1061_v48 = vadd.f32 %v4495_v17, %v1060_v35  ;;  %v1078_v49 = vmul.f32 %v4497_v21, %v1076_v23  ;;  %v4499_v16 = vpop.eup %4498  ;;  %vm1083_vm0 = vweird.f32 %v4497_v21  ;;  %v10783_v35 = vld [vmem:[#allocation19_spill] sm:$0xff] }
 0x278   :  { %v1046_v22 = vsel %vm1045_vm12, %v4493_v28, %v1042_v18  ;;  %v1086_v28 = vand.u32 2147483647, %v1076_v23  ;;  %vm1084_vm2 = vmor %vm1082_vm1, %vm1083_vm0  ;;  %v10782_v23 = vld [vmem:[#allocation27_spill] sm:$0xff] }
 0x279   :  { %v1051_v37 = vsel %vm1048_vm14, %v1050_v19, %v1046_v22  ;;  %v1065_v14 = vsel %vm1064_vm13, %v4495_v17, %v1061_v48  ;;  %v1079_v34 = vsub.f32 1.0, %v1078_v49  ;;  %v10786_v18 = vld [vmem:[#allocation31_spill] sm:$0xff]  ;;  %v10787_v19 = vld [vmem:[#allocation22_spill] sm:$0xff]  ;;  %v10789_v22 = vld [vmem:[#allocation25_spill] sm:$0xff] }
 0x27a   :  { %v1070_v25 = vsel %vm1067_vm15, %v1069_v15, %v1065_v14  ;;  %v1093_v9 = vmul.f32 %v4499_v16, %v1051_v37  ;;  %vm1087_vm3 = vcmp.eq.f32.partialorder %v1086_v28, 8.507059e+37  ;;  %v10778_v37 = vld [vmem:[#allocation23_spill] sm:$0xff]  ;;  %v10788_v15 = vld [vmem:[#allocation24_spill] sm:$0xff]  ;;  %v10791_v14 = vld [vmem:[#allocation26_spill] sm:$0xff] }
 0x27b   :  { %v1092_v8 = vmul.f32 %v1070_v25, %v6256_v20  ;;  %v1080_v13 = vmul.f32 %v4497_v21, %v1079_v34  ;;  %v4323_v34 = vld [vmem:[%s9688_s2 + $0x18] sm:$0xff]  ;;  %v10779_v20 = vld [vmem:[#allocation16_spill] sm:$0xff] }
 0x27c   :  { %v10790_v16 = vld [vmem:[#allocation35_spill] sm:$0xff]  ;;  %v10792_v25 = vld [vmem:[#allocation28_spill] sm:$0xff] }
 0x27d   :  { %v6651_v10 = vadd.f32 %v1093_v9, %v1092_v8  ;;  %v1081_v27 = vadd.f32 %v4497_v21, %v1080_v13  ;;  %v10780_v8 = vld [vmem:[#allocation17_spill] sm:$0xff]  ;;  %v10781_v9 = vld [vmem:[#allocation18_spill] sm:$0xff]  ;;  %v10796_v28 = vld [vmem:[#allocation32_spill] sm:$0xff] }
 0x27e   :  { %v10793_v13 = vld [vmem:[#allocation29_spill] sm:$0xff] }
 0x27f   :  { %4500 = vtanh.f32 %v6651_v10  ;;  %v1085_v12 = vsel %vm1084_vm2, %v4497_v21, %v1081_v27  ;;  %v10785_v21 = vld [vmem:[#allocation21_spill] sm:$0xff]  ;;  %v10794_v27 = vld [vmem:[#allocation42_spill] sm:$0xff] }
 0x280   :  { %v1090_v49 = vsel %vm1087_vm3, %v1089_v11, %v1085_v12  ;;  %v10797_v12 = vld [vmem:[#allocation33_spill] sm:$0xff]  ;;  %v10798_v11 = vld [vmem:[#allocation46_spill] sm:$0xff] }
 0x285   :  { %v4501_v48 = vpop.eup %4500 }
 0x286   :  { %v1096_v17 = vmul.f32 %v4501_v48, %v1090_v49  ;;  %v10799_v48 = vld [vmem:[#allocation34_spill] sm:$0xff]  ;;  %v10800_v49 = vld [vmem:[#allocation36_spill] sm:$0xff] }
 0x288   :  { %1115 = vmatmul.f32.vlgmr.msra.gmra.mxu0 %v1096_v17  ;;  %1135 = vmatmul.f32.vlgmr.msra.gmra.mxu1 %v1096_v17 }
 0x289   :  { %1155 = vmatmul.f32.vlgmr.msra.gmra.mxu2 %v1096_v17  ;;  %1175 = vmatmul.f32.vlgmr.msra.gmra.mxu3 %v1096_v17  ;;  %v10801_v17 = vld [vmem:[#allocation37_spill] sm:$0xff] }
 0x28a   :  { %1328 = vmatpush.msra.mxu0 %v6259_v61  ;;  %1348 = vmatpush.msra.mxu1 %v6262_v29 }
 0x28b   :  { %1368 = vmatpush.msra.mxu2 %v6265_v30  ;;  %1388 = vmatpush.msra.mxu3 %v6268_v31 }
 0x28c   :  { %1329 = vmatpush.msra.mxu0 %v6271_v32  ;;  %1349 = vmatpush.msra.mxu1 %v6274_v33 }
 0x28d   :  { %1369 = vmatpush.msra.mxu2 %v6280_v38  ;;  %1389 = vmatpush.msra.mxu3 %v6283_v39 }
 0x28e   :  { %1330 = vmatpush.msra.mxu0 %v6286_v41  ;;  %1350 = vmatpush.msra.mxu1 %v6289_v44 }
 0x28f   :  { %1370 = vmatpush.msra.mxu2 %v6292_v45  ;;  %1390 = vmatpush.msra.mxu3 %v6295_v58 }
 0x290   :  { %1195 = vmatmul.f32.vlgmr.msrb.gmra.mxu0 %v4323_v34  ;;  %1215 = vmatmul.f32.vlgmr.msrb.gmra.mxu1 %v4323_v34 }
 0x291   :  { %1235 = vmatmul.f32.vlgmr.msrb.gmra.mxu2 %v4323_v34  ;;  %1255 = vmatmul.f32.vlgmr.msrb.gmra.mxu3 %v4323_v34  ;;  %v10802_v34 = vld [vmem:[#allocation50_spill] sm:$0xff] }
 0x292   :  { %1331 = vmatpush.msra.mxu0 %v6298_v52  ;;  %1351 = vmatpush.msra.mxu1 %v6301_v46 }
 0x293   :  { %1371 = vmatpush.msra.mxu2 %v6304_v53  ;;  %1391 = vmatpush.msra.mxu3 %v6307_v56 }
 0x294   :  { %1332 = vmatpush.msra.mxu0 %v6310_v55  ;;  %1352 = vmatpush.msra.mxu1 %v6313_v54 }
 0x295   :  { %1372 = vmatpush.msra.mxu2 %v6316_v62  ;;  %1392 = vmatpush.msra.mxu3 %v6319_v40 }
 0x296   :  { %1333 = vmatpush.msra.mxu0 %v6322_v60  ;;  %1353 = vmatpush.msra.mxu1 %v6325_v63 }
 0x297   :  { %1373 = vmatpush.msra.mxu2 %v6328_v51  ;;  %1393 = vmatpush.msra.mxu3 %v6331_v59 }
 0x298   :  { %1334 = vmatpush.msra.mxu0 %v6334_v43  ;;  %1354 = vmatpush.msra.mxu1 %v6337_v50 }
 0x299   :  { %1374 = vmatpush.msra.mxu2 %v6340_v57  ;;  %1394 = vmatpush.msra.mxu3 %v6343_v47 }
 0x29a   :  { %1335 = vmatpush.msra.mxu0 %v6346_v42  ;;  %1355 = vmatpush.msra.mxu1 %v6349_v36 }
 0x29b   :  { %1375 = vmatpush.msra.mxu2 %v6352_v0  ;;  %1395 = vmatpush.msra.mxu3 %v6355_v1 }
 0x29c   :  { %1336 = vmatpush.msra.mxu0 %v6358_v2  ;;  %1356 = vmatpush.msra.mxu1 %v6361_v3 }
 0x29d   :  { %1376 = vmatpush.msra.mxu2 %v6364_v4  ;;  %1396 = vmatpush.msra.mxu3 %v6367_v5 }
 0x29e   :  { %1337 = vmatpush.msra.mxu0 %v6370_v6  ;;  %1357 = vmatpush.msra.mxu1 %v6373_v7 }
 0x29f   :  { %1377 = vmatpush.msra.mxu2 %v10778_v37  ;;  %1397 = vmatpush.msra.mxu3 %v10779_v20 }
 0x2a0   :  { %1338 = vmatpush.msra.mxu0 %v10780_v8  ;;  %1358 = vmatpush.msra.mxu1 %v10781_v9 }
 0x2a1   :  { %1378 = vmatpush.msra.mxu2 %v10782_v23  ;;  %1398 = vmatpush.msra.mxu3 %v10783_v35 }
 0x2a2   :  { %1339 = vmatpush.msra.mxu0 %v10784_v24  ;;  %1359 = vmatpush.msra.mxu1 %v10785_v21  ;;  %v10870_v21 = vld [vmem:[#allocation108_spill] sm:$0xff] }
 0x2a3   :  { %1379 = vmatpush.msra.mxu2 %v10786_v18  ;;  %1399 = vmatpush.msra.mxu3 %v10787_v19 }
 0x2a4   :  { %1340 = vmatpush.msra.mxu0 %v10788_v15  ;;  %1360 = vmatpush.msra.mxu1 %v10789_v22 }
 0x2a5   :  { %1380 = vmatpush.msra.mxu2 %v10790_v16  ;;  %1400 = vmatpush.msra.mxu3 %v10791_v14 }
 0x2a6   :  { %1341 = vmatpush.msra.mxu0 %v10792_v25  ;;  %1361 = vmatpush.msra.mxu1 %v10793_v13  ;;  %v10803_v25 = vld [vmem:[#allocation38_spill] sm:$0xff]  ;;  %v10804_v13 = vld [vmem:[#allocation39_spill] sm:$0xff] }
 0x2a7   :  { %1381 = vmatpush.msra.mxu2 %v10794_v27  ;;  %1401 = vmatpush.msra.mxu3 %v10795_v26  ;;  %v10805_v27 = vld [vmem:[#allocation40_spill] sm:$0xff]  ;;  %v10806_v26 = vld [vmem:[#allocation54_spill] sm:$0xff] }
 0x2a8   :  { %1342 = vmatpush.msra.mxu0 %v10796_v28  ;;  %1362 = vmatpush.msra.mxu1 %v10797_v12  ;;  %v10807_v28 = vld [vmem:[#allocation41_spill] sm:$0xff]  ;;  %v10808_v12 = vld [vmem:[#allocation43_spill] sm:$0xff] }
 0x2a9   :  { %1382 = vmatpush.msra.mxu2 %v10798_v11  ;;  %1402 = vmatpush.msra.mxu3 %v10799_v48  ;;  %v10809_v11 = vld [vmem:[#allocation44_spill] sm:$0xff]  ;;  %v10810_v48 = vld [vmem:[#allocation58_spill] sm:$0xff] }
 0x2aa   :  { %1343 = vmatpush.msra.mxu0 %v10800_v49  ;;  %1363 = vmatpush.msra.mxu1 %v10801_v17  ;;  %v10811_v49 = vld [vmem:[#allocation45_spill] sm:$0xff]  ;;  %v10812_v17 = vld [vmem:[#allocation47_spill] sm:$0xff] }
 0x2ab   :  { %1383 = vmatpush.msra.mxu2 %v10802_v34  ;;  %1403 = vmatpush.msra.mxu3 %v10803_v25  ;;  %v10813_v34 = vld [vmem:[#allocation48_spill] sm:$0xff]  ;;  %v10814_v25 = vld [vmem:[#allocation62_spill] sm:$0xff] }
 0x2ac   :  { %1408 = vmatpush.msrb.mxu0 %v10804_v13  ;;  %1428 = vmatpush.msrb.mxu1 %v10805_v27  ;;  %v10815_v13 = vld [vmem:[#allocation49_spill] sm:$0xff]  ;;  %v10816_v27 = vld [vmem:[#allocation51_spill] sm:$0xff] }
 0x2ad   :  { %1448 = vmatpush.msrb.mxu2 %v10806_v26  ;;  %1468 = vmatpush.msrb.mxu3 %v10807_v28  ;;  %v10817_v26 = vld [vmem:[#allocation52_spill] sm:$0xff]  ;;  %v10818_v28 = vld [vmem:[#allocation66_spill] sm:$0xff] }
 0x2ae   :  { %1409 = vmatpush.msrb.mxu0 %v10808_v12  ;;  %1429 = vmatpush.msrb.mxu1 %v10809_v11  ;;  %v10819_v12 = vld [vmem:[#allocation53_spill] sm:$0xff]  ;;  %v10820_v11 = vld [vmem:[#allocation55_spill] sm:$0xff] }
 0x2af   :  { %1449 = vmatpush.msrb.mxu2 %v10810_v48  ;;  %1469 = vmatpush.msrb.mxu3 %v10811_v49  ;;  %v10821_v48 = vld [vmem:[#allocation56_spill] sm:$0xff]  ;;  %v10822_v49 = vld [vmem:[#allocation70_spill] sm:$0xff] }
 0x2b0   :  { %1410 = vmatpush.msrb.mxu0 %v10812_v17  ;;  %1430 = vmatpush.msrb.mxu1 %v10813_v34  ;;  %v10823_v17 = vld [vmem:[#allocation57_spill] sm:$0xff]  ;;  %v10824_v34 = vld [vmem:[#allocation59_spill] sm:$0xff] }
 0x2b1   :  { %1450 = vmatpush.msrb.mxu2 %v10814_v25  ;;  %1470 = vmatpush.msrb.mxu3 %v10815_v13  ;;  %v10825_v25 = vld [vmem:[#allocation60_spill] sm:$0xff]  ;;  %v10826_v13 = vld [vmem:[#allocation74_spill] sm:$0xff] }
 0x2b2   :  { %1411 = vmatpush.msrb.mxu0 %v10816_v27  ;;  %1431 = vmatpush.msrb.mxu1 %v10817_v26  ;;  %v10827_v27 = vld [vmem:[#allocation61_spill] sm:$0xff]  ;;  %v10828_v26 = vld [vmem:[#allocation63_spill] sm:$0xff] }
 0x2b3   :  { %1451 = vmatpush.msrb.mxu2 %v10818_v28  ;;  %1471 = vmatpush.msrb.mxu3 %v10819_v12  ;;  %v10829_v28 = vld [vmem:[#allocation64_spill] sm:$0xff]  ;;  %v10830_v12 = vld [vmem:[#allocation78_spill] sm:$0xff] }
 0x2b4   :  { %1412 = vmatpush.msrb.mxu0 %v10820_v11  ;;  %1432 = vmatpush.msrb.mxu1 %v10821_v48  ;;  %v10831_v11 = vld [vmem:[#allocation65_spill] sm:$0xff]  ;;  %v10832_v48 = vld [vmem:[#allocation67_spill] sm:$0xff] }
 0x2b5   :  { %1452 = vmatpush.msrb.mxu2 %v10822_v49  ;;  %1472 = vmatpush.msrb.mxu3 %v10823_v17  ;;  %v10833_v49 = vld [vmem:[#allocation68_spill] sm:$0xff]  ;;  %v10834_v17 = vld [vmem:[#allocation82_spill] sm:$0xff] }
 0x2b6   :  { %1413 = vmatpush.msrb.mxu0 %v10824_v34  ;;  %1433 = vmatpush.msrb.mxu1 %v10825_v25  ;;  %v10835_v34 = vld [vmem:[#allocation69_spill] sm:$0xff]  ;;  %v10836_v25 = vld [vmem:[#allocation71_spill] sm:$0xff] }
 0x2b7   :  { %1453 = vmatpush.msrb.mxu2 %v10826_v13  ;;  %1473 = vmatpush.msrb.mxu3 %v10827_v27  ;;  %v10837_v13 = vld [vmem:[#allocation72_spill] sm:$0xff]  ;;  %v10838_v27 = vld [vmem:[#allocation86_spill] sm:$0xff] }
 0x2b8   :  { %1414 = vmatpush.msrb.mxu0 %v10828_v26  ;;  %1434 = vmatpush.msrb.mxu1 %v10829_v28  ;;  %v10839_v26 = vld [vmem:[#allocation73_spill] sm:$0xff]  ;;  %v10840_v28 = vld [vmem:[#allocation75_spill] sm:$0xff] }
 0x2b9   :  { %1454 = vmatpush.msrb.mxu2 %v10830_v12  ;;  %1474 = vmatpush.msrb.mxu3 %v10831_v11  ;;  %v10841_v12 = vld [vmem:[#allocation76_spill] sm:$0xff]  ;;  %v10842_v11 = vld [vmem:[#allocation90_spill] sm:$0xff] }
 0x2ba   :  { %1415 = vmatpush.msrb.mxu0 %v10832_v48  ;;  %1435 = vmatpush.msrb.mxu1 %v10833_v49  ;;  %v10843_v48 = vld [vmem:[#allocation77_spill] sm:$0xff]  ;;  %v10844_v49 = vld [vmem:[#allocation79_spill] sm:$0xff] }
 0x2bb   :  { %1455 = vmatpush.msrb.mxu2 %v10834_v17  ;;  %1475 = vmatpush.msrb.mxu3 %v10835_v34  ;;  %v10845_v17 = vld [vmem:[#allocation80_spill] sm:$0xff]  ;;  %v10846_v34 = vld [vmem:[#allocation94_spill] sm:$0xff] }
 0x2bc   :  { %1416 = vmatpush.msrb.mxu0 %v10836_v25  ;;  %1436 = vmatpush.msrb.mxu1 %v10837_v13  ;;  %v10847_v25 = vld [vmem:[#allocation81_spill] sm:$0xff]  ;;  %v10848_v13 = vld [vmem:[#allocation83_spill] sm:$0xff] }
 0x2bd   :  { %1456 = vmatpush.msrb.mxu2 %v10838_v27  ;;  %1476 = vmatpush.msrb.mxu3 %v10839_v26  ;;  %v10849_v27 = vld [vmem:[#allocation84_spill] sm:$0xff]  ;;  %v10850_v26 = vld [vmem:[#allocation98_spill] sm:$0xff] }
 0x2be   :  { %1417 = vmatpush.msrb.mxu0 %v10840_v28  ;;  %1437 = vmatpush.msrb.mxu1 %v10841_v12  ;;  %v10851_v28 = vld [vmem:[#allocation85_spill] sm:$0xff]  ;;  %v10852_v12 = vld [vmem:[#allocation87_spill] sm:$0xff] }
 0x2bf   :  { %1457 = vmatpush.msrb.mxu2 %v10842_v11  ;;  %1477 = vmatpush.msrb.mxu3 %v10843_v48  ;;  %v10853_v11 = vld [vmem:[#allocation88_spill] sm:$0xff]  ;;  %v10854_v48 = vld [vmem:[#allocation102_spill] sm:$0xff] }
 0x2c0   :  { %1418 = vmatpush.msrb.mxu0 %v10844_v49  ;;  %1438 = vmatpush.msrb.mxu1 %v10845_v17  ;;  %v10855_v49 = vld [vmem:[#allocation89_spill] sm:$0xff]  ;;  %v10856_v17 = vld [vmem:[#allocation91_spill] sm:$0xff] }
 0x2c1   :  { %1458 = vmatpush.msrb.mxu2 %v10846_v34  ;;  %1478 = vmatpush.msrb.mxu3 %v10847_v25  ;;  %v10857_v34 = vld [vmem:[#allocation92_spill] sm:$0xff]  ;;  %v10858_v25 = vld [vmem:[#allocation103_spill] sm:$0xff] }
 0x2c2   :  { %1419 = vmatpush.msrb.mxu0 %v10848_v13  ;;  %1439 = vmatpush.msrb.mxu1 %v10849_v27  ;;  %v10859_v13 = vld [vmem:[#allocation93_spill] sm:$0xff]  ;;  %v10860_v27 = vld [vmem:[#allocation95_spill] sm:$0xff] }
 0x2c3   :  { %1459 = vmatpush.msrb.mxu2 %v10850_v26  ;;  %1479 = vmatpush.msrb.mxu3 %v10851_v28  ;;  %v10861_v26 = vld [vmem:[#allocation96_spill] sm:$0xff] }
 0x2c4   :  { %1420 = vmatpush.msrb.mxu0 %v10852_v12  ;;  %1440 = vmatpush.msrb.mxu1 %v10853_v11  ;;  %v10862_v28 = vld [vmem:[#allocation104_spill] sm:$0xff]  ;;  %v10863_v12 = vld [vmem:[#allocation97_spill] sm:$0xff]  ;;  %v10864_v11 = vld [vmem:[#allocation99_spill] sm:$0xff] }
 0x2c5   :  { %1460 = vmatpush.msrb.mxu2 %v10854_v48  ;;  %1480 = vmatpush.msrb.mxu3 %v10855_v49  ;;  %v10865_v48 = vld [vmem:[#allocation100_spill] sm:$0xff]  ;;  %v10866_v49 = vld [vmem:[#allocation105_spill] sm:$0xff] }
 0x2c6   :  { %1421 = vmatpush.msrb.mxu0 %v10856_v17  ;;  %1441 = vmatpush.msrb.mxu1 %v10857_v34  ;;  %v10867_v17 = vld [vmem:[#allocation101_spill] sm:$0xff] }
 0x2c7   :  { %1461 = vmatpush.msrb.mxu2 %v10858_v25  ;;  %1481 = vmatpush.msrb.mxu3 %v10859_v13 }
 0x2c8   :  { %1422 = vmatpush.msrb.mxu0 %v10860_v27  ;;  %1442 = vmatpush.msrb.mxu1 %v10861_v26  ;;  %v10868_v26 = vld [vmem:[#allocation106_spill] sm:$0xff] }
 0x2c9   :  { %1462 = vmatpush.msrb.mxu2 %v10862_v28  ;;  %1482 = vmatpush.msrb.mxu3 %v10863_v12  ;;  %v10869_v28 = vld [vmem:[#allocation107_spill] sm:$0xff] }
 0x2ca   :  { %1423 = vmatpush.msrb.mxu0 %v10864_v11  ;;  %1443 = vmatpush.msrb.mxu1 %v10865_v48 }
 0x2cb   :  { %1463 = vmatpush.msrb.mxu2 %v10866_v49  ;;  %1483 = vmatpush.msrb.mxu3 %v10867_v17 }
 0x305   :  { %v1116_v34 = vpop.f32.mrf.mxu0  ;;  %v1136_v25 = vpop.f32.mrf.mxu1 }
 0x30c   :  { %v1176_v14 = vpop.f32.mrf.mxu3  ;;  %v1156_v12 = vpop.f32.mrf.mxu2 }
 0x30d   :  { %v1196_v13 = vpop.f32.mrf.mxu0  ;;  %v1216_v16 = vpop.f32.mrf.mxu1 }
 0x30e   :  { %v1197_v27 = vadd.f32 %v1196_v13, %v1116_v34  ;;  %v1217_v22 = vadd.f32 %v1216_v16, %v1136_v25 }
 0x310   :  { %v1259_v15 = vadd.f32 %v1197_v27, %v10868_v26  ;;  %v1260_v19 = vadd.f32 %v1217_v22, %v10869_v28 }
 0x312   :  { %v4324_v18 = vmul.f32 -1.442695, %v1259_v15  ;;  %v4325_v11 = vmul.f32 -1.442695, %v1260_v19  ;;  %v10871_v19 = vld [vmem:[#allocation109_spill] sm:$0xff] }
 0x314   :  { %4502 = vpow2.f32 %v4324_v18  ;;  %v1256_v48 = vpop.f32.mrf.mxu3  ;;  %v1236_v16 = vpop.f32.mrf.mxu2 }
 0x315   :  { %4504 = vpow2.f32 %v4325_v11  ;;  %v1257_v49 = vadd.f32 %v1256_v48, %v1176_v14  ;;  %v1237_v25 = vadd.f32 %v1236_v16, %v1156_v12 }
 0x317   :  { %v1262_v17 = vadd.f32 %v1257_v49, %v10870_v21  ;;  %v1261_v18 = vadd.f32 %v1237_v25, %v10871_v19 }
 0x319   :  { %v4326_v24 = vmul.f32 -1.442695, %v1262_v17 }
 0x31a   :  { %v4503_v35 = vpop.eup %4502 }
 0x31b   :  { %v4505_v23 = vpop.eup %4504  ;;  %v1266_v9 = vadd.f32 1.0, %v4503_v35  ;;  %4506 = vpow2.f32 %v4326_v24 }
 0x31c   :  { %v1285_v13 = vadd.f32 1.0, %v4505_v23 }
 0x31d   :  { %4508 = vrcp.f32 %v1266_v9  ;;  %v1278_v17 = vand.u32 2147483648, %v1266_v9  ;;  %v1276_v23 = vand.u32 2147483647, %v1266_v9  ;;  %vm1272_vm6 = vweird.f32 %v1266_v9 }
 0x31e   :  { %4510 = vrcp.f32 %v1285_v13  ;;  %v1297_v35 = vand.u32 2147483648, %v1285_v13  ;;  %v1295_v12 = vand.u32 2147483647, %v1285_v13  ;;  %vm1291_vm7 = vweird.f32 %v1285_v13 }
 0x31f   :  { %v1279_v25 = vor.u32 1.1754944e-38, %v1278_v17  ;;  %vm1277_vm10 = vcmp.eq.f32.partialorder %v1276_v23, 8.507059e+37  ;;  %v10915_v23 = vld [vmem:[#allocation56_spill] sm:$0xff] }
 0x320   :  { %vm1296_vm11 = vcmp.eq.f32.partialorder %v1295_v12, 8.507059e+37  ;;  %v10916_v12 = vld [vmem:[#allocation70_spill] sm:$0xff] }
 0x321   :  { %v4507_v22 = vpop.eup %4506 }
 0x322   :  { %v1305_v27 = vadd.f32 1.0, %v4507_v22 }
 0x323   :  { %v4509_v15 = vpop.eup %4508 }
 0x324   :  { %v4511_v34 = vpop.eup %4510  ;;  %v1268_v11 = vmul.f32 %v4509_v15, %v1266_v9  ;;  %4512 = vrcp.f32 %v1305_v27  ;;  %vm1273_vm4 = vweird.f32 %v4509_v15  ;;  %vm1311_vm13 = vweird.f32 %v1305_v27 }
 0x325   :  { %v1287_v14 = vmul.f32 %v4511_v34, %v1285_v13  ;;  %4514 = vtanh.f32 %v1261_v18  ;;  %vm1292_vm5 = vweird.f32 %v4511_v34  ;;  %vm1274_vm8 = vmor %vm1272_vm6, %vm1273_vm4 }
 0x326   :  { %v1269_v48 = vsub.f32 1.0, %v1268_v11  ;;  %vm1293_vm9 = vmor %vm1291_vm7, %vm1292_vm5  ;;  %v1298_v11 = vor.u32 1.1754944e-38, %v1297_v35 }
 0x327   :  { %v1288_v49 = vsub.f32 1.0, %v1287_v14 }
 0x328   :  { %v1270_v24 = vmul.f32 %v4509_v15, %v1269_v48 }
 0x329   :  { %v1289_v21 = vmul.f32 %v4511_v34, %v1288_v49 }
 0x32a   :  { %v4513_v16 = vpop.eup %4512  ;;  %v1271_v22 = vadd.f32 %v4509_v15, %v1270_v24 }
 0x32b   :  { %v1290_v19 = vadd.f32 %v4511_v34, %v1289_v21  ;;  %v1307_v28 = vmul.f32 %v4513_v16, %v1305_v27  ;;  %v4515_v18 = vpop.eup %4514  ;;  %vm1312_vm12 = vweird.f32 %v4513_v16  ;;  %v1317_v21 = vand.u32 2147483648, %v1305_v27 }
 0x32c   :  { %v1275_v14 = vsel %vm1274_vm8, %v4509_v15, %v1271_v22  ;;  %v1315_v15 = vand.u32 2147483647, %v1305_v27  ;;  %vm1313_vm14 = vmor %vm1311_vm13, %vm1312_vm12  ;;  %v10914_v27 = vld [vmem:[#allocation55_spill] sm:$0xff] }
 0x32d   :  { %v1280_v26 = vsel %vm1277_vm10, %v1279_v25, %v1275_v14  ;;  %v1294_v48 = vsel %vm1293_vm9, %v4511_v34, %v1290_v19  ;;  %v1308_v8 = vsub.f32 1.0, %v1307_v28  ;;  %v1318_v35 = vor.u32 1.1754944e-38, %v1317_v21  ;;  %v10918_v22 = vld [vmem:[#allocation59_spill] sm:$0xff]  ;;  %v10919_v25 = vld [vmem:[#allocation60_spill] sm:$0xff]  ;;  %v10921_v14 = vld [vmem:[#allocation61_spill] sm:$0xff] }
 0x32e   :  { %v1299_v49 = vsel %vm1296_vm11, %v1298_v11, %v1294_v48  ;;  %v1322_v20 = vmul.f32 %v4515_v18, %v1280_v26  ;;  %vm1316_vm15 = vcmp.eq.f32.partialorder %v1315_v15, 8.507059e+37  ;;  %v10913_v26 = vld [vmem:[#allocation53_spill] sm:$0xff]  ;;  %v10920_v11 = vld [vmem:[#allocation74_spill] sm:$0xff]  ;;  %v10922_v18 = vld [vmem:[#allocation63_spill] sm:$0xff] }
 0x32f   :  { %v1321_v37 = vmul.f32 %v1299_v49, %v6651_v10  ;;  %v1309_v24 = vmul.f32 %v4513_v16, %v1308_v8  ;;  %v4327_v10 = vld [vmem:[%s9688_s2 + $0x20] sm:$0xff]  ;;  %v10912_v8 = vld [vmem:[#allocation66_spill] sm:$0xff] }
 0x330   :  { %v10923_v48 = vld [vmem:[#allocation64_spill] sm:$0xff]  ;;  %v10924_v49 = vld [vmem:[#allocation78_spill] sm:$0xff] }
 0x331   :  { %v6790_v9 = vadd.f32 %v1322_v20, %v1321_v37  ;;  %v1310_v13 = vadd.f32 %v4513_v16, %v1309_v24  ;;  %v10910_v37 = vld [vmem:[#allocation51_spill] sm:$0xff]  ;;  %v10911_v20 = vld [vmem:[#allocation52_spill] sm:$0xff]  ;;  %v10925_v24 = vld [vmem:[#allocation65_spill] sm:$0xff] }
 0x332   :  { %v10927_v21 = vld [vmem:[#allocation68_spill] sm:$0xff]  ;;  %v10928_v15 = vld [vmem:[#allocation82_spill] sm:$0xff] }
 0x333   :  { %4516 = vtanh.f32 %v6790_v9  ;;  %v1314_v17 = vsel %vm1313_vm14, %v4513_v16, %v1310_v13  ;;  %v10917_v16 = vld [vmem:[#allocation57_spill] sm:$0xff]  ;;  %v10926_v13 = vld [vmem:[#allocation67_spill] sm:$0xff] }
 0x334   :  { %v1319_v28 = vsel %vm1316_vm15, %v1318_v35, %v1314_v17  ;;  %v10929_v17 = vld [vmem:[#allocation69_spill] sm:$0xff]  ;;  %v10930_v35 = vld [vmem:[#allocation71_spill] sm:$0xff] }
 0x339   :  { %v4517_v19 = vpop.eup %4516 }
 0x33a   :  { %v1325_v34 = vmul.f32 %v4517_v19, %v1319_v28  ;;  %v10931_v19 = vld [vmem:[#allocation72_spill] sm:$0xff]  ;;  %v10932_v28 = vld [vmem:[#allocation86_spill] sm:$0xff] }
 0x33c   :  { %1344 = vmatmul.f32.vlgmr.msra.gmra.mxu0 %v1325_v34  ;;  %1364 = vmatmul.f32.vlgmr.msra.gmra.mxu1 %v1325_v34 }
 0x33d   :  { %1384 = vmatmul.f32.vlgmr.msra.gmra.mxu2 %v1325_v34  ;;  %1404 = vmatmul.f32.vlgmr.msra.gmra.mxu3 %v1325_v34  ;;  %v10933_v34 = vld [vmem:[#allocation73_spill] sm:$0xff] }
 0x33e   :  { %1557 = vmatpush.msra.mxu0 %v6259_v61  ;;  %1577 = vmatpush.msra.mxu1 %v6262_v29  ;;  %v10872_v61 = vld [vmem:[#allocation23_spill] sm:$0xff]  ;;  %v10873_v29 = vld [vmem:[#allocation16_spill] sm:$0xff] }
 0x33f   :  { %1597 = vmatpush.msra.mxu2 %v6265_v30  ;;  %1617 = vmatpush.msra.mxu3 %v6268_v31  ;;  %v10874_v30 = vld [vmem:[#allocation17_spill] sm:$0xff]  ;;  %v10875_v31 = vld [vmem:[#allocation18_spill] sm:$0xff] }
 0x340   :  { %1558 = vmatpush.msra.mxu0 %v6271_v32  ;;  %1578 = vmatpush.msra.mxu1 %v6274_v33  ;;  %v10876_v32 = vld [vmem:[#allocation27_spill] sm:$0xff] }
 0x341   :  { %1598 = vmatpush.msra.mxu2 %v6280_v38  ;;  %1618 = vmatpush.msra.mxu3 %v6283_v39  ;;  %v10877_v33 = vld [vmem:[#allocation19_spill] sm:$0xff]  ;;  %v10878_v38 = vld [vmem:[#allocation20_spill] sm:$0xff]  ;;  %v10879_v39 = vld [vmem:[#allocation21_spill] sm:$0xff] }
 0x342   :  { %1559 = vmatpush.msra.mxu0 %v6286_v41  ;;  %1579 = vmatpush.msra.mxu1 %v6289_v44  ;;  %v10880_v41 = vld [vmem:[#allocation31_spill] sm:$0xff]  ;;  %v10881_v44 = vld [vmem:[#allocation22_spill] sm:$0xff] }
 0x343   :  { %1599 = vmatpush.msra.mxu2 %v6292_v45  ;;  %1619 = vmatpush.msra.mxu3 %v6295_v58  ;;  %v10882_v45 = vld [vmem:[#allocation24_spill] sm:$0xff]  ;;  %v10883_v58 = vld [vmem:[#allocation25_spill] sm:$0xff] }
 0x344   :  { %1424 = vmatmul.f32.vlgmr.msrb.gmra.mxu0 %v4327_v10  ;;  %1444 = vmatmul.f32.vlgmr.msrb.gmra.mxu1 %v4327_v10 }
 0x345   :  { %1464 = vmatmul.f32.vlgmr.msrb.gmra.mxu2 %v4327_v10  ;;  %1484 = vmatmul.f32.vlgmr.msrb.gmra.mxu3 %v4327_v10  ;;  %v10934_v10 = vld [vmem:[#allocation75_spill] sm:$0xff] }
 0x346   :  { %1560 = vmatpush.msra.mxu0 %v6298_v52  ;;  %1580 = vmatpush.msra.mxu1 %v6301_v46  ;;  %v10884_v52 = vld [vmem:[#allocation35_spill] sm:$0xff]  ;;  %v10885_v46 = vld [vmem:[#allocation26_spill] sm:$0xff] }
 0x347   :  { %1600 = vmatpush.msra.mxu2 %v6304_v53  ;;  %1620 = vmatpush.msra.mxu3 %v6307_v56  ;;  %v10886_v53 = vld [vmem:[#allocation28_spill] sm:$0xff]  ;;  %v10887_v56 = vld [vmem:[#allocation29_spill] sm:$0xff] }
 0x348   :  { %1561 = vmatpush.msra.mxu0 %v6310_v55  ;;  %1581 = vmatpush.msra.mxu1 %v6313_v54  ;;  %v10888_v55 = vld [vmem:[#allocation42_spill] sm:$0xff] }
 0x349   :  { %1601 = vmatpush.msra.mxu2 %v6316_v62  ;;  %1621 = vmatpush.msra.mxu3 %v6319_v40  ;;  %v10889_v54 = vld [vmem:[#allocation30_spill] sm:$0xff]  ;;  %v10890_v62 = vld [vmem:[#allocation32_spill] sm:$0xff]  ;;  %v10891_v40 = vld [vmem:[#allocation33_spill] sm:$0xff] }
 0x34a   :  { %1562 = vmatpush.msra.mxu0 %v6322_v60  ;;  %1582 = vmatpush.msra.mxu1 %v6325_v63  ;;  %v10892_v60 = vld [vmem:[#allocation46_spill] sm:$0xff] }
 0x34b   :  { %1602 = vmatpush.msra.mxu2 %v6328_v51  ;;  %1622 = vmatpush.msra.mxu3 %v6331_v59  ;;  %v10893_v63 = vld [vmem:[#allocation34_spill] sm:$0xff]  ;;  %v10894_v51 = vld [vmem:[#allocation36_spill] sm:$0xff]  ;;  %v10895_v59 = vld [vmem:[#allocation37_spill] sm:$0xff] }
 0x34c   :  { %1563 = vmatpush.msra.mxu0 %v6334_v43  ;;  %1583 = vmatpush.msra.mxu1 %v6337_v50  ;;  %v10896_v43 = vld [vmem:[#allocation50_spill] sm:$0xff] }
 0x34d   :  { %1603 = vmatpush.msra.mxu2 %v6340_v57  ;;  %1623 = vmatpush.msra.mxu3 %v6343_v47  ;;  %v10897_v50 = vld [vmem:[#allocation38_spill] sm:$0xff]  ;;  %v10898_v57 = vld [vmem:[#allocation39_spill] sm:$0xff]  ;;  %v10899_v47 = vld [vmem:[#allocation40_spill] sm:$0xff] }
 0x34e   :  { %1564 = vmatpush.msra.mxu0 %v6346_v42  ;;  %1584 = vmatpush.msra.mxu1 %v6349_v36  ;;  %v10900_v42 = vld [vmem:[#allocation54_spill] sm:$0xff]  ;;  %v10901_v36 = vld [vmem:[#allocation41_spill] sm:$0xff] }
 0x34f   :  { %1604 = vmatpush.msra.mxu2 %v6352_v0  ;;  %1624 = vmatpush.msra.mxu3 %v6355_v1  ;;  %v10902_v0 = vld [vmem:[#allocation43_spill] sm:$0xff]  ;;  %v10903_v1 = vld [vmem:[#allocation44_spill] sm:$0xff] }
 0x350   :  { %1565 = vmatpush.msra.mxu0 %v6358_v2  ;;  %1585 = vmatpush.msra.mxu1 %v6361_v3  ;;  %v10904_v2 = vld [vmem:[#allocation58_spill] sm:$0xff]  ;;  %v10905_v3 = vld [vmem:[#allocation45_spill] sm:$0xff] }
 0x351   :  { %1605 = vmatpush.msra.mxu2 %v6364_v4  ;;  %1625 = vmatpush.msra.mxu3 %v6367_v5  ;;  %v10906_v4 = vld [vmem:[#allocation47_spill] sm:$0xff]  ;;  %v10907_v5 = vld [vmem:[#allocation48_spill] sm:$0xff] }
 0x352   :  { %1566 = vmatpush.msra.mxu0 %v6370_v6  ;;  %1586 = vmatpush.msra.mxu1 %v6373_v7  ;;  %v10908_v6 = vld [vmem:[#allocation62_spill] sm:$0xff]  ;;  %v10909_v7 = vld [vmem:[#allocation49_spill] sm:$0xff] }
 0x353   :  { %1606 = vmatpush.msra.mxu2 %v10872_v61  ;;  %1626 = vmatpush.msra.mxu3 %v10873_v29  ;;  %v10935_v61 = vld [vmem:[#allocation76_spill] sm:$0xff]  ;;  %v10936_v29 = vld [vmem:[#allocation90_spill] sm:$0xff] }
 0x354   :  { %1567 = vmatpush.msra.mxu0 %v10874_v30  ;;  %1587 = vmatpush.msra.mxu1 %v10875_v31  ;;  %v10937_v30 = vld [vmem:[#allocation77_spill] sm:$0xff]  ;;  %v10938_v31 = vld [vmem:[#allocation79_spill] sm:$0xff] }
 0x355   :  { %1607 = vmatpush.msra.mxu2 %v10876_v32  ;;  %1627 = vmatpush.msra.mxu3 %v10877_v33  ;;  %v10939_v32 = vld [vmem:[#allocation80_spill] sm:$0xff]  ;;  %v10940_v33 = vld [vmem:[#allocation94_spill] sm:$0xff] }
 0x356   :  { %1568 = vmatpush.msra.mxu0 %v10878_v38  ;;  %1588 = vmatpush.msra.mxu1 %v10879_v39  ;;  %v10941_v38 = vld [vmem:[#allocation81_spill] sm:$0xff]  ;;  %v10942_v39 = vld [vmem:[#allocation83_spill] sm:$0xff] }
 0x357   :  { %1608 = vmatpush.msra.mxu2 %v10880_v41  ;;  %1628 = vmatpush.msra.mxu3 %v10881_v44  ;;  %v10943_v41 = vld [vmem:[#allocation84_spill] sm:$0xff]  ;;  %v10944_v44 = vld [vmem:[#allocation98_spill] sm:$0xff] }
 0x358   :  { %1569 = vmatpush.msra.mxu0 %v10882_v45  ;;  %1589 = vmatpush.msra.mxu1 %v10883_v58  ;;  %v10945_v45 = vld [vmem:[#allocation85_spill] sm:$0xff]  ;;  %v10946_v58 = vld [vmem:[#allocation87_spill] sm:$0xff] }
 0x359   :  { %1609 = vmatpush.msra.mxu2 %v10884_v52  ;;  %1629 = vmatpush.msra.mxu3 %v10885_v46  ;;  %v10947_v52 = vld [vmem:[#allocation88_spill] sm:$0xff]  ;;  %v10948_v46 = vld [vmem:[#allocation102_spill] sm:$0xff] }
 0x35a   :  { %1570 = vmatpush.msra.mxu0 %v10886_v53  ;;  %1590 = vmatpush.msra.mxu1 %v10887_v56  ;;  %v10949_v53 = vld [vmem:[#allocation89_spill] sm:$0xff]  ;;  %v10950_v56 = vld [vmem:[#allocation91_spill] sm:$0xff] }
 0x35b   :  { %1610 = vmatpush.msra.mxu2 %v10888_v55  ;;  %1630 = vmatpush.msra.mxu3 %v10889_v54  ;;  %v10951_v55 = vld [vmem:[#allocation92_spill] sm:$0xff]  ;;  %v10952_v54 = vld [vmem:[#allocation103_spill] sm:$0xff] }
 0x35c   :  { %1571 = vmatpush.msra.mxu0 %v10890_v62  ;;  %1591 = vmatpush.msra.mxu1 %v10891_v40  ;;  %v10953_v62 = vld [vmem:[#allocation93_spill] sm:$0xff]  ;;  %v10954_v40 = vld [vmem:[#allocation95_spill] sm:$0xff] }
 0x35d   :  { %1611 = vmatpush.msra.mxu2 %v10892_v60  ;;  %1631 = vmatpush.msra.mxu3 %v10893_v63  ;;  %v10955_v60 = vld [vmem:[#allocation96_spill] sm:$0xff] }
 0x35e   :  { %1572 = vmatpush.msra.mxu0 %v10894_v51  ;;  %1592 = vmatpush.msra.mxu1 %v10895_v59  ;;  %v10956_v63 = vld [vmem:[#allocation104_spill] sm:$0xff]  ;;  %v10957_v51 = vld [vmem:[#allocation97_spill] sm:$0xff]  ;;  %v10958_v59 = vld [vmem:[#allocation99_spill] sm:$0xff] }
 0x35f   :  { %1612 = vmatpush.msra.mxu2 %v10896_v43  ;;  %1632 = vmatpush.msra.mxu3 %v10897_v50  ;;  %v10959_v43 = vld [vmem:[#allocation100_spill] sm:$0xff]  ;;  %v10960_v50 = vld [vmem:[#allocation105_spill] sm:$0xff] }
 0x360   :  { %1637 = vmatpush.msrb.mxu0 %v10898_v57  ;;  %1657 = vmatpush.msrb.mxu1 %v10899_v47  ;;  %v10961_v57 = vld [vmem:[#allocation101_spill] sm:$0xff] }
 0x361   :  { %1677 = vmatpush.msrb.mxu2 %v10900_v42  ;;  %1697 = vmatpush.msrb.mxu3 %v10901_v36 }
 0x362   :  { %1638 = vmatpush.msrb.mxu0 %v10902_v0  ;;  %1658 = vmatpush.msrb.mxu1 %v10903_v1 }
 0x363   :  { %1678 = vmatpush.msrb.mxu2 %v10904_v2  ;;  %1698 = vmatpush.msrb.mxu3 %v10905_v3 }
 0x364   :  { %1639 = vmatpush.msrb.mxu0 %v10906_v4  ;;  %1659 = vmatpush.msrb.mxu1 %v10907_v5  ;;  %v10962_v4 = vld [vmem:[#allocation106_spill] sm:$0xff] }
 0x365   :  { %1679 = vmatpush.msrb.mxu2 %v10908_v6  ;;  %1699 = vmatpush.msrb.mxu3 %v10909_v7  ;;  %v10963_v6 = vld [vmem:[#allocation107_spill] sm:$0xff] }
 0x366   :  { %1640 = vmatpush.msrb.mxu0 %v10910_v37  ;;  %1660 = vmatpush.msrb.mxu1 %v10911_v20 }
 0x367   :  { %1680 = vmatpush.msrb.mxu2 %v10912_v8  ;;  %1700 = vmatpush.msrb.mxu3 %v10913_v26 }
 0x368   :  { %1641 = vmatpush.msrb.mxu0 %v10914_v27  ;;  %1661 = vmatpush.msrb.mxu1 %v10915_v23  ;;  %v10964_v23 = vld [vmem:[#allocation108_spill] sm:$0xff] }
 0x369   :  { %1681 = vmatpush.msrb.mxu2 %v10916_v12  ;;  %1701 = vmatpush.msrb.mxu3 %v10917_v16 }
 0x36a   :  { %1642 = vmatpush.msrb.mxu0 %v10918_v22  ;;  %1662 = vmatpush.msrb.mxu1 %v10919_v25 }
 0x36b   :  { %1682 = vmatpush.msrb.mxu2 %v10920_v11  ;;  %1702 = vmatpush.msrb.mxu3 %v10921_v14 }
 0x36c   :  { %1643 = vmatpush.msrb.mxu0 %v10922_v18  ;;  %1663 = vmatpush.msrb.mxu1 %v10923_v48 }
 0x36d   :  { %1683 = vmatpush.msrb.mxu2 %v10924_v49  ;;  %1703 = vmatpush.msrb.mxu3 %v10925_v24 }
 0x36e   :  { %1644 = vmatpush.msrb.mxu0 %v10926_v13  ;;  %1664 = vmatpush.msrb.mxu1 %v10927_v21  ;;  %v10965_v21 = vld [vmem:[#allocation109_spill] sm:$0xff] }
 0x36f   :  { %1684 = vmatpush.msrb.mxu2 %v10928_v15  ;;  %1704 = vmatpush.msrb.mxu3 %v10929_v17 }
 0x370   :  { %1645 = vmatpush.msrb.mxu0 %v10930_v35  ;;  %1665 = vmatpush.msrb.mxu1 %v10931_v19 }
 0x371   :  { %1685 = vmatpush.msrb.mxu2 %v10932_v28  ;;  %1705 = vmatpush.msrb.mxu3 %v10933_v34 }
 0x372   :  { %1646 = vmatpush.msrb.mxu0 %v10934_v10  ;;  %1666 = vmatpush.msrb.mxu1 %v10935_v61 }
 0x373   :  { %1686 = vmatpush.msrb.mxu2 %v10936_v29  ;;  %1706 = vmatpush.msrb.mxu3 %v10937_v30 }
 0x374   :  { %1647 = vmatpush.msrb.mxu0 %v10938_v31  ;;  %1667 = vmatpush.msrb.mxu1 %v10939_v32 }
 0x375   :  { %1687 = vmatpush.msrb.mxu2 %v10940_v33  ;;  %1707 = vmatpush.msrb.mxu3 %v10941_v38 }
 0x376   :  { %1648 = vmatpush.msrb.mxu0 %v10942_v39  ;;  %1668 = vmatpush.msrb.mxu1 %v10943_v41 }
 0x377   :  { %1688 = vmatpush.msrb.mxu2 %v10944_v44  ;;  %1708 = vmatpush.msrb.mxu3 %v10945_v45 }
 0x378   :  { %1649 = vmatpush.msrb.mxu0 %v10946_v58  ;;  %1669 = vmatpush.msrb.mxu1 %v10947_v52 }
 0x379   :  { %1689 = vmatpush.msrb.mxu2 %v10948_v46  ;;  %1709 = vmatpush.msrb.mxu3 %v10949_v53 }
 0x37a   :  { %1650 = vmatpush.msrb.mxu0 %v10950_v56  ;;  %1670 = vmatpush.msrb.mxu1 %v10951_v55 }
 0x37b   :  { %1690 = vmatpush.msrb.mxu2 %v10952_v54  ;;  %1710 = vmatpush.msrb.mxu3 %v10953_v62 }
 0x37c   :  { %1651 = vmatpush.msrb.mxu0 %v10954_v40  ;;  %1671 = vmatpush.msrb.mxu1 %v10955_v60 }
 0x37d   :  { %1691 = vmatpush.msrb.mxu2 %v10956_v63  ;;  %1711 = vmatpush.msrb.mxu3 %v10957_v51 }
 0x37e   :  { %1652 = vmatpush.msrb.mxu0 %v10958_v59  ;;  %1672 = vmatpush.msrb.mxu1 %v10959_v43 }
 0x37f   :  { %1692 = vmatpush.msrb.mxu2 %v10960_v50  ;;  %1712 = vmatpush.msrb.mxu3 %v10961_v57 }
 0x3b9   :  { %v1345_v47 = vpop.f32.mrf.mxu0  ;;  %v1365_v42 = vpop.f32.mrf.mxu1 }
 0x3c0   :  { %v1405_v36 = vpop.f32.mrf.mxu3  ;;  %v1385_v37 = vpop.f32.mrf.mxu2 }
 0x3c1   :  { %v1425_v0 = vpop.f32.mrf.mxu0  ;;  %v1445_v1 = vpop.f32.mrf.mxu1 }
 0x3c2   :  { %v1426_v2 = vadd.f32 %v1425_v0, %v1345_v47  ;;  %v1446_v3 = vadd.f32 %v1445_v1, %v1365_v42  ;;  %v6938_v0 = vld [vmem:[#allocation7 + $0x1f0] sm:$0xff]  ;;  %v6941_v1 = vld [vmem:[#allocation7 + $0x1f8] sm:$0xff] }
 0x3c4   :  { %v1488_v5 = vadd.f32 %v1426_v2, %v10962_v4  ;;  %v1489_v7 = vadd.f32 %v1446_v3, %v10963_v6  ;;  %v6944_v2 = vld [vmem:[#allocation7 + $0x1c0] sm:$0xff]  ;;  %v6947_v3 = vld [vmem:[#allocation7 + $0x1c8] sm:$0xff] }
 0x3c6   :  { %v4328_v20 = vmul.f32 -1.442695, %v1488_v5  ;;  %v4329_v8 = vmul.f32 -1.442695, %v1489_v7  ;;  %v4331_v5 = vld [vmem:[%s9688_s2 + $0x28] sm:$0xff]  ;;  %v6953_v7 = vld [vmem:[#allocation7 + $0x1d0] sm:$0xff] }
 0x3c8   :  { %4518 = vpow2.f32 %v4328_v20  ;;  %v1485_v26 = vpop.f32.mrf.mxu3  ;;  %v1465_v18 = vpop.f32.mrf.mxu2  ;;  %v6959_v20 = vld [vmem:[#allocation7 + $0x1a0] sm:$0xff] }
 0x3c9   :  { %4520 = vpow2.f32 %v4329_v8  ;;  %v1486_v27 = vadd.f32 %v1485_v26, %v1405_v36  ;;  %v1466_v48 = vadd.f32 %v1465_v18, %v1385_v37  ;;  %v6935_v36 = vld [vmem:[#allocation7 + $0x1e8] sm:$0xff]  ;;  %v6956_v37 = vld [vmem:[#allocation7 + $0x1d8] sm:$0xff]  ;;  %v6965_v26 = vld [vmem:[#allocation7 + $0x1b0] sm:$0xff] }
 0x3ca   :  { %v6962_v8 = vld [vmem:[#allocation7 + $0x1a8] sm:$0xff]  ;;  %v6989_v18 = vld [vmem:[#allocation7 + $0x170] sm:$0xff] }
 0x3cb   :  { %v1491_v12 = vadd.f32 %v1486_v27, %v10964_v23  ;;  %v1490_v15 = vadd.f32 %v1466_v48, %v10965_v21  ;;  %v6968_v27 = vld [vmem:[#allocation7 + $0x1b8] sm:$0xff] }
 0x3cc   :  { %v6992_v48 = vld [vmem:[#allocation7 + $0x178] sm:$0xff] }
 0x3cd   :  { %v4330_v16 = vmul.f32 -1.442695, %v1491_v12  ;;  %v6971_v12 = vld [vmem:[#allocation7 + $0x180] sm:$0xff] }
 0x3ce   :  { %v4519_v22 = vpop.eup %4518 }
 0x3cf   :  { %v4521_v25 = vpop.eup %4520  ;;  %v1495_v11 = vadd.f32 1.0, %v4519_v22  ;;  %4522 = vpow2.f32 %v4330_v16  ;;  %v6974_v16 = vld [vmem:[#allocation7 + $0x188] sm:$0xff]  ;;  %v6977_v22 = vld [vmem:[#allocation7 + $0x190] sm:$0xff] }
 0x3d0   :  { %v1514_v14 = vadd.f32 1.0, %v4521_v25  ;;  %v6980_v25 = vld [vmem:[#allocation7 + $0x198] sm:$0xff] }
 0x3d1   :  { %4524 = vrcp.f32 %v1495_v11  ;;  %v1507_v10 = vand.u32 2147483648, %v1495_v11  ;;  %v1505_v30 = vand.u32 2147483647, %v1495_v11  ;;  %vm1501_vm2 = vweird.f32 %v1495_v11 }
 0x3d2   :  { %4526 = vrcp.f32 %v1514_v14  ;;  %v1526_v61 = vand.u32 2147483648, %v1514_v14  ;;  %v1524_v32 = vand.u32 2147483647, %v1514_v14  ;;  %vm1520_vm3 = vweird.f32 %v1514_v14 }
 0x3d3   :  { %v1508_v39 = vor.u32 1.1754944e-38, %v1507_v10  ;;  %vm1506_vm6 = vcmp.eq.f32.partialorder %v1505_v30, 8.507059e+37  ;;  %v7022_v10 = vld [vmem:[#allocation7 + $0x108] sm:$0xff]  ;;  %v7031_v30 = vld [vmem:[#allocation7 + $0xe0] sm:$0xff] }
 0x3d4   :  { %v1527_v45 = vor.u32 1.1754944e-38, %v1526_v61  ;;  %vm1525_vm7 = vcmp.eq.f32.partialorder %v1524_v32, 8.507059e+37  ;;  %v7025_v61 = vld [vmem:[#allocation7 + $0x110] sm:$0xff] }
 0x3d5   :  { %v4523_v49 = vpop.eup %4522  ;;  %v7037_v32 = vld [vmem:[#allocation7 + $0xf0] sm:$0xff] }
 0x3d6   :  { %v1534_v24 = vadd.f32 1.0, %v4523_v49  ;;  %v6995_v49 = vld [vmem:[#allocation7 + $0x140] sm:$0xff] }
 0x3d7   :  { %v4525_v13 = vpop.eup %4524 }
 0x3d8   :  { %v4527_v17 = vpop.eup %4526  ;;  %v1497_v35 = vmul.f32 %v4525_v13, %v1495_v11  ;;  %4528 = vrcp.f32 %v1534_v24  ;;  %vm1502_vm0 = vweird.f32 %v4525_v13  ;;  %v1546_v51 = vand.u32 2147483648, %v1534_v24  ;;  %v6983_v11 = vld [vmem:[#allocation7 + $0x160] sm:$0xff] }
 0x3d9   :  { %v1516_v19 = vmul.f32 %v4527_v17, %v1514_v14  ;;  %4530 = vtanh.f32 %v1490_v15  ;;  %vm1521_vm1 = vweird.f32 %v4527_v17  ;;  %vm1503_vm4 = vmor %vm1501_vm2, %vm1502_vm0  ;;  %vm1540_vm9 = vweird.f32 %v1534_v24  ;;  %v6986_v14 = vld [vmem:[#allocation7 + $0x168] sm:$0xff]  ;;  %v7004_v15 = vld [vmem:[#allocation7 + $0x158] sm:$0xff] }
 0x3da   :  { %v1498_v28 = vsub.f32 1.0, %v1497_v35  ;;  %vm1522_vm5 = vmor %vm1520_vm3, %vm1521_vm1  ;;  %v1544_v59 = vand.u32 2147483647, %v1534_v24  ;;  %v1547_v50 = vor.u32 1.1754944e-38, %v1546_v51  ;;  %v7010_v35 = vld [vmem:[#allocation7 + $0x128] sm:$0xff]  ;;  %v7088_v51 = vld [vmem:[#allocation7 + $0x78] sm:$0xff] }
 0x3db   :  { %v1517_v34 = vsub.f32 1.0, %v1516_v19  ;;  %v7013_v19 = vld [vmem:[#allocation7 + $0x130] sm:$0xff]  ;;  %10979 = vst [vmem:[#allocation26_spill] sm:$0xff] %v7088_v51 }
 0x3dc   :  { %v1499_v29 = vmul.f32 %v4525_v13, %v1498_v28  ;;  %vm1545_vm11 = vcmp.eq.f32.partialorder %v1544_v59, 8.507059e+37  ;;  %v7016_v28 = vld [vmem:[#allocation7 + $0x138] sm:$0xff]  ;;  %v7091_v59 = vld [vmem:[#allocation7 + $0x40] sm:$0xff] }
 0x3dd   :  { %v1518_v31 = vmul.f32 %v4527_v17, %v1517_v34  ;;  %v7019_v34 = vld [vmem:[#allocation7 + $0x100] sm:$0xff]  ;;  %10980 = vst [vmem:[#allocation28_spill] sm:$0xff] %v7091_v59 }
 0x3de   :  { %v4529_v33 = vpop.eup %4528  ;;  %v1500_v38 = vadd.f32 %v4525_v13, %v1499_v29  ;;  %v7028_v29 = vld [vmem:[#allocation7 + $0x118] sm:$0xff] }
 0x3df   :  { %v1519_v41 = vadd.f32 %v4527_v17, %v1518_v31  ;;  %v1536_v44 = vmul.f32 %v4529_v33, %v1534_v24  ;;  %v4531_v52 = vpop.eup %4530  ;;  %vm1541_vm8 = vweird.f32 %v4529_v33  ;;  %v6998_v24 = vld [vmem:[#allocation7 + $0x148] sm:$0xff] }
 0x3e0   :  { %v1504_v58 = vsel %vm1503_vm4, %v4525_v13, %v1500_v38  ;;  %vm1542_vm10 = vmor %vm1540_vm9, %vm1541_vm8  ;;  %v7001_v13 = vld [vmem:[#allocation7 + $0x150] sm:$0xff]  ;;  %v7034_v31 = vld [vmem:[#allocation7 + $0xe8] sm:$0xff] }
 0x3e1   :  { %v1509_v46 = vsel %vm1506_vm6, %v1508_v39, %v1504_v58  ;;  %v1523_v53 = vsel %vm1522_vm5, %v4527_v17, %v1519_v41  ;;  %v1537_v56 = vsub.f32 1.0, %v1536_v44  ;;  %v7007_v17 = vld [vmem:[#allocation7 + $0x120] sm:$0xff]  ;;  %v7046_v39 = vld [vmem:[#allocation7 + $0xc8] sm:$0xff]  ;;  %v7049_v41 = vld [vmem:[#allocation7 + $0xd0] sm:$0xff] }
 0x3e2   :  { %v1528_v55 = vsel %vm1525_vm7, %v1527_v45, %v1523_v53  ;;  %v1551_v54 = vmul.f32 %v4531_v52, %v1509_v46  ;;  %v7043_v38 = vld [vmem:[#allocation7 + $0xc0] sm:$0xff]  ;;  %10966 = vst [vmem:[#allocation23_spill] sm:$0xff] %v7049_v41  ;;  %v7052_v44 = vld [vmem:[#allocation7 + $0xd8] sm:$0xff]  ;;  %v7058_v58 = vld [vmem:[#allocation7 + $0xa8] sm:$0xff] }
 0x3e3   :  { %v1550_v62 = vmul.f32 %v1528_v55, %v6790_v9  ;;  %v1538_v40 = vmul.f32 %v4529_v33, %v1537_v56  ;;  %v6932_v9 = vld [vmem:[#allocation7 + $0x1e0] sm:$0xff]  ;;  %10967 = vst [vmem:[#allocation16_spill] sm:$0xff] %v7052_v44  ;;  %v7061_v52 = vld [vmem:[#allocation7 + $0xb0] sm:$0xff]  ;;  %v7064_v46 = vld [vmem:[#allocation7 + $0xb8] sm:$0xff] }
 0x3e4   :  { %v7055_v45 = vld [vmem:[#allocation7 + $0xa0] sm:$0xff]  ;;  %10969 = vst [vmem:[#allocation18_spill] sm:$0xff] %v7058_v58  ;;  %v7070_v56 = vld [vmem:[#allocation7 + $0x88] sm:$0xff]  ;;  %v7073_v55 = vld [vmem:[#allocation7 + $0x90] sm:$0xff] }
 0x3e5   :  { %v6929_v60 = vadd.f32 %v1551_v54, %v1550_v62  ;;  %v1539_v63 = vadd.f32 %v4529_v33, %v1538_v40  ;;  %10968 = vst [vmem:[#allocation17_spill] sm:$0xff] %v7055_v45  ;;  %v7067_v53 = vld [vmem:[#allocation7 + $0x80] sm:$0xff]  ;;  %v7076_v54 = vld [vmem:[#allocation7 + $0x98] sm:$0xff]  ;;  %v7082_v40 = vld [vmem:[#allocation7 + $0x68] sm:$0xff] }
 0x3e6   :  { %10970 = vst [vmem:[#allocation27_spill] sm:$0xff] %v7061_v52  ;;  %v7079_v62 = vld [vmem:[#allocation7 + $0x60] sm:$0xff] }
 0x3e7   :  { %4532 = vtanh.f32 %v6929_v60  ;;  %v1543_v43 = vsel %vm1542_vm10, %v4529_v33, %v1539_v63  ;;  %v7040_v33 = vld [vmem:[#allocation7 + $0xf8] sm:$0xff]  ;;  %10971 = vst [vmem:[#allocation19_spill] sm:$0xff] %v7064_v46  ;;  %v7085_v63 = vld [vmem:[#allocation7 + $0x70] sm:$0xff] }
 0x3e8   :  { %v1548_v47 = vsel %vm1545_vm11, %v1547_v50, %v1543_v43  ;;  %10972 = vst [vmem:[#allocation20_spill] sm:$0xff] %v7067_v53  ;;  %v7094_v43 = vld [vmem:[#allocation7 + $0x48] sm:$0xff]  ;;  %v7097_v50 = vld [vmem:[#allocation7 + $0x50] sm:$0xff] }
 0x3e9   :  { %10973 = vst [vmem:[#allocation21_spill] sm:$0xff] %v7070_v56 }
 0x3ea   :  { %10974 = vst [vmem:[#allocation31_spill] sm:$0xff] %v7073_v55 }
 0x3eb   :  { %10975 = vst [vmem:[#allocation22_spill] sm:$0xff] %v7076_v54 }
 0x3ec   :  { %10976 = vst [vmem:[#allocation24_spill] sm:$0xff] %v7079_v62 }
 0x3ed   :  { %v4533_v57 = vpop.eup %4532  ;;  %10977 = vst [vmem:[#allocation25_spill] sm:$0xff] %v7082_v40 }
 0x3ee   :  { %v1554_v42 = vmul.f32 %v4533_v57, %v1548_v47  ;;  %10978 = vst [vmem:[#allocation35_spill] sm:$0xff] %v7085_v63  ;;  %v7100_v57 = vld [vmem:[#allocation7 + $0x58] sm:$0xff]  ;;  %v7103_v47 = vld [vmem:[#allocation7 + $0x20] sm:$0xff] }
 0x3ef   :  { %10981 = vst [vmem:[#allocation29_spill] sm:$0xff] %v7094_v43 }
 0x3f0   :  { %1573 = vmatmul.f32.vlgmr.msra.gmra.mxu0 %v1554_v42  ;;  %1593 = vmatmul.f32.vlgmr.msra.gmra.mxu1 %v1554_v42  ;;  %10982 = vst [vmem:[#allocation42_spill] sm:$0xff] %v7097_v50 }
 0x3f1   :  { %1613 = vmatmul.f32.vlgmr.msra.gmra.mxu2 %v1554_v42  ;;  %1633 = vmatmul.f32.vlgmr.msra.gmra.mxu3 %v1554_v42  ;;  %10983 = vst [vmem:[#allocation30_spill] sm:$0xff] %v7100_v57  ;;  %v7106_v42 = vld [vmem:[#allocation7 + $0x28] sm:$0xff] }
 0x3f2   :  { %1786 = vmatpush.msra.mxu0 %v6932_v9  ;;  %1806 = vmatpush.msra.mxu1 %v6935_v36  ;;  %10984 = vst [vmem:[#allocation32_spill] sm:$0xff] %v7103_v47 }
 0x3f3   :  { %1826 = vmatpush.msra.mxu2 %v6938_v0  ;;  %1846 = vmatpush.msra.mxu3 %v6941_v1  ;;  %10985 = vst [vmem:[#allocation33_spill] sm:$0xff] %v7106_v42 }
 0x3f4   :  { %1787 = vmatpush.msra.mxu0 %v6944_v2  ;;  %1807 = vmatpush.msra.mxu1 %v6947_v3 }
 0x3f5   :  { %1827 = vmatpush.msra.mxu2 %v6953_v7  ;;  %1847 = vmatpush.msra.mxu3 %v6956_v37 }
 0x3f6   :  { %1788 = vmatpush.msra.mxu0 %v6959_v20  ;;  %1808 = vmatpush.msra.mxu1 %v6962_v8 }
 0x3f7   :  { %1828 = vmatpush.msra.mxu2 %v6965_v26  ;;  %1848 = vmatpush.msra.mxu3 %v6968_v27 }
 0x3f8   :  { %1653 = vmatmul.f32.vlgmr.msrb.gmra.mxu0 %v4331_v5  ;;  %1673 = vmatmul.f32.vlgmr.msrb.gmra.mxu1 %v4331_v5 }
 0x3f9   :  { %1693 = vmatmul.f32.vlgmr.msrb.gmra.mxu2 %v4331_v5  ;;  %1713 = vmatmul.f32.vlgmr.msrb.gmra.mxu3 %v4331_v5  ;;  %v7109_v5 = vld [vmem:[#allocation7 + $0x30] sm:$0xff] }
 0x3fa   :  { %1789 = vmatpush.msra.mxu0 %v6971_v12  ;;  %1809 = vmatpush.msra.mxu1 %v6974_v16  ;;  %10986 = vst [vmem:[#allocation46_spill] sm:$0xff] %v7109_v5 }
 0x3fb   :  { %1829 = vmatpush.msra.mxu2 %v6977_v22  ;;  %1849 = vmatpush.msra.mxu3 %v6980_v25 }
 0x3fc   :  { %1790 = vmatpush.msra.mxu0 %v6983_v11  ;;  %1810 = vmatpush.msra.mxu1 %v6986_v14 }
 0x3fd   :  { %1830 = vmatpush.msra.mxu2 %v6989_v18  ;;  %1850 = vmatpush.msra.mxu3 %v6992_v48 }
 0x3fe   :  { %1791 = vmatpush.msra.mxu0 %v6995_v49  ;;  %1811 = vmatpush.msra.mxu1 %v6998_v24 }
 0x3ff   :  { %1831 = vmatpush.msra.mxu2 %v7001_v13  ;;  %1851 = vmatpush.msra.mxu3 %v7004_v15 }
 0x400   :  { %1792 = vmatpush.msra.mxu0 %v7007_v17  ;;  %1812 = vmatpush.msra.mxu1 %v7010_v35 }
 0x401   :  { %1832 = vmatpush.msra.mxu2 %v7013_v19  ;;  %1852 = vmatpush.msra.mxu3 %v7016_v28 }
 0x402   :  { %1793 = vmatpush.msra.mxu0 %v7019_v34  ;;  %1813 = vmatpush.msra.mxu1 %v7022_v10 }
 0x403   :  { %1833 = vmatpush.msra.mxu2 %v7025_v61  ;;  %1853 = vmatpush.msra.mxu3 %v7028_v29 }
 0x404   :  { %1794 = vmatpush.msra.mxu0 %v7031_v30  ;;  %1814 = vmatpush.msra.mxu1 %v7034_v31 }
 0x405   :  { %1834 = vmatpush.msra.mxu2 %v7037_v32  ;;  %1854 = vmatpush.msra.mxu3 %v7040_v33 }
 0x406   :  { %1795 = vmatpush.msra.mxu0 %v7043_v38  ;;  %1815 = vmatpush.msra.mxu1 %v7046_v39 }
 0x407   :  { %1835 = vmatpush.msra.mxu2 %v7049_v41  ;;  %1855 = vmatpush.msra.mxu3 %v7052_v44 }
 0x408   :  { %1796 = vmatpush.msra.mxu0 %v7055_v45  ;;  %1816 = vmatpush.msra.mxu1 %v7058_v58 }
 0x409   :  { %1836 = vmatpush.msra.mxu2 %v7061_v52  ;;  %1856 = vmatpush.msra.mxu3 %v7064_v46 }
 0x40a   :  { %1797 = vmatpush.msra.mxu0 %v7067_v53  ;;  %1817 = vmatpush.msra.mxu1 %v7070_v56 }
 0x40b   :  { %1837 = vmatpush.msra.mxu2 %v7073_v55  ;;  %1857 = vmatpush.msra.mxu3 %v7076_v54 }
 0x40c   :  { %1798 = vmatpush.msra.mxu0 %v7079_v62  ;;  %1818 = vmatpush.msra.mxu1 %v7082_v40 }
 0x40d   :  { %1838 = vmatpush.msra.mxu2 %v7085_v63  ;;  %1858 = vmatpush.msra.mxu3 %v7088_v51 }
 0x40e   :  { %1799 = vmatpush.msra.mxu0 %v7091_v59  ;;  %1819 = vmatpush.msra.mxu1 %v7094_v43  ;;  %v7112_v43 = vld [vmem:[#allocation7 + $0x38] sm:$0xff] }
 0x40f   :  { %1839 = vmatpush.msra.mxu2 %v7097_v50  ;;  %1859 = vmatpush.msra.mxu3 %v7100_v57  ;;  %10987 = vst [vmem:[#allocation34_spill] sm:$0xff] %v7112_v43  ;;  %v7115_v50 = vld [vmem:[#allocation7] sm:$0xff]  ;;  %v7118_v57 = vld [vmem:[#allocation7 + $0x8] sm:$0xff] }
 0x410   :  { %1800 = vmatpush.msra.mxu0 %v7103_v47  ;;  %1820 = vmatpush.msra.mxu1 %v7106_v42  ;;  %10988 = vst [vmem:[#allocation36_spill] sm:$0xff] %v7115_v50  ;;  %v7121_v47 = vld [vmem:[#allocation7 + $0x10] sm:$0xff]  ;;  %v7124_v42 = vld [vmem:[#allocation7 + $0x18] sm:$0xff] }
 0x411   :  { %1840 = vmatpush.msra.mxu2 %v7109_v5  ;;  %1860 = vmatpush.msra.mxu3 %v7112_v43  ;;  %10989 = vst [vmem:[#allocation37_spill] sm:$0xff] %v7118_v57  ;;  %v7127_v5 = vld [vmem:[#allocation5 + $0x1e0] sm:$0xff]  ;;  %v7130_v43 = vld [vmem:[#allocation5 + $0x1e8] sm:$0xff] }
 0x412   :  { %1801 = vmatpush.msra.mxu0 %v7115_v50  ;;  %1821 = vmatpush.msra.mxu1 %v7118_v57  ;;  %10990 = vst [vmem:[#allocation50_spill] sm:$0xff] %v7121_v47  ;;  %v7133_v50 = vld [vmem:[#allocation5 + $0x1f0] sm:$0xff]  ;;  %v7136_v57 = vld [vmem:[#allocation5 + $0x1f8] sm:$0xff] }
 0x413   :  { %1841 = vmatpush.msra.mxu2 %v7121_v47  ;;  %10991 = vst [vmem:[#allocation38_spill] sm:$0xff] %v7124_v42  ;;  %1861 = vmatpush.msra.mxu3 %v7124_v42  ;;  %v7139_v47 = vld [vmem:[#allocation5 + $0x1c0] sm:$0xff]  ;;  %v7142_v42 = vld [vmem:[#allocation5 + $0x1c8] sm:$0xff] }
 0x414   :  { %10992 = vst [vmem:[#allocation39_spill] sm:$0xff] %v7127_v5  ;;  %1866 = vmatpush.msrb.mxu0 %v7127_v5  ;;  %1886 = vmatpush.msrb.mxu1 %v7130_v43  ;;  %v7145_v5 = vld [vmem:[#allocation5 + $0x1d0] sm:$0xff] }
 0x415   :  { %10993 = vst [vmem:[#allocation40_spill] sm:$0xff] %v7130_v43  ;;  %1906 = vmatpush.msrb.mxu2 %v7133_v50  ;;  %1926 = vmatpush.msrb.mxu3 %v7136_v57  ;;  %v7148_v43 = vld [vmem:[#allocation5 + $0x1d8] sm:$0xff] }
 0x416   :  { %10994 = vst [vmem:[#allocation54_spill] sm:$0xff] %v7133_v50  ;;  %1867 = vmatpush.msrb.mxu0 %v7139_v47  ;;  %1887 = vmatpush.msrb.mxu1 %v7142_v42  ;;  %v7151_v50 = vld [vmem:[#allocation5 + $0x1a0] sm:$0xff] }
 0x417   :  { %10995 = vst [vmem:[#allocation41_spill] sm:$0xff] %v7136_v57  ;;  %1907 = vmatpush.msrb.mxu2 %v7145_v5  ;;  %1927 = vmatpush.msrb.mxu3 %v7148_v43  ;;  %v7154_v57 = vld [vmem:[#allocation5 + $0x1a8] sm:$0xff] }
 0x418   :  { %10996 = vst [vmem:[#allocation43_spill] sm:$0xff] %v7139_v47  ;;  %1868 = vmatpush.msrb.mxu0 %v7151_v50  ;;  %1888 = vmatpush.msrb.mxu1 %v7154_v57  ;;  %v7157_v47 = vld [vmem:[#allocation5 + $0x1b0] sm:$0xff] }
 0x419   :  { %10997 = vst [vmem:[#allocation44_spill] sm:$0xff] %v7142_v42  ;;  %1908 = vmatpush.msrb.mxu2 %v7157_v47  ;;  %v7160_v42 = vld [vmem:[#allocation5 + $0x1b8] sm:$0xff] }
 0x41a   :  { %10998 = vst [vmem:[#allocation58_spill] sm:$0xff] %v7145_v5  ;;  %1928 = vmatpush.msrb.mxu3 %v7160_v42  ;;  %v7163_v5 = vld [vmem:[#allocation5 + $0x180] sm:$0xff] }
 0x41b   :  { %10999 = vst [vmem:[#allocation45_spill] sm:$0xff] %v7148_v43  ;;  %1869 = vmatpush.msrb.mxu0 %v7163_v5  ;;  %v7166_v43 = vld [vmem:[#allocation5 + $0x188] sm:$0xff] }
 0x41c   :  { %11000 = vst [vmem:[#allocation47_spill] sm:$0xff] %v7151_v50  ;;  %1889 = vmatpush.msrb.mxu1 %v7166_v43  ;;  %v7169_v50 = vld [vmem:[#allocation5 + $0x190] sm:$0xff] }
 0x41d   :  { %11001 = vst [vmem:[#allocation48_spill] sm:$0xff] %v7154_v57  ;;  %1909 = vmatpush.msrb.mxu2 %v7169_v50  ;;  %v7172_v57 = vld [vmem:[#allocation5 + $0x198] sm:$0xff] }
 0x41e   :  { %11002 = vst [vmem:[#allocation62_spill] sm:$0xff] %v7157_v47  ;;  %1929 = vmatpush.msrb.mxu3 %v7172_v57  ;;  %v7175_v47 = vld [vmem:[#allocation5 + $0x160] sm:$0xff] }
 0x41f   :  { %11003 = vst [vmem:[#allocation49_spill] sm:$0xff] %v7160_v42  ;;  %1870 = vmatpush.msrb.mxu0 %v7175_v47  ;;  %v7178_v42 = vld [vmem:[#allocation5 + $0x168] sm:$0xff] }
 0x420   :  { %11004 = vst [vmem:[#allocation51_spill] sm:$0xff] %v7163_v5  ;;  %1890 = vmatpush.msrb.mxu1 %v7178_v42  ;;  %v7181_v5 = vld [vmem:[#allocation5 + $0x170] sm:$0xff] }
 0x421   :  { %11005 = vst [vmem:[#allocation52_spill] sm:$0xff] %v7166_v43  ;;  %1910 = vmatpush.msrb.mxu2 %v7181_v5  ;;  %v7184_v43 = vld [vmem:[#allocation5 + $0x178] sm:$0xff] }
 0x422   :  { %11006 = vst [vmem:[#allocation66_spill] sm:$0xff] %v7169_v50  ;;  %1930 = vmatpush.msrb.mxu3 %v7184_v43  ;;  %v7187_v50 = vld [vmem:[#allocation5 + $0x140] sm:$0xff] }
 0x423   :  { %11007 = vst [vmem:[#allocation53_spill] sm:$0xff] %v7172_v57  ;;  %1871 = vmatpush.msrb.mxu0 %v7187_v50  ;;  %v7190_v57 = vld [vmem:[#allocation5 + $0x148] sm:$0xff] }
 0x424   :  { %11008 = vst [vmem:[#allocation55_spill] sm:$0xff] %v7175_v47  ;;  %1891 = vmatpush.msrb.mxu1 %v7190_v57  ;;  %v7193_v47 = vld [vmem:[#allocation5 + $0x150] sm:$0xff] }
 0x425   :  { %11009 = vst [vmem:[#allocation56_spill] sm:$0xff] %v7178_v42  ;;  %1911 = vmatpush.msrb.mxu2 %v7193_v47  ;;  %v7196_v42 = vld [vmem:[#allocation5 + $0x158] sm:$0xff] }
 0x426   :  { %11010 = vst [vmem:[#allocation70_spill] sm:$0xff] %v7181_v5  ;;  %1931 = vmatpush.msrb.mxu3 %v7196_v42  ;;  %v7199_v5 = vld [vmem:[#allocation5 + $0x120] sm:$0xff] }
 0x427   :  { %11011 = vst [vmem:[#allocation57_spill] sm:$0xff] %v7184_v43  ;;  %1872 = vmatpush.msrb.mxu0 %v7199_v5  ;;  %v7202_v43 = vld [vmem:[#allocation5 + $0x128] sm:$0xff] }
 0x428   :  { %11012 = vst [vmem:[#allocation59_spill] sm:$0xff] %v7187_v50  ;;  %1892 = vmatpush.msrb.mxu1 %v7202_v43  ;;  %v7205_v50 = vld [vmem:[#allocation5 + $0x130] sm:$0xff] }
 0x429   :  { %11013 = vst [vmem:[#allocation60_spill] sm:$0xff] %v7190_v57  ;;  %1912 = vmatpush.msrb.mxu2 %v7205_v50  ;;  %v7208_v57 = vld [vmem:[#allocation5 + $0x138] sm:$0xff] }
 0x42a   :  { %11014 = vst [vmem:[#allocation74_spill] sm:$0xff] %v7193_v47  ;;  %1932 = vmatpush.msrb.mxu3 %v7208_v57  ;;  %v7211_v47 = vld [vmem:[#allocation5 + $0x100] sm:$0xff] }
 0x42b   :  { %11015 = vst [vmem:[#allocation61_spill] sm:$0xff] %v7196_v42  ;;  %1873 = vmatpush.msrb.mxu0 %v7211_v47  ;;  %v7214_v42 = vld [vmem:[#allocation5 + $0x108] sm:$0xff] }
 0x42c   :  { %11016 = vst [vmem:[#allocation63_spill] sm:$0xff] %v7199_v5  ;;  %1893 = vmatpush.msrb.mxu1 %v7214_v42  ;;  %v7217_v5 = vld [vmem:[#allocation5 + $0x110] sm:$0xff] }
 0x42d   :  { %11017 = vst [vmem:[#allocation64_spill] sm:$0xff] %v7202_v43  ;;  %1913 = vmatpush.msrb.mxu2 %v7217_v5  ;;  %v7220_v43 = vld [vmem:[#allocation5 + $0x118] sm:$0xff] }
 0x42e   :  { %11018 = vst [vmem:[#allocation78_spill] sm:$0xff] %v7205_v50  ;;  %1933 = vmatpush.msrb.mxu3 %v7220_v43  ;;  %v7223_v50 = vld [vmem:[#allocation5 + $0xe0] sm:$0xff] }
 0x42f   :  { %11019 = vst [vmem:[#allocation65_spill] sm:$0xff] %v7208_v57  ;;  %1874 = vmatpush.msrb.mxu0 %v7223_v50  ;;  %v7226_v57 = vld [vmem:[#allocation5 + $0xe8] sm:$0xff] }
 0x430   :  { %11020 = vst [vmem:[#allocation67_spill] sm:$0xff] %v7211_v47  ;;  %1894 = vmatpush.msrb.mxu1 %v7226_v57  ;;  %v7229_v47 = vld [vmem:[#allocation5 + $0xf0] sm:$0xff] }
 0x431   :  { %11021 = vst [vmem:[#allocation68_spill] sm:$0xff] %v7214_v42  ;;  %1914 = vmatpush.msrb.mxu2 %v7229_v47  ;;  %v7232_v42 = vld [vmem:[#allocation5 + $0xf8] sm:$0xff] }
 0x432   :  { %11022 = vst [vmem:[#allocation82_spill] sm:$0xff] %v7217_v5  ;;  %1934 = vmatpush.msrb.mxu3 %v7232_v42  ;;  %v7235_v5 = vld [vmem:[#allocation5 + $0xc0] sm:$0xff] }
 0x433   :  { %11023 = vst [vmem:[#allocation69_spill] sm:$0xff] %v7220_v43  ;;  %1875 = vmatpush.msrb.mxu0 %v7235_v5  ;;  %v7238_v43 = vld [vmem:[#allocation5 + $0xc8] sm:$0xff] }
 0x434   :  { %11024 = vst [vmem:[#allocation71_spill] sm:$0xff] %v7223_v50  ;;  %1895 = vmatpush.msrb.mxu1 %v7238_v43  ;;  %v7241_v50 = vld [vmem:[#allocation5 + $0xd0] sm:$0xff] }
 0x435   :  { %11025 = vst [vmem:[#allocation72_spill] sm:$0xff] %v7226_v57  ;;  %1915 = vmatpush.msrb.mxu2 %v7241_v50  ;;  %v7244_v57 = vld [vmem:[#allocation5 + $0xd8] sm:$0xff] }
 0x436   :  { %11026 = vst [vmem:[#allocation86_spill] sm:$0xff] %v7229_v47  ;;  %1935 = vmatpush.msrb.mxu3 %v7244_v57  ;;  %v7247_v47 = vld [vmem:[#allocation5 + $0xa0] sm:$0xff] }
 0x437   :  { %11027 = vst [vmem:[#allocation73_spill] sm:$0xff] %v7232_v42  ;;  %1876 = vmatpush.msrb.mxu0 %v7247_v47  ;;  %v7250_v42 = vld [vmem:[#allocation5 + $0xa8] sm:$0xff] }
 0x438   :  { %11028 = vst [vmem:[#allocation75_spill] sm:$0xff] %v7235_v5  ;;  %1896 = vmatpush.msrb.mxu1 %v7250_v42  ;;  %v7253_v5 = vld [vmem:[#allocation5 + $0xb0] sm:$0xff] }
 0x439   :  { %11029 = vst [vmem:[#allocation76_spill] sm:$0xff] %v7238_v43  ;;  %1916 = vmatpush.msrb.mxu2 %v7253_v5  ;;  %v7256_v43 = vld [vmem:[#allocation5 + $0xb8] sm:$0xff] }
 0x43a   :  { %11030 = vst [vmem:[#allocation90_spill] sm:$0xff] %v7241_v50  ;;  %1936 = vmatpush.msrb.mxu3 %v7256_v43  ;;  %v7259_v50 = vld [vmem:[#allocation5 + $0x80] sm:$0xff] }
 0x43b   :  { %11031 = vst [vmem:[#allocation77_spill] sm:$0xff] %v7244_v57  ;;  %1877 = vmatpush.msrb.mxu0 %v7259_v50  ;;  %v7262_v57 = vld [vmem:[#allocation5 + $0x88] sm:$0xff] }
 0x43c   :  { %11032 = vst [vmem:[#allocation79_spill] sm:$0xff] %v7247_v47  ;;  %1897 = vmatpush.msrb.mxu1 %v7262_v57  ;;  %v7265_v47 = vld [vmem:[#allocation5 + $0x90] sm:$0xff] }
 0x43d   :  { %11033 = vst [vmem:[#allocation80_spill] sm:$0xff] %v7250_v42  ;;  %1917 = vmatpush.msrb.mxu2 %v7265_v47  ;;  %v7268_v42 = vld [vmem:[#allocation5 + $0x98] sm:$0xff] }
 0x43e   :  { %11034 = vst [vmem:[#allocation94_spill] sm:$0xff] %v7253_v5  ;;  %1937 = vmatpush.msrb.mxu3 %v7268_v42  ;;  %v7271_v5 = vld [vmem:[#allocation5 + $0x60] sm:$0xff] }
 0x43f   :  { %11035 = vst [vmem:[#allocation81_spill] sm:$0xff] %v7256_v43  ;;  %1878 = vmatpush.msrb.mxu0 %v7271_v5  ;;  %v7274_v43 = vld [vmem:[#allocation5 + $0x68] sm:$0xff] }
 0x440   :  { %11036 = vst [vmem:[#allocation83_spill] sm:$0xff] %v7259_v50  ;;  %1898 = vmatpush.msrb.mxu1 %v7274_v43  ;;  %v7277_v50 = vld [vmem:[#allocation5 + $0x70] sm:$0xff] }
 0x441   :  { %11037 = vst [vmem:[#allocation84_spill] sm:$0xff] %v7262_v57  ;;  %1918 = vmatpush.msrb.mxu2 %v7277_v50  ;;  %v7280_v57 = vld [vmem:[#allocation5 + $0x78] sm:$0xff] }
 0x442   :  { %11038 = vst [vmem:[#allocation98_spill] sm:$0xff] %v7265_v47  ;;  %1938 = vmatpush.msrb.mxu3 %v7280_v57  ;;  %v7283_v47 = vld [vmem:[#allocation5 + $0x40] sm:$0xff] }
 0x443   :  { %11039 = vst [vmem:[#allocation85_spill] sm:$0xff] %v7268_v42  ;;  %1879 = vmatpush.msrb.mxu0 %v7283_v47  ;;  %v7286_v42 = vld [vmem:[#allocation5 + $0x48] sm:$0xff] }
 0x444   :  { %11040 = vst [vmem:[#allocation87_spill] sm:$0xff] %v7271_v5  ;;  %1899 = vmatpush.msrb.mxu1 %v7286_v42  ;;  %v7289_v5 = vld [vmem:[#allocation5 + $0x50] sm:$0xff] }
 0x445   :  { %11041 = vst [vmem:[#allocation88_spill] sm:$0xff] %v7274_v43  ;;  %1919 = vmatpush.msrb.mxu2 %v7289_v5  ;;  %v7292_v43 = vld [vmem:[#allocation5 + $0x58] sm:$0xff] }
 0x446   :  { %11042 = vst [vmem:[#allocation102_spill] sm:$0xff] %v7277_v50  ;;  %1939 = vmatpush.msrb.mxu3 %v7292_v43  ;;  %v7295_v50 = vld [vmem:[#allocation5 + $0x20] sm:$0xff] }
 0x447   :  { %11043 = vst [vmem:[#allocation89_spill] sm:$0xff] %v7280_v57  ;;  %1880 = vmatpush.msrb.mxu0 %v7295_v50  ;;  %v7298_v57 = vld [vmem:[#allocation5 + $0x28] sm:$0xff] }
 0x448   :  { %11044 = vst [vmem:[#allocation91_spill] sm:$0xff] %v7283_v47  ;;  %1900 = vmatpush.msrb.mxu1 %v7298_v57  ;;  %v7301_v47 = vld [vmem:[#allocation5 + $0x30] sm:$0xff] }
 0x449   :  { %11045 = vst [vmem:[#allocation92_spill] sm:$0xff] %v7286_v42  ;;  %1920 = vmatpush.msrb.mxu2 %v7301_v47  ;;  %v7304_v42 = vld [vmem:[#allocation5 + $0x38] sm:$0xff] }
 0x44a   :  { %11046 = vst [vmem:[#allocation103_spill] sm:$0xff] %v7289_v5  ;;  %1940 = vmatpush.msrb.mxu3 %v7304_v42  ;;  %v7307_v5 = vld [vmem:[#allocation5] sm:$0xff] }
 0x44b   :  { %11047 = vst [vmem:[#allocation93_spill] sm:$0xff] %v7292_v43  ;;  %1881 = vmatpush.msrb.mxu0 %v7307_v5  ;;  %v7310_v43 = vld [vmem:[#allocation5 + $0x8] sm:$0xff] }
 0x44c   :  { %11048 = vst [vmem:[#allocation95_spill] sm:$0xff] %v7295_v50  ;;  %1901 = vmatpush.msrb.mxu1 %v7310_v43  ;;  %v7313_v50 = vld [vmem:[#allocation5 + $0x10] sm:$0xff] }
 0x44d   :  { %11049 = vst [vmem:[#allocation96_spill] sm:$0xff] %v7298_v57  ;;  %1921 = vmatpush.msrb.mxu2 %v7313_v50  ;;  %v7316_v57 = vld [vmem:[#allocation5 + $0x18] sm:$0xff] }
 0x44e   :  { %11050 = vst [vmem:[#allocation104_spill] sm:$0xff] %v7301_v47  ;;  %1941 = vmatpush.msrb.mxu3 %v7316_v57 }
 0x44f   :  { %11051 = vst [vmem:[#allocation97_spill] sm:$0xff] %v7304_v42 }
 0x450   :  { %11052 = vst [vmem:[#allocation99_spill] sm:$0xff] %v7307_v5 }
 0x451   :  { %11053 = vst [vmem:[#allocation100_spill] sm:$0xff] %v7310_v43 }
 0x452   :  { %11054 = vst [vmem:[#allocation105_spill] sm:$0xff] %v7313_v50 }
 0x453   :  { %11055 = vst [vmem:[#allocation101_spill] sm:$0xff] %v7316_v57 }
 0x46d   :  { %v1574_v47 = vpop.f32.mrf.mxu0  ;;  %v1594_v59 = vpop.f32.mrf.mxu1 }
 0x474   :  { %v1634_v51 = vpop.f32.mrf.mxu3  ;;  %v1614_v43 = vpop.f32.mrf.mxu2 }
 0x475   :  { %v1654_v42 = vpop.f32.mrf.mxu0  ;;  %v1674_v63 = vpop.f32.mrf.mxu1 }
 0x476   :  { %v1655_v40 = vadd.f32 %v1654_v42, %v1574_v47  ;;  %v1675_v62 = vadd.f32 %v1674_v63, %v1594_v59 }
 0x478   :  { %v1717_v5 = vadd.f32 %v1655_v40, %v10962_v4  ;;  %v1718_v54 = vadd.f32 %v1675_v62, %v10963_v6 }
 0x47a   :  { %v4332_v55 = vmul.f32 -1.442695, %v1717_v5  ;;  %v4333_v56 = vmul.f32 -1.442695, %v1718_v54 }
 0x47c   :  { %4534 = vpow2.f32 %v4332_v55  ;;  %v1714_v50 = vpop.f32.mrf.mxu3  ;;  %v1694_v63 = vpop.f32.mrf.mxu2 }
 0x47d   :  { %4536 = vpow2.f32 %v4333_v56  ;;  %v1715_v53 = vadd.f32 %v1714_v50, %v1634_v51  ;;  %v1695_v40 = vadd.f32 %v1694_v63, %v1614_v43 }
 0x47f   :  { %v1720_v57 = vadd.f32 %v1715_v53, %v10964_v23  ;;  %v1719_v55 = vadd.f32 %v1695_v40, %v10965_v21 }
 0x481   :  { %v4334_v46 = vmul.f32 -1.442695, %v1720_v57 }
 0x482   :  { %v4535_v52 = vpop.eup %4534 }
 0x483   :  { %v4537_v58 = vpop.eup %4536  ;;  %v1724_v45 = vadd.f32 1.0, %v4535_v52  ;;  %4538 = vpow2.f32 %v4334_v46 }
 0x484   :  { %v1743_v47 = vadd.f32 1.0, %v4537_v58 }
 0x485   :  { %4540 = vrcp.f32 %v1724_v45  ;;  %v1736_v57 = vand.u32 2147483648, %v1724_v45  ;;  %v1734_v58 = vand.u32 2147483647, %v1724_v45  ;;  %vm1730_vm14 = vweird.f32 %v1724_v45 }
 0x486   :  { %4542 = vrcp.f32 %v1743_v47  ;;  %v1755_v52 = vand.u32 2147483648, %v1743_v47  ;;  %v1753_v43 = vand.u32 2147483647, %v1743_v47  ;;  %vm1749_vm15 = vweird.f32 %v1743_v47 }
 0x487   :  { %v1737_v40 = vor.u32 1.1754944e-38, %v1736_v57  ;;  %vm1735_vm2 = vcmp.eq.f32.partialorder %v1734_v58, 8.507059e+37 }
 0x488   :  { %vm1754_vm3 = vcmp.eq.f32.partialorder %v1753_v43, 8.507059e+37  ;;  %v11100_v43 = vld [vmem:[#allocation70_spill] sm:$0xff] }
 0x489   :  { %v4539_v62 = vpop.eup %4538 }
 0x48a   :  { %v1763_v59 = vadd.f32 1.0, %v4539_v62 }
 0x48b   :  { %v4541_v42 = vpop.eup %4540 }
 0x48c   :  { %v4543_v54 = vpop.eup %4542  ;;  %v1726_v56 = vmul.f32 %v4541_v42, %v1724_v45  ;;  %4544 = vrcp.f32 %v1763_v59  ;;  %vm1731_vm12 = vweird.f32 %v4541_v42  ;;  %v1775_v57 = vand.u32 2147483648, %v1763_v59 }
 0x48d   :  { %v1745_v51 = vmul.f32 %v4543_v54, %v1743_v47  ;;  %4546 = vtanh.f32 %v1719_v55  ;;  %vm1750_vm13 = vweird.f32 %v4543_v54  ;;  %vm1732_vm0 = vmor %vm1730_vm14, %vm1731_vm12  ;;  %vm1769_vm5 = vweird.f32 %v1763_v59 }
 0x48e   :  { %v1727_v53 = vsub.f32 1.0, %v1726_v56  ;;  %vm1751_vm1 = vmor %vm1749_vm15, %vm1750_vm13  ;;  %v1756_v56 = vor.u32 1.1754944e-38, %v1755_v52  ;;  %v1776_v58 = vor.u32 1.1754944e-38, %v1775_v57  ;;  %v11111_v57 = vld [vmem:[#allocation68_spill] sm:$0xff] }
 0x48f   :  { %v1746_v50 = vsub.f32 1.0, %v1745_v51 }
 0x490   :  { %v1728_v46 = vmul.f32 %v4541_v42, %v1727_v53 }
 0x491   :  { %v1747_v5 = vmul.f32 %v4543_v54, %v1746_v50 }
 0x492   :  { %v4545_v63 = vpop.eup %4544  ;;  %v1729_v62 = vadd.f32 %v4541_v42, %v1728_v46 }
 0x493   :  { %v1748_v21 = vadd.f32 %v4543_v54, %v1747_v5  ;;  %v1765_v23 = vmul.f32 %v4545_v63, %v1763_v59  ;;  %v4547_v55 = vpop.eup %4546  ;;  %vm1770_vm4 = vweird.f32 %v4545_v63  ;;  %v11099_v5 = vld [vmem:[#allocation56_spill] sm:$0xff] }
 0x494   :  { %v1733_v51 = vsel %vm1732_vm0, %v4541_v42, %v1729_v62  ;;  %v1773_v42 = vand.u32 2147483647, %v1763_v59  ;;  %vm1771_vm6 = vmor %vm1769_vm5, %vm1770_vm4  ;;  %v11098_v59 = vld [vmem:[#allocation55_spill] sm:$0xff] }
 0x495   :  { %v1738_v6 = vsel %vm1735_vm2, %v1737_v40, %v1733_v51  ;;  %v1752_v53 = vsel %vm1751_vm1, %v4543_v54, %v1748_v21  ;;  %v1766_v4 = vsub.f32 1.0, %v1765_v23  ;;  %v11102_v62 = vld [vmem:[#allocation59_spill] sm:$0xff]  ;;  %v11103_v40 = vld [vmem:[#allocation60_spill] sm:$0xff]  ;;  %v11105_v51 = vld [vmem:[#allocation61_spill] sm:$0xff] }
 0x496   :  { %v1757_v50 = vsel %vm1754_vm3, %v1756_v56, %v1752_v53  ;;  %v1780_v44 = vmul.f32 %v4547_v55, %v1738_v6  ;;  %vm1774_vm7 = vcmp.eq.f32.partialorder %v1773_v42, 8.507059e+37  ;;  %v11056_v6 = vld [vmem:[#allocation23_spill] sm:$0xff]  ;;  %v11104_v56 = vld [vmem:[#allocation74_spill] sm:$0xff]  ;;  %v11107_v53 = vld [vmem:[#allocation64_spill] sm:$0xff] }
 0x497   :  { %v1779_v41 = vmul.f32 %v1757_v50, %v6929_v60  ;;  %v1767_v46 = vmul.f32 %v4545_v63, %v1766_v4  ;;  %v4335_v4 = vld [vmem:[%s9688_s2 + $0x30] sm:$0xff]  ;;  %v11057_v60 = vld [vmem:[#allocation16_spill] sm:$0xff]  ;;  %v11106_v55 = vld [vmem:[#allocation63_spill] sm:$0xff] }
 0x498   :  { %v11108_v50 = vld [vmem:[#allocation78_spill] sm:$0xff] }
 0x499   :  { %v7324_v45 = vadd.f32 %v1780_v44, %v1779_v41  ;;  %v1768_v47 = vadd.f32 %v4545_v63, %v1767_v46  ;;  %v11096_v41 = vld [vmem:[#allocation66_spill] sm:$0xff]  ;;  %v11097_v44 = vld [vmem:[#allocation53_spill] sm:$0xff] }
 0x49a   :  { %v11109_v46 = vld [vmem:[#allocation65_spill] sm:$0xff]  ;;  %v11112_v42 = vld [vmem:[#allocation82_spill] sm:$0xff] }
 0x49b   :  { %4548 = vtanh.f32 %v7324_v45  ;;  %v1772_v52 = vsel %vm1771_vm6, %v4545_v63, %v1768_v47  ;;  %v11101_v63 = vld [vmem:[#allocation57_spill] sm:$0xff]  ;;  %v11110_v47 = vld [vmem:[#allocation67_spill] sm:$0xff] }
 0x49c   :  { %v1777_v23 = vsel %vm1774_vm7, %v1776_v58, %v1772_v52  ;;  %v11113_v52 = vld [vmem:[#allocation69_spill] sm:$0xff]  ;;  %v11114_v58 = vld [vmem:[#allocation71_spill] sm:$0xff] }
 0x4a1   :  { %v4549_v21 = vpop.eup %4548 }
 0x4a2   :  { %v1783_v54 = vmul.f32 %v4549_v21, %v1777_v23  ;;  %v11115_v21 = vld [vmem:[#allocation72_spill] sm:$0xff]  ;;  %v11116_v23 = vld [vmem:[#allocation86_spill] sm:$0xff] }
 0x4a4   :  { %1802 = vmatmul.f32.vlgmr.msra.gmra.mxu0 %v1783_v54  ;;  %1822 = vmatmul.f32.vlgmr.msra.gmra.mxu1 %v1783_v54 }
 0x4a5   :  { %1842 = vmatmul.f32.vlgmr.msra.gmra.mxu2 %v1783_v54  ;;  %1862 = vmatmul.f32.vlgmr.msra.gmra.mxu3 %v1783_v54  ;;  %v11117_v54 = vld [vmem:[#allocation73_spill] sm:$0xff] }
 0x4a6   :  { %2015 = vmatpush.msra.mxu0 %v6932_v9  ;;  %2035 = vmatpush.msra.mxu1 %v6935_v36  ;;  %v11058_v9 = vld [vmem:[#allocation17_spill] sm:$0xff]  ;;  %v11059_v36 = vld [vmem:[#allocation18_spill] sm:$0xff] }
 0x4a7   :  { %2055 = vmatpush.msra.mxu2 %v6938_v0  ;;  %2075 = vmatpush.msra.mxu3 %v6941_v1  ;;  %v11060_v0 = vld [vmem:[#allocation27_spill] sm:$0xff] }
 0x4a8   :  { %2016 = vmatpush.msra.mxu0 %v6944_v2  ;;  %2036 = vmatpush.msra.mxu1 %v6947_v3  ;;  %v11061_v1 = vld [vmem:[#allocation19_spill] sm:$0xff]  ;;  %v11062_v2 = vld [vmem:[#allocation20_spill] sm:$0xff]  ;;  %v11063_v3 = vld [vmem:[#allocation21_spill] sm:$0xff] }
 0x4a9   :  { %2056 = vmatpush.msra.mxu2 %v6953_v7  ;;  %2076 = vmatpush.msra.mxu3 %v6956_v37  ;;  %v11064_v7 = vld [vmem:[#allocation31_spill] sm:$0xff]  ;;  %v11065_v37 = vld [vmem:[#allocation22_spill] sm:$0xff] }
 0x4aa   :  { %2017 = vmatpush.msra.mxu0 %v6959_v20  ;;  %2037 = vmatpush.msra.mxu1 %v6962_v8  ;;  %v11066_v20 = vld [vmem:[#allocation24_spill] sm:$0xff]  ;;  %v11067_v8 = vld [vmem:[#allocation25_spill] sm:$0xff] }
 0x4ab   :  { %2057 = vmatpush.msra.mxu2 %v6965_v26  ;;  %2077 = vmatpush.msra.mxu3 %v6968_v27  ;;  %v11068_v26 = vld [vmem:[#allocation35_spill] sm:$0xff]  ;;  %v11069_v27 = vld [vmem:[#allocation26_spill] sm:$0xff] }
 0x4ac   :  { %1882 = vmatmul.f32.vlgmr.msrb.gmra.mxu0 %v4335_v4  ;;  %1902 = vmatmul.f32.vlgmr.msrb.gmra.mxu1 %v4335_v4 }
 0x4ad   :  { %1922 = vmatmul.f32.vlgmr.msrb.gmra.mxu2 %v4335_v4  ;;  %1942 = vmatmul.f32.vlgmr.msrb.gmra.mxu3 %v4335_v4  ;;  %v11118_v4 = vld [vmem:[#allocation75_spill] sm:$0xff] }
 0x4ae   :  { %2018 = vmatpush.msra.mxu0 %v6971_v12  ;;  %2038 = vmatpush.msra.mxu1 %v6974_v16  ;;  %v11070_v12 = vld [vmem:[#allocation28_spill] sm:$0xff]  ;;  %v11071_v16 = vld [vmem:[#allocation29_spill] sm:$0xff] }
 0x4af   :  { %2058 = vmatpush.msra.mxu2 %v6977_v22  ;;  %2078 = vmatpush.msra.mxu3 %v6980_v25  ;;  %v11072_v22 = vld [vmem:[#allocation42_spill] sm:$0xff] }
 0x4b0   :  { %2019 = vmatpush.msra.mxu0 %v6983_v11  ;;  %2039 = vmatpush.msra.mxu1 %v6986_v14  ;;  %v11073_v25 = vld [vmem:[#allocation30_spill] sm:$0xff]  ;;  %v11074_v11 = vld [vmem:[#allocation32_spill] sm:$0xff]  ;;  %v11075_v14 = vld [vmem:[#allocation33_spill] sm:$0xff] }
 0x4b1   :  { %2059 = vmatpush.msra.mxu2 %v6989_v18  ;;  %2079 = vmatpush.msra.mxu3 %v6992_v48  ;;  %v11076_v18 = vld [vmem:[#allocation46_spill] sm:$0xff] }
 0x4b2   :  { %2020 = vmatpush.msra.mxu0 %v6995_v49  ;;  %2040 = vmatpush.msra.mxu1 %v6998_v24  ;;  %v11077_v48 = vld [vmem:[#allocation34_spill] sm:$0xff]  ;;  %v11078_v49 = vld [vmem:[#allocation36_spill] sm:$0xff]  ;;  %v11079_v24 = vld [vmem:[#allocation37_spill] sm:$0xff] }
 0x4b3   :  { %2060 = vmatpush.msra.mxu2 %v7001_v13  ;;  %2080 = vmatpush.msra.mxu3 %v7004_v15  ;;  %v11080_v13 = vld [vmem:[#allocation50_spill] sm:$0xff] }
 0x4b4   :  { %2021 = vmatpush.msra.mxu0 %v7007_v17  ;;  %2041 = vmatpush.msra.mxu1 %v7010_v35  ;;  %v11081_v15 = vld [vmem:[#allocation38_spill] sm:$0xff]  ;;  %v11082_v17 = vld [vmem:[#allocation39_spill] sm:$0xff]  ;;  %v11083_v35 = vld [vmem:[#allocation40_spill] sm:$0xff] }
 0x4b5   :  { %2061 = vmatpush.msra.mxu2 %v7013_v19  ;;  %2081 = vmatpush.msra.mxu3 %v7016_v28  ;;  %v11084_v19 = vld [vmem:[#allocation54_spill] sm:$0xff]  ;;  %v11085_v28 = vld [vmem:[#allocation41_spill] sm:$0xff] }
 0x4b6   :  { %2022 = vmatpush.msra.mxu0 %v7019_v34  ;;  %2042 = vmatpush.msra.mxu1 %v7022_v10  ;;  %v11086_v34 = vld [vmem:[#allocation43_spill] sm:$0xff]  ;;  %v11087_v10 = vld [vmem:[#allocation44_spill] sm:$0xff] }
 0x4b7   :  { %2062 = vmatpush.msra.mxu2 %v7025_v61  ;;  %2082 = vmatpush.msra.mxu3 %v7028_v29  ;;  %v11088_v61 = vld [vmem:[#allocation58_spill] sm:$0xff]  ;;  %v11089_v29 = vld [vmem:[#allocation45_spill] sm:$0xff] }
 0x4b8   :  { %2023 = vmatpush.msra.mxu0 %v7031_v30  ;;  %2043 = vmatpush.msra.mxu1 %v7034_v31  ;;  %v11090_v30 = vld [vmem:[#allocation47_spill] sm:$0xff]  ;;  %v11091_v31 = vld [vmem:[#allocation48_spill] sm:$0xff] }
 0x4b9   :  { %2063 = vmatpush.msra.mxu2 %v7037_v32  ;;  %2083 = vmatpush.msra.mxu3 %v7040_v33  ;;  %v11092_v32 = vld [vmem:[#allocation62_spill] sm:$0xff]  ;;  %v11093_v33 = vld [vmem:[#allocation49_spill] sm:$0xff] }
 0x4ba   :  { %2024 = vmatpush.msra.mxu0 %v7043_v38  ;;  %2044 = vmatpush.msra.mxu1 %v7046_v39  ;;  %v11094_v38 = vld [vmem:[#allocation51_spill] sm:$0xff]  ;;  %v11095_v39 = vld [vmem:[#allocation52_spill] sm:$0xff] }
 0x4bb   :  { %2064 = vmatpush.msra.mxu2 %v11056_v6  ;;  %2084 = vmatpush.msra.mxu3 %v11057_v60  ;;  %v11119_v6 = vld [vmem:[#allocation76_spill] sm:$0xff]  ;;  %v11120_v60 = vld [vmem:[#allocation90_spill] sm:$0xff] }
 0x4bc   :  { %2025 = vmatpush.msra.mxu0 %v11058_v9  ;;  %2045 = vmatpush.msra.mxu1 %v11059_v36  ;;  %v11121_v9 = vld [vmem:[#allocation77_spill] sm:$0xff]  ;;  %v11122_v36 = vld [vmem:[#allocation79_spill] sm:$0xff] }
 0x4bd   :  { %2065 = vmatpush.msra.mxu2 %v11060_v0  ;;  %2085 = vmatpush.msra.mxu3 %v11061_v1  ;;  %v11123_v0 = vld [vmem:[#allocation80_spill] sm:$0xff]  ;;  %v11124_v1 = vld [vmem:[#allocation94_spill] sm:$0xff] }
 0x4be   :  { %2026 = vmatpush.msra.mxu0 %v11062_v2  ;;  %2046 = vmatpush.msra.mxu1 %v11063_v3  ;;  %v11125_v2 = vld [vmem:[#allocation81_spill] sm:$0xff]  ;;  %v11126_v3 = vld [vmem:[#allocation83_spill] sm:$0xff] }
 0x4bf   :  { %2066 = vmatpush.msra.mxu2 %v11064_v7  ;;  %2086 = vmatpush.msra.mxu3 %v11065_v37  ;;  %v11127_v7 = vld [vmem:[#allocation84_spill] sm:$0xff]  ;;  %v11128_v37 = vld [vmem:[#allocation98_spill] sm:$0xff] }
 0x4c0   :  { %2027 = vmatpush.msra.mxu0 %v11066_v20  ;;  %2047 = vmatpush.msra.mxu1 %v11067_v8  ;;  %v11129_v20 = vld [vmem:[#allocation85_spill] sm:$0xff]  ;;  %v11130_v8 = vld [vmem:[#allocation87_spill] sm:$0xff] }
 0x4c1   :  { %2067 = vmatpush.msra.mxu2 %v11068_v26  ;;  %2087 = vmatpush.msra.mxu3 %v11069_v27  ;;  %v11131_v26 = vld [vmem:[#allocation88_spill] sm:$0xff]  ;;  %v11132_v27 = vld [vmem:[#allocation102_spill] sm:$0xff] }
 0x4c2   :  { %2028 = vmatpush.msra.mxu0 %v11070_v12  ;;  %2048 = vmatpush.msra.mxu1 %v11071_v16  ;;  %v11133_v12 = vld [vmem:[#allocation89_spill] sm:$0xff]  ;;  %v11134_v16 = vld [vmem:[#allocation91_spill] sm:$0xff] }
 0x4c3   :  { %2068 = vmatpush.msra.mxu2 %v11072_v22  ;;  %2088 = vmatpush.msra.mxu3 %v11073_v25  ;;  %v11135_v22 = vld [vmem:[#allocation92_spill] sm:$0xff]  ;;  %v11136_v25 = vld [vmem:[#allocation103_spill] sm:$0xff] }
 0x4c4   :  { %2029 = vmatpush.msra.mxu0 %v11074_v11  ;;  %2049 = vmatpush.msra.mxu1 %v11075_v14  ;;  %v11137_v11 = vld [vmem:[#allocation93_spill] sm:$0xff]  ;;  %v11138_v14 = vld [vmem:[#allocation95_spill] sm:$0xff] }
 0x4c5   :  { %2069 = vmatpush.msra.mxu2 %v11076_v18  ;;  %2089 = vmatpush.msra.mxu3 %v11077_v48  ;;  %v11139_v18 = vld [vmem:[#allocation96_spill] sm:$0xff] }
 0x4c6   :  { %2030 = vmatpush.msra.mxu0 %v11078_v49  ;;  %2050 = vmatpush.msra.mxu1 %v11079_v24  ;;  %v11140_v48 = vld [vmem:[#allocation104_spill] sm:$0xff]  ;;  %v11141_v49 = vld [vmem:[#allocation97_spill] sm:$0xff]  ;;  %v11142_v24 = vld [vmem:[#allocation99_spill] sm:$0xff] }
 0x4c7   :  { %2070 = vmatpush.msra.mxu2 %v11080_v13  ;;  %2090 = vmatpush.msra.mxu3 %v11081_v15  ;;  %v11143_v13 = vld [vmem:[#allocation100_spill] sm:$0xff]  ;;  %v11144_v15 = vld [vmem:[#allocation105_spill] sm:$0xff] }
 0x4c8   :  { %2095 = vmatpush.msrb.mxu0 %v11082_v17  ;;  %2115 = vmatpush.msrb.mxu1 %v11083_v35  ;;  %v11145_v17 = vld [vmem:[#allocation101_spill] sm:$0xff] }
 0x4c9   :  { %2135 = vmatpush.msrb.mxu2 %v11084_v19  ;;  %2155 = vmatpush.msrb.mxu3 %v11085_v28 }
 0x4ca   :  { %2096 = vmatpush.msrb.mxu0 %v11086_v34  ;;  %2116 = vmatpush.msrb.mxu1 %v11087_v10 }
 0x4cb   :  { %2136 = vmatpush.msrb.mxu2 %v11088_v61  ;;  %2156 = vmatpush.msrb.mxu3 %v11089_v29 }
 0x4cc   :  { %2097 = vmatpush.msrb.mxu0 %v11090_v30  ;;  %2117 = vmatpush.msrb.mxu1 %v11091_v31  ;;  %v11146_v30 = vld [vmem:[#allocation106_spill] sm:$0xff] }
 0x4cd   :  { %2137 = vmatpush.msrb.mxu2 %v11092_v32  ;;  %2157 = vmatpush.msrb.mxu3 %v11093_v33  ;;  %v11147_v32 = vld [vmem:[#allocation107_spill] sm:$0xff] }
 0x4ce   :  { %2098 = vmatpush.msrb.mxu0 %v11094_v38  ;;  %2118 = vmatpush.msrb.mxu1 %v11095_v39 }
 0x4cf   :  { %2138 = vmatpush.msrb.mxu2 %v11096_v41  ;;  %2158 = vmatpush.msrb.mxu3 %v11097_v44 }
 0x4d0   :  { %2099 = vmatpush.msrb.mxu0 %v11098_v59  ;;  %2119 = vmatpush.msrb.mxu1 %v11099_v5  ;;  %v11148_v5 = vld [vmem:[#allocation108_spill] sm:$0xff] }
 0x4d1   :  { %2139 = vmatpush.msrb.mxu2 %v11100_v43  ;;  %2159 = vmatpush.msrb.mxu3 %v11101_v63 }
 0x4d2   :  { %2100 = vmatpush.msrb.mxu0 %v11102_v62  ;;  %2120 = vmatpush.msrb.mxu1 %v11103_v40 }
 0x4d3   :  { %2140 = vmatpush.msrb.mxu2 %v11104_v56  ;;  %2160 = vmatpush.msrb.mxu3 %v11105_v51 }
 0x4d4   :  { %2101 = vmatpush.msrb.mxu0 %v11106_v55  ;;  %2121 = vmatpush.msrb.mxu1 %v11107_v53 }
 0x4d5   :  { %2141 = vmatpush.msrb.mxu2 %v11108_v50  ;;  %2161 = vmatpush.msrb.mxu3 %v11109_v46 }
 0x4d6   :  { %2102 = vmatpush.msrb.mxu0 %v11110_v47  ;;  %2122 = vmatpush.msrb.mxu1 %v11111_v57  ;;  %v11149_v57 = vld [vmem:[#allocation109_spill] sm:$0xff] }
 0x4d7   :  { %2142 = vmatpush.msrb.mxu2 %v11112_v42  ;;  %2162 = vmatpush.msrb.mxu3 %v11113_v52 }
 0x4d8   :  { %2103 = vmatpush.msrb.mxu0 %v11114_v58  ;;  %2123 = vmatpush.msrb.mxu1 %v11115_v21 }
 0x4d9   :  { %2143 = vmatpush.msrb.mxu2 %v11116_v23  ;;  %2163 = vmatpush.msrb.mxu3 %v11117_v54 }
 0x4da   :  { %2104 = vmatpush.msrb.mxu0 %v11118_v4  ;;  %2124 = vmatpush.msrb.mxu1 %v11119_v6 }
 0x4db   :  { %2144 = vmatpush.msrb.mxu2 %v11120_v60  ;;  %2164 = vmatpush.msrb.mxu3 %v11121_v9 }
 0x4dc   :  { %2105 = vmatpush.msrb.mxu0 %v11122_v36  ;;  %2125 = vmatpush.msrb.mxu1 %v11123_v0 }
 0x4dd   :  { %2145 = vmatpush.msrb.mxu2 %v11124_v1  ;;  %2165 = vmatpush.msrb.mxu3 %v11125_v2 }
 0x4de   :  { %2106 = vmatpush.msrb.mxu0 %v11126_v3  ;;  %2126 = vmatpush.msrb.mxu1 %v11127_v7 }
 0x4df   :  { %2146 = vmatpush.msrb.mxu2 %v11128_v37  ;;  %2166 = vmatpush.msrb.mxu3 %v11129_v20 }
 0x4e0   :  { %2107 = vmatpush.msrb.mxu0 %v11130_v8  ;;  %2127 = vmatpush.msrb.mxu1 %v11131_v26 }
 0x4e1   :  { %2147 = vmatpush.msrb.mxu2 %v11132_v27  ;;  %2167 = vmatpush.msrb.mxu3 %v11133_v12 }
 0x4e2   :  { %2108 = vmatpush.msrb.mxu0 %v11134_v16  ;;  %2128 = vmatpush.msrb.mxu1 %v11135_v22 }
 0x4e3   :  { %2148 = vmatpush.msrb.mxu2 %v11136_v25  ;;  %2168 = vmatpush.msrb.mxu3 %v11137_v11 }
 0x4e4   :  { %2109 = vmatpush.msrb.mxu0 %v11138_v14  ;;  %2129 = vmatpush.msrb.mxu1 %v11139_v18 }
 0x4e5   :  { %2149 = vmatpush.msrb.mxu2 %v11140_v48  ;;  %2169 = vmatpush.msrb.mxu3 %v11141_v49 }
 0x4e6   :  { %2110 = vmatpush.msrb.mxu0 %v11142_v24  ;;  %2130 = vmatpush.msrb.mxu1 %v11143_v13 }
 0x4e7   :  { %2150 = vmatpush.msrb.mxu2 %v11144_v15  ;;  %2170 = vmatpush.msrb.mxu3 %v11145_v17 }
 0x521   :  { %v1803_v35 = vpop.f32.mrf.mxu0  ;;  %v1823_v19 = vpop.f32.mrf.mxu1 }
 0x528   :  { %v1863_v28 = vpop.f32.mrf.mxu3  ;;  %v1843_v38 = vpop.f32.mrf.mxu2 }
 0x529   :  { %v1883_v34 = vpop.f32.mrf.mxu0  ;;  %v1903_v10 = vpop.f32.mrf.mxu1 }
 0x52a   :  { %v1884_v61 = vadd.f32 %v1883_v34, %v1803_v35  ;;  %v1904_v29 = vadd.f32 %v1903_v10, %v1823_v19  ;;  %v7471_v34 = vld [vmem:[#allocation10 + $0x1e8] sm:$0xff]  ;;  %v7473_v10 = vld [vmem:[#allocation10 + $0x1f0] sm:$0xff] }
 0x52c   :  { %v1946_v31 = vadd.f32 %v1884_v61, %v11146_v30  ;;  %v1947_v33 = vadd.f32 %v1904_v29, %v11147_v32  ;;  %v375_v61 = vld [vmem:[#allocation10 + $0x1f8] sm:$0xff]  ;;  %v7477_v29 = vld [vmem:[#allocation10 + $0x1c0] sm:$0xff] }
 0x52e   :  { %v4336_v39 = vmul.f32 -1.442695, %v1946_v31  ;;  %v4337_v41 = vmul.f32 -1.442695, %v1947_v33  ;;  %v7479_v31 = vld [vmem:[#allocation10 + $0x1c8] sm:$0xff]  ;;  %v7482_v33 = vld [vmem:[#allocation10 + $0x1d0] sm:$0xff] }
 0x530   :  { %4550 = vpow2.f32 %v4336_v39  ;;  %v1943_v44 = vpop.f32.mrf.mxu3  ;;  %v1923_v55 = vpop.f32.mrf.mxu2  ;;  %v7484_v39 = vld [vmem:[#allocation10 + $0x1a0] sm:$0xff] }
 0x531   :  { %4552 = vpow2.f32 %v4337_v41  ;;  %v1944_v59 = vadd.f32 %v1943_v44, %v1863_v28  ;;  %v1924_v53 = vadd.f32 %v1923_v55, %v1843_v38  ;;  %v7469_v28 = vld [vmem:[#allocation10 + $0x1e0] sm:$0xff]  ;;  %v371_v38 = vld [vmem:[#allocation10 + $0x1d8] sm:$0xff]  ;;  %v7488_v41 = vld [vmem:[#allocation10 + $0x1a8] sm:$0xff] }
 0x532   :  { %v7490_v44 = vld [vmem:[#allocation10 + $0x1b0] sm:$0xff] }
 0x533   :  { %v1949_v43 = vadd.f32 %v1944_v59, %v11148_v5  ;;  %v1948_v42 = vadd.f32 %v1924_v53, %v11149_v57  ;;  %v7492_v59 = vld [vmem:[#allocation10 + $0x1b8] sm:$0xff]  ;;  %v7515_v55 = vld [vmem:[#allocation10 + $0x170] sm:$0xff] }
 0x534   :  { %11150 = vst [vmem:[#allocation23_spill] sm:$0xff] %v7492_v59  ;;  %v7519_v53 = vld [vmem:[#allocation10 + $0x178] sm:$0xff] }
 0x535   :  { %v4338_v63 = vmul.f32 -1.442695, %v1949_v43  ;;  %v7499_v43 = vld [vmem:[#allocation10 + $0x180] sm:$0xff]  ;;  %11152 = vst [vmem:[#allocation17_spill] sm:$0xff] %v7519_v53 }
 0x536   :  { %v4551_v62 = vpop.eup %4550 }
 0x537   :  { %v4553_v40 = vpop.eup %4552  ;;  %v1953_v56 = vadd.f32 1.0, %v4551_v62  ;;  %4554 = vpow2.f32 %v4338_v63  ;;  %v7501_v63 = vld [vmem:[#allocation10 + $0x188] sm:$0xff]  ;;  %v7503_v62 = vld [vmem:[#allocation10 + $0x190] sm:$0xff] }
 0x538   :  { %v1972_v51 = vadd.f32 1.0, %v4553_v40  ;;  %v7507_v40 = vld [vmem:[#allocation10 + $0x198] sm:$0xff] }
 0x539   :  { %4556 = vrcp.f32 %v1953_v56  ;;  %v1965_v4 = vand.u32 2147483648, %v1953_v56  ;;  %v1963_v9 = vand.u32 2147483647, %v1953_v56  ;;  %vm1959_vm10 = vweird.f32 %v1953_v56  ;;  %11151 = vst [vmem:[#allocation16_spill] sm:$0xff] %v7507_v40 }
 0x53a   :  { %4558 = vrcp.f32 %v1972_v51  ;;  %v1984_v6 = vand.u32 2147483648, %v1972_v51  ;;  %v1982_v0 = vand.u32 2147483647, %v1972_v51  ;;  %vm1978_vm11 = vweird.f32 %v1972_v51 }
 0x53b   :  { %v1966_v3 = vor.u32 1.1754944e-38, %v1965_v4  ;;  %vm1964_vm14 = vcmp.eq.f32.partialorder %v1963_v9, 8.507059e+37  ;;  %v7549_v4 = vld [vmem:[#allocation10 + $0x108] sm:$0xff]  ;;  %v7559_v9 = vld [vmem:[#allocation10 + $0xe0] sm:$0xff] }
 0x53c   :  { %v1985_v20 = vor.u32 1.1754944e-38, %v1984_v6  ;;  %vm1983_vm15 = vcmp.eq.f32.partialorder %v1982_v0, 8.507059e+37  ;;  %v7551_v6 = vld [vmem:[#allocation10 + $0x110] sm:$0xff] }
 0x53d   :  { %v4555_v50 = vpop.eup %4554  ;;  %v7563_v0 = vld [vmem:[#allocation10 + $0xf0] sm:$0xff] }
 0x53e   :  { %v1992_v46 = vadd.f32 1.0, %v4555_v50  ;;  %v7523_v50 = vld [vmem:[#allocation10 + $0x140] sm:$0xff] }
 0x53f   :  { %v4557_v47 = vpop.eup %4556 }
 0x540   :  { %v4559_v52 = vpop.eup %4558  ;;  %v1955_v58 = vmul.f32 %v4557_v47, %v1953_v56  ;;  %4560 = vrcp.f32 %v1992_v46  ;;  %vm1960_vm8 = vweird.f32 %v4557_v47  ;;  %v2004_v49 = vand.u32 2147483648, %v1992_v46  ;;  %v7511_v56 = vld [vmem:[#allocation10 + $0x160] sm:$0xff] }
 0x541   :  { %v1974_v21 = vmul.f32 %v4559_v52, %v1972_v51  ;;  %4562 = vtanh.f32 %v1948_v42  ;;  %vm1979_vm9 = vweird.f32 %v4559_v52  ;;  %vm1961_vm12 = vmor %vm1959_vm10, %vm1960_vm8  ;;  %vm1998_vm1 = vweird.f32 %v1992_v46  ;;  %v7513_v51 = vld [vmem:[#allocation10 + $0x168] sm:$0xff]  ;;  %v7531_v42 = vld [vmem:[#allocation10 + $0x158] sm:$0xff] }
 0x542   :  { %v1956_v23 = vsub.f32 1.0, %v1955_v58  ;;  %vm1980_vm13 = vmor %vm1978_vm11, %vm1979_vm9  ;;  %v2002_v24 = vand.u32 2147483647, %v1992_v46  ;;  %v2005_v15 = vor.u32 1.1754944e-38, %v2004_v49  ;;  %11153 = vst [vmem:[#allocation18_spill] sm:$0xff] %v7531_v42  ;;  %v7537_v58 = vld [vmem:[#allocation10 + $0x128] sm:$0xff] }
 0x543   :  { %v1975_v54 = vsub.f32 1.0, %v1974_v21  ;;  %v7539_v21 = vld [vmem:[#allocation10 + $0x130] sm:$0xff]  ;;  %v7615_v49 = vld [vmem:[#allocation10 + $0x78] sm:$0xff] }
 0x544   :  { %v1957_v60 = vmul.f32 %v4557_v47, %v1956_v23  ;;  %vm2003_vm3 = vcmp.eq.f32.partialorder %v2002_v24, 8.507059e+37  ;;  %v7543_v23 = vld [vmem:[#allocation10 + $0x138] sm:$0xff]  ;;  %11163 = vst [vmem:[#allocation26_spill] sm:$0xff] %v7615_v49  ;;  %v7619_v24 = vld [vmem:[#allocation10 + $0x40] sm:$0xff] }
 0x545   :  { %v1976_v36 = vmul.f32 %v4559_v52, %v1975_v54  ;;  %11154 = vst [vmem:[#allocation27_spill] sm:$0xff] %v7543_v23  ;;  %v7547_v54 = vld [vmem:[#allocation10 + $0x100] sm:$0xff] }
 0x546   :  { %v4561_v1 = vpop.eup %4560  ;;  %v1958_v2 = vadd.f32 %v4557_v47, %v1957_v60  ;;  %v7555_v60 = vld [vmem:[#allocation10 + $0x118] sm:$0xff]  ;;  %11164 = vst [vmem:[#allocation28_spill] sm:$0xff] %v7619_v24 }
 0x547   :  { %v1977_v7 = vadd.f32 %v4559_v52, %v1976_v36  ;;  %v1994_v37 = vmul.f32 %v4561_v1, %v1992_v46  ;;  %v4563_v26 = vpop.eup %4562  ;;  %vm1999_vm0 = vweird.f32 %v4561_v1  ;;  %v7525_v46 = vld [vmem:[#allocation10 + $0x148] sm:$0xff]  ;;  %11155 = vst [vmem:[#allocation19_spill] sm:$0xff] %v7555_v60 }
 0x548   :  { %v1962_v8 = vsel %vm1961_vm12, %v4557_v47, %v1958_v2  ;;  %vm2000_vm2 = vmor %vm1998_vm1, %vm1999_vm0  ;;  %v7527_v47 = vld [vmem:[#allocation10 + $0x150] sm:$0xff]  ;;  %v7561_v36 = vld [vmem:[#allocation10 + $0xe8] sm:$0xff] }
 0x549   :  { %v1967_v27 = vsel %vm1964_vm14, %v1966_v3, %v1962_v8  ;;  %v1981_v12 = vsel %vm1980_vm13, %v4559_v52, %v1977_v7  ;;  %v1995_v16 = vsub.f32 1.0, %v1994_v37  ;;  %v7535_v52 = vld [vmem:[#allocation10 + $0x120] sm:$0xff]  ;;  %v7573_v3 = vld [vmem:[#allocation10 + $0xc8] sm:$0xff]  ;;  %v7575_v7 = vld [vmem:[#allocation10 + $0xd0] sm:$0xff] }
 0x54a   :  { %v1986_v22 = vsel %vm1983_vm15, %v1985_v20, %v1981_v12  ;;  %v2009_v25 = vmul.f32 %v4563_v26, %v1967_v27  ;;  %v7571_v2 = vld [vmem:[#allocation10 + $0xc0] sm:$0xff]  ;;  %v7579_v37 = vld [vmem:[#allocation10 + $0xd8] sm:$0xff]  ;;  %v7585_v8 = vld [vmem:[#allocation10 + $0xa8] sm:$0xff] }
 0x54b   :  { %v2008_v11 = vmul.f32 %v1986_v22, %v7324_v45  ;;  %v1996_v14 = vmul.f32 %v4561_v1, %v1995_v16  ;;  %v4339_v45 = vld [vmem:[%s9688_s2 + $0x38] sm:$0xff]  ;;  %11157 = vst [vmem:[#allocation21_spill] sm:$0xff] %v7579_v37  ;;  %v7583_v20 = vld [vmem:[#allocation10 + $0xa0] sm:$0xff]  ;;  %v7587_v26 = vld [vmem:[#allocation10 + $0xb0] sm:$0xff]  ;;  %s7739_s2 = sld [smem:[#allocation4]] }
 0x54c   :  { %v7591_v27 = vld [vmem:[#allocation10 + $0xb8] sm:$0xff]  ;;  %v7595_v12 = vld [vmem:[#allocation10 + $0x80] sm:$0xff]  ;;  %v7597_v16 = vld [vmem:[#allocation10 + $0x88] sm:$0xff] }
 0x54d   :  { %v7463_v18 = vadd.f32 %v2009_v25, %v2008_v11  ;;  %v1997_v48 = vadd.f32 %v4561_v1, %v1996_v14  ;;  %11158 = vst [vmem:[#allocation31_spill] sm:$0xff] %v7591_v27  ;;  %v7599_v22 = vld [vmem:[#allocation10 + $0x90] sm:$0xff]  ;;  %v7603_v25 = vld [vmem:[#allocation10 + $0x98] sm:$0xff]  ;;  %v7607_v11 = vld [vmem:[#allocation10 + $0x60] sm:$0xff] }
 0x54e   :  { %11159 = vst [vmem:[#allocation22_spill] sm:$0xff] %v7603_v25  ;;  %v7609_v14 = vld [vmem:[#allocation10 + $0x68] sm:$0xff] }
 0x54f   :  { %4564 = vtanh.f32 %v7463_v18  ;;  %v2001_v13 = vsel %vm2000_vm2, %v4561_v1, %v1997_v48  ;;  %v7567_v1 = vld [vmem:[#allocation10 + $0xf8] sm:$0xff]  ;;  %11160 = vst [vmem:[#allocation24_spill] sm:$0xff] %v7607_v11  ;;  %v7611_v48 = vld [vmem:[#allocation10 + $0x70] sm:$0xff] }
 0x550   :  { %v2006_v35 = vsel %vm2003_vm3, %v2005_v15, %v2001_v13  ;;  %11156 = vst [vmem:[#allocation20_spill] sm:$0xff] %v7567_v1  ;;  %v7621_v13 = vld [vmem:[#allocation10 + $0x48] sm:$0xff]  ;;  %v7623_v15 = vld [vmem:[#allocation10 + $0x50] sm:$0xff] }
 0x551   :  { %11161 = vst [vmem:[#allocation25_spill] sm:$0xff] %v7609_v14 }
 0x552   :  { %11162 = vst [vmem:[#allocation35_spill] sm:$0xff] %v7611_v48 }
 0x553   :  { %11165 = vst [vmem:[#allocation29_spill] sm:$0xff] %v7621_v13 }
 0x554   :  { %11166 = vst [vmem:[#allocation42_spill] sm:$0xff] %v7623_v15 }
 0x555   :  { %v4565_v17 = vpop.eup %4564 }
 0x556   :  { %v2012_v19 = vmul.f32 %v4565_v17, %v2006_v35  ;;  %v7627_v17 = vld [vmem:[#allocation10 + $0x58] sm:$0xff]  ;;  %v7631_v35 = vld [vmem:[#allocation10 + $0x20] sm:$0xff] }
 0x557   :  { %11167 = vst [vmem:[#allocation30_spill] sm:$0xff] %v7627_v17 }
 0x558   :  { %2031 = vmatmul.f32.vlgmr.msra.gmra.mxu0 %v2012_v19  ;;  %2051 = vmatmul.f32.vlgmr.msra.gmra.mxu1 %v2012_v19  ;;  %11168 = vst [vmem:[#allocation32_spill] sm:$0xff] %v7631_v35 }
 0x559   :  { %2071 = vmatmul.f32.vlgmr.msra.gmra.mxu2 %v2012_v19  ;;  %2091 = vmatmul.f32.vlgmr.msra.gmra.mxu3 %v2012_v19  ;;  %v7633_v19 = vld [vmem:[#allocation10 + $0x28] sm:$0xff] }
 0x55a   :  { %2287 = vmatpush.msra.mxu0 %v7469_v28  ;;  %2307 = vmatpush.msra.mxu1 %v7471_v34  ;;  %11169 = vst [vmem:[#allocation33_spill] sm:$0xff] %v7633_v19 }
 0x55b   :  { %2327 = vmatpush.msra.mxu2 %v7473_v10  ;;  %2347 = vmatpush.msra.mxu3 %v375_v61  ;;  %v7639_v61 = vld [vmem:[#allocation10 + $0x38] sm:$0xff] }
 0x55c   :  { %2288 = vmatpush.msra.mxu0 %v7477_v29  ;;  %2308 = vmatpush.msra.mxu1 %v7479_v31  ;;  %11171 = vst [vmem:[#allocation34_spill] sm:$0xff] %v7639_v61 }
 0x55d   :  { %2328 = vmatpush.msra.mxu2 %v7482_v33  ;;  %2348 = vmatpush.msra.mxu3 %v371_v38  ;;  %v7643_v38 = vld [vmem:[#allocation10] sm:$0xff] }
 0x55e   :  { %2289 = vmatpush.msra.mxu0 %v7484_v39  ;;  %2309 = vmatpush.msra.mxu1 %v7488_v41  ;;  %11172 = vst [vmem:[#allocation36_spill] sm:$0xff] %v7643_v38 }
 0x55f   :  { %2329 = vmatpush.msra.mxu2 %v7490_v44  ;;  %2349 = vmatpush.msra.mxu3 %v7492_v59  ;;  %v7673_v59 = vld [vmem:[#allocation9 + $0x1d8] sm:$0xff] }
 0x560   :  { %2111 = vmatmul.f32.vlgmr.msrb.gmra.mxu0 %v4339_v45  ;;  %2131 = vmatmul.f32.vlgmr.msrb.gmra.mxu1 %v4339_v45  ;;  %11183 = vst [vmem:[#allocation45_spill] sm:$0xff] %v7673_v59 }
 0x561   :  { %2151 = vmatmul.f32.vlgmr.msrb.gmra.mxu2 %v4339_v45  ;;  %2171 = vmatmul.f32.vlgmr.msrb.gmra.mxu3 %v4339_v45  ;;  %v7635_v45 = vld [vmem:[#allocation10 + $0x30] sm:$0xff] }
 0x562   :  { %2290 = vmatpush.msra.mxu0 %v7499_v43  ;;  %2310 = vmatpush.msra.mxu1 %v7501_v63  ;;  %11170 = vst [vmem:[#allocation46_spill] sm:$0xff] %v7635_v45 }
 0x563   :  { %2330 = vmatpush.msra.mxu2 %v7503_v62  ;;  %2350 = vmatpush.msra.mxu3 %v7507_v40  ;;  %v7669_v40 = vld [vmem:[#allocation9 + $0x1d0] sm:$0xff] }
 0x564   :  { %2291 = vmatpush.msra.mxu0 %v7511_v56  ;;  %2311 = vmatpush.msra.mxu1 %v7513_v51  ;;  %11182 = vst [vmem:[#allocation58_spill] sm:$0xff] %v7669_v40 }
 0x565   :  { %2331 = vmatpush.msra.mxu2 %v7515_v55  ;;  %2351 = vmatpush.msra.mxu3 %v7519_v53  ;;  %v7667_v53 = vld [vmem:[#allocation9 + $0x1c8] sm:$0xff] }
 0x566   :  { %2292 = vmatpush.msra.mxu0 %v7523_v50  ;;  %2312 = vmatpush.msra.mxu1 %v7525_v46  ;;  %11181 = vst [vmem:[#allocation44_spill] sm:$0xff] %v7667_v53 }
 0x567   :  { %2332 = vmatpush.msra.mxu2 %v7527_v47  ;;  %2352 = vmatpush.msra.mxu3 %v7531_v42  ;;  %v7665_v42 = vld [vmem:[#allocation9 + $0x1c0] sm:$0xff] }
 0x568   :  { %2293 = vmatpush.msra.mxu0 %v7535_v52  ;;  %2313 = vmatpush.msra.mxu1 %v7537_v58  ;;  %11180 = vst [vmem:[#allocation43_spill] sm:$0xff] %v7665_v42 }
 0x569   :  { %2333 = vmatpush.msra.mxu2 %v7539_v21  ;;  %2353 = vmatpush.msra.mxu3 %v7543_v23  ;;  %v7661_v23 = vld [vmem:[#allocation9 + $0x1f8] sm:$0xff] }
 0x56a   :  { %2294 = vmatpush.msra.mxu0 %v7547_v54  ;;  %2314 = vmatpush.msra.mxu1 %v7549_v4  ;;  %11179 = vst [vmem:[#allocation41_spill] sm:$0xff] %v7661_v23 }
 0x56b   :  { %2334 = vmatpush.msra.mxu2 %v7551_v6  ;;  %2354 = vmatpush.msra.mxu3 %v7555_v60 }
 0x56c   :  { %2295 = vmatpush.msra.mxu0 %v7559_v9  ;;  %2315 = vmatpush.msra.mxu1 %v7561_v36 }
 0x56d   :  { %2335 = vmatpush.msra.mxu2 %v7563_v0  ;;  %2355 = vmatpush.msra.mxu3 %v7567_v1 }
 0x56e   :  { %2296 = vmatpush.msra.mxu0 %v7571_v2  ;;  %2316 = vmatpush.msra.mxu1 %v7573_v3 }
 0x56f   :  { %2336 = vmatpush.msra.mxu2 %v7575_v7  ;;  %2356 = vmatpush.msra.mxu3 %v7579_v37  ;;  %v7655_v37 = vld [vmem:[#allocation9 + $0x1e8] sm:$0xff] }
 0x570   :  { %2297 = vmatpush.msra.mxu0 %v7583_v20  ;;  %2317 = vmatpush.msra.mxu1 %v7585_v8  ;;  %11177 = vst [vmem:[#allocation40_spill] sm:$0xff] %v7655_v37 }
 0x571   :  { %2337 = vmatpush.msra.mxu2 %v7587_v26  ;;  %2357 = vmatpush.msra.mxu3 %v7591_v27  ;;  %v7653_v27 = vld [vmem:[#allocation9 + $0x1e0] sm:$0xff] }
 0x572   :  { %2298 = vmatpush.msra.mxu0 %v7595_v12  ;;  %2318 = vmatpush.msra.mxu1 %v7597_v16  ;;  %11176 = vst [vmem:[#allocation39_spill] sm:$0xff] %v7653_v27 }
 0x573   :  { %2338 = vmatpush.msra.mxu2 %v7599_v22  ;;  %2358 = vmatpush.msra.mxu3 %v7603_v25  ;;  %v7651_v25 = vld [vmem:[#allocation10 + $0x18] sm:$0xff] }
 0x574   :  { %2299 = vmatpush.msra.mxu0 %v7607_v11  ;;  %2319 = vmatpush.msra.mxu1 %v7609_v14  ;;  %11175 = vst [vmem:[#allocation38_spill] sm:$0xff] %v7651_v25 }
 0x575   :  { %2339 = vmatpush.msra.mxu2 %v7611_v48  ;;  %2359 = vmatpush.msra.mxu3 %v7615_v49  ;;  %v7645_v49 = vld [vmem:[#allocation10 + $0x8] sm:$0xff]  ;;  %v2268_v48 = vstv %s7896_s3  ;;  %s4394_s3 = sld [smem:[#allocation3 + $0x3]] }
 0x576   :  { %2300 = vmatpush.msra.mxu0 %v7619_v24  ;;  %2320 = vmatpush.msra.mxu1 %v7621_v13  ;;  %11173 = vst [vmem:[#allocation37_spill] sm:$0xff] %v7645_v49 }
 0x577   :  { %2340 = vmatpush.msra.mxu2 %v7623_v15  ;;  %2360 = vmatpush.msra.mxu3 %v7627_v17  ;;  %v7647_v17 = vld [vmem:[#allocation10 + $0x10] sm:$0xff] }
 0x578   :  { %2301 = vmatpush.msra.mxu0 %v7631_v35  ;;  %2321 = vmatpush.msra.mxu1 %v7633_v19  ;;  %11174 = vst [vmem:[#allocation50_spill] sm:$0xff] %v7647_v17  ;;  %v7717_v19 = vld [vmem:[#allocation9 + $0x150] sm:$0xff] }
 0x579   :  { %2341 = vmatpush.msra.mxu2 %v7635_v45  ;;  %2361 = vmatpush.msra.mxu3 %v7639_v61  ;;  %v7659_v61 = vld [vmem:[#allocation9 + $0x1f0] sm:$0xff]  ;;  %11198 = vst [vmem:[#allocation74_spill] sm:$0xff] %v7717_v19 }
 0x57a   :  { %2302 = vmatpush.msra.mxu0 %v7643_v38  ;;  %2322 = vmatpush.msra.mxu1 %v7645_v49  ;;  %11178 = vst [vmem:[#allocation54_spill] sm:$0xff] %v7659_v61 }
 0x57b   :  { %2342 = vmatpush.msra.mxu2 %v7647_v17  ;;  %2362 = vmatpush.msra.mxu3 %v7651_v25  ;;  %v7677_v25 = vld [vmem:[#allocation9 + $0x1a0] sm:$0xff]  ;;  %v7685_v17 = vld [vmem:[#allocation9 + $0x1b8] sm:$0xff]  ;;  %p3162_p3 = scmp.ne.s32.totalorder %s4394_s3, 0  ;;  %s4416_s3 = sld [smem:[#allocation4 + $0x281]] }
 0x57c   :  { %2367 = vmatpush.msrb.mxu0 %v7653_v27  ;;  %2387 = vmatpush.msrb.mxu1 %v7655_v37  ;;  %11184 = vst [vmem:[#allocation47_spill] sm:$0xff] %v7677_v25  ;;  %v7679_v27 = vld [vmem:[#allocation9 + $0x1a8] sm:$0xff]  ;;  %v7681_v37 = vld [vmem:[#allocation9 + $0x1b0] sm:$0xff] }
 0x57d   :  { %2407 = vmatpush.msrb.mxu2 %v7659_v61  ;;  %2427 = vmatpush.msrb.mxu3 %v7661_v23  ;;  %11185 = vst [vmem:[#allocation48_spill] sm:$0xff] %v7679_v27  ;;  %v7689_v23 = vld [vmem:[#allocation9 + $0x180] sm:$0xff]  ;;  %v7697_v61 = vld [vmem:[#allocation9 + $0x198] sm:$0xff] }
 0x57e   :  { %2368 = vmatpush.msrb.mxu0 %v7665_v42  ;;  %2388 = vmatpush.msrb.mxu1 %v7667_v53  ;;  %11186 = vst [vmem:[#allocation62_spill] sm:$0xff] %v7681_v37  ;;  %v7691_v42 = vld [vmem:[#allocation9 + $0x188] sm:$0xff]  ;;  %v7693_v53 = vld [vmem:[#allocation9 + $0x190] sm:$0xff] }
 0x57f   :  { %2408 = vmatpush.msrb.mxu2 %v7669_v40  ;;  %2428 = vmatpush.msrb.mxu3 %v7673_v59  ;;  %11187 = vst [vmem:[#allocation49_spill] sm:$0xff] %v7685_v17  ;;  %v7701_v59 = vld [vmem:[#allocation9 + $0x160] sm:$0xff] }
 0x580   :  { %2369 = vmatpush.msrb.mxu0 %v7677_v25  ;;  %2389 = vmatpush.msrb.mxu1 %v7679_v27  ;;  %11188 = vst [vmem:[#allocation51_spill] sm:$0xff] %v7689_v23  ;;  %v7703_v27 = vld [vmem:[#allocation9 + $0x168] sm:$0xff]  ;;  %v7705_v25 = vld [vmem:[#allocation9 + $0x170] sm:$0xff] }
 0x581   :  { %11189 = vst [vmem:[#allocation52_spill] sm:$0xff] %v7691_v42  ;;  %2409 = vmatpush.msrb.mxu2 %v7681_v37  ;;  %2429 = vmatpush.msrb.mxu3 %v7685_v17  ;;  %v7709_v17 = vld [vmem:[#allocation9 + $0x178] sm:$0xff] }
 0x582   :  { %11190 = vst [vmem:[#allocation66_spill] sm:$0xff] %v7693_v53  ;;  %2370 = vmatpush.msrb.mxu0 %v7689_v23  ;;  %2390 = vmatpush.msrb.mxu1 %v7691_v42  ;;  %v7713_v42 = vld [vmem:[#allocation9 + $0x140] sm:$0xff]  ;;  %v7715_v23 = vld [vmem:[#allocation9 + $0x148] sm:$0xff] }
 0x583   :  { %11191 = vst [vmem:[#allocation53_spill] sm:$0xff] %v7697_v61  ;;  %2410 = vmatpush.msrb.mxu2 %v7693_v53  ;;  %2430 = vmatpush.msrb.mxu3 %v7697_v61  ;;  %v7723_v61 = vld [vmem:[#allocation9 + $0x158] sm:$0xff] }
 0x584   :  { %11192 = vst [vmem:[#allocation55_spill] sm:$0xff] %v7701_v59  ;;  %2371 = vmatpush.msrb.mxu0 %v7701_v59  ;;  %2391 = vmatpush.msrb.mxu1 %v7703_v27 }
 0x585   :  { %11193 = vst [vmem:[#allocation56_spill] sm:$0xff] %v7703_v27  ;;  %2411 = vmatpush.msrb.mxu2 %v7705_v25  ;;  %2431 = vmatpush.msrb.mxu3 %v7709_v17  ;;  %v7733_v27 = vld [vmem:[#allocation9 + $0x130] sm:$0xff] }
 0x586   :  { %11194 = vst [vmem:[#allocation70_spill] sm:$0xff] %v7705_v25  ;;  %2372 = vmatpush.msrb.mxu0 %v7713_v42  ;;  %2392 = vmatpush.msrb.mxu1 %v7715_v23 }
 0x587   :  { %11195 = vst [vmem:[#allocation57_spill] sm:$0xff] %v7709_v17  ;;  %2412 = vmatpush.msrb.mxu2 %v7717_v19  ;;  %2432 = vmatpush.msrb.mxu3 %v7723_v61  ;;  %v7737_v17 = vld [vmem:[#allocation9 + $0x138] sm:$0xff] }
 0x588   :  { %11196 = vst [vmem:[#allocation59_spill] sm:$0xff] %v7713_v42  ;;  %v7751_v19 = vld [vmem:[#allocation9 + $0x118] sm:$0xff]  ;;  %v7753_v42 = vld [vmem:[#allocation9 + $0xe0] sm:$0xff] }
 0x589   :  { %11197 = vst [vmem:[#allocation60_spill] sm:$0xff] %v7715_v23  ;;  %2413 = vmatpush.msrb.mxu2 %v7733_v27  ;;  %2433 = vmatpush.msrb.mxu3 %v7737_v17  ;;  %v7761_v23 = vld [vmem:[#allocation9 + $0xf8] sm:$0xff] }
 0x58a   :  { %11199 = vst [vmem:[#allocation61_spill] sm:$0xff] %v7723_v61  ;;  %v7749_v61 = vld [vmem:[#allocation9 + $0x110] sm:$0xff] }
 0x58b   :  { %11202 = vst [vmem:[#allocation78_spill] sm:$0xff] %v7733_v27  ;;  %2414 = vmatpush.msrb.mxu2 %v7749_v61  ;;  %2434 = vmatpush.msrb.mxu3 %v7751_v19  ;;  %v7765_v27 = vld [vmem:[#allocation9 + $0xc0] sm:$0xff] }
 0x58c   :  { %11203 = vst [vmem:[#allocation65_spill] sm:$0xff] %v7737_v17 }
 0x58d   :  { %11206 = vst [vmem:[#allocation82_spill] sm:$0xff] %v7749_v61  ;;  %2435 = vmatpush.msrb.mxu3 %v7761_v23  ;;  %v7785_v61 = vld [vmem:[#allocation9 + $0xa8] sm:$0xff] }
 0x58e   :  { %11207 = vst [vmem:[#allocation69_spill] sm:$0xff] %v7751_v19  ;;  %v7783_v19 = vld [vmem:[#allocation9 + $0xa0] sm:$0xff] }
 0x58f   :  { %11208 = vst [vmem:[#allocation71_spill] sm:$0xff] %v7753_v42 }
 0x590   :  { %11211 = vst [vmem:[#allocation73_spill] sm:$0xff] %v7761_v23  ;;  %v7797_v23 = vld [vmem:[#allocation9 + $0x80] sm:$0xff] }
 0x591   :  { %11212 = vst [vmem:[#allocation75_spill] sm:$0xff] %v7765_v27 }
 0x592   :  { %11218 = vst [vmem:[#allocation80_spill] sm:$0xff] %v7783_v19 }
 0x593   :  { %11219 = vst [vmem:[#allocation94_spill] sm:$0xff] %v7785_v61 }
 0x594   :  { %11222 = vst [vmem:[#allocation84_spill] sm:$0xff] %v7797_v23 }
 0x5d5   :  { %v2032_v1 = vpop.f32.mrf.mxu0  ;;  %v2052_v60 = vpop.f32.mrf.mxu1 }
 0x5dc   :  { %v2092_v40 = vpop.f32.mrf.mxu3  ;;  %v7719_v35 = vpop.f32.mrf.mxu2 }
 0x5dd   :  { %v2112_v49 = vpop.f32.mrf.mxu0  ;;  %v2132_v38 = vpop.f32.mrf.mxu1 }
 0x5de   :  { %v2113_v37 = vadd.f32 %v2112_v49, %v2032_v1  ;;  %v2133_v45 = vadd.f32 %v2132_v38, %v2052_v60  ;;  %v7729_v49 = vld [vmem:[#allocation9 + $0x120] sm:$0xff]  ;;  %v7731_v38 = vld [vmem:[#allocation9 + $0x128] sm:$0xff] }
 0x5df   :  { %11200 = vst [vmem:[#allocation63_spill] sm:$0xff] %v7729_v49  ;;  %2373 = vmatpush.msrb.mxu0 %v7729_v49  ;;  %2393 = vmatpush.msrb.mxu1 %v7731_v38  ;;  %v7805_v49 = vld [vmem:[#allocation9 + $0x98] sm:$0xff] }
 0x5e0   :  { %v2175_v60 = vadd.f32 %v2113_v37, %v11146_v30  ;;  %v2176_v1 = vadd.f32 %v2133_v45, %v11147_v32  ;;  %11201 = vst [vmem:[#allocation64_spill] sm:$0xff] %v7731_v38  ;;  %v7743_v37 = vld [vmem:[#allocation9 + $0x100] sm:$0xff]  ;;  %v7745_v45 = vld [vmem:[#allocation9 + $0x108] sm:$0xff]  ;;  %v7759_v38 = vld [vmem:[#allocation9 + $0xf0] sm:$0xff] }
 0x5e1   :  { %11204 = vst [vmem:[#allocation67_spill] sm:$0xff] %v7743_v37  ;;  %2374 = vmatpush.msrb.mxu0 %v7743_v37  ;;  %2394 = vmatpush.msrb.mxu1 %v7745_v45  ;;  %v7775_v37 = vld [vmem:[#allocation9 + $0xd8] sm:$0xff] }
 0x5e2   :  { %v4340_v30 = vmul.f32 -1.442695, %v2175_v60  ;;  %v4341_v32 = vmul.f32 -1.442695, %v2176_v1  ;;  %11205 = vst [vmem:[#allocation68_spill] sm:$0xff] %v7745_v45  ;;  %v7757_v1 = vld [vmem:[#allocation9 + $0xe8] sm:$0xff]  ;;  %2415 = vmatpush.msrb.mxu2 %v7759_v38  ;;  %2436 = vmatpush.msrb.mxu3 %v7775_v37 }
 0x5e3   :  { %11209 = vst [vmem:[#allocation72_spill] sm:$0xff] %v7757_v1  ;;  %2375 = vmatpush.msrb.mxu0 %v7753_v42  ;;  %2395 = vmatpush.msrb.mxu1 %v7757_v1  ;;  %v7773_v45 = vld [vmem:[#allocation9 + $0xd0] sm:$0xff]  ;;  %v7791_v42 = vld [vmem:[#allocation9 + $0xb8] sm:$0xff] }
 0x5e4   :  { %4566 = vpow2.f32 %v4340_v30  ;;  %v2172_v60 = vpop.f32.mrf.mxu3  ;;  %11210 = vst [vmem:[#allocation86_spill] sm:$0xff] %v7759_v38  ;;  %v7767_v30 = vld [vmem:[#allocation9 + $0xc8] sm:$0xff]  ;;  %v7789_v1 = vld [vmem:[#allocation9 + $0xb0] sm:$0xff]  ;;  %2416 = vmatpush.msrb.mxu2 %v7773_v45  ;;  %2437 = vmatpush.msrb.mxu3 %v7791_v42 }
 0x5e5   :  { %4568 = vpow2.f32 %v4341_v32  ;;  %v2173_v17 = vadd.f32 %v2172_v60, %v2092_v40  ;;  %11213 = vst [vmem:[#allocation76_spill] sm:$0xff] %v7767_v30  ;;  %v11216_v32 = vlaneseq  ;;  %2376 = vmatpush.msrb.mxu0 %v7765_v27  ;;  %2396 = vmatpush.msrb.mxu1 %v7767_v30  ;;  %v7799_v38 = vld [vmem:[#allocation9 + $0x88] sm:$0xff]  ;;  %v7803_v30 = vld [vmem:[#allocation9 + $0x90] sm:$0xff] }
 0x5e6   :  { %11214 = vst [vmem:[#allocation90_spill] sm:$0xff] %v7773_v45  ;;  %2417 = vmatpush.msrb.mxu2 %v7789_v1  ;;  %2438 = vmatpush.msrb.mxu3 %v7805_v49 }
 0x5e7   :  { %11215 = vst [vmem:[#allocation77_spill] sm:$0xff] %v7775_v37  ;;  %v7778_v40 = vshrl.u32 %v11216_v32, 7  ;;  %v2178_v60 = vadd.f32 %v2173_v17, %v11148_v5  ;;  %v2152_v5 = vpop.f32.mrf.mxu2  ;;  %2377 = vmatpush.msrb.mxu0 %v7783_v19  ;;  %2397 = vmatpush.msrb.mxu1 %v7785_v61 }
 0x5e8   :  { %11220 = vst [vmem:[#allocation81_spill] sm:$0xff] %v7789_v1  ;;  %v2153_v61 = vadd.f32 %v2152_v5, %v7719_v35  ;;  %2418 = vmatpush.msrb.mxu2 %v7803_v30  ;;  %v2248_v35 = vstv %s7769_s18  ;;  %v7836_v5 = vld [vmem:[#allocation9 + $0x78] sm:$0xff]  ;;  %s4364_s18 = sld [smem:[#allocation3 + $0x1]] }
 0x5e9   :  { %11217 = vst [vmem:[#allocation79_spill] sm:$0xff] %v7778_v40  ;;  %v4342_v17 = vmul.f32 -1.442695, %v2178_v60  ;;  %vm2242_vm4 = vcmp.eq.s32.totalorder %v7778_v40, 0  ;;  %v2244_v60 = vstv %s7739_s2  ;;  %2378 = vmatpush.msrb.mxu0 %v7797_v23  ;;  %2398 = vmatpush.msrb.mxu1 %v7799_v38  ;;  %vm2246_vm5 = vcmp.eq.s32.totalorder %v7778_v40, 1  ;;  %v7856_v23 = vld [vmem:[#allocation9 + $0x30] sm:$0xff] }
 0x5ea   :  { %11221 = vst [vmem:[#allocation83_spill] sm:$0xff] %v7791_v42  ;;  %v4567_v27 = vpop.eup %4566  ;;  %v7827_v42 = vld [vmem:[#allocation9 + $0x70] sm:$0xff]  ;;  %2439 = vmatpush.msrb.mxu3 %v7836_v5  ;;  %v7858_v1 = vld [vmem:[#allocation9 + $0x38] sm:$0xff]  ;;  %vm2250_vm6 = vcmp.eq.s32.totalorder %v7778_v40, 2  ;;  %v2177_v59 = vadd.f32 %v2153_v61, %v11149_v57  ;;  %vm2254_vm7 = vcmp.eq.s32.totalorder %v7778_v40, 3  ;;  %vm2258_vm8 = vcmp.eq.s32.totalorder %v7778_v40, 4 }
 0x5eb   :  { %11223 = vst [vmem:[#allocation98_spill] sm:$0xff] %v7799_v38  ;;  %v4569_v25 = vpop.eup %4568  ;;  %v7809_v45 = vadd.f32 1.0, %v4567_v27  ;;  %4570 = vpow2.f32 %v4342_v17  ;;  %v7823_v27 = vld [vmem:[#allocation9 + $0x60] sm:$0xff]  ;;  %v7825_v17 = vld [vmem:[#allocation9 + $0x68] sm:$0xff]  ;;  %2419 = vmatpush.msrb.mxu2 %v7827_v42  ;;  %v7848_v38 = vld [vmem:[#allocation9 + $0x58] sm:$0xff]  ;;  %vm2262_vm9 = vcmp.eq.s32.totalorder %v7778_v40, 5 }
 0x5ec   :  { %11224 = vst [vmem:[#allocation85_spill] sm:$0xff] %v7803_v30  ;;  %v7815_v37 = vadd.f32 1.0, %v4569_v25  ;;  %v2245_v25 = vsel %vm2242_vm4, %v2244_v60, 0  ;;  %2379 = vmatpush.msrb.mxu0 %v7823_v27  ;;  %2399 = vmatpush.msrb.mxu1 %v7825_v17  ;;  %v7840_v30 = vld [vmem:[#allocation9 + $0x48] sm:$0xff]  ;;  %v7846_v60 = vld [vmem:[#allocation9 + $0x50] sm:$0xff]  ;;  %v7881_v57 = vld [vmem:[#allocation9 + $0x18] sm:$0xff] }
 0x5ed   :  { %11225 = vst [vmem:[#allocation87_spill] sm:$0xff] %v7805_v49  ;;  %4572 = vrcp.f32 %v7809_v45  ;;  %v7838_v49 = vld [vmem:[#allocation9 + $0x40] sm:$0xff]  ;;  %2420 = vmatpush.msrb.mxu2 %v7846_v60  ;;  %2440 = vmatpush.msrb.mxu3 %v7848_v38  ;;  %vm2188_vm13 = vweird.f32 %v7809_v45  ;;  %vm2266_vm14 = vcmp.eq.s32.totalorder %v7778_v40, 6  ;;  %vm2270_vm3 = vcmp.eq.s32.totalorder %v7778_v40, 7  ;;  %s4360_s2 = sld [smem:[#allocation4 + $0x85]] }
 0x5ee   :  { %11226 = vst [vmem:[#allocation88_spill] sm:$0xff] %v7823_v27  ;;  %4574 = vrcp.f32 %v7815_v37  ;;  %v7850_v27 = vld [vmem:[#allocation9 + $0x20] sm:$0xff]  ;;  %2380 = vmatpush.msrb.mxu0 %v7838_v49  ;;  %2400 = vmatpush.msrb.mxu1 %v7840_v30  ;;  %vm2207_vm12 = vweird.f32 %v7815_v37  ;;  %p2572_p1 = scmp.ne.s32.totalorder %s4364_s18, 0  ;;  %s4385_s18 = sld [smem:[#allocation4 + $0x180]] }
 0x5ef   :  { %11227 = vst [vmem:[#allocation102_spill] sm:$0xff] %v7825_v17  ;;  %v7854_v17 = vld [vmem:[#allocation9 + $0x28] sm:$0xff]  ;;  %2421 = vmatpush.msrb.mxu2 %v7856_v23  ;;  %2441 = vmatpush.msrb.mxu3 %v7858_v1 }
 0x5f0   :  { %11228 = vst [vmem:[#allocation89_spill] sm:$0xff] %v7827_v42  ;;  %v2249_v42 = vsel %vm2246_vm5, %v2248_v35, %v2245_v25  ;;  %2381 = vmatpush.msrb.mxu0 %v7850_v27  ;;  %2401 = vmatpush.msrb.mxu1 %v7854_v17  ;;  %v7879_v35 = vld [vmem:[#allocation9 + $0x10] sm:$0xff] }
 0x5f1   :  { %11229 = vst [vmem:[#allocation91_spill] sm:$0xff] %v7836_v5  ;;  %v2252_v5 = vstv %s7793_s4  ;;  %v4571_v19 = vpop.eup %4570  ;;  %2422 = vmatpush.msrb.mxu2 %v7879_v35  ;;  %2442 = vmatpush.msrb.mxu3 %v7881_v57  ;;  %s4361_s4 = sld [smem:[#allocation4 + $0x86]] }
 0x5f2   :  { %11230 = vst [vmem:[#allocation92_spill] sm:$0xff] %v7838_v49  ;;  %v7871_v49 = vld [vmem:[#allocation9 + $0x8] sm:$0xff]  ;;  %v7875_v25 = vadd.f32 1.0, %v4571_v19  ;;  %v2256_v19 = vstv %s7813_s19  ;;  %s4362_s19 = sld [smem:[#allocation4 + $0x87]] }
 0x5f3   :  { %11231 = vst [vmem:[#allocation103_spill] sm:$0xff] %v7840_v30  ;;  %v7869_v30 = vld [vmem:[#allocation9] sm:$0xff]  ;;  %v4573_v61 = vpop.eup %4572  ;;  %2402 = vmatpush.msrb.mxu1 %v7871_v49 }
 0x5f4   :  { %11232 = vst [vmem:[#allocation93_spill] sm:$0xff] %v7846_v60  ;;  %v4575_v60 = vpop.eup %4574  ;;  %4576 = vrcp.f32 %v7875_v25  ;;  %2382 = vmatpush.msrb.mxu0 %v7869_v30  ;;  %vm2189_vm10 = vweird.f32 %v4573_v61 }
 0x5f5   :  { %11233 = vst [vmem:[#allocation95_spill] sm:$0xff] %v7848_v38  ;;  %v2253_v38 = vsel %vm2250_vm6, %v2252_v5, %v2249_v42  ;;  %4578 = vtanh.f32 %v2177_v59  ;;  %v2194_v59 = vand.u32 2147483648, %v7809_v45  ;;  %vm2208_vm11 = vweird.f32 %v4575_v60  ;;  %vm2190_vm15 = vmor %vm2188_vm13, %vm2189_vm10 }
 0x5f6   :  { %11234 = vst [vmem:[#allocation96_spill] sm:$0xff] %v7850_v27  ;;  %v2184_v27 = vmul.f32 %v4573_v61, %v7809_v45  ;;  %v2257_v5 = vsel %vm2254_vm7, %v2256_v19, %v2253_v38  ;;  %vm2209_vm1 = vmor %vm2207_vm12, %vm2208_vm11  ;;  %vm2227_vm11 = vweird.f32 %v7875_v25 }
 0x5f7   :  { %11235 = vst [vmem:[#allocation104_spill] sm:$0xff] %v7854_v17 }
 0x5f8   :  { %11236 = vst [vmem:[#allocation97_spill] sm:$0xff] %v7856_v23  ;;  %v2203_v23 = vmul.f32 %v4575_v60, %v7815_v37  ;;  %v2185_v42 = vsub.f32 1.0, %v2184_v27  ;;  %v2211_v27 = vand.u32 2147483647, %v7815_v37 }
 0x5f9   :  { %11237 = vst [vmem:[#allocation99_spill] sm:$0xff] %v7858_v1  ;;  %v2260_v1 = vstv %s7842_s20  ;;  %s2573_s20 = scalar_select %p2572_p1, 1, 0 }
 0x5fa   :  { %11238 = vst [vmem:[#allocation100_spill] sm:$0xff] %v7869_v30  ;;  %v2204_v30 = vsub.f32 1.0, %v2203_v23  ;;  %v2261_v19 = vsel %vm2258_vm8, %v2260_v1, %v2257_v5  ;;  %v2264_v23 = vstv %s7864_s21  ;;  %v4577_v17 = vpop.eup %4576  ;;  %vm2212_vm2 = vcmp.eq.f32.partialorder %v2211_v27, 8.507059e+37 }
 0x5fb   :  { %11239 = vst [vmem:[#allocation105_spill] sm:$0xff] %v7871_v49  ;;  %v2192_v49 = vand.u32 2147483647, %v7809_v45  ;;  %v2223_v13 = vmul.f32 %v4577_v17, %v7875_v25  ;;  %vm2228_vm10 = vweird.f32 %v4577_v17  ;;  %v11243_v27 = vmov 0.0   ;;  %s2574_s21 = scvt.s32.f32 %s2573_s20  ;;  %s4388_s20 = sld [smem:[#allocation4 + $0x183]] }
 0x5fc   :  { %11240 = vst [vmem:[#allocation101_spill] sm:$0xff] %v7879_v35  ;;  %v2186_v35 = vmul.f32 %v4573_v61, %v2185_v42  ;;  %v2205_v38 = vmul.f32 %v4575_v60, %v2204_v30  ;;  %v4579_v42 = vpop.eup %4578  ;;  %v2195_v30 = vor.u32 1.1754944e-38, %v2194_v59  ;;  %vm2229_vm12 = vmor %vm2227_vm11, %vm2228_vm10 }
 0x5fd   :  { %11241 = vst [vmem:[#allocation106_spill] sm:$0xff] %v7881_v57  ;;  %v2213_v57 = vand.u32 2147483648, %v7815_v37  ;;  %vm2193_vm0 = vcmp.eq.f32.partialorder %v2192_v49, 8.507059e+37  ;;  %v2265_v37 = vsel %vm2262_vm9, %v2264_v23, %v2261_v19  ;;  %v2224_v24 = vsub.f32 1.0, %v2223_v13  ;;  %s2577_s22 = ssub.f32 1.0, %s2574_s21 }
 0x5fe   :  { %v2187_v53 = vadd.f32 %v4573_v61, %v2186_v35  ;;  %v2206_v15 = vadd.f32 %v4575_v60, %v2205_v38  ;;  %v2269_v11 = vsel %vm2266_vm14, %v2268_v48, %v2265_v37  ;;  %v7931_v13 = vand.u32 127, %v11216_v32  ;;  %v11282_v37 = vld [vmem:[#allocation86_spill] sm:$0xff] }
 0x5ff   :  { %v2214_v1 = vor.u32 1.1754944e-38, %v2213_v57  ;;  %v2225_v14 = vmul.f32 %v4577_v17, %v2224_v24  ;;  %v2231_v48 = vand.u32 2147483647, %v7875_v25  ;;  %v2281_v23 = vstv %s2280_s7  ;;  %s4371_s7 = sld [smem:[#allocation4 + $0x101]] }
 0x600   :  { %v2191_v5 = vsel %vm2190_vm15, %v4573_v61, %v2187_v53  ;;  %v2210_v35 = vsel %vm2209_vm1, %v4575_v60, %v2206_v15  ;;  %v2272_v53 = vstv %s7907_s23  ;;  %11242 = vst [vmem:[#allocation107_spill] sm:$0xff] %v7931_v13  ;;  %v2233_v15 = vand.u32 2147483648, %v7875_v25  ;;  %v11280_v25 = vld [vmem:[#allocation71_spill] sm:$0xff]  ;;  %s4391_s23 = sld [smem:[#allocation4 + $0x186]] }
 0x601   :  { %v2196_v45 = vsel %vm2193_vm0, %v2195_v30, %v2191_v5  ;;  %v2215_v49 = vsel %vm2212_vm2, %v2214_v1, %v2210_v35  ;;  %v2226_v61 = vadd.f32 %v4577_v17, %v2225_v14  ;;  %vm2232_vm15 = vcmp.eq.f32.partialorder %v2231_v48, 8.507059e+37  ;;  %v11281_v5 = vld [vmem:[#allocation72_spill] sm:$0xff] }
 0x602   :  { %v2238_v59 = vmul.f32 %v4579_v42, %v2196_v45  ;;  %v2237_v38 = vmul.f32 %v2215_v49, %v7463_v18  ;;  %v2273_v18 = vsel %vm2270_vm3, %v2272_v53, %v2269_v11  ;;  %v2234_v14 = vor.u32 1.1754944e-38, %v2233_v15  ;;  %v11283_v45 = vld [vmem:[#allocation75_spill] sm:$0xff]  ;;  %v11284_v35 = vld [vmem:[#allocation76_spill] sm:$0xff]  ;;  %v11285_v49 = vld [vmem:[#allocation90_spill] sm:$0xff] }
 0x603   :  { %v2230_v24 = vsel %vm2229_vm12, %v4577_v17, %v2226_v61  ;;  %vm2274_vm13 = vcmp.eq.s32.totalorder %v7931_v13, %v2273_v18  ;;  %v2284_v42 = vstv %s2283_s24  ;;  %v11288_v53 = vld [vmem:[#allocation81_spill] sm:$0xff]  ;;  %v11289_v61 = vld [vmem:[#allocation84_spill] sm:$0xff]  ;;  %v11290_v15 = vld [vmem:[#allocation98_spill] sm:$0xff]  ;;  %s4372_s24 = sld [smem:[#allocation4 + $0x102]] }
 0x604   :  { %v7928_v57 = vadd.f32 %v2238_v59, %v2237_v38  ;;  %v2235_v60 = vsel %vm2232_vm15, %v2234_v14, %v2230_v24  ;;  %v4350_v19 = vsel %vm2274_vm13, 1.0, %v11243_v27  ;;  %v2285_v1 = vmul.f32 0.0, %v2284_v42  ;;  %v11286_v59 = vld [vmem:[#allocation80_spill] sm:$0xff]  ;;  %v11287_v38 = vld [vmem:[#allocation94_spill] sm:$0xff]  ;;  %v11291_v18 = vld [vmem:[#allocation85_spill] sm:$0xff] }
 0x605   :  { %v2282_v11 = vmul.f32 %v4350_v19, %v2281_v23  ;;  %v11292_v48 = vld [vmem:[#allocation88_spill] sm:$0xff]  ;;  %v11293_v24 = vld [vmem:[#allocation102_spill] sm:$0xff]  ;;  %v11294_v14 = vld [vmem:[#allocation89_spill] sm:$0xff] }
 0x606   :  { %4580 = vtanh.f32 %v7928_v57  ;;  %v11297_v19 = vld [vmem:[#allocation93_spill] sm:$0xff]  ;;  %v11298_v23 = vld [vmem:[#allocation96_spill] sm:$0xff] }
 0x607   :  { %v2286_v17 = vadd.f32 %v2285_v1, %v2282_v11  ;;  %v11299_v42 = vld [vmem:[#allocation104_spill] sm:$0xff]  ;;  %v11302_v1 = vld [vmem:[#allocation105_spill] sm:$0xff] }
 0x608   :  { %v11301_v11 = vld [vmem:[#allocation100_spill] sm:$0xff] }
 0x60c   :  { %v4581_v32 = vpop.eup %4580 }
 0x60d   :  { %v2241_v30 = vmul.f32 %v4581_v32, %v2235_v60  ;;  %v11295_v32 = vld [vmem:[#allocation92_spill] sm:$0xff]  ;;  %v11296_v60 = vld [vmem:[#allocation103_spill] sm:$0xff] }
 0x60f   :  { %2303 = vmatmul.f32.vlgmr.msra.gmra.mxu0 %v2241_v30  ;;  %2323 = vmatmul.f32.vlgmr.msra.gmra.mxu1 %v2241_v30 }
 0x610   :  { %2343 = vmatmul.f32.vlgmr.msra.gmra.mxu2 %v2241_v30  ;;  %2363 = vmatmul.f32.vlgmr.msra.gmra.mxu3 %v2241_v30  ;;  %v11300_v30 = vld [vmem:[#allocation97_spill] sm:$0xff] }
 0x611   :  { %2581 = vmatpush.msra.mxu1 %v7469_v28  ;;  %2601 = vmatpush.msra.mxu2 %v7471_v34  ;;  %v11244_v28 = vld [vmem:[#allocation24_spill] sm:$0xff]  ;;  %v11245_v34 = vld [vmem:[#allocation25_spill] sm:$0xff] }
 0x612   :  { %2621 = vmatpush.msra.mxu3 %v7473_v10  ;;  %v11246_v10 = vld [vmem:[#allocation35_spill] sm:$0xff] }
 0x613   :  { %2582 = vmatpush.msra.mxu1 %v7477_v29  ;;  %2602 = vmatpush.msra.mxu2 %v7479_v31  ;;  %v11247_v29 = vld [vmem:[#allocation28_spill] sm:$0xff]  ;;  %v11248_v31 = vld [vmem:[#allocation29_spill] sm:$0xff] }
 0x614   :  { %2622 = vmatpush.msra.mxu3 %v7482_v33  ;;  %v11249_v33 = vld [vmem:[#allocation42_spill] sm:$0xff] }
 0x615   :  { %2583 = vmatpush.msra.mxu1 %v7484_v39  ;;  %2603 = vmatpush.msra.mxu2 %v7488_v41  ;;  %v11250_v39 = vld [vmem:[#allocation32_spill] sm:$0xff]  ;;  %v11251_v41 = vld [vmem:[#allocation33_spill] sm:$0xff] }
 0x616   :  { %2623 = vmatpush.msra.mxu3 %v7490_v44  ;;  %v11252_v44 = vld [vmem:[#allocation46_spill] sm:$0xff] }
 0x617   :  { %2383 = vmatmul.f32.vlgmr.msrb.gmra.mxu0 %v2286_v17  ;;  %2403 = vmatmul.f32.vlgmr.msrb.gmra.mxu1 %v2286_v17 }
 0x618   :  { %2423 = vmatmul.f32.vlgmr.msrb.gmra.mxu2 %v2286_v17  ;;  %2443 = vmatmul.f32.vlgmr.msrb.gmra.mxu3 %v2286_v17  ;;  %v11303_v17 = vld [vmem:[#allocation101_spill] sm:$0xff] }
 0x619   :  { %2584 = vmatpush.msra.mxu1 %v7499_v43  ;;  %2604 = vmatpush.msra.mxu2 %v7501_v63  ;;  %v11253_v43 = vld [vmem:[#allocation36_spill] sm:$0xff]  ;;  %v11254_v63 = vld [vmem:[#allocation37_spill] sm:$0xff] }
 0x61a   :  { %2624 = vmatpush.msra.mxu3 %v7503_v62  ;;  %v11255_v62 = vld [vmem:[#allocation50_spill] sm:$0xff] }
 0x61b   :  { %2585 = vmatpush.msra.mxu1 %v7511_v56  ;;  %2605 = vmatpush.msra.mxu2 %v7513_v51  ;;  %v11256_v56 = vld [vmem:[#allocation39_spill] sm:$0xff]  ;;  %v11257_v51 = vld [vmem:[#allocation40_spill] sm:$0xff] }
 0x61c   :  { %2625 = vmatpush.msra.mxu3 %v7515_v55  ;;  %v11258_v55 = vld [vmem:[#allocation54_spill] sm:$0xff] }
 0x61d   :  { %2586 = vmatpush.msra.mxu1 %v7523_v50  ;;  %2606 = vmatpush.msra.mxu2 %v7525_v46  ;;  %v11259_v50 = vld [vmem:[#allocation43_spill] sm:$0xff]  ;;  %v11260_v46 = vld [vmem:[#allocation44_spill] sm:$0xff] }
 0x61e   :  { %2626 = vmatpush.msra.mxu3 %v7527_v47  ;;  %v11261_v47 = vld [vmem:[#allocation58_spill] sm:$0xff] }
 0x61f   :  { %2587 = vmatpush.msra.mxu1 %v7535_v52  ;;  %2607 = vmatpush.msra.mxu2 %v7537_v58  ;;  %v11262_v52 = vld [vmem:[#allocation47_spill] sm:$0xff]  ;;  %v11263_v58 = vld [vmem:[#allocation48_spill] sm:$0xff] }
 0x620   :  { %2627 = vmatpush.msra.mxu3 %v7539_v21  ;;  %v11264_v21 = vld [vmem:[#allocation62_spill] sm:$0xff] }
 0x621   :  { %2588 = vmatpush.msra.mxu1 %v7547_v54  ;;  %2608 = vmatpush.msra.mxu2 %v7549_v4  ;;  %v11265_v54 = vld [vmem:[#allocation51_spill] sm:$0xff]  ;;  %v11266_v4 = vld [vmem:[#allocation52_spill] sm:$0xff] }
 0x622   :  { %2628 = vmatpush.msra.mxu3 %v7551_v6  ;;  %v11267_v6 = vld [vmem:[#allocation66_spill] sm:$0xff] }
 0x623   :  { %2589 = vmatpush.msra.mxu1 %v7559_v9  ;;  %2609 = vmatpush.msra.mxu2 %v7561_v36  ;;  %v11268_v9 = vld [vmem:[#allocation55_spill] sm:$0xff]  ;;  %v11269_v36 = vld [vmem:[#allocation56_spill] sm:$0xff] }
 0x624   :  { %2629 = vmatpush.msra.mxu3 %v7563_v0  ;;  %v11270_v0 = vld [vmem:[#allocation70_spill] sm:$0xff] }
 0x625   :  { %2590 = vmatpush.msra.mxu1 %v7571_v2  ;;  %2610 = vmatpush.msra.mxu2 %v7573_v3  ;;  %v11271_v2 = vld [vmem:[#allocation59_spill] sm:$0xff]  ;;  %v11272_v3 = vld [vmem:[#allocation60_spill] sm:$0xff] }
 0x626   :  { %2630 = vmatpush.msra.mxu3 %v7575_v7  ;;  %v11273_v7 = vld [vmem:[#allocation74_spill] sm:$0xff] }
 0x627   :  { %2591 = vmatpush.msra.mxu1 %v7583_v20  ;;  %2611 = vmatpush.msra.mxu2 %v7585_v8  ;;  %v11274_v20 = vld [vmem:[#allocation63_spill] sm:$0xff]  ;;  %v11275_v8 = vld [vmem:[#allocation64_spill] sm:$0xff] }
 0x628   :  { %2631 = vmatpush.msra.mxu3 %v7587_v26  ;;  %v11276_v26 = vld [vmem:[#allocation78_spill] sm:$0xff] }
 0x629   :  { %2592 = vmatpush.msra.mxu1 %v7595_v12  ;;  %2612 = vmatpush.msra.mxu2 %v7597_v16  ;;  %v11277_v12 = vld [vmem:[#allocation67_spill] sm:$0xff]  ;;  %v11278_v16 = vld [vmem:[#allocation68_spill] sm:$0xff] }
 0x62a   :  { %2632 = vmatpush.msra.mxu3 %v7599_v22  ;;  %v11279_v22 = vld [vmem:[#allocation82_spill] sm:$0xff] }
 0x62b   :  { %2593 = vmatpush.msra.mxu1 %v11244_v28  ;;  %2613 = vmatpush.msra.mxu2 %v11245_v34  ;;  %v8040_v28 = vld [vmem:[%s9695_s9 + $0x78] sm:$0xff]  ;;  %v8045_v34 = vld [vmem:[%s9695_s9 + $0x70] sm:$0xff] }
 0x62c   :  { %2633 = vmatpush.msra.mxu3 %v11246_v10  ;;  %2514 = vmatpush.msra.mxu0 %v8040_v28  ;;  %v8051_v10 = vld [vmem:[%s9695_s9 + $0x68] sm:$0xff] }
 0x62d   :  { %2594 = vmatpush.msra.mxu1 %v11247_v29  ;;  %2614 = vmatpush.msra.mxu2 %v11248_v31  ;;  %v8058_v29 = vld [vmem:[%s9695_s9 + $0x60] sm:$0xff]  ;;  %v8064_v31 = vld [vmem:[%s9695_s9 + $0x58] sm:$0xff] }
 0x62e   :  { %2634 = vmatpush.msra.mxu3 %v11249_v33  ;;  %2515 = vmatpush.msra.mxu0 %v8045_v34  ;;  %v8070_v33 = vld [vmem:[%s9695_s9 + $0x50] sm:$0xff] }
 0x62f   :  { %2595 = vmatpush.msra.mxu1 %v11250_v39  ;;  %2615 = vmatpush.msra.mxu2 %v11251_v41  ;;  %v8076_v39 = vld [vmem:[%s9695_s9 + $0x48] sm:$0xff]  ;;  %v8082_v41 = vld [vmem:[%s9695_s9 + $0x40] sm:$0xff] }
 0x630   :  { %2635 = vmatpush.msra.mxu3 %v11252_v44  ;;  %2516 = vmatpush.msra.mxu0 %v8051_v10  ;;  %v8088_v44 = vld [vmem:[%s9695_s9 + $0x38] sm:$0xff] }
 0x631   :  { %2596 = vmatpush.msra.mxu1 %v11253_v43  ;;  %2616 = vmatpush.msra.mxu2 %v11254_v63  ;;  %v8094_v43 = vld [vmem:[%s9695_s9 + $0x30] sm:$0xff]  ;;  %v8100_v63 = vld [vmem:[%s9695_s9 + $0x28] sm:$0xff] }
 0x632   :  { %2636 = vmatpush.msra.mxu3 %v11255_v62  ;;  %2517 = vmatpush.msra.mxu0 %v8058_v29  ;;  %v8106_v62 = vld [vmem:[%s9695_s9 + $0x20] sm:$0xff] }
 0x633   :  { %2661 = vmatpush.msrb.mxu1 %v11256_v56  ;;  %2681 = vmatpush.msrb.mxu2 %v11257_v51  ;;  %v8112_v56 = vld [vmem:[%s9695_s9 + $0x18] sm:$0xff]  ;;  %v8118_v51 = vld [vmem:[%s9695_s9 + $0x10] sm:$0xff] }
 0x634   :  { %2701 = vmatpush.msrb.mxu3 %v11258_v55  ;;  %2518 = vmatpush.msra.mxu0 %v8064_v31  ;;  %11304 = vst [vmem:[#allocation108_spill] sm:$0xff] %v8118_v51  ;;  %v8124_v55 = vld [vmem:[%s9695_s9 + $0x8] sm:$0xff] }
 0x635   :  { %2662 = vmatpush.msrb.mxu1 %v11259_v50  ;;  %2682 = vmatpush.msrb.mxu2 %v11260_v46  ;;  %11305 = vst [vmem:[#allocation109_spill] sm:$0xff] %v8124_v55  ;;  %v8130_v50 = vld [vmem:[%s9695_s9] sm:$0xff] }
 0x636   :  { %2702 = vmatpush.msrb.mxu3 %v11261_v47  ;;  %2519 = vmatpush.msra.mxu0 %v8070_v33  ;;  %11306 = vst [vmem:[#allocation24_spill] sm:$0xff] %v8130_v50 }
 0x637   :  { %2663 = vmatpush.msrb.mxu1 %v11262_v52  ;;  %2683 = vmatpush.msrb.mxu2 %v11263_v58  ;;  %v8133_v52 = vld [vmem:[#allocation10 + $0x1f8] sm:$0xff] }
 0x638   :  { %2703 = vmatpush.msrb.mxu3 %v11264_v21  ;;  %2520 = vmatpush.msra.mxu0 %v8076_v39  ;;  %v8136_v58 = vld [vmem:[#allocation10 + $0x1d8] sm:$0xff]  ;;  %v376_v21 = vld [vmem:[%s9694_s8] sm:$0xf]  ;;  %s2869_s8 = scvt.s32.f32 %s2868_s1  ;;  %s4403_s1 = sld [smem:[#allocation4 + $0x203]] }
 0x639   :  { %2664 = vmatpush.msrb.mxu1 %v11265_v54  ;;  %2684 = vmatpush.msrb.mxu2 %v11266_v4  ;;  %v11307_v54 = vld [vmem:[#allocation23_spill] sm:$0xff] }
 0x63a   :  { %2704 = vmatpush.msrb.mxu3 %v11267_v6  ;;  %2521 = vmatpush.msra.mxu0 %v8082_v41  ;;  %v8143_v6 = vperm.slane %v376_v21, 0  ;;  %s2872_s29 = ssub.f32 1.0, %s2869_s8 }
 0x63b   :  { %2665 = vmatpush.msrb.mxu1 %v11268_v9  ;;  %2685 = vmatpush.msrb.mxu2 %v11269_v36  ;;  %v8145_v9 = vperm.slane %v376_v21, 1  ;;  %v11310_v36 = vld [vmem:[#allocation16_spill] sm:$0xff] }
 0x63c   :  { %2705 = vmatpush.msrb.mxu3 %v11270_v0  ;;  %2522 = vmatpush.msra.mxu0 %v8088_v44  ;;  %11308 = vst [vmem:[#allocation25_spill] sm:$0xff] %v8143_v6 }
 0x63d   :  { %2666 = vmatpush.msrb.mxu1 %v11271_v2  ;;  %2686 = vmatpush.msrb.mxu2 %v11272_v3  ;;  %11309 = vst [vmem:[#allocation35_spill] sm:$0xff] %v8145_v9 }
 0x63e   :  { %2706 = vmatpush.msrb.mxu3 %v11273_v7  ;;  %2523 = vmatpush.msra.mxu0 %v8094_v43 }
 0x63f   :  { %2667 = vmatpush.msrb.mxu1 %v11274_v20  ;;  %2687 = vmatpush.msrb.mxu2 %v11275_v8  ;;  %v11311_v20 = vld [vmem:[#allocation17_spill] sm:$0xff] }
 0x640   :  { %2707 = vmatpush.msrb.mxu3 %v11276_v26  ;;  %2524 = vmatpush.msra.mxu0 %v8100_v63 }
 0x641   :  { %2668 = vmatpush.msrb.mxu1 %v11277_v12  ;;  %2688 = vmatpush.msrb.mxu2 %v11278_v16  ;;  %v11312_v12 = vld [vmem:[#allocation18_spill] sm:$0xff] }
 0x642   :  { %2708 = vmatpush.msrb.mxu3 %v11279_v22  ;;  %2525 = vmatpush.msra.mxu0 %v8106_v62 }
 0x643   :  { %2669 = vmatpush.msrb.mxu1 %v11280_v25  ;;  %2689 = vmatpush.msrb.mxu2 %v11281_v5  ;;  %v11313_v5 = vld [vmem:[#allocation27_spill] sm:$0xff] }
 0x644   :  { %2709 = vmatpush.msrb.mxu3 %v11282_v37  ;;  %2526 = vmatpush.msra.mxu0 %v8112_v56  ;;  %v8153_v37 = vperm.slane %v376_v21, 3 }
 0x645   :  { %2670 = vmatpush.msrb.mxu1 %v11283_v45  ;;  %2690 = vmatpush.msrb.mxu2 %v11284_v35  ;;  %v11315_v35 = vld [vmem:[#allocation19_spill] sm:$0xff] }
 0x646   :  { %2710 = vmatpush.msrb.mxu3 %v11285_v49  ;;  %2527 = vmatpush.msra.mxu0 %v8118_v51  ;;  %11314 = vst [vmem:[#allocation28_spill] sm:$0xff] %v8153_v37 }
 0x647   :  { %2671 = vmatpush.msrb.mxu1 %v11286_v59  ;;  %2691 = vmatpush.msrb.mxu2 %v11287_v38  ;;  %v11316_v59 = vld [vmem:[#allocation20_spill] sm:$0xff] }
 0x648   :  { %2711 = vmatpush.msrb.mxu3 %v11288_v53  ;;  %2528 = vmatpush.msra.mxu0 %v8124_v55  ;;  %v11317_v53 = vld [vmem:[#allocation21_spill] sm:$0xff] }
 0x649   :  { %2672 = vmatpush.msrb.mxu1 %v11289_v61  ;;  %2692 = vmatpush.msrb.mxu2 %v11290_v15 }
 0x64a   :  { %2712 = vmatpush.msrb.mxu3 %v11291_v18  ;;  %2529 = vmatpush.msra.mxu0 %v8130_v50  ;;  %v11318_v18 = vld [vmem:[#allocation31_spill] sm:$0xff] }
 0x64b   :  { %2673 = vmatpush.msrb.mxu1 %v11292_v48  ;;  %2693 = vmatpush.msrb.mxu2 %v11293_v24 }
 0x64c   :  { %2713 = vmatpush.msrb.mxu3 %v11294_v14  ;;  %2641 = vmatpush.msrb.mxu0 %v8133_v52 }
 0x64d   :  { %2674 = vmatpush.msrb.mxu1 %v11295_v32  ;;  %2694 = vmatpush.msrb.mxu2 %v11296_v60  ;;  %v11319_v60 = vld [vmem:[#allocation22_spill] sm:$0xff] }
 0x64e   :  { %2714 = vmatpush.msrb.mxu3 %v11297_v19  ;;  %2642 = vmatpush.msrb.mxu0 %v8136_v58  ;;  %v11320_v19 = vld [vmem:[#allocation26_spill] sm:$0xff] }
 0x64f   :  { %2675 = vmatpush.msrb.mxu1 %v11298_v23  ;;  %2695 = vmatpush.msrb.mxu2 %v11299_v42  ;;  %v8162_v23 = vperm.slane %v376_v21, 2 }
 0x650   :  { %2715 = vmatpush.msrb.mxu3 %v11300_v30  ;;  %2643 = vmatpush.msrb.mxu0 %v11307_v54  ;;  %v11322_v30 = vld [vmem:[#allocation30_spill] sm:$0xff] }
 0x651   :  { %2676 = vmatpush.msrb.mxu1 %v11301_v11  ;;  %2696 = vmatpush.msrb.mxu2 %v11302_v1  ;;  %11321 = vst [vmem:[#allocation29_spill] sm:$0xff] %v8162_v23 }
 0x652   :  { %2716 = vmatpush.msrb.mxu3 %v11303_v17  ;;  %2644 = vmatpush.msrb.mxu0 %v11310_v36  ;;  %v11323_v17 = vld [vmem:[#allocation34_spill] sm:$0xff] }
 0x653   :  { %v11324_v36 = vld [vmem:[#allocation38_spill] sm:$0xff] }
 0x654   :  { %2645 = vmatpush.msrb.mxu0 %v11311_v20 }
 0x656   :  { %2646 = vmatpush.msrb.mxu0 %v11312_v12 }
 0x658   :  { %2647 = vmatpush.msrb.mxu0 %v11313_v5 }
 0x65a   :  { %2648 = vmatpush.msrb.mxu0 %v11315_v35 }
 0x65c   :  { %2649 = vmatpush.msrb.mxu0 %v11316_v59 }
 0x65e   :  { %2650 = vmatpush.msrb.mxu0 %v11317_v53 }
 0x660   :  { %2651 = vmatpush.msrb.mxu0 %v11318_v18 }
 0x662   :  { %2652 = vmatpush.msrb.mxu0 %v11319_v60 }
 0x664   :  { %2653 = vmatpush.msrb.mxu0 %v11320_v19 }
 0x666   :  { %2654 = vmatpush.msrb.mxu0 %v11322_v30 }
 0x668   :  { %2655 = vmatpush.msrb.mxu0 %v11323_v17 }
 0x66a   :  { %2656 = vmatpush.msrb.mxu0 %v11324_v36  ;;  %v8185_v36 = vld [vmem:[#allocation10 + $0x1c8] sm:$0xff] }
 0x68c   :  { %v2304_v46 = vpop.f32.mrf.mxu0  ;;  %v2324_v47 = vpop.f32.mrf.mxu1 }
 0x693   :  { %v2364_v4 = vpop.f32.mrf.mxu3  ;;  %v2344_v16 = vpop.f32.mrf.mxu2 }
 0x694   :  { %v2384_v0 = vpop.f32.mrf.mxu0  ;;  %v2404_v2 = vpop.f32.mrf.mxu1 }
 0x695   :  { %v2385_v3 = vadd.f32 %v2384_v0, %v2304_v46  ;;  %v2405_v7 = vadd.f32 %v2404_v2, %v2324_v47 }
 0x697   :  { %v2447_v8 = vadd.f32 %v2385_v3, %v8143_v6  ;;  %v2448_v26 = vadd.f32 %v2405_v7, %v8145_v9 }
 0x699   :  { %v4351_v22 = vmul.f32 -1.442695, %v2447_v8  ;;  %v4352_v25 = vmul.f32 -1.442695, %v2448_v26 }
 0x69b   :  { %4582 = vpow2.f32 %v4351_v22  ;;  %v2444_v45 = vpop.f32.mrf.mxu3  ;;  %v2424_v32 = vpop.f32.mrf.mxu2 }
 0x69c   :  { %4584 = vpow2.f32 %v4352_v25  ;;  %v2445_v49 = vadd.f32 %v2444_v45, %v2364_v4  ;;  %v2425_v42 = vadd.f32 %v2424_v32, %v2344_v16 }
 0x69e   :  { %v2450_v38 = vadd.f32 %v2445_v49, %v8153_v37  ;;  %v2449_v47 = vadd.f32 %v2425_v42, %v8162_v23 }
 0x6a0   :  { %v4353_v61 = vmul.f32 -1.442695, %v2450_v38 }
 0x6a1   :  { %v4583_v15 = vpop.eup %4582 }
 0x6a2   :  { %v4585_v48 = vpop.eup %4584  ;;  %v2454_v24 = vadd.f32 1.0, %v4583_v15  ;;  %4586 = vpow2.f32 %v4353_v61 }
 0x6a3   :  { %v2473_v14 = vadd.f32 1.0, %v4585_v48 }
 0x6a4   :  { %4588 = vrcp.f32 %v2454_v24  ;;  %v2466_v21 = vand.u32 2147483648, %v2454_v24  ;;  %v2464_v8 = vand.u32 2147483647, %v2454_v24  ;;  %vm2460_vm2 = vweird.f32 %v2454_v24 }
 0x6a5   :  { %4590 = vrcp.f32 %v2473_v14  ;;  %v2485_v7 = vand.u32 2147483648, %v2473_v14  ;;  %v2483_v12 = vand.u32 2147483647, %v2473_v14  ;;  %vm2479_vm10 = vweird.f32 %v2473_v14 }
 0x6a6   :  { %v2467_v25 = vor.u32 1.1754944e-38, %v2466_v21  ;;  %vm2465_vm13 = vcmp.eq.f32.partialorder %v2464_v8, 8.507059e+37  ;;  %v11328_v21 = vld [vmem:[#allocation53_spill] sm:$0xff] }
 0x6a7   :  { %v2486_v35 = vor.u32 1.1754944e-38, %v2485_v7  ;;  %vm2484_vm15 = vcmp.eq.f32.partialorder %v2483_v12, 8.507059e+37  ;;  %v8198_v7 = vld [vmem:[#allocation10 + $0x180] sm:$0xff]  ;;  %v11329_v8 = vld [vmem:[#allocation57_spill] sm:$0xff] }
 0x6a8   :  { %v4587_v11 = vpop.eup %4586  ;;  %v8210_v12 = vld [vmem:[#allocation10 + $0x168] sm:$0xff] }
 0x6a9   :  { %v2493_v1 = vadd.f32 1.0, %v4587_v11 }
 0x6aa   :  { %v4589_v46 = vpop.eup %4588 }
 0x6ab   :  { %v4591_v54 = vpop.eup %4590  ;;  %v2456_v4 = vmul.f32 %v4589_v46, %v2454_v24  ;;  %4592 = vrcp.f32 %v2493_v1  ;;  %vm2461_vm0 = vweird.f32 %v4589_v46  ;;  %v2505_v60 = vand.u32 2147483648, %v2493_v1 }
 0x6ac   :  { %v2475_v0 = vmul.f32 %v4591_v54, %v2473_v14  ;;  %4594 = vtanh.f32 %v2449_v47  ;;  %vm2480_vm1 = vweird.f32 %v4591_v54  ;;  %vm2462_vm11 = vmor %vm2460_vm2, %vm2461_vm0  ;;  %v2503_v19 = vand.u32 2147483647, %v2493_v1  ;;  %v8174_v47 = vld [vmem:[#allocation10 + $0x1e0] sm:$0xff] }
 0x6ad   :  { %v2457_v2 = vsub.f32 1.0, %v2456_v4  ;;  %vm2481_vm12 = vmor %vm2479_vm10, %vm2480_vm1  ;;  %vm2499_vm1 = vweird.f32 %v2493_v1  ;;  %v2506_v30 = vor.u32 1.1754944e-38, %v2505_v60  ;;  %v8182_v4 = vld [vmem:[#allocation10 + $0x1c0] sm:$0xff] }
 0x6ae   :  { %v2476_v3 = vsub.f32 1.0, %v2475_v0  ;;  %vm2504_vm10 = vcmp.eq.f32.partialorder %v2503_v19, 8.507059e+37  ;;  %v11327_v0 = vld [vmem:[#allocation49_spill] sm:$0xff]  ;;  %v8254_v60 = vld [vmem:[#allocation10 + $0xa0] sm:$0xff] }
 0x6af   :  { %v2458_v20 = vmul.f32 %v4589_v46, %v2457_v2  ;;  %v8190_v2 = vld [vmem:[#allocation10 + $0x1a0] sm:$0xff]  ;;  %v8258_v19 = vld [vmem:[#allocation10 + $0xa8] sm:$0xff] }
 0x6b0   :  { %v2477_v26 = vmul.f32 %v4591_v54, %v2476_v3  ;;  %v8193_v3 = vld [vmem:[#allocation10 + $0x1a8] sm:$0xff] }
 0x6b1   :  { %v4593_v16 = vpop.eup %4592  ;;  %v2459_v22 = vadd.f32 %v4589_v46, %v2458_v20  ;;  %v8202_v20 = vld [vmem:[#allocation10 + $0x188] sm:$0xff] }
 0x6b2   :  { %v2478_v5 = vadd.f32 %v4591_v54, %v2477_v26  ;;  %v2495_v45 = vmul.f32 %v4593_v16, %v2493_v1  ;;  %v4595_v59 = vpop.eup %4594  ;;  %vm2500_vm0 = vweird.f32 %v4593_v16  ;;  %v8177_v1 = vld [vmem:[#allocation10 + $0x1e8] sm:$0xff]  ;;  %v8206_v26 = vld [vmem:[#allocation10 + $0x160] sm:$0xff] }
 0x6b3   :  { %v2463_v49 = vsel %vm2462_vm11, %v4589_v46, %v2459_v22  ;;  %vm2501_vm2 = vmor %vm2499_vm1, %vm2500_vm0  ;;  %v8214_v22 = vld [vmem:[#allocation10 + $0x140] sm:$0xff] }
 0x6b4   :  { %v2468_v38 = vsel %vm2465_vm13, %v2467_v25, %v2463_v49  ;;  %v2482_v53 = vsel %vm2481_vm12, %v4591_v54, %v2478_v5  ;;  %v2496_v61 = vsub.f32 1.0, %v2495_v45  ;;  %v11326_v54 = vld [vmem:[#allocation45_spill] sm:$0xff]  ;;  %v8222_v45 = vld [vmem:[#allocation10 + $0x120] sm:$0xff] }
 0x6b5   :  { %v2487_v15 = vsel %vm2484_vm15, %v2486_v35, %v2482_v53  ;;  %v2510_v18 = vmul.f32 %v4595_v59, %v2468_v38  ;;  %v8218_v25 = vld [vmem:[#allocation10 + $0x148] sm:$0xff]  ;;  %v8230_v59 = vld [vmem:[#allocation10 + $0x100] sm:$0xff] }
 0x6b6   :  { %v2509_v48 = vmul.f32 %v2487_v15, %v7928_v57  ;;  %v2497_v32 = vmul.f32 %v4593_v16, %v2496_v61  ;;  %v11325_v57 = vld [vmem:[#allocation41_spill] sm:$0xff]  ;;  %v8238_v61 = vld [vmem:[#allocation10 + $0xe0] sm:$0xff] }
 0x6b7   :  { %v11331_v5 = vld [vmem:[#allocation65_spill] sm:$0xff] }
 0x6b8   :  { %v8169_v24 = vadd.f32 %v2510_v18, %v2509_v48  ;;  %v2498_v14 = vadd.f32 %v4593_v16, %v2497_v32  ;;  %v8226_v35 = vld [vmem:[#allocation10 + $0x128] sm:$0xff]  ;;  %v8246_v48 = vld [vmem:[#allocation10 + $0xc0] sm:$0xff] }
 0x6b9   :  { %v11332_v49 = vld [vmem:[#allocation69_spill] sm:$0xff] }
 0x6ba   :  { %4596 = vtanh.f32 %v8169_v24  ;;  %v2502_v42 = vsel %vm2501_vm2, %v4593_v16, %v2498_v14  ;;  %v11330_v16 = vld [vmem:[#allocation61_spill] sm:$0xff]  ;;  %v11335_v14 = vld [vmem:[#allocation83_spill] sm:$0xff] }
 0x6bb   :  { %v2507_v17 = vsel %vm2504_vm10, %v2506_v30, %v2502_v42  ;;  %v8234_v38 = vld [vmem:[#allocation10 + $0x108] sm:$0xff]  ;;  %v11336_v42 = vld [vmem:[#allocation87_spill] sm:$0xff]  ;;  %v8262_v30 = vld [vmem:[#allocation10 + $0x80] sm:$0xff] }
 0x6bc   :  { %v11333_v53 = vld [vmem:[#allocation73_spill] sm:$0xff] }
 0x6bd   :  { %v8242_v15 = vld [vmem:[#allocation10 + $0xe8] sm:$0xff] }
 0x6be   :  { %v11334_v18 = vld [vmem:[#allocation77_spill] sm:$0xff] }
 0x6bf   :  { %v8250_v32 = vld [vmem:[#allocation10 + $0xc8] sm:$0xff] }
 0x6c0   :  { %v4597_v11 = vpop.eup %4596 }
 0x6c1   :  { %v2513_v46 = vmul.f32 %v4597_v11, %v2507_v17  ;;  %v8266_v11 = vld [vmem:[#allocation10 + $0x88] sm:$0xff]  ;;  %v11337_v17 = vld [vmem:[#allocation91_spill] sm:$0xff] }
 0x6c3   :  { %2530 = vmatmul.f32.vlgmr.msra.gmra.mxu0 %v2513_v46  ;;  %2597 = vmatmul.f32.vlgmr.msra.gmra.mxu1 %v2513_v46 }
 0x6c4   :  { %2617 = vmatmul.f32.vlgmr.msra.gmra.mxu2 %v2513_v46  ;;  %2637 = vmatmul.f32.vlgmr.msra.gmra.mxu3 %v2513_v46 }
 0x6c5   :  { %2721 = vmatpush.msra.mxu0 %v11325_v57  ;;  %2808 = vmatpush.msra.mxu1 %v8040_v28  ;;  %v8274_v57 = vld [vmem:[#allocation10 + $0x68] sm:$0xff] }
 0x6c6   :  { %2876 = vmatpush.msra.mxu2 %v8174_v47  ;;  %2896 = vmatpush.msra.mxu3 %v8177_v1  ;;  %11338 = vst [vmem:[#allocation42_spill] sm:$0xff] %v8274_v57 }
 0x6c7   :  { %2722 = vmatpush.msra.mxu0 %v11326_v54  ;;  %2809 = vmatpush.msra.mxu1 %v8045_v34  ;;  %v11339_v54 = vld [vmem:[#allocation95_spill] sm:$0xff] }
 0x6c8   :  { %2877 = vmatpush.msra.mxu2 %v8182_v4  ;;  %2897 = vmatpush.msra.mxu3 %v8185_v36 }
 0x6c9   :  { %2723 = vmatpush.msra.mxu0 %v11327_v0  ;;  %2810 = vmatpush.msra.mxu1 %v8051_v10  ;;  %v8278_v0 = vld [vmem:[#allocation10 + $0x40] sm:$0xff] }
 0x6ca   :  { %2878 = vmatpush.msra.mxu2 %v8190_v2  ;;  %2898 = vmatpush.msra.mxu3 %v8193_v3  ;;  %11340 = vst [vmem:[#allocation32_spill] sm:$0xff] %v8278_v0 }
 0x6cb   :  { %2657 = vmatmul.f32.vlgmr.msrb.gmra.mxu0 %v2513_v46  ;;  %2811 = vmatpush.msra.mxu1 %v8058_v29  ;;  %v8270_v46 = vld [vmem:[#allocation10 + $0x60] sm:$0xff] }
 0x6cc   :  { %2724 = vmatpush.msra.mxu0 %v11328_v21  ;;  %2879 = vmatpush.msra.mxu2 %v8198_v7  ;;  %v8282_v21 = vld [vmem:[#allocation10 + $0x48] sm:$0xff] }
 0x6cd   :  { %2812 = vmatpush.msra.mxu1 %v8064_v31  ;;  %2899 = vmatpush.msra.mxu3 %v8202_v20  ;;  %11341 = vst [vmem:[#allocation33_spill] sm:$0xff] %v8282_v21 }
 0x6ce   :  { %2725 = vmatpush.msra.mxu0 %v11329_v8  ;;  %2880 = vmatpush.msra.mxu2 %v8206_v26  ;;  %v11342_v8 = vld [vmem:[#allocation99_spill] sm:$0xff] }
 0x6cf   :  { %2813 = vmatpush.msra.mxu1 %v8070_v33  ;;  %2900 = vmatpush.msra.mxu3 %v8210_v12 }
 0x6d0   :  { %2726 = vmatpush.msra.mxu0 %v11330_v16  ;;  %2881 = vmatpush.msra.mxu2 %v8214_v22  ;;  %v8286_v16 = vld [vmem:[#allocation10 + $0x20] sm:$0xff] }
 0x6d1   :  { %2814 = vmatpush.msra.mxu1 %v8076_v39  ;;  %2901 = vmatpush.msra.mxu3 %v8218_v25  ;;  %11343 = vst [vmem:[#allocation46_spill] sm:$0xff] %v8286_v16 }
 0x6d2   :  { %2727 = vmatpush.msra.mxu0 %v11331_v5  ;;  %2882 = vmatpush.msra.mxu2 %v8222_v45  ;;  %v8290_v5 = vld [vmem:[#allocation10 + $0x28] sm:$0xff] }
 0x6d3   :  { %2815 = vmatpush.msra.mxu1 %v8082_v41  ;;  %2902 = vmatpush.msra.mxu3 %v8226_v35  ;;  %11344 = vst [vmem:[#allocation36_spill] sm:$0xff] %v8290_v5 }
 0x6d4   :  { %2728 = vmatpush.msra.mxu0 %v11332_v49  ;;  %2883 = vmatpush.msra.mxu2 %v8230_v59  ;;  %v11345_v49 = vld [vmem:[#allocation106_spill] sm:$0xff] }
 0x6d5   :  { %2816 = vmatpush.msra.mxu1 %v8088_v44  ;;  %2903 = vmatpush.msra.mxu3 %v8234_v38 }
 0x6d6   :  { %2729 = vmatpush.msra.mxu0 %v11333_v53  ;;  %2884 = vmatpush.msra.mxu2 %v8238_v61  ;;  %v8294_v53 = vld [vmem:[#allocation10] sm:$0xff] }
 0x6d7   :  { %2817 = vmatpush.msra.mxu1 %v8094_v43  ;;  %2904 = vmatpush.msra.mxu3 %v8242_v15  ;;  %11346 = vst [vmem:[#allocation37_spill] sm:$0xff] %v8294_v53 }
 0x6d8   :  { %2730 = vmatpush.msra.mxu0 %v11334_v18  ;;  %2885 = vmatpush.msra.mxu2 %v8246_v48  ;;  %v8297_v18 = vld [vmem:[#allocation10 + $0x1f0] sm:$0xff] }
 0x6d9   :  { %2818 = vmatpush.msra.mxu1 %v8100_v63  ;;  %2905 = vmatpush.msra.mxu3 %v8250_v32  ;;  %11347 = vst [vmem:[#allocation50_spill] sm:$0xff] %v8297_v18 }
 0x6da   :  { %2731 = vmatpush.msra.mxu0 %v11335_v14  ;;  %2886 = vmatpush.msra.mxu2 %v8254_v60  ;;  %v8300_v14 = vld [vmem:[#allocation10 + $0x8] sm:$0xff] }
 0x6db   :  { %2819 = vmatpush.msra.mxu1 %v8106_v62  ;;  %2906 = vmatpush.msra.mxu3 %v8258_v19  ;;  %11348 = vst [vmem:[#allocation39_spill] sm:$0xff] %v8300_v14 }
 0x6dc   :  { %2732 = vmatpush.msra.mxu0 %v11336_v42  ;;  %2887 = vmatpush.msra.mxu2 %v8262_v30  ;;  %v8303_v42 = vld [vmem:[#allocation10 + $0x1d0] sm:$0xff] }
 0x6dd   :  { %2820 = vmatpush.msra.mxu1 %v8112_v56  ;;  %2907 = vmatpush.msra.mxu3 %v8266_v11  ;;  %11349 = vst [vmem:[#allocation40_spill] sm:$0xff] %v8303_v42 }
 0x6de   :  { %2733 = vmatpush.msra.mxu0 %v11337_v17  ;;  %2888 = vmatpush.msra.mxu2 %v8270_v46  ;;  %v8306_v17 = vld [vmem:[#allocation10 + $0x1b0] sm:$0xff] }
 0x6df   :  { %2821 = vmatpush.msra.mxu1 %v8118_v51  ;;  %2908 = vmatpush.msra.mxu3 %v8274_v57  ;;  %11350 = vst [vmem:[#allocation54_spill] sm:$0xff] %v8306_v17 }
 0x6e0   :  { %2734 = vmatpush.msra.mxu0 %v11339_v54  ;;  %2889 = vmatpush.msra.mxu2 %v8278_v0  ;;  %v8309_v54 = vld [vmem:[#allocation10 + $0x190] sm:$0xff] }
 0x6e1   :  { %2822 = vmatpush.msra.mxu1 %v8124_v55  ;;  %2909 = vmatpush.msra.mxu3 %v8282_v21  ;;  %11351 = vst [vmem:[#allocation43_spill] sm:$0xff] %v8309_v54 }
 0x6e2   :  { %2735 = vmatpush.msra.mxu0 %v11342_v8  ;;  %2890 = vmatpush.msra.mxu2 %v8286_v16  ;;  %v8312_v8 = vld [vmem:[#allocation10 + $0x170] sm:$0xff]  ;;  %v2560_v16 = vstv %s4360_s2 }
 0x6e3   :  { %2823 = vmatpush.msra.mxu1 %v8130_v50  ;;  %2910 = vmatpush.msra.mxu3 %v8290_v5  ;;  %11352 = vst [vmem:[#allocation44_spill] sm:$0xff] %v8312_v8  ;;  %v2551_v5 = vstv %s4357_s15  ;;  %v2557_v50 = vstv %s4359_s17  ;;  %s4437_s17 = sld [smem:[#allocation4 + $0x307]] }
 0x6e4   :  { %2736 = vmatpush.msra.mxu0 %v11345_v49  ;;  %2891 = vmatpush.msra.mxu2 %v8294_v53  ;;  %v8315_v49 = vld [vmem:[#allocation10 + $0x150] sm:$0xff] }
 0x6e5   :  { %2911 = vmatpush.msra.mxu3 %v8300_v14  ;;  %11353 = vst [vmem:[#allocation58_spill] sm:$0xff] %v8315_v49  ;;  %v8318_v14 = vld [vmem:[#allocation10 + $0x130] sm:$0xff] }
 0x6e6   :  { %2916 = vmatpush.msrb.mxu0 %v8297_v18  ;;  %11354 = vst [vmem:[#allocation47_spill] sm:$0xff] %v8318_v14  ;;  %v2545_v18 = vstv %s4355_s13  ;;  %s4407_s13 = sld [smem:[#allocation4 + $0x207]] }
 0x6e8   :  { %2917 = vmatpush.msrb.mxu0 %v8303_v42  ;;  %v8321_v42 = vld [vmem:[#allocation10 + $0x110] sm:$0xff] }
 0x6e9   :  { %11355 = vst [vmem:[#allocation48_spill] sm:$0xff] %v8321_v42 }
 0x6ea   :  { %2918 = vmatpush.msrb.mxu0 %v8306_v17  ;;  %v8324_v17 = vld [vmem:[#allocation10 + $0xf0] sm:$0xff] }
 0x6eb   :  { %11356 = vst [vmem:[#allocation62_spill] sm:$0xff] %v8324_v17 }
 0x6ec   :  { %2919 = vmatpush.msrb.mxu0 %v8309_v54  ;;  %v8327_v54 = vld [vmem:[#allocation10 + $0xd0] sm:$0xff] }
 0x6ed   :  { %11357 = vst [vmem:[#allocation51_spill] sm:$0xff] %v8327_v54 }
 0x6ee   :  { %2920 = vmatpush.msrb.mxu0 %v8312_v8  ;;  %v8330_v8 = vld [vmem:[#allocation10 + $0xb0] sm:$0xff] }
 0x6ef   :  { %11358 = vst [vmem:[#allocation52_spill] sm:$0xff] %v8330_v8 }
 0x6f0   :  { %2921 = vmatpush.msrb.mxu0 %v8315_v49  ;;  %v8333_v49 = vld [vmem:[#allocation10 + $0x90] sm:$0xff] }
 0x6f1   :  { %11359 = vst [vmem:[#allocation66_spill] sm:$0xff] %v8333_v49 }
 0x6f2   :  { %2922 = vmatpush.msrb.mxu0 %v8318_v14  ;;  %v8336_v14 = vld [vmem:[#allocation10 + $0x70] sm:$0xff] }
 0x6f3   :  { %11360 = vst [vmem:[#allocation55_spill] sm:$0xff] %v8336_v14 }
 0x6f4   :  { %2923 = vmatpush.msrb.mxu0 %v8321_v42  ;;  %v8339_v42 = vld [vmem:[#allocation10 + $0x50] sm:$0xff] }
 0x6f5   :  { %11361 = vst [vmem:[#allocation56_spill] sm:$0xff] %v8339_v42 }
 0x6f6   :  { %2924 = vmatpush.msrb.mxu0 %v8324_v17  ;;  %v8342_v17 = vld [vmem:[#allocation10 + $0x30] sm:$0xff] }
 0x6f7   :  { %11362 = vst [vmem:[#allocation70_spill] sm:$0xff] %v8342_v17 }
 0x6f8   :  { %2925 = vmatpush.msrb.mxu0 %v8327_v54  ;;  %v8345_v54 = vld [vmem:[#allocation10 + $0x10] sm:$0xff] }
 0x6f9   :  { %11363 = vst [vmem:[#allocation59_spill] sm:$0xff] %v8345_v54 }
 0x6fa   :  { %2926 = vmatpush.msrb.mxu0 %v8330_v8 }
 0x6fc   :  { %2927 = vmatpush.msrb.mxu0 %v8333_v49  ;;  %v8351_v49 = vld [vmem:[%s9696_s10] ss:$0 sm:$0xff] }
 0x6fd   :  { %11364 = vst [vmem:[#allocation60_spill] sm:$0xff] %v8351_v49 }
 0x6fe   :  { %2928 = vmatpush.msrb.mxu0 %v8336_v14 }
 0x700   :  { %2929 = vmatpush.msrb.mxu0 %v8339_v42  ;;  %v8358_v42 = vcvt.s32.f32 %v7931_v13 }
 0x702   :  { %2930 = vmatpush.msrb.mxu0 %v8342_v17  ;;  %11365 = vst [vmem:[#allocation74_spill] sm:$0xff] %v8358_v42 }
 0x704   :  { %2931 = vmatpush.msrb.mxu0 %v8345_v54 }
 0x740   :  { %v2531_v8 = vpop.f32.mrf.mxu0 }
 0x741   :  { %v2532_v14 = vadd.f32 %v8351_v49, %v2531_v8  ;;  %v2546_v8 = vsel %vm2242_vm4, %v2545_v18, 0  ;;  %v2548_v49 = vstv %s4356_s14  ;;  %s3458_s14 = scalar_select %p3457_p4, 1, 0 }
 0x742   :  { %v2549_v53 = vsel %vm2246_vm5, %v2548_v49, %v2546_v8  ;;  %v2563_v8 = vstv %s4361_s4  ;;  %s4386_s4 = sld [smem:[#allocation4 + $0x181]] }
 0x743   :  { %2534 = vst [vmem:[%s9697_s11] sm:$0xff] %v2532_v14  ;;  %2535 = vmax.xlane.f32.xlu0 %v2532_v14  ;;  %s3459_s15 = scvt.s32.f32 %s3458_s14  ;;  %s4435_s14 = sld [smem:[#allocation4 + $0x305]] }
 0x747   :  { %v2638_v40 = vpop.f32.mrf.mxu3 }
 0x7b6   :  { %v2536_v17 = vpop.xlane.xlu0 %2535 }
 0x7b7   :  { %vm2537_vm11 = vcmp.ge.f32.partialorder %v2532_v14, %v2536_v17  ;;  %v2552_v14 = vsel %vm2250_vm6, %v2551_v5, %v2549_v53  ;;  %v2554_v17 = vstv %s4358_s16  ;;  %v2566_v53 = vstv %s4362_s19  ;;  %s4387_s19 = sld [smem:[#allocation4 + $0x182]] }
 0x7b8   :  { %v2538_v54 = vsel %vm2537_vm11, %v8358_v42, 128.0  ;;  %s3462_s16 = ssub.f32 1.0, %s3459_s15 }
 0x7b9   :  { %2539 = vmin.xlane.f32.xlu0 %v2538_v54  ;;  %v2555_v54 = vsel %vm2254_vm7, %v2554_v17, %v2552_v14  ;;  %v2575_v14 = vstv %s2574_s21  ;;  %v2578_v17 = vstv %s2577_s22  ;;  %s4389_s21 = sld [smem:[#allocation4 + $0x184]] }
 0x7ba   :  { %v2558_v18 = vsel %vm2258_vm8, %v2557_v50, %v2555_v54  ;;  %s4390_s22 = sld [smem:[#allocation4 + $0x185]] }
 0x7bb   :  { %v2561_v49 = vsel %vm2262_vm9, %v2560_v16, %v2558_v18 }
 0x7bc   :  { %v2564_v5 = vsel %vm2266_vm14, %v2563_v8, %v2561_v49  ;;  %v8385_v8 = vld [vmem:[#allocation9 + $0x1e8] sm:$0xff] }
 0x7bd   :  { %v2567_v21 = vsel %vm2270_vm3, %v2566_v53, %v2564_v5  ;;  %11367 = vst [vmem:[#allocation64_spill] sm:$0xff] %v8385_v8  ;;  %v8388_v5 = vld [vmem:[#allocation9 + $0x1f0] sm:$0xff]  ;;  %v8395_v53 = vld [vmem:[#allocation9 + $0x1c8] sm:$0xff] }
 0x7be   :  { %vm2568_vm12 = vcmp.eq.s32.totalorder %v7931_v13, %v2567_v21  ;;  %v8382_v21 = vld [vmem:[#allocation9 + $0x1e0] sm:$0xff]  ;;  %11368 = vst [vmem:[#allocation78_spill] sm:$0xff] %v8388_v5 }
 0x7bf   :  { %v4363_v50 = vsel %vm2568_vm12, 1.0, %v11243_v27  ;;  %11366 = vst [vmem:[#allocation63_spill] sm:$0xff] %v8382_v21 }
 0x7c0   :  { %v2576_v55 = vmul.f32 %v4363_v50, %v2575_v14  ;;  %11370 = vst [vmem:[#allocation68_spill] sm:$0xff] %v8395_v53  ;;  %v8401_v50 = vld [vmem:[#allocation10 + $0x1b8] sm:$0xff]  ;;  %v8404_v14 = vld [vmem:[#allocation9 + $0x1a0] sm:$0xff] }
 0x7c1   :  { %11372 = vst [vmem:[#allocation71_spill] sm:$0xff] %v8401_v50 }
 0x7c2   :  { %11373 = vst [vmem:[#allocation72_spill] sm:$0xff] %v8404_v14 }
 0x82c   :  { %v2540_v54 = vpop.xlane.xlu0 %2539 }
 0x82d   :  { %vm2541_vm13 = vcmp.eq.f32.partialorder %v8358_v42, %v2540_v54  ;;  %v8413_v54 = vld [vmem:[#allocation10 + $0x198] sm:$0xff] }
 0x82e   :  { %v4354_v16 = vsel %vm2541_vm13, 1.0, %v11243_v27  ;;  %11376 = vst [vmem:[#allocation76_spill] sm:$0xff] %v8413_v54 }
 0x82f   :  { %v2579_v18 = vmul.f32 %v4354_v16, %v2578_v17  ;;  %v8410_v17 = vld [vmem:[#allocation9 + $0x1b0] sm:$0xff]  ;;  %v8416_v16 = vld [vmem:[#allocation9 + $0x180] sm:$0xff] }
 0x830   :  { %11375 = vst [vmem:[#allocation75_spill] sm:$0xff] %v8410_v17 }
 0x831   :  { %v2580_v49 = vadd.f32 %v2579_v18, %v2576_v55  ;;  %v8392_v55 = vld [vmem:[#allocation9 + $0x1c0] sm:$0xff]  ;;  %11377 = vst [vmem:[#allocation90_spill] sm:$0xff] %v8416_v16  ;;  %v8419_v18 = vld [vmem:[#allocation9 + $0x188] sm:$0xff] }
 0x832   :  { %11369 = vst [vmem:[#allocation67_spill] sm:$0xff] %v8392_v55 }
 0x833   :  { %2677 = vmatmul.f32.vlgmr.msrb.gmra.mxu1 %v2580_v49  ;;  %2697 = vmatmul.f32.vlgmr.msrb.gmra.mxu2 %v2580_v49  ;;  %11378 = vst [vmem:[#allocation80_spill] sm:$0xff] %v8419_v18 }
 0x834   :  { %2717 = vmatmul.f32.vlgmr.msrb.gmra.mxu3 %v2580_v49  ;;  %2737 = vmatmul.f32.vlgmr.msra.gmra.mxu0 %v2580_v49  ;;  %v8422_v49 = vld [vmem:[#allocation9 + $0x190] sm:$0xff] }
 0x835   :  { %2936 = vmatpush.msrb.mxu1 %v8133_v52  ;;  %2956 = vmatpush.msrb.mxu2 %v8382_v21  ;;  %v8398_v52 = vld [vmem:[#allocation9 + $0x1d0] sm:$0xff]  ;;  %11379 = vst [vmem:[#allocation94_spill] sm:$0xff] %v8422_v49 }
 0x836   :  { %2976 = vmatpush.msrb.mxu3 %v8385_v8  ;;  %2996 = vmatpush.msra.mxu0 %v8388_v5  ;;  %11371 = vst [vmem:[#allocation82_spill] sm:$0xff] %v8398_v52 }
 0x837   :  { %2937 = vmatpush.msrb.mxu1 %v8136_v58  ;;  %2957 = vmatpush.msrb.mxu2 %v8392_v55  ;;  %v8407_v58 = vld [vmem:[#allocation9 + $0x1a8] sm:$0xff] }
 0x838   :  { %2977 = vmatpush.msrb.mxu3 %v8395_v53  ;;  %2997 = vmatpush.msra.mxu0 %v8398_v52  ;;  %11374 = vst [vmem:[#allocation86_spill] sm:$0xff] %v8407_v58 }
 0x839   :  { %2938 = vmatpush.msrb.mxu1 %v8401_v50  ;;  %2958 = vmatpush.msrb.mxu2 %v8404_v14  ;;  %v2658_v14 = vpop.f32.mrf.mxu0  ;;  %v2618_v50 = vpop.f32.mrf.mxu2 }
 0x83a   :  { %2978 = vmatpush.msrb.mxu3 %v8407_v58  ;;  %2998 = vmatpush.msra.mxu0 %v8410_v17  ;;  %v8425_v58 = vld [vmem:[#allocation10 + $0x178] sm:$0xff]  ;;  %v8428_v17 = vld [vmem:[#allocation9 + $0x160] sm:$0xff] }
 0x83b   :  { %2939 = vmatpush.msrb.mxu1 %v8413_v54  ;;  %2959 = vmatpush.msrb.mxu2 %v8416_v16  ;;  %11380 = vst [vmem:[#allocation81_spill] sm:$0xff] %v8425_v58  ;;  %v8431_v54 = vld [vmem:[#allocation9 + $0x168] sm:$0xff]  ;;  %v8434_v16 = vld [vmem:[#allocation9 + $0x170] sm:$0xff] }
 0x83c   :  { %2979 = vmatpush.msrb.mxu3 %v8419_v18  ;;  %2999 = vmatpush.msra.mxu0 %v8422_v49  ;;  %11381 = vst [vmem:[#allocation84_spill] sm:$0xff] %v8428_v17  ;;  %v8437_v18 = vld [vmem:[#allocation10 + $0x158] sm:$0xff]  ;;  %v8440_v49 = vld [vmem:[#allocation9 + $0x140] sm:$0xff] }
 0x83d   :  { %2940 = vmatpush.msrb.mxu1 %v8425_v58  ;;  %2960 = vmatpush.msrb.mxu2 %v8428_v17  ;;  %11382 = vst [vmem:[#allocation98_spill] sm:$0xff] %v8431_v54  ;;  %v8443_v58 = vld [vmem:[#allocation9 + $0x148] sm:$0xff]  ;;  %v8446_v17 = vld [vmem:[#allocation9 + $0x150] sm:$0xff] }
 0x83e   :  { %2980 = vmatpush.msrb.mxu3 %v8431_v54  ;;  %11383 = vst [vmem:[#allocation85_spill] sm:$0xff] %v8434_v16  ;;  %3000 = vmatpush.msra.mxu0 %v8434_v16  ;;  %v8449_v54 = vld [vmem:[#allocation10 + $0x138] sm:$0xff]  ;;  %v8452_v16 = vld [vmem:[#allocation9 + $0x120] sm:$0xff] }
 0x83f   :  { %11384 = vst [vmem:[#allocation88_spill] sm:$0xff] %v8437_v18  ;;  %2941 = vmatpush.msrb.mxu1 %v8437_v18  ;;  %2961 = vmatpush.msrb.mxu2 %v8440_v49  ;;  %v8455_v18 = vld [vmem:[#allocation9 + $0x128] sm:$0xff] }
 0x840   :  { %11385 = vst [vmem:[#allocation102_spill] sm:$0xff] %v8440_v49  ;;  %2981 = vmatpush.msrb.mxu3 %v8443_v58  ;;  %3001 = vmatpush.msra.mxu0 %v8446_v17  ;;  %v8458_v49 = vld [vmem:[#allocation9 + $0x130] sm:$0xff] }
 0x841   :  { %11386 = vst [vmem:[#allocation89_spill] sm:$0xff] %v8443_v58  ;;  %2942 = vmatpush.msrb.mxu1 %v8449_v54  ;;  %2962 = vmatpush.msrb.mxu2 %v8452_v16  ;;  %v8461_v58 = vld [vmem:[#allocation10 + $0x118] sm:$0xff] }
 0x842   :  { %11387 = vst [vmem:[#allocation92_spill] sm:$0xff] %v8446_v17  ;;  %2982 = vmatpush.msrb.mxu3 %v8455_v18  ;;  %3002 = vmatpush.msra.mxu0 %v8458_v49  ;;  %v8464_v17 = vld [vmem:[#allocation9 + $0x100] sm:$0xff] }
 0x843   :  { %11388 = vst [vmem:[#allocation103_spill] sm:$0xff] %v8449_v54  ;;  %2943 = vmatpush.msrb.mxu1 %v8461_v58  ;;  %2963 = vmatpush.msrb.mxu2 %v8464_v17  ;;  %v8467_v54 = vld [vmem:[#allocation9 + $0x108] sm:$0xff] }
 0x844   :  { %11389 = vst [vmem:[#allocation93_spill] sm:$0xff] %v8452_v16  ;;  %2983 = vmatpush.msrb.mxu3 %v8467_v54  ;;  %v8470_v16 = vld [vmem:[#allocation9 + $0x110] sm:$0xff] }
 0x845   :  { %11390 = vst [vmem:[#allocation96_spill] sm:$0xff] %v8455_v18  ;;  %3003 = vmatpush.msra.mxu0 %v8470_v16  ;;  %v8473_v18 = vld [vmem:[#allocation10 + $0xf8] sm:$0xff] }
 0x846   :  { %11391 = vst [vmem:[#allocation104_spill] sm:$0xff] %v8458_v49  ;;  %2944 = vmatpush.msrb.mxu1 %v8473_v18  ;;  %v8476_v49 = vld [vmem:[#allocation9 + $0xe0] sm:$0xff] }
 0x847   :  { %11392 = vst [vmem:[#allocation97_spill] sm:$0xff] %v8461_v58  ;;  %2964 = vmatpush.msrb.mxu2 %v8476_v49  ;;  %v8479_v58 = vld [vmem:[#allocation9 + $0xe8] sm:$0xff] }
 0x848   :  { %11393 = vst [vmem:[#allocation100_spill] sm:$0xff] %v8464_v17  ;;  %2984 = vmatpush.msrb.mxu3 %v8479_v58  ;;  %v8482_v17 = vld [vmem:[#allocation9 + $0xf0] sm:$0xff] }
 0x849   :  { %11394 = vst [vmem:[#allocation105_spill] sm:$0xff] %v8467_v54  ;;  %3004 = vmatpush.msra.mxu0 %v8482_v17  ;;  %v8485_v54 = vld [vmem:[#allocation10 + $0xd8] sm:$0xff] }
 0x84a   :  { %11395 = vst [vmem:[#allocation101_spill] sm:$0xff] %v8470_v16  ;;  %2945 = vmatpush.msrb.mxu1 %v8485_v54  ;;  %v8488_v16 = vld [vmem:[#allocation9 + $0xc0] sm:$0xff] }
 0x84b   :  { %11396 = vst [vmem:[#allocation23_spill] sm:$0xff] %v8473_v18  ;;  %2965 = vmatpush.msrb.mxu2 %v8488_v16  ;;  %v8491_v18 = vld [vmem:[#allocation9 + $0xc8] sm:$0xff] }
 0x84c   :  { %11397 = vst [vmem:[#allocation16_spill] sm:$0xff] %v8476_v49  ;;  %2985 = vmatpush.msrb.mxu3 %v8491_v18  ;;  %v8494_v49 = vld [vmem:[#allocation9 + $0xd0] sm:$0xff] }
 0x84d   :  { %11398 = vst [vmem:[#allocation17_spill] sm:$0xff] %v8479_v58  ;;  %3005 = vmatpush.msra.mxu0 %v8494_v49  ;;  %v8497_v58 = vld [vmem:[#allocation10 + $0xb8] sm:$0xff] }
 0x84e   :  { %11399 = vst [vmem:[#allocation18_spill] sm:$0xff] %v8482_v17  ;;  %2946 = vmatpush.msrb.mxu1 %v8497_v58  ;;  %v8500_v17 = vld [vmem:[#allocation9 + $0xa0] sm:$0xff] }
 0x84f   :  { %11400 = vst [vmem:[#allocation27_spill] sm:$0xff] %v8485_v54  ;;  %2966 = vmatpush.msrb.mxu2 %v8500_v17  ;;  %v8503_v54 = vld [vmem:[#allocation9 + $0xa8] sm:$0xff] }
 0x850   :  { %11401 = vst [vmem:[#allocation19_spill] sm:$0xff] %v8488_v16  ;;  %2986 = vmatpush.msrb.mxu3 %v8503_v54  ;;  %v8506_v16 = vld [vmem:[#allocation9 + $0xb0] sm:$0xff] }
 0x851   :  { %11402 = vst [vmem:[#allocation20_spill] sm:$0xff] %v8491_v18  ;;  %3006 = vmatpush.msra.mxu0 %v8506_v16  ;;  %v8509_v18 = vld [vmem:[#allocation10 + $0x98] sm:$0xff] }
 0x852   :  { %11403 = vst [vmem:[#allocation21_spill] sm:$0xff] %v8494_v49  ;;  %2947 = vmatpush.msrb.mxu1 %v8509_v18  ;;  %v8512_v49 = vld [vmem:[#allocation9 + $0x80] sm:$0xff] }
 0x853   :  { %11404 = vst [vmem:[#allocation31_spill] sm:$0xff] %v8497_v58  ;;  %2967 = vmatpush.msrb.mxu2 %v8512_v49  ;;  %v8515_v58 = vld [vmem:[#allocation9 + $0x88] sm:$0xff] }
 0x854   :  { %11405 = vst [vmem:[#allocation22_spill] sm:$0xff] %v8500_v17  ;;  %2987 = vmatpush.msrb.mxu3 %v8515_v58  ;;  %v8518_v17 = vld [vmem:[#allocation9 + $0x90] sm:$0xff] }
 0x855   :  { %11406 = vst [vmem:[#allocation26_spill] sm:$0xff] %v8503_v54  ;;  %3007 = vmatpush.msra.mxu0 %v8518_v17  ;;  %v8521_v54 = vld [vmem:[#allocation10 + $0x78] sm:$0xff] }
 0x856   :  { %11407 = vst [vmem:[#allocation30_spill] sm:$0xff] %v8506_v16  ;;  %2948 = vmatpush.msrb.mxu1 %v8521_v54  ;;  %v8524_v16 = vld [vmem:[#allocation9 + $0x60] sm:$0xff] }
 0x857   :  { %11408 = vst [vmem:[#allocation34_spill] sm:$0xff] %v8509_v18  ;;  %2968 = vmatpush.msrb.mxu2 %v8524_v16  ;;  %v8527_v18 = vld [vmem:[#allocation9 + $0x68] sm:$0xff] }
 0x858   :  { %11409 = vst [vmem:[#allocation38_spill] sm:$0xff] %v8512_v49  ;;  %2988 = vmatpush.msrb.mxu3 %v8527_v18  ;;  %v8530_v49 = vld [vmem:[#allocation9 + $0x70] sm:$0xff] }
 0x859   :  { %11410 = vst [vmem:[#allocation41_spill] sm:$0xff] %v8515_v58  ;;  %3008 = vmatpush.msra.mxu0 %v8530_v49  ;;  %v8533_v58 = vld [vmem:[#allocation10 + $0x58] sm:$0xff] }
 0x85a   :  { %11411 = vst [vmem:[#allocation45_spill] sm:$0xff] %v8518_v17  ;;  %2949 = vmatpush.msrb.mxu1 %v8533_v58  ;;  %v8536_v17 = vld [vmem:[#allocation9 + $0x40] sm:$0xff] }
 0x85b   :  { %11412 = vst [vmem:[#allocation49_spill] sm:$0xff] %v8521_v54  ;;  %2969 = vmatpush.msrb.mxu2 %v8536_v17  ;;  %v8539_v54 = vld [vmem:[#allocation9 + $0x48] sm:$0xff] }
 0x85c   :  { %11413 = vst [vmem:[#allocation53_spill] sm:$0xff] %v8524_v16  ;;  %2989 = vmatpush.msrb.mxu3 %v8539_v54  ;;  %v8542_v16 = vld [vmem:[#allocation9 + $0x50] sm:$0xff] }
 0x85d   :  { %11414 = vst [vmem:[#allocation57_spill] sm:$0xff] %v8527_v18  ;;  %3009 = vmatpush.msra.mxu0 %v8542_v16  ;;  %v8545_v18 = vld [vmem:[#allocation10 + $0x38] sm:$0xff] }
 0x85e   :  { %11415 = vst [vmem:[#allocation61_spill] sm:$0xff] %v8530_v49  ;;  %2950 = vmatpush.msrb.mxu1 %v8545_v18  ;;  %v8548_v49 = vld [vmem:[#allocation9 + $0x20] sm:$0xff] }
 0x85f   :  { %11416 = vst [vmem:[#allocation65_spill] sm:$0xff] %v8533_v58  ;;  %2970 = vmatpush.msrb.mxu2 %v8548_v49  ;;  %v8551_v58 = vld [vmem:[#allocation9 + $0x28] sm:$0xff] }
 0x860   :  { %11417 = vst [vmem:[#allocation69_spill] sm:$0xff] %v8536_v17  ;;  %2990 = vmatpush.msrb.mxu3 %v8551_v58  ;;  %v8554_v17 = vld [vmem:[#allocation9 + $0x30] sm:$0xff] }
 0x861   :  { %11418 = vst [vmem:[#allocation73_spill] sm:$0xff] %v8539_v54  ;;  %3010 = vmatpush.msra.mxu0 %v8554_v17  ;;  %v8557_v54 = vld [vmem:[#allocation10 + $0x18] sm:$0xff] }
 0x862   :  { %11419 = vst [vmem:[#allocation77_spill] sm:$0xff] %v8542_v16  ;;  %2951 = vmatpush.msrb.mxu1 %v8557_v54  ;;  %v8560_v16 = vld [vmem:[#allocation9] sm:$0xff] }
 0x863   :  { %11420 = vst [vmem:[#allocation83_spill] sm:$0xff] %v8545_v18  ;;  %2971 = vmatpush.msrb.mxu2 %v8560_v16  ;;  %v8563_v18 = vld [vmem:[#allocation9 + $0x8] sm:$0xff] }
 0x864   :  { %11421 = vst [vmem:[#allocation87_spill] sm:$0xff] %v8548_v49  ;;  %2991 = vmatpush.msrb.mxu3 %v8563_v18  ;;  %v8566_v49 = vld [vmem:[#allocation9 + $0x10] sm:$0xff] }
 0x865   :  { %11422 = vst [vmem:[#allocation91_spill] sm:$0xff] %v8551_v58  ;;  %3011 = vmatpush.msra.mxu0 %v8566_v49  ;;  %v2598_v58 = vpop.f32.mrf.mxu1 }
 0x866   :  { %11423 = vst [vmem:[#allocation95_spill] sm:$0xff] %v8554_v17 }
 0x867   :  { %11424 = vst [vmem:[#allocation99_spill] sm:$0xff] %v8557_v54 }
 0x868   :  { %11425 = vst [vmem:[#allocation106_spill] sm:$0xff] %v8560_v16 }
 0x869   :  { %11426 = vst [vmem:[#allocation110_spill] sm:$0xff] %v8563_v18 }
 0x86a   :  { %11427 = vst [vmem:[#allocation111_spill] sm:$0xff] %v8566_v49 }
 0x8b0   :  { %v2678_v17 = vpop.f32.mrf.mxu1 }
 0x8b1   :  { %v2679_v52 = vadd.f32 %v2678_v17, %v2598_v58  ;;  %v2738_v53 = vpop.f32.mrf.mxu0 }
 0x8b2   :  { %v2739_v55 = vadd.f32 %v2738_v53, %v2658_v14 }
 0x8b3   :  { %v2741_v54 = vadd.f32 %v2679_v52, %v8143_v6 }
 0x8b4   :  { %v2744_v5 = vadd.f32 %v2739_v55, %v8153_v37 }
 0x8b5   :  { %v4365_v16 = vmul.f32 -1.442695, %v2741_v54 }
 0x8b6   :  { %v4367_v8 = vmul.f32 -1.442695, %v2744_v5  ;;  %v2698_v21 = vpop.f32.mrf.mxu2 }
 0x8b7   :  { %4598 = vpow2.f32 %v4365_v16  ;;  %v2699_v18 = vadd.f32 %v2698_v21, %v2618_v50  ;;  %v2718_v55 = vpop.f32.mrf.mxu3 }
 0x8b8   :  { %4600 = vpow2.f32 %v4367_v8  ;;  %v2719_v54 = vadd.f32 %v2718_v55, %v2638_v40 }
 0x8b9   :  { %v2742_v27 = vadd.f32 %v2699_v18, %v8145_v9 }
 0x8bb   :  { %v4366_v49 = vmul.f32 -1.442695, %v2742_v27  ;;  %v2743_v27 = vadd.f32 %v2719_v54, %v8162_v23 }
 0x8bd   :  { %v4599_v13 = vpop.eup %4598  ;;  %4602 = vpow2.f32 %v4366_v49 }
 0x8be   :  { %v4601_v42 = vpop.eup %4600  ;;  %v2748_v58 = vadd.f32 1.0, %v4599_v13 }
 0x8bf   :  { %v2787_v53 = vadd.f32 1.0, %v4601_v42 }
 0x8c0   :  { %4604 = vrcp.f32 %v2748_v58  ;;  %v2760_v9 = vand.u32 2147483648, %v2748_v58  ;;  %vm2754_vm0 = vweird.f32 %v2748_v58 }
 0x8c1   :  { %4606 = vrcp.f32 %v2787_v53 }
 0x8c3   :  { %v4603_v14 = vpop.eup %4602 }
 0x8c4   :  { %v2767_v52 = vadd.f32 1.0, %v4603_v14  ;;  %v2758_v14 = vand.u32 2147483647, %v2748_v58 }
 0x8c6   :  { %v4605_v17 = vpop.eup %4604  ;;  %4608 = vrcp.f32 %v2767_v52  ;;  %v2779_v6 = vand.u32 2147483648, %v2767_v52  ;;  %v2777_v55 = vand.u32 2147483647, %v2767_v52  ;;  %vm2773_vm10 = vweird.f32 %v2767_v52 }
 0x8c7   :  { %v2750_v5 = vmul.f32 %v4605_v17, %v2748_v58  ;;  %v4607_v8 = vpop.eup %4606  ;;  %vm2755_vm15 = vweird.f32 %v4605_v17  ;;  %4610 = vtanh.f32 %v2743_v27  ;;  %vm2759_vm11 = vcmp.eq.f32.partialorder %v2758_v14, 8.507059e+37 }
 0x8c8   :  { %v2789_v13 = vmul.f32 %v4607_v8, %v2787_v53  ;;  %vm2756_vm1 = vmor %vm2754_vm0, %vm2755_vm15  ;;  %vm2778_vm13 = vcmp.eq.f32.partialorder %v2777_v55, 8.507059e+37  ;;  %vm2794_vm15 = vweird.f32 %v4607_v8  ;;  %vm2793_vm0 = vweird.f32 %v2787_v53 }
 0x8c9   :  { %v2751_v21 = vsub.f32 1.0, %v2750_v5 }
 0x8ca   :  { %v2790_v5 = vsub.f32 1.0, %v2789_v13 }
 0x8cb   :  { %v2752_v50 = vmul.f32 %v4605_v17, %v2751_v21  ;;  %v2761_v21 = vor.u32 1.1754944e-38, %v2760_v9  ;;  %v2797_v9 = vand.u32 2147483647, %v2787_v53 }
 0x8cc   :  { %v4609_v16 = vpop.eup %4608  ;;  %v2791_v57 = vmul.f32 %v4607_v8, %v2790_v5  ;;  %v2840_v5 = vstv %s4370_s6  ;;  %s4392_s6 = sld [smem:[#allocation4 + $0x187]] }
 0x8cd   :  { %v2769_v18 = vmul.f32 %v4609_v16, %v2767_v52  ;;  %v2753_v49 = vadd.f32 %v4605_v17, %v2752_v50  ;;  %vm2774_vm2 = vweird.f32 %v4609_v16  ;;  %v2780_v50 = vor.u32 1.1754944e-38, %v2779_v6 }
 0x8ce   :  { %vm2775_vm12 = vmor %vm2773_vm10, %vm2774_vm2  ;;  %vm2798_vm2 = vcmp.eq.f32.partialorder %v2797_v9, 8.507059e+37  ;;  %v2852_v9 = vstv %s4374_s5  ;;  %s4422_s5 = sld [smem:[#allocation4 + $0x287]] }
 0x8cf   :  { %v2770_v42 = vsub.f32 1.0, %v2769_v18  ;;  %v2757_v40 = vsel %vm2756_vm1, %v4605_v17, %v2753_v49  ;;  %v4611_v18 = vpop.eup %4610  ;;  %v2792_v17 = vadd.f32 %v4607_v8, %v2791_v57  ;;  %v2799_v49 = vand.u32 2147483648, %v2787_v53  ;;  %vm2795_vm1 = vmor %vm2793_vm0, %vm2794_vm15  ;;  %v11453_v57 = vld [vmem:[#allocation59_spill] sm:$0xff]  ;;  %v11454_v53 = vld [vmem:[#allocation60_spill] sm:$0xff] }
 0x8d0   :  { %v2762_v23 = vsel %vm2759_vm11, %v2761_v21, %v2757_v40  ;;  %v11455_v40 = vld [vmem:[#allocation74_spill] sm:$0xff] }
 0x8d1   :  { %v2771_v37 = vmul.f32 %v4609_v16, %v2770_v42  ;;  %v2804_v27 = vmul.f32 %v4611_v18, %v2762_v23  ;;  %v2796_v6 = vsel %vm2795_vm1, %v4607_v8, %v2792_v17  ;;  %v8583_v23 = vld [vmem:[#allocation9 + $0x1d8] sm:$0xff]  ;;  %v2849_v17 = vstv %s4373_s25 }
 0x8d3   :  { %v2772_v54 = vadd.f32 %v4609_v16, %v2771_v37  ;;  %v2800_v37 = vor.u32 1.1754944e-38, %v2799_v49 }
 0x8d5   :  { %v2776_v0 = vsel %vm2775_vm12, %v4609_v16, %v2772_v54  ;;  %v2801_v16 = vsel %vm2798_vm2, %v2800_v37, %v2796_v6  ;;  %v2841_v54 = vsel %vm2242_vm4, %v2840_v5, 0  ;;  %v2855_v37 = vstv %s4375_s26  ;;  %v11476_v5 = vld [vmem:[#allocation85_spill] sm:$0xff] }
 0x8d6   :  { %v2781_v58 = vsel %vm2778_vm13, %v2780_v50, %v2776_v0  ;;  %v2843_v50 = vstv %s4371_s7  ;;  %s3163_s7 = scalar_select %p3162_p3, 1, 0 }
 0x8d7   :  { %v2803_v51 = vmul.f32 %v2781_v58, %v8169_v24  ;;  %v8589_v24 = vld [vmem:[#allocation9 + $0x1b8] sm:$0xff]  ;;  %v2844_v18 = vsel %vm2246_vm5, %v2843_v50, %v2841_v54  ;;  %v2846_v58 = vstv %s4372_s24  ;;  %v11477_v54 = vld [vmem:[#allocation88_spill] sm:$0xff]  ;;  %v11478_v50 = vld [vmem:[#allocation102_spill] sm:$0xff] }
 0x8d8   :  { %s3164_s24 = scvt.s32.f32 %s3163_s7  ;;  %s4420_s7 = sld [smem:[#allocation4 + $0x285]] }
 0x8d9   :  { %v8574_v42 = vadd.f32 %v2804_v27, %v2803_v51  ;;  %v8577_v51 = vld [vmem:[#allocation9 + $0x1f8] sm:$0xff]  ;;  %v2847_v27 = vsel %vm2250_vm6, %v2846_v58, %v2844_v18  ;;  %v11479_v18 = vld [vmem:[#allocation89_spill] sm:$0xff]  ;;  %v11480_v58 = vld [vmem:[#allocation92_spill] sm:$0xff] }
 0x8da   :  { %v2850_v49 = vsel %vm2254_vm7, %v2849_v17, %v2847_v27  ;;  %v11481_v27 = vld [vmem:[#allocation103_spill] sm:$0xff]  ;;  %v11482_v17 = vld [vmem:[#allocation93_spill] sm:$0xff]  ;;  %s3167_s25 = ssub.f32 1.0, %s3164_s24 }
 0x8db   :  { %4612 = vtanh.f32 %v8574_v42  ;;  %v2853_v6 = vsel %vm2258_vm8, %v2852_v9, %v2850_v49  ;;  %v11483_v49 = vld [vmem:[#allocation96_spill] sm:$0xff] }
 0x8dc   :  { %v11484_v9 = vld [vmem:[#allocation104_spill] sm:$0xff] }
 0x8e1   :  { %v4613_v52 = vpop.eup %4612 }
 0x8e2   :  { %v2807_v13 = vmul.f32 %v4613_v52, %v2801_v16  ;;  %v2856_v52 = vsel %vm2262_vm9, %v2855_v37, %v2853_v6  ;;  %v2858_v16 = vstv %s4376_s27  ;;  %v11485_v6 = vld [vmem:[#allocation97_spill] sm:$0xff]  ;;  %v11486_v37 = vld [vmem:[#allocation100_spill] sm:$0xff]  ;;  %s4401_s27 = sld [smem:[#allocation4 + $0x201]] }
 0x8e4   :  { %2824 = vmatmul.f32.vlgmr.msra.gmra.mxu1 %v2807_v13  ;;  %2892 = vmatmul.f32.vlgmr.msra.gmra.mxu2 %v2807_v13 }
 0x8e5   :  { %2912 = vmatmul.f32.vlgmr.msra.gmra.mxu3 %v2807_v13  ;;  %2932 = vmatmul.f32.vlgmr.msrb.gmra.mxu0 %v2807_v13 }
 0x8e6   :  { %3016 = vmatpush.msra.mxu1 %v8577_v51  ;;  %3103 = vmatpush.msra.mxu2 %v8040_v28  ;;  %v8596_v28 = vld [vmem:[#allocation9 + $0x198] sm:$0xff] }
 0x8e7   :  { %3171 = vmatpush.msra.mxu3 %v8174_v47  ;;  %3191 = vmatpush.msrb.mxu0 %v8177_v1  ;;  %v8656_v47 = vld [vmem:[#allocation9 + $0x58] sm:$0xff]  ;;  %v11430_v1 = vld [vmem:[#allocation32_spill] sm:$0xff] }
 0x8e8   :  { %3017 = vmatpush.msra.mxu1 %v8583_v23  ;;  %3104 = vmatpush.msra.mxu2 %v8045_v34  ;;  %v8602_v34 = vld [vmem:[#allocation9 + $0x178] sm:$0xff] }
 0x8e9   :  { %3172 = vmatpush.msra.mxu3 %v8182_v4  ;;  %3192 = vmatpush.msrb.mxu0 %v8185_v36  ;;  %v11431_v4 = vld [vmem:[#allocation109_spill] sm:$0xff]  ;;  %v8662_v36 = vld [vmem:[#allocation9 + $0x38] sm:$0xff] }
 0x8ea   :  { %3018 = vmatpush.msra.mxu1 %v8589_v24  ;;  %3105 = vmatpush.msra.mxu2 %v8051_v10  ;;  %v8608_v10 = vld [vmem:[#allocation9 + $0x158] sm:$0xff] }
 0x8eb   :  { %3173 = vmatpush.msra.mxu3 %v8190_v2  ;;  %3193 = vmatpush.msrb.mxu0 %v8193_v3  ;;  %v11433_v2 = vld [vmem:[#allocation46_spill] sm:$0xff]  ;;  %v11434_v3 = vld [vmem:[#allocation24_spill] sm:$0xff] }
 0x8ec   :  { %2952 = vmatmul.f32.vlgmr.msrb.gmra.mxu1 %v2807_v13  ;;  %3106 = vmatpush.msra.mxu2 %v8058_v29  ;;  %v8614_v29 = vld [vmem:[#allocation9 + $0x138] sm:$0xff]  ;;  %v2859_v13 = vsel %vm2266_vm14, %v2858_v16, %v2856_v52  ;;  %v11487_v52 = vld [vmem:[#allocation105_spill] sm:$0xff] }
 0x8ed   :  { %3019 = vmatpush.msra.mxu1 %v8596_v28  ;;  %3174 = vmatpush.msra.mxu3 %v8198_v7  ;;  %v11435_v7 = vld [vmem:[#allocation36_spill] sm:$0xff]  ;;  %v11488_v16 = vld [vmem:[#allocation101_spill] sm:$0xff] }
 0x8ee   :  { %3107 = vmatpush.msra.mxu2 %v8064_v31  ;;  %3194 = vmatpush.msrb.mxu0 %v8202_v20  ;;  %v8620_v31 = vld [vmem:[#allocation9 + $0x118] sm:$0xff] }
 0x8ef   :  { %3020 = vmatpush.msra.mxu1 %v8602_v34  ;;  %3175 = vmatpush.msra.mxu3 %v8206_v26  ;;  %v8668_v20 = vld [vmem:[#allocation9 + $0x18] sm:$0xff]  ;;  %v11436_v26 = vld [vmem:[#allocation37_spill] sm:$0xff] }
 0x8f0   :  { %3108 = vmatpush.msra.mxu2 %v8070_v33  ;;  %3195 = vmatpush.msrb.mxu0 %v8210_v12  ;;  %v8626_v33 = vld [vmem:[#allocation9 + $0xf8] sm:$0xff]  ;;  %v11437_v12 = vld [vmem:[#allocation50_spill] sm:$0xff] }
 0x8f1   :  { %3021 = vmatpush.msra.mxu1 %v8608_v10  ;;  %3176 = vmatpush.msra.mxu3 %v8214_v22  ;;  %v11438_v22 = vld [vmem:[#allocation39_spill] sm:$0xff] }
 0x8f2   :  { %3109 = vmatpush.msra.mxu2 %v8076_v39  ;;  %3196 = vmatpush.msrb.mxu0 %v8218_v25  ;;  %v8632_v39 = vld [vmem:[#allocation9 + $0xd8] sm:$0xff]  ;;  %v11439_v25 = vld [vmem:[#allocation40_spill] sm:$0xff] }
 0x8f3   :  { %3022 = vmatpush.msra.mxu1 %v8614_v29  ;;  %3177 = vmatpush.msra.mxu3 %v8222_v45  ;;  %v11440_v45 = vld [vmem:[#allocation54_spill] sm:$0xff] }
 0x8f4   :  { %3110 = vmatpush.msra.mxu2 %v8082_v41  ;;  %3197 = vmatpush.msrb.mxu0 %v8226_v35  ;;  %v8638_v41 = vld [vmem:[#allocation9 + $0xb8] sm:$0xff] }
 0x8f5   :  { %3023 = vmatpush.msra.mxu1 %v8620_v31  ;;  %3178 = vmatpush.msra.mxu3 %v8230_v59  ;;  %v11441_v35 = vld [vmem:[#allocation43_spill] sm:$0xff]  ;;  %v11442_v59 = vld [vmem:[#allocation44_spill] sm:$0xff] }
 0x8f6   :  { %3111 = vmatpush.msra.mxu2 %v8088_v44  ;;  %3198 = vmatpush.msrb.mxu0 %v8234_v38  ;;  %v8644_v44 = vld [vmem:[#allocation9 + $0x98] sm:$0xff]  ;;  %v11443_v38 = vld [vmem:[#allocation58_spill] sm:$0xff] }
 0x8f7   :  { %3024 = vmatpush.msra.mxu1 %v8626_v33  ;;  %3179 = vmatpush.msra.mxu3 %v8238_v61  ;;  %v11444_v61 = vld [vmem:[#allocation47_spill] sm:$0xff] }
 0x8f8   :  { %3112 = vmatpush.msra.mxu2 %v8094_v43  ;;  %3199 = vmatpush.msrb.mxu0 %v8242_v15  ;;  %v8650_v43 = vld [vmem:[#allocation9 + $0x78] sm:$0xff]  ;;  %v11445_v15 = vld [vmem:[#allocation48_spill] sm:$0xff] }
 0x8f9   :  { %3025 = vmatpush.msra.mxu1 %v8632_v39  ;;  %3180 = vmatpush.msra.mxu3 %v8246_v48  ;;  %v11446_v48 = vld [vmem:[#allocation62_spill] sm:$0xff] }
 0x8fa   :  { %3113 = vmatpush.msra.mxu2 %v8100_v63  ;;  %3200 = vmatpush.msrb.mxu0 %v8250_v32  ;;  %v11428_v63 = vld [vmem:[#allocation108_spill] sm:$0xff]  ;;  %v11447_v32 = vld [vmem:[#allocation51_spill] sm:$0xff] }
 0x8fb   :  { %3026 = vmatpush.msra.mxu1 %v8638_v41  ;;  %3181 = vmatpush.msra.mxu3 %v8254_v60  ;;  %v11448_v60 = vld [vmem:[#allocation52_spill] sm:$0xff] }
 0x8fc   :  { %3114 = vmatpush.msra.mxu2 %v8106_v62  ;;  %3201 = vmatpush.msrb.mxu0 %v8258_v19  ;;  %v11429_v62 = vld [vmem:[#allocation42_spill] sm:$0xff] }
 0x8fd   :  { %3027 = vmatpush.msra.mxu1 %v8644_v44  ;;  %3182 = vmatpush.msra.mxu3 %v8262_v30  ;;  %v11449_v19 = vld [vmem:[#allocation66_spill] sm:$0xff]  ;;  %v11450_v30 = vld [vmem:[#allocation55_spill] sm:$0xff] }
 0x8fe   :  { %3115 = vmatpush.msra.mxu2 %v8112_v56  ;;  %3202 = vmatpush.msrb.mxu0 %v8266_v11  ;;  %v11432_v56 = vld [vmem:[#allocation33_spill] sm:$0xff]  ;;  %v11451_v11 = vld [vmem:[#allocation56_spill] sm:$0xff] }
 0x8ff   :  { %3028 = vmatpush.msra.mxu1 %v8650_v43  ;;  %3183 = vmatpush.msra.mxu3 %v8270_v46  ;;  %v11452_v46 = vld [vmem:[#allocation70_spill] sm:$0xff] }
 0x900   :  { %3116 = vmatpush.msra.mxu2 %v11428_v63  ;;  %3203 = vmatpush.msrb.mxu0 %v11429_v62  ;;  %v2861_v63 = vstv %s4377_s28  ;;  %s4402_s28 = sld [smem:[#allocation4 + $0x202]] }
 0x901   :  { %3029 = vmatpush.msra.mxu1 %v8656_v47  ;;  %3184 = vmatpush.msra.mxu3 %v11430_v1  ;;  %v2862_v62 = vsel %vm2270_vm3, %v2861_v63, %v2859_v13  ;;  %v11457_v1 = vld [vmem:[#allocation107_spill] sm:$0xff]  ;;  %v11490_v63 = vld [vmem:[#allocation16_spill] sm:$0xff] }
 0x902   :  { %3117 = vmatpush.msra.mxu2 %v11431_v4  ;;  %3204 = vmatpush.msrb.mxu0 %v11432_v56  ;;  %vm2863_vm11 = vcmp.eq.s32.totalorder %v11457_v1, %v2862_v62  ;;  %v11458_v4 = vmov 0.0   ;;  %v11489_v13 = vld [vmem:[#allocation23_spill] sm:$0xff]  ;;  %v11491_v62 = vld [vmem:[#allocation17_spill] sm:$0xff] }
 0x903   :  { %3030 = vmatpush.msra.mxu1 %v8662_v36  ;;  %3185 = vmatpush.msra.mxu3 %v11433_v2  ;;  %v4378_v56 = vsel %vm2863_vm11, 1.0, %v11458_v4  ;;  %v2870_v2 = vstv %s2869_s8  ;;  %s4404_s8 = sld [smem:[#allocation4 + $0x204]] }
 0x904   :  { %3118 = vmatpush.msra.mxu2 %v11434_v3  ;;  %3205 = vmatpush.msrb.mxu0 %v11435_v7  ;;  %v2873_v3 = vstv %s2872_s29  ;;  %s4405_s29 = sld [smem:[#allocation4 + $0x205]] }
 0x905   :  { %3031 = vmatpush.msra.mxu1 %v8668_v20  ;;  %3186 = vmatpush.msra.mxu3 %v11436_v26  ;;  %v2871_v26 = vmul.f32 %v4378_v56, %v2870_v2  ;;  %v11492_v56 = vld [vmem:[#allocation18_spill] sm:$0xff]  ;;  %v11493_v2 = vld [vmem:[#allocation27_spill] sm:$0xff] }
 0x906   :  { %3206 = vmatpush.msrb.mxu0 %v11438_v22 }
 0x907   :  { %3211 = vmatpush.msrb.mxu1 %v11437_v12 }
 0x909   :  { %3212 = vmatpush.msrb.mxu1 %v11439_v25 }
 0x90b   :  { %3213 = vmatpush.msrb.mxu1 %v11440_v45  ;;  %v8714_v45 = vld [vmem:[#allocation10 + $0x1f8] sm:$0xff] }
 0x90d   :  { %3214 = vmatpush.msrb.mxu1 %v11441_v35  ;;  %v11459_v35 = vld [vmem:[#allocation63_spill] sm:$0xff] }
 0x90f   :  { %3215 = vmatpush.msrb.mxu1 %v11442_v59  ;;  %v11460_v59 = vld [vmem:[#allocation64_spill] sm:$0xff] }
 0x911   :  { %3216 = vmatpush.msrb.mxu1 %v11443_v38  ;;  %v11461_v38 = vld [vmem:[#allocation78_spill] sm:$0xff] }
 0x913   :  { %3217 = vmatpush.msrb.mxu1 %v11444_v61  ;;  %v8720_v61 = vld [vmem:[#allocation10 + $0x1d8] sm:$0xff] }
 0x915   :  { %3218 = vmatpush.msrb.mxu1 %v11445_v15  ;;  %v11462_v15 = vld [vmem:[#allocation67_spill] sm:$0xff] }
 0x917   :  { %3219 = vmatpush.msrb.mxu1 %v11446_v48  ;;  %v11463_v48 = vld [vmem:[#allocation68_spill] sm:$0xff] }
 0x919   :  { %3220 = vmatpush.msrb.mxu1 %v11447_v32  ;;  %v11464_v32 = vld [vmem:[#allocation82_spill] sm:$0xff] }
 0x91b   :  { %3221 = vmatpush.msrb.mxu1 %v11448_v60  ;;  %v11465_v60 = vld [vmem:[#allocation71_spill] sm:$0xff] }
 0x91d   :  { %3222 = vmatpush.msrb.mxu1 %v11449_v19  ;;  %v11466_v19 = vld [vmem:[#allocation72_spill] sm:$0xff] }
 0x91f   :  { %3223 = vmatpush.msrb.mxu1 %v11450_v30  ;;  %v11467_v30 = vld [vmem:[#allocation86_spill] sm:$0xff] }
 0x921   :  { %3224 = vmatpush.msrb.mxu1 %v11451_v11  ;;  %v11468_v11 = vld [vmem:[#allocation75_spill] sm:$0xff] }
 0x923   :  { %3225 = vmatpush.msrb.mxu1 %v11452_v46  ;;  %v11469_v46 = vld [vmem:[#allocation76_spill] sm:$0xff] }
 0x925   :  { %3226 = vmatpush.msrb.mxu1 %v11453_v57  ;;  %v11470_v57 = vld [vmem:[#allocation90_spill] sm:$0xff] }
 0x961   :  { %v2825_v0 = vpop.f32.mrf.mxu1 }
 0x962   :  { %v2826_v8 = vadd.f32 %v11454_v53, %v2825_v0  ;;  %v11471_v0 = vld [vmem:[#allocation80_spill] sm:$0xff]  ;;  %v11472_v53 = vld [vmem:[#allocation94_spill] sm:$0xff] }
 0x964   :  { %4368 = vst [vmem:[%s9697_s11 + $0x8] sm:$0xff] %v2826_v8  ;;  %2830 = vmax.xlane.f32.xlu1 %v2826_v8 }
 0x9d7   :  { %v2831_v14 = vpop.xlane.xlu1 %2830 }
 0x9d8   :  { %vm2832_vm10 = vcmp.ge.f32.partialorder %v2826_v8, %v2831_v14  ;;  %v11473_v8 = vld [vmem:[#allocation81_spill] sm:$0xff]  ;;  %v11474_v14 = vld [vmem:[#allocation84_spill] sm:$0xff] }
 0x9d9   :  { %v2833_v55 = vsel %vm2832_vm10, %v11455_v40, 128.0 }
 0x9da   :  { %2834 = vmin.xlane.f32.xlu1 %v2833_v55  ;;  %v11475_v55 = vld [vmem:[#allocation98_spill] sm:$0xff] }
 0xa4d   :  { %v2835_v7 = vpop.xlane.xlu1 %2834 }
 0xa4e   :  { %vm2836_vm12 = vcmp.eq.f32.partialorder %v11455_v40, %v2835_v7  ;;  %v11495_v7 = vld [vmem:[#allocation20_spill] sm:$0xff] }
 0xa4f   :  { %v4369_v12 = vsel %vm2836_vm12, 1.0, %v11458_v4 }
 0xa50   :  { %v2874_v22 = vmul.f32 %v4369_v12, %v2873_v3  ;;  %v11494_v3 = vld [vmem:[#allocation19_spill] sm:$0xff] }
 0xa51   :  { %v11497_v12 = vld [vmem:[#allocation31_spill] sm:$0xff] }
 0xa52   :  { %v2875_v25 = vadd.f32 %v2874_v22, %v2871_v26  ;;  %v11496_v26 = vld [vmem:[#allocation21_spill] sm:$0xff]  ;;  %v11498_v22 = vld [vmem:[#allocation22_spill] sm:$0xff] }
 0xa54   :  { %2972 = vmatmul.f32.vlgmr.msrb.gmra.mxu2 %v2875_v25  ;;  %2992 = vmatmul.f32.vlgmr.msrb.gmra.mxu3 %v2875_v25 }
 0xa55   :  { %3012 = vmatmul.f32.vlgmr.msra.gmra.mxu0 %v2875_v25  ;;  %3032 = vmatmul.f32.vlgmr.msra.gmra.mxu1 %v2875_v25  ;;  %v11499_v25 = vld [vmem:[#allocation26_spill] sm:$0xff] }
 0xa56   :  { %3231 = vmatpush.msrb.mxu2 %v8714_v45  ;;  %3251 = vmatpush.msrb.mxu3 %v11459_v35  ;;  %v11500_v35 = vld [vmem:[#allocation30_spill] sm:$0xff] }
 0xa57   :  { %3271 = vmatpush.msra.mxu0 %v11460_v59  ;;  %3291 = vmatpush.msra.mxu1 %v11461_v38  ;;  %v11501_v59 = vld [vmem:[#allocation34_spill] sm:$0xff] }
 0xa58   :  { %3232 = vmatpush.msrb.mxu2 %v8720_v61  ;;  %3252 = vmatpush.msrb.mxu3 %v11462_v15  ;;  %v11502_v38 = vld [vmem:[#allocation38_spill] sm:$0xff]  ;;  %v11503_v15 = vld [vmem:[#allocation41_spill] sm:$0xff] }
 0xa59   :  { %3272 = vmatpush.msra.mxu0 %v11463_v48  ;;  %3292 = vmatpush.msra.mxu1 %v11464_v32  ;;  %v11504_v48 = vld [vmem:[#allocation45_spill] sm:$0xff] }
 0xa5a   :  { %3233 = vmatpush.msrb.mxu2 %v11465_v60  ;;  %3253 = vmatpush.msrb.mxu3 %v11466_v19  ;;  %v11505_v32 = vld [vmem:[#allocation49_spill] sm:$0xff] }
 0xa5b   :  { %3273 = vmatpush.msra.mxu0 %v11467_v30  ;;  %3293 = vmatpush.msra.mxu1 %v11468_v11  ;;  %v11506_v60 = vld [vmem:[#allocation53_spill] sm:$0xff] }
 0xa5c   :  { %3234 = vmatpush.msrb.mxu2 %v11469_v46  ;;  %3254 = vmatpush.msrb.mxu3 %v11470_v57  ;;  %v11507_v19 = vld [vmem:[#allocation57_spill] sm:$0xff] }
 0xa5d   :  { %3274 = vmatpush.msra.mxu0 %v11471_v0  ;;  %3294 = vmatpush.msra.mxu1 %v11472_v53  ;;  %v11508_v30 = vld [vmem:[#allocation61_spill] sm:$0xff]  ;;  %v11513_v53 = vld [vmem:[#allocation83_spill] sm:$0xff] }
 0xa5e   :  { %3235 = vmatpush.msrb.mxu2 %v11473_v8  ;;  %3255 = vmatpush.msrb.mxu3 %v11474_v14  ;;  %v11509_v11 = vld [vmem:[#allocation65_spill] sm:$0xff]  ;;  %v11514_v8 = vld [vmem:[#allocation87_spill] sm:$0xff] }
 0xa5f   :  { %3275 = vmatpush.msra.mxu0 %v11475_v55  ;;  %3295 = vmatpush.msra.mxu1 %v11476_v5  ;;  %v11510_v46 = vld [vmem:[#allocation69_spill] sm:$0xff]  ;;  %v11515_v14 = vld [vmem:[#allocation91_spill] sm:$0xff] }
 0xa60   :  { %3236 = vmatpush.msrb.mxu2 %v11477_v54  ;;  %3256 = vmatpush.msrb.mxu3 %v11478_v50  ;;  %v11511_v57 = vld [vmem:[#allocation73_spill] sm:$0xff]  ;;  %v11516_v55 = vld [vmem:[#allocation95_spill] sm:$0xff]  ;;  %v11518_v54 = vld [vmem:[#allocation106_spill] sm:$0xff] }
 0xa61   :  { %3276 = vmatpush.msra.mxu0 %v11479_v18  ;;  %3296 = vmatpush.msra.mxu1 %v11480_v58  ;;  %v11512_v0 = vld [vmem:[#allocation77_spill] sm:$0xff]  ;;  %v11517_v5 = vld [vmem:[#allocation99_spill] sm:$0xff]  ;;  %v11519_v50 = vld [vmem:[#allocation110_spill] sm:$0xff]  ;;  %v2953_v58 = vpop.f32.mrf.mxu1 }
 0xa62   :  { %3237 = vmatpush.msrb.mxu2 %v11481_v27  ;;  %3257 = vmatpush.msrb.mxu3 %v11482_v17  ;;  %v11520_v18 = vld [vmem:[#allocation111_spill] sm:$0xff]  ;;  %v2893_v27 = vpop.f32.mrf.mxu2  ;;  %v2913_v17 = vpop.f32.mrf.mxu3 }
 0xa63   :  { %3277 = vmatpush.msra.mxu0 %v11483_v49  ;;  %3297 = vmatpush.msra.mxu1 %v11484_v9 }
 0xa64   :  { %3238 = vmatpush.msrb.mxu2 %v11485_v6  ;;  %3258 = vmatpush.msrb.mxu3 %v11486_v37  ;;  %v11521_v6 = vld [vmem:[#allocation28_spill] sm:$0xff] }
 0xa65   :  { %3278 = vmatpush.msra.mxu0 %v11487_v52  ;;  %3298 = vmatpush.msra.mxu1 %v11488_v16 }
 0xa66   :  { %3239 = vmatpush.msrb.mxu2 %v11489_v13  ;;  %3259 = vmatpush.msrb.mxu3 %v11490_v63 }
 0xa67   :  { %3279 = vmatpush.msra.mxu0 %v11491_v62  ;;  %3299 = vmatpush.msra.mxu1 %v11492_v56  ;;  %v11522_v56 = vld [vmem:[#allocation25_spill] sm:$0xff] }
 0xa68   :  { %3240 = vmatpush.msrb.mxu2 %v11493_v2  ;;  %3260 = vmatpush.msrb.mxu3 %v11494_v3  ;;  %v11523_v3 = vld [vmem:[#allocation35_spill] sm:$0xff] }
 0xa69   :  { %3280 = vmatpush.msra.mxu0 %v11495_v7  ;;  %3300 = vmatpush.msra.mxu1 %v11496_v26 }
 0xa6a   :  { %3241 = vmatpush.msrb.mxu2 %v11497_v12  ;;  %3261 = vmatpush.msrb.mxu3 %v11498_v22  ;;  %v2933_v22 = vpop.f32.mrf.mxu0 }
 0xa6b   :  { %3281 = vmatpush.msra.mxu0 %v11499_v25  ;;  %3301 = vmatpush.msra.mxu1 %v11500_v35 }
 0xa6c   :  { %3242 = vmatpush.msrb.mxu2 %v11501_v59  ;;  %3262 = vmatpush.msrb.mxu3 %v11502_v38 }
 0xa6d   :  { %3282 = vmatpush.msra.mxu0 %v11503_v15  ;;  %3302 = vmatpush.msra.mxu1 %v11504_v48 }
 0xa6e   :  { %3243 = vmatpush.msrb.mxu2 %v11505_v32  ;;  %3263 = vmatpush.msrb.mxu3 %v11506_v60 }
 0xa6f   :  { %3283 = vmatpush.msra.mxu0 %v11507_v19  ;;  %3303 = vmatpush.msra.mxu1 %v11508_v30 }
 0xa70   :  { %3244 = vmatpush.msrb.mxu2 %v11509_v11  ;;  %3264 = vmatpush.msrb.mxu3 %v11510_v46  ;;  %v11524_v11 = vld [vmem:[#allocation29_spill] sm:$0xff] }
 0xa71   :  { %3284 = vmatpush.msra.mxu0 %v11511_v57  ;;  %3304 = vmatpush.msra.mxu1 %v11512_v0 }
 0xa72   :  { %3245 = vmatpush.msrb.mxu2 %v11513_v53  ;;  %3265 = vmatpush.msrb.mxu3 %v11514_v8 }
 0xa73   :  { %3285 = vmatpush.msra.mxu0 %v11515_v14  ;;  %3305 = vmatpush.msra.mxu1 %v11516_v55 }
 0xa74   :  { %3246 = vmatpush.msrb.mxu2 %v11517_v5  ;;  %3266 = vmatpush.msrb.mxu3 %v11518_v54 }
 0xa75   :  { %3286 = vmatpush.msra.mxu0 %v11519_v50  ;;  %3306 = vmatpush.msra.mxu1 %v11520_v18 }
 0xad2   :  { %v3033_v49 = vpop.f32.mrf.mxu1  ;;  %v3013_v48 = vpop.f32.mrf.mxu0 }
 0xad3   :  { %v3034_v9 = vadd.f32 %v3033_v49, %v2953_v58  ;;  %v3014_v60 = vadd.f32 %v3013_v48, %v2933_v22 }
 0xad5   :  { %v3039_v37 = vadd.f32 %v3034_v9, %v11521_v6  ;;  %v3038_v46 = vadd.f32 %v3014_v60, %v11524_v11 }
 0xad7   :  { %v4382_v52 = vmul.f32 -1.442695, %v3039_v37  ;;  %v2973_v16 = vpop.f32.mrf.mxu2  ;;  %v2993_v13 = vpop.f32.mrf.mxu3 }
 0xad8   :  { %v2974_v63 = vadd.f32 %v2973_v16, %v2893_v27  ;;  %v2994_v62 = vadd.f32 %v2993_v13, %v2913_v17 }
 0xad9   :  { %4614 = vpow2.f32 %v4382_v52 }
 0xada   :  { %v3036_v2 = vadd.f32 %v2974_v63, %v11522_v56  ;;  %v3037_v7 = vadd.f32 %v2994_v62, %v11523_v3 }
 0xadc   :  { %v4380_v26 = vmul.f32 -1.442695, %v3036_v2  ;;  %v4381_v12 = vmul.f32 -1.442695, %v3037_v7 }
 0xade   :  { %4616 = vpow2.f32 %v4380_v26 }
 0xadf   :  { %v4615_v25 = vpop.eup %4614  ;;  %4618 = vpow2.f32 %v4381_v12 }
 0xae0   :  { %v3082_v35 = vadd.f32 1.0, %v4615_v25 }
 0xae2   :  { %4620 = vrcp.f32 %v3082_v35 }
 0xae4   :  { %v4617_v59 = vpop.eup %4616 }
 0xae5   :  { %v4619_v38 = vpop.eup %4618  ;;  %v3043_v15 = vadd.f32 1.0, %v4617_v59  ;;  %v3094_v59 = vand.u32 2147483648, %v3082_v35 }
 0xae6   :  { %v3062_v32 = vadd.f32 1.0, %v4619_v38  ;;  %v3092_v38 = vand.u32 2147483647, %v3082_v35 }
 0xae7   :  { %4622 = vrcp.f32 %v3043_v15  ;;  %v3055_v55 = vand.u32 2147483648, %v3043_v15  ;;  %v3053_v50 = vand.u32 2147483647, %v3043_v15  ;;  %vm3049_vm0 = vweird.f32 %v3043_v15 }
 0xae8   :  { %4624 = vrcp.f32 %v3062_v32  ;;  %v4621_v19 = vpop.eup %4620  ;;  %v3074_v18 = vand.u32 2147483648, %v3062_v32  ;;  %v3072_v27 = vand.u32 2147483647, %v3062_v32  ;;  %vm3068_vm2 = vweird.f32 %v3062_v32 }
 0xae9   :  { %v3084_v8 = vmul.f32 %v4621_v19, %v3082_v35  ;;  %4626 = vtanh.f32 %v3038_v46  ;;  %v3056_v9 = vor.u32 1.1754944e-38, %v3055_v55  ;;  %vm3054_vm10 = vcmp.eq.f32.partialorder %v3053_v50, 8.507059e+37  ;;  %v8810_v46 = vld [vmem:[#allocation10 + $0x1c0] sm:$0xff]  ;;  %v8845_v55 = vld [vmem:[#allocation10 + $0x188] sm:$0xff] }
 0xaea   :  { %v3075_v16 = vor.u32 1.1754944e-38, %v3074_v18  ;;  %vm3073_vm12 = vcmp.eq.f32.partialorder %v3072_v27, 8.507059e+37  ;;  %v3095_v48 = vor.u32 1.1754944e-38, %v3094_v59  ;;  %v8862_v50 = vld [vmem:[#allocation10 + $0x140] sm:$0xff]  ;;  %v8871_v18 = vld [vmem:[#allocation10 + $0x148] sm:$0xff] }
 0xaeb   :  { %v3085_v17 = vsub.f32 1.0, %v3084_v8  ;;  %v8836_v8 = vld [vmem:[#allocation10 + $0x180] sm:$0xff]  ;;  %v8884_v27 = vld [vmem:[#allocation10 + $0x128] sm:$0xff] }
 0xaec   :  { %v8979_v59 = vld [vmem:[#allocation10 + $0x20] sm:$0xff] }
 0xaed   :  { %v4623_v30 = vpop.eup %4622  ;;  %v3086_v2 = vmul.f32 %v4621_v19, %v3085_v17  ;;  %v8888_v17 = vld [vmem:[#allocation10 + $0x100] sm:$0xff]  ;;  %11530 = vst [vmem:[#allocation46_spill] sm:$0xff] %v8979_v59 }
 0xaee   :  { %v4625_v57 = vpop.eup %4624  ;;  %v3045_v0 = vmul.f32 %v4623_v30, %v3043_v15  ;;  %vm3050_vm13 = vweird.f32 %v4623_v30 }
 0xaef   :  { %v3064_v53 = vmul.f32 %v4625_v57, %v3062_v32  ;;  %vm3069_vm15 = vweird.f32 %v4625_v57  ;;  %vm3051_vm1 = vmor %vm3049_vm0, %vm3050_vm13  ;;  %v4627_v13 = vpop.eup %4626  ;;  %v3087_v25 = vadd.f32 %v4621_v19, %v3086_v2  ;;  %vm3089_vm13 = vweird.f32 %v4621_v19  ;;  %v8949_v2 = vld [vmem:[#allocation10 + $0x88] sm:$0xff] }
 0xaf0   :  { %v3046_v14 = vsub.f32 1.0, %v3045_v0  ;;  %vm3070_vm11 = vmor %vm3068_vm2, %vm3069_vm15  ;;  %vm3088_vm0 = vweird.f32 %v3082_v35  ;;  %v8797_v35 = vld [vmem:[#allocation10 + $0x1e0] sm:$0xff] }
 0xaf1   :  { %v3065_v5 = vsub.f32 1.0, %v3064_v53  ;;  %vm3090_vm15 = vmor %vm3088_vm0, %vm3089_vm13  ;;  %v8823_v0 = vld [vmem:[#allocation10 + $0x1a0] sm:$0xff]  ;;  %v8826_v53 = vld [vmem:[#allocation10 + $0x1a8] sm:$0xff] }
 0xaf2   :  { %v3047_v54 = vmul.f32 %v4623_v30, %v3046_v14  ;;  %v3091_v15 = vsel %vm3090_vm15, %v4621_v19, %v3087_v25  ;;  %v8800_v19 = vld [vmem:[#allocation10 + $0x1e8] sm:$0xff]  ;;  %v8842_v14 = vld [vmem:[%s9695_s9 + $0x58] sm:$0xff] }
 0xaf3   :  { %v3066_v58 = vmul.f32 %v4625_v57, %v3065_v5  ;;  %v8849_v5 = vld [vmem:[#allocation10 + $0x160] sm:$0xff]  ;;  %v8975_v25 = vld [vmem:[#allocation10 + $0x48] sm:$0xff] }
 0xaf4   :  { %v3048_v49 = vadd.f32 %v4623_v30, %v3047_v54  ;;  %v8858_v54 = vld [vmem:[#allocation10 + $0x168] sm:$0xff]  ;;  %11529 = vst [vmem:[#allocation33_spill] sm:$0xff] %v8975_v25 }
 0xaf5   :  { %v3067_v37 = vadd.f32 %v4625_v57, %v3066_v58  ;;  %v8875_v58 = vld [vmem:[#allocation10 + $0x120] sm:$0xff] }
 0xaf6   :  { %v3052_v52 = vsel %vm3051_vm1, %v4623_v30, %v3048_v49  ;;  %vm3093_vm1 = vcmp.eq.f32.partialorder %v3092_v38, 8.507059e+37  ;;  %v8897_v49 = vld [vmem:[#allocation10 + $0x108] sm:$0xff] }
 0xaf7   :  { %v3057_v63 = vsel %vm3054_vm10, %v3056_v9, %v3052_v52  ;;  %v3071_v62 = vsel %vm3070_vm11, %v4625_v57, %v3067_v37  ;;  %v3096_v60 = vsel %vm3093_vm1, %v3095_v48, %v3091_v15  ;;  %v8813_v57 = vld [vmem:[#allocation10 + $0x1c8] sm:$0xff]  ;;  %v8901_v9 = vld [vmem:[#allocation10 + $0xe0] sm:$0xff] }
 0xaf8   :  { %v3099_v7 = vmul.f32 %v4627_v13, %v3057_v63  ;;  %v3076_v26 = vsel %vm3073_vm12, %v3075_v16, %v3071_v62  ;;  %v8910_v37 = vld [vmem:[#allocation10 + $0xe8] sm:$0xff]  ;;  %v8914_v52 = vld [vmem:[#allocation10 + $0xc0] sm:$0xff] }
 0xaf9   :  { %v3098_v12 = vmul.f32 %v3076_v26, %v8574_v42  ;;  %v8794_v42 = vld [vmem:[%s9695_s9 + $0x78] sm:$0xff]  ;;  %v8923_v16 = vld [vmem:[#allocation10 + $0xc8] sm:$0xff]  ;;  %v8927_v13 = vld [vmem:[#allocation10 + $0xa0] sm:$0xff] }
 0xafa   :  { %v8936_v63 = vld [vmem:[#allocation10 + $0xa8] sm:$0xff]  ;;  %v8940_v62 = vld [vmem:[#allocation10 + $0x80] sm:$0xff] }
 0xafb   :  { %v8787_v22 = vadd.f32 %v3099_v7, %v3098_v12  ;;  %v8953_v7 = vld [vmem:[#allocation10 + $0x60] sm:$0xff]  ;;  %v8962_v26 = vld [vmem:[#allocation10 + $0x68] sm:$0xff] }
 0xafc   :  { %11526 = vst [vmem:[#allocation42_spill] sm:$0xff] %v8962_v26  ;;  %v8966_v12 = vld [vmem:[#allocation10 + $0x40] sm:$0xff]  ;;  %v8988_v38 = vld [vmem:[#allocation10 + $0x28] sm:$0xff] }
 0xafd   :  { %4628 = vtanh.f32 %v8787_v22  ;;  %11527 = vst [vmem:[#allocation32_spill] sm:$0xff] %v8966_v12  ;;  %v8992_v15 = vld [vmem:[#allocation10] sm:$0xff]  ;;  %v8998_v48 = vld [vmem:[#allocation10 + $0x8] sm:$0xff] }
 0xafe   :  { %11532 = vst [vmem:[#allocation36_spill] sm:$0xff] %v8988_v38 }
 0xaff   :  { %11533 = vst [vmem:[#allocation37_spill] sm:$0xff] %v8992_v15 }
 0xb00   :  { %11535 = vst [vmem:[#allocation39_spill] sm:$0xff] %v8998_v48 }
 0xb03   :  { %v4629_v32 = vpop.eup %4628 }
 0xb04   :  { %v3102_v30 = vmul.f32 %v4629_v32, %v3096_v60  ;;  %v9001_v32 = vld [vmem:[#allocation10 + $0x1d0] sm:$0xff] }
 0xb05   :  { %11536 = vst [vmem:[#allocation40_spill] sm:$0xff] %v9001_v32  ;;  %v9004_v60 = vld [vmem:[#allocation10 + $0x1b0] sm:$0xff] }
 0xb06   :  { %3119 = vmatmul.f32.vlgmr.msra.gmra.mxu2 %v3102_v30  ;;  %3187 = vmatmul.f32.vlgmr.msra.gmra.mxu3 %v3102_v30  ;;  %11537 = vst [vmem:[#allocation54_spill] sm:$0xff] %v9004_v60 }
 0xb07   :  { %3207 = vmatmul.f32.vlgmr.msrb.gmra.mxu0 %v3102_v30  ;;  %3227 = vmatmul.f32.vlgmr.msrb.gmra.mxu1 %v3102_v30 }
 0xb08   :  { %3311 = vmatpush.msra.mxu2 %v8577_v51  ;;  %3398 = vmatpush.msra.mxu3 %v8794_v42  ;;  %v8807_v51 = vld [vmem:[%s9695_s9 + $0x70] sm:$0xff] }
 0xb09   :  { %3466 = vmatpush.msrb.mxu0 %v8797_v35  ;;  %3486 = vmatpush.msrb.mxu1 %v8800_v19 }
 0xb0a   :  { %3312 = vmatpush.msra.mxu2 %v8583_v23  ;;  %3399 = vmatpush.msra.mxu3 %v8807_v51  ;;  %v8820_v23 = vld [vmem:[%s9695_s9 + $0x68] sm:$0xff] }
 0xb0b   :  { %3467 = vmatpush.msrb.mxu0 %v8810_v46  ;;  %3487 = vmatpush.msrb.mxu1 %v8813_v57 }
 0xb0c   :  { %3313 = vmatpush.msra.mxu2 %v8589_v24  ;;  %3400 = vmatpush.msra.mxu3 %v8820_v23  ;;  %v8832_v24 = vld [vmem:[%s9695_s9 + $0x60] sm:$0xff] }
 0xb0d   :  { %3468 = vmatpush.msrb.mxu0 %v8823_v0  ;;  %3488 = vmatpush.msrb.mxu1 %v8826_v53 }
 0xb0e   :  { %3247 = vmatmul.f32.vlgmr.msrb.gmra.mxu2 %v3102_v30  ;;  %3401 = vmatpush.msra.mxu3 %v8832_v24  ;;  %v9010_v30 = vld [vmem:[#allocation10 + $0x170] sm:$0xff] }
 0xb0f   :  { %3314 = vmatpush.msra.mxu2 %v8596_v28  ;;  %3469 = vmatpush.msrb.mxu0 %v8836_v8  ;;  %v8855_v28 = vld [vmem:[%s9695_s9 + $0x50] sm:$0xff]  ;;  %11539 = vst [vmem:[#allocation44_spill] sm:$0xff] %v9010_v30 }
 0xb10   :  { %3402 = vmatpush.msra.mxu3 %v8842_v14  ;;  %3489 = vmatpush.msrb.mxu1 %v8845_v55 }
 0xb11   :  { %3315 = vmatpush.msra.mxu2 %v8602_v34  ;;  %3470 = vmatpush.msrb.mxu0 %v8849_v5  ;;  %v8868_v34 = vld [vmem:[%s9695_s9 + $0x48] sm:$0xff] }
 0xb12   :  { %3403 = vmatpush.msra.mxu3 %v8855_v28  ;;  %3490 = vmatpush.msrb.mxu1 %v8858_v54 }
 0xb13   :  { %3316 = vmatpush.msra.mxu2 %v8608_v10  ;;  %3471 = vmatpush.msrb.mxu0 %v8862_v50  ;;  %v8881_v10 = vld [vmem:[%s9695_s9 + $0x40] sm:$0xff] }
 0xb14   :  { %3404 = vmatpush.msra.mxu3 %v8868_v34  ;;  %3491 = vmatpush.msrb.mxu1 %v8871_v18 }
 0xb15   :  { %3317 = vmatpush.msra.mxu2 %v8614_v29  ;;  %3472 = vmatpush.msrb.mxu0 %v8875_v58  ;;  %v8894_v29 = vld [vmem:[%s9695_s9 + $0x38] sm:$0xff] }
 0xb16   :  { %3405 = vmatpush.msra.mxu3 %v8881_v10  ;;  %3492 = vmatpush.msrb.mxu1 %v8884_v27 }
 0xb17   :  { %3318 = vmatpush.msra.mxu2 %v8620_v31  ;;  %3473 = vmatpush.msrb.mxu0 %v8888_v17  ;;  %v8907_v31 = vld [vmem:[%s9695_s9 + $0x30] sm:$0xff] }
 0xb18   :  { %3406 = vmatpush.msra.mxu3 %v8894_v29  ;;  %3493 = vmatpush.msrb.mxu1 %v8897_v49 }
 0xb19   :  { %3319 = vmatpush.msra.mxu2 %v8626_v33  ;;  %3474 = vmatpush.msrb.mxu0 %v8901_v9  ;;  %v8920_v33 = vld [vmem:[%s9695_s9 + $0x28] sm:$0xff] }
 0xb1a   :  { %3407 = vmatpush.msra.mxu3 %v8907_v31  ;;  %3494 = vmatpush.msrb.mxu1 %v8910_v37 }
 0xb1b   :  { %3320 = vmatpush.msra.mxu2 %v8632_v39  ;;  %3475 = vmatpush.msrb.mxu0 %v8914_v52  ;;  %v8933_v39 = vld [vmem:[%s9695_s9 + $0x20] sm:$0xff] }
 0xb1c   :  { %3408 = vmatpush.msra.mxu3 %v8920_v33  ;;  %3495 = vmatpush.msrb.mxu1 %v8923_v16 }
 0xb1d   :  { %3321 = vmatpush.msra.mxu2 %v8638_v41  ;;  %3476 = vmatpush.msrb.mxu0 %v8927_v13  ;;  %v8946_v41 = vld [vmem:[%s9695_s9 + $0x18] sm:$0xff] }
 0xb1e   :  { %3409 = vmatpush.msra.mxu3 %v8933_v39  ;;  %3496 = vmatpush.msrb.mxu1 %v8936_v63 }
 0xb1f   :  { %3322 = vmatpush.msra.mxu2 %v8644_v44  ;;  %3477 = vmatpush.msrb.mxu0 %v8940_v62  ;;  %v8959_v44 = vld [vmem:[%s9695_s9 + $0x10] sm:$0xff] }
 0xb20   :  { %3410 = vmatpush.msra.mxu3 %v8946_v41  ;;  %3497 = vmatpush.msrb.mxu1 %v8949_v2  ;;  %11525 = vst [vmem:[#allocation108_spill] sm:$0xff] %v8959_v44 }
 0xb21   :  { %3323 = vmatpush.msra.mxu2 %v8650_v43  ;;  %3478 = vmatpush.msrb.mxu0 %v8953_v7  ;;  %v8972_v43 = vld [vmem:[%s9695_s9 + $0x8] sm:$0xff] }
 0xb22   :  { %3411 = vmatpush.msra.mxu3 %v8959_v44  ;;  %3498 = vmatpush.msrb.mxu1 %v8962_v26  ;;  %11528 = vst [vmem:[#allocation109_spill] sm:$0xff] %v8972_v43 }
 0xb23   :  { %3324 = vmatpush.msra.mxu2 %v8656_v47  ;;  %3479 = vmatpush.msrb.mxu0 %v8966_v12  ;;  %v8985_v47 = vld [vmem:[%s9695_s9] sm:$0xff] }
 0xb24   :  { %3412 = vmatpush.msra.mxu3 %v8972_v43  ;;  %3499 = vmatpush.msrb.mxu1 %v8975_v25  ;;  %11531 = vst [vmem:[#allocation24_spill] sm:$0xff] %v8985_v47 }
 0xb25   :  { %3325 = vmatpush.msra.mxu2 %v8662_v36  ;;  %3480 = vmatpush.msrb.mxu0 %v8979_v59  ;;  %v8995_v36 = vld [vmem:[#allocation10 + $0x1f0] sm:$0xff]  ;;  %v3150_v59 = vstv %s4390_s22  ;;  %s4415_s22 = sld [smem:[#allocation4 + $0x280]] }
 0xb26   :  { %3413 = vmatpush.msra.mxu3 %v8985_v47  ;;  %3500 = vmatpush.msrb.mxu1 %v8988_v38  ;;  %11534 = vst [vmem:[#allocation50_spill] sm:$0xff] %v8995_v36  ;;  %v3138_v38 = vstv %s4386_s4  ;;  %v3147_v47 = vstv %s4389_s21 }
 0xb27   :  { %3326 = vmatpush.msra.mxu2 %v8668_v20  ;;  %3481 = vmatpush.msrb.mxu0 %v8992_v15  ;;  %v9007_v20 = vld [vmem:[#allocation10 + $0x190] sm:$0xff] }
 0xb28   :  { %3501 = vmatpush.msrb.mxu1 %v8998_v48  ;;  %11538 = vst [vmem:[#allocation43_spill] sm:$0xff] %v9007_v20  ;;  %v9016_v48 = vld [vmem:[#allocation10 + $0x130] sm:$0xff] }
 0xb29   :  { %3506 = vmatpush.msrb.mxu2 %v8995_v36  ;;  %v9013_v36 = vld [vmem:[#allocation10 + $0x150] sm:$0xff]  ;;  %11541 = vst [vmem:[#allocation47_spill] sm:$0xff] %v9016_v48 }
 0xb2a   :  { %11540 = vst [vmem:[#allocation58_spill] sm:$0xff] %v9013_v36 }
 0xb2b   :  { %3507 = vmatpush.msrb.mxu2 %v9001_v32  ;;  %v9019_v32 = vld [vmem:[#allocation10 + $0x110] sm:$0xff] }
 0xb2c   :  { %11542 = vst [vmem:[#allocation48_spill] sm:$0xff] %v9019_v32 }
 0xb2d   :  { %3508 = vmatpush.msrb.mxu2 %v9004_v60  ;;  %v9022_v60 = vld [vmem:[#allocation10 + $0xf0] sm:$0xff] }
 0xb2e   :  { %11543 = vst [vmem:[#allocation62_spill] sm:$0xff] %v9022_v60 }
 0xb2f   :  { %3509 = vmatpush.msrb.mxu2 %v9007_v20  ;;  %v9025_v20 = vld [vmem:[#allocation10 + $0xd0] sm:$0xff] }
 0xb30   :  { %11544 = vst [vmem:[#allocation51_spill] sm:$0xff] %v9025_v20 }
 0xb31   :  { %3510 = vmatpush.msrb.mxu2 %v9010_v30  ;;  %v9028_v30 = vld [vmem:[#allocation10 + $0xb0] sm:$0xff] }
 0xb32   :  { %11545 = vst [vmem:[#allocation52_spill] sm:$0xff] %v9028_v30 }
 0xb33   :  { %3511 = vmatpush.msrb.mxu2 %v9013_v36  ;;  %v9031_v36 = vld [vmem:[#allocation10 + $0x90] sm:$0xff] }
 0xb34   :  { %11546 = vst [vmem:[#allocation66_spill] sm:$0xff] %v9031_v36 }
 0xb35   :  { %3512 = vmatpush.msrb.mxu2 %v9016_v48  ;;  %v9034_v48 = vld [vmem:[#allocation10 + $0x70] sm:$0xff] }
 0xb36   :  { %11547 = vst [vmem:[#allocation55_spill] sm:$0xff] %v9034_v48 }
 0xb37   :  { %3513 = vmatpush.msrb.mxu2 %v9019_v32  ;;  %v9037_v32 = vld [vmem:[#allocation10 + $0x50] sm:$0xff] }
 0xb38   :  { %11548 = vst [vmem:[#allocation56_spill] sm:$0xff] %v9037_v32 }
 0xb39   :  { %3514 = vmatpush.msrb.mxu2 %v9022_v60  ;;  %v9040_v60 = vld [vmem:[#allocation10 + $0x30] sm:$0xff] }
 0xb3a   :  { %11549 = vst [vmem:[#allocation70_spill] sm:$0xff] %v9040_v60 }
 0xb3b   :  { %3515 = vmatpush.msrb.mxu2 %v9025_v20  ;;  %v9043_v20 = vld [vmem:[#allocation10 + $0x10] sm:$0xff] }
 0xb3c   :  { %11550 = vst [vmem:[#allocation59_spill] sm:$0xff] %v9043_v20 }
 0xb3d   :  { %3516 = vmatpush.msrb.mxu2 %v9028_v30 }
 0xb3f   :  { %3517 = vmatpush.msrb.mxu2 %v9031_v36  ;;  %v9049_v36 = vld [vmem:[%s9696_s10] ss:$0 sm:$0xff] }
 0xb40   :  { %11551 = vst [vmem:[#allocation60_spill] sm:$0xff] %v9049_v36 }
 0xb41   :  { %3518 = vmatpush.msrb.mxu2 %v9034_v48 }
 0xb43   :  { %3519 = vmatpush.msrb.mxu2 %v9037_v32 }
 0xb45   :  { %3520 = vmatpush.msrb.mxu2 %v9040_v60 }
 0xb47   :  { %3521 = vmatpush.msrb.mxu2 %v9043_v20  ;;  %v3135_v20 = vstv %s4385_s18 }
 0xb48   :  { %v3136_v15 = vsel %vm2242_vm4, %v3135_v20, 0 }
 0xb84   :  { %v3228_v21 = vpop.f32.mrf.mxu1 }
 0xb89   :  { %v3120_v30 = vpop.f32.mrf.mxu2 }
 0xb8a   :  { %v3121_v48 = vadd.f32 %v9049_v36, %v3120_v30  ;;  %v3139_v30 = vsel %vm2246_vm5, %v3138_v38, %v3136_v15  ;;  %v3141_v36 = vstv %s4387_s19  ;;  %v3153_v15 = vstv %s4391_s23  ;;  %s4417_s23 = sld [smem:[#allocation4 + $0x282]] }
 0xb8c   :  { %4383 = vst [vmem:[%s9697_s11 + $0x10] sm:$0xff] %v3121_v48  ;;  %3125 = vmax.xlane.f32.xlu2 %v3121_v48 }
 0xbff   :  { %v3126_v32 = vpop.xlane.xlu2 %3125 }
 0xc00   :  { %vm3127_vm2 = vcmp.ge.f32.partialorder %v3121_v48, %v3126_v32  ;;  %v3142_v48 = vsel %vm2250_vm6, %v3141_v36, %v3139_v30  ;;  %v3144_v32 = vstv %s4388_s20  ;;  %v3156_v30 = vstv %s4392_s6  ;;  %s4418_s6 = sld [smem:[#allocation4 + $0x283]] }
 0xc01   :  { %v3128_v60 = vsel %vm3127_vm2, %v11455_v40, 128.0 }
 0xc02   :  { %3129 = vmin.xlane.f32.xlu2 %v3128_v60  ;;  %v3145_v60 = vsel %vm2254_vm7, %v3144_v32, %v3142_v48  ;;  %v3165_v48 = vstv %s3164_s24  ;;  %v3168_v32 = vstv %s3167_s25  ;;  %s4424_s24 = sld [smem:[#allocation3 + $0x5]] }
 0xc03   :  { %v3148_v20 = vsel %vm2258_vm8, %v3147_v47, %v3145_v60  ;;  %s4421_s25 = sld [smem:[#allocation4 + $0x286]] }
 0xc04   :  { %v3151_v38 = vsel %vm2262_vm9, %v3150_v59, %v3148_v20 }
 0xc05   :  { %v3154_v36 = vsel %vm2266_vm14, %v3153_v15, %v3151_v38  ;;  %v9080_v15 = vld [vmem:[#allocation9 + $0x1e8] sm:$0xff] }
 0xc06   :  { %v3157_v25 = vsel %vm2270_vm3, %v3156_v30, %v3154_v36  ;;  %11553 = vst [vmem:[#allocation64_spill] sm:$0xff] %v9080_v15  ;;  %v9083_v36 = vld [vmem:[#allocation9 + $0x1f0] sm:$0xff]  ;;  %v9090_v30 = vld [vmem:[#allocation9 + $0x1c8] sm:$0xff] }
 0xc07   :  { %vm3158_vm10 = vcmp.eq.s32.totalorder %v11457_v1, %v3157_v25  ;;  %v9077_v25 = vld [vmem:[#allocation9 + $0x1e0] sm:$0xff]  ;;  %11554 = vst [vmem:[#allocation78_spill] sm:$0xff] %v9083_v36 }
 0xc08   :  { %v4393_v47 = vsel %vm3158_vm10, 1.0, %v11458_v4  ;;  %11552 = vst [vmem:[#allocation63_spill] sm:$0xff] %v9077_v25  ;;  %p3752_p5 = scmp.ne.s32.totalorder %s4424_s24, 0 }
 0xc09   :  { %v3166_v43 = vmul.f32 %v4393_v47, %v3165_v48  ;;  %11556 = vst [vmem:[#allocation68_spill] sm:$0xff] %v9090_v30  ;;  %v9096_v47 = vld [vmem:[#allocation10 + $0x1b8] sm:$0xff]  ;;  %v9099_v48 = vld [vmem:[#allocation9 + $0x1a0] sm:$0xff] }
 0xc0a   :  { %11558 = vst [vmem:[#allocation71_spill] sm:$0xff] %v9096_v47  ;;  %s3753_s26 = scalar_select %p3752_p5, 1, 0 }
 0xc0b   :  { %11559 = vst [vmem:[#allocation72_spill] sm:$0xff] %v9099_v48 }
 0xc75   :  { %v3130_v60 = vpop.xlane.xlu2 %3129 }
 0xc76   :  { %vm3131_vm11 = vcmp.eq.f32.partialorder %v11455_v40, %v3130_v60  ;;  %v9108_v60 = vld [vmem:[#allocation10 + $0x198] sm:$0xff] }
 0xc77   :  { %v4384_v59 = vsel %vm3131_vm11, 1.0, %v11458_v4  ;;  %11562 = vst [vmem:[#allocation76_spill] sm:$0xff] %v9108_v60 }
 0xc78   :  { %v3169_v20 = vmul.f32 %v4384_v59, %v3168_v32  ;;  %v9105_v32 = vld [vmem:[#allocation9 + $0x1b0] sm:$0xff]  ;;  %v9111_v59 = vld [vmem:[#allocation9 + $0x180] sm:$0xff] }
 0xc79   :  { %11561 = vst [vmem:[#allocation75_spill] sm:$0xff] %v9105_v32 }
 0xc7a   :  { %v3170_v38 = vadd.f32 %v3169_v20, %v3166_v43  ;;  %v9087_v43 = vld [vmem:[#allocation9 + $0x1c0] sm:$0xff]  ;;  %11563 = vst [vmem:[#allocation90_spill] sm:$0xff] %v9111_v59  ;;  %v9114_v20 = vld [vmem:[#allocation9 + $0x188] sm:$0xff] }
 0xc7b   :  { %11555 = vst [vmem:[#allocation67_spill] sm:$0xff] %v9087_v43 }
 0xc7c   :  { %3267 = vmatmul.f32.vlgmr.msrb.gmra.mxu3 %v3170_v38  ;;  %3287 = vmatmul.f32.vlgmr.msra.gmra.mxu0 %v3170_v38  ;;  %11564 = vst [vmem:[#allocation80_spill] sm:$0xff] %v9114_v20 }
 0xc7d   :  { %3307 = vmatmul.f32.vlgmr.msra.gmra.mxu1 %v3170_v38  ;;  %3327 = vmatmul.f32.vlgmr.msra.gmra.mxu2 %v3170_v38  ;;  %v9117_v38 = vld [vmem:[#allocation9 + $0x190] sm:$0xff] }
 0xc7e   :  { %3526 = vmatpush.msrb.mxu3 %v8714_v45  ;;  %3546 = vmatpush.msra.mxu0 %v9077_v25  ;;  %v9093_v45 = vld [vmem:[#allocation9 + $0x1d0] sm:$0xff]  ;;  %11565 = vst [vmem:[#allocation94_spill] sm:$0xff] %v9117_v38 }
 0xc7f   :  { %3566 = vmatpush.msra.mxu1 %v9080_v15  ;;  %3586 = vmatpush.msra.mxu2 %v9083_v36  ;;  %11557 = vst [vmem:[#allocation82_spill] sm:$0xff] %v9093_v45 }
 0xc80   :  { %3527 = vmatpush.msrb.mxu3 %v8720_v61  ;;  %3547 = vmatpush.msra.mxu0 %v9087_v43  ;;  %v9102_v61 = vld [vmem:[#allocation9 + $0x1a8] sm:$0xff] }
 0xc81   :  { %3567 = vmatpush.msra.mxu1 %v9090_v30  ;;  %3587 = vmatpush.msra.mxu2 %v9093_v45  ;;  %11560 = vst [vmem:[#allocation86_spill] sm:$0xff] %v9102_v61 }
 0xc82   :  { %3528 = vmatpush.msrb.mxu3 %v9096_v47  ;;  %3548 = vmatpush.msra.mxu0 %v9099_v48  ;;  %v3188_v48 = vpop.f32.mrf.mxu3  ;;  %v3248_v47 = vpop.f32.mrf.mxu2 }
 0xc83   :  { %3568 = vmatpush.msra.mxu1 %v9102_v61  ;;  %3588 = vmatpush.msra.mxu2 %v9105_v32  ;;  %v9120_v61 = vld [vmem:[#allocation10 + $0x178] sm:$0xff]  ;;  %v9123_v32 = vld [vmem:[#allocation9 + $0x160] sm:$0xff] }
 0xc84   :  { %3529 = vmatpush.msrb.mxu3 %v9108_v60  ;;  %3549 = vmatpush.msra.mxu0 %v9111_v59  ;;  %11566 = vst [vmem:[#allocation81_spill] sm:$0xff] %v9120_v61  ;;  %v9126_v60 = vld [vmem:[#allocation9 + $0x168] sm:$0xff]  ;;  %v9129_v59 = vld [vmem:[#allocation9 + $0x170] sm:$0xff] }
 0xc85   :  { %3569 = vmatpush.msra.mxu1 %v9114_v20  ;;  %3589 = vmatpush.msra.mxu2 %v9117_v38  ;;  %11567 = vst [vmem:[#allocation84_spill] sm:$0xff] %v9123_v32  ;;  %v9132_v20 = vld [vmem:[#allocation10 + $0x158] sm:$0xff]  ;;  %v9135_v38 = vld [vmem:[#allocation9 + $0x140] sm:$0xff] }
 0xc86   :  { %3530 = vmatpush.msrb.mxu3 %v9120_v61  ;;  %3550 = vmatpush.msra.mxu0 %v9123_v32  ;;  %11568 = vst [vmem:[#allocation98_spill] sm:$0xff] %v9126_v60  ;;  %v9138_v61 = vld [vmem:[#allocation9 + $0x148] sm:$0xff]  ;;  %v9141_v32 = vld [vmem:[#allocation9 + $0x150] sm:$0xff] }
 0xc87   :  { %3570 = vmatpush.msra.mxu1 %v9126_v60  ;;  %11569 = vst [vmem:[#allocation85_spill] sm:$0xff] %v9129_v59  ;;  %3590 = vmatpush.msra.mxu2 %v9129_v59  ;;  %v9144_v60 = vld [vmem:[#allocation10 + $0x138] sm:$0xff]  ;;  %v9147_v59 = vld [vmem:[#allocation9 + $0x120] sm:$0xff] }
 0xc88   :  { %11570 = vst [vmem:[#allocation88_spill] sm:$0xff] %v9132_v20  ;;  %3531 = vmatpush.msrb.mxu3 %v9132_v20  ;;  %3551 = vmatpush.msra.mxu0 %v9135_v38  ;;  %v9150_v20 = vld [vmem:[#allocation9 + $0x128] sm:$0xff] }
 0xc89   :  { %11571 = vst [vmem:[#allocation102_spill] sm:$0xff] %v9135_v38  ;;  %3571 = vmatpush.msra.mxu1 %v9138_v61  ;;  %3591 = vmatpush.msra.mxu2 %v9141_v32  ;;  %v9153_v38 = vld [vmem:[#allocation9 + $0x130] sm:$0xff] }
 0xc8a   :  { %11572 = vst [vmem:[#allocation89_spill] sm:$0xff] %v9138_v61  ;;  %3532 = vmatpush.msrb.mxu3 %v9144_v60  ;;  %3552 = vmatpush.msra.mxu0 %v9147_v59  ;;  %v9156_v61 = vld [vmem:[#allocation10 + $0x118] sm:$0xff] }
 0xc8b   :  { %11573 = vst [vmem:[#allocation92_spill] sm:$0xff] %v9141_v32  ;;  %3572 = vmatpush.msra.mxu1 %v9150_v20  ;;  %3592 = vmatpush.msra.mxu2 %v9153_v38  ;;  %v9159_v32 = vld [vmem:[#allocation9 + $0x100] sm:$0xff] }
 0xc8c   :  { %11574 = vst [vmem:[#allocation103_spill] sm:$0xff] %v9144_v60  ;;  %3533 = vmatpush.msrb.mxu3 %v9156_v61  ;;  %3553 = vmatpush.msra.mxu0 %v9159_v32  ;;  %v9162_v60 = vld [vmem:[#allocation9 + $0x108] sm:$0xff] }
 0xc8d   :  { %11575 = vst [vmem:[#allocation93_spill] sm:$0xff] %v9147_v59  ;;  %3573 = vmatpush.msra.mxu1 %v9162_v60  ;;  %v9165_v59 = vld [vmem:[#allocation9 + $0x110] sm:$0xff] }
 0xc8e   :  { %11576 = vst [vmem:[#allocation96_spill] sm:$0xff] %v9150_v20  ;;  %3593 = vmatpush.msra.mxu2 %v9165_v59  ;;  %v9168_v20 = vld [vmem:[#allocation10 + $0xf8] sm:$0xff] }
 0xc8f   :  { %11577 = vst [vmem:[#allocation104_spill] sm:$0xff] %v9153_v38  ;;  %3534 = vmatpush.msrb.mxu3 %v9168_v20  ;;  %v9171_v38 = vld [vmem:[#allocation9 + $0xe0] sm:$0xff] }
 0xc90   :  { %11578 = vst [vmem:[#allocation97_spill] sm:$0xff] %v9156_v61  ;;  %3554 = vmatpush.msra.mxu0 %v9171_v38  ;;  %v9174_v61 = vld [vmem:[#allocation9 + $0xe8] sm:$0xff] }
 0xc91   :  { %11579 = vst [vmem:[#allocation100_spill] sm:$0xff] %v9159_v32  ;;  %3574 = vmatpush.msra.mxu1 %v9174_v61  ;;  %v9177_v32 = vld [vmem:[#allocation9 + $0xf0] sm:$0xff] }
 0xc92   :  { %11580 = vst [vmem:[#allocation105_spill] sm:$0xff] %v9162_v60  ;;  %3594 = vmatpush.msra.mxu2 %v9177_v32  ;;  %v9180_v60 = vld [vmem:[#allocation10 + $0xd8] sm:$0xff] }
 0xc93   :  { %11581 = vst [vmem:[#allocation101_spill] sm:$0xff] %v9165_v59  ;;  %3535 = vmatpush.msrb.mxu3 %v9180_v60  ;;  %v9183_v59 = vld [vmem:[#allocation9 + $0xc0] sm:$0xff] }
 0xc94   :  { %11582 = vst [vmem:[#allocation23_spill] sm:$0xff] %v9168_v20  ;;  %3555 = vmatpush.msra.mxu0 %v9183_v59  ;;  %v9186_v20 = vld [vmem:[#allocation9 + $0xc8] sm:$0xff] }
 0xc95   :  { %11583 = vst [vmem:[#allocation16_spill] sm:$0xff] %v9171_v38  ;;  %3575 = vmatpush.msra.mxu1 %v9186_v20  ;;  %v9189_v38 = vld [vmem:[#allocation9 + $0xd0] sm:$0xff] }
 0xc96   :  { %11584 = vst [vmem:[#allocation17_spill] sm:$0xff] %v9174_v61  ;;  %3595 = vmatpush.msra.mxu2 %v9189_v38  ;;  %v9192_v61 = vld [vmem:[#allocation10 + $0xb8] sm:$0xff] }
 0xc97   :  { %11585 = vst [vmem:[#allocation18_spill] sm:$0xff] %v9177_v32  ;;  %3536 = vmatpush.msrb.mxu3 %v9192_v61  ;;  %v9195_v32 = vld [vmem:[#allocation9 + $0xa0] sm:$0xff] }
 0xc98   :  { %11586 = vst [vmem:[#allocation27_spill] sm:$0xff] %v9180_v60  ;;  %3556 = vmatpush.msra.mxu0 %v9195_v32  ;;  %v9198_v60 = vld [vmem:[#allocation9 + $0xa8] sm:$0xff] }
 0xc99   :  { %11587 = vst [vmem:[#allocation19_spill] sm:$0xff] %v9183_v59  ;;  %3576 = vmatpush.msra.mxu1 %v9198_v60  ;;  %v9201_v59 = vld [vmem:[#allocation9 + $0xb0] sm:$0xff] }
 0xc9a   :  { %11588 = vst [vmem:[#allocation20_spill] sm:$0xff] %v9186_v20  ;;  %3596 = vmatpush.msra.mxu2 %v9201_v59  ;;  %v9204_v20 = vld [vmem:[#allocation10 + $0x98] sm:$0xff] }
 0xc9b   :  { %11589 = vst [vmem:[#allocation21_spill] sm:$0xff] %v9189_v38  ;;  %3537 = vmatpush.msrb.mxu3 %v9204_v20  ;;  %v9207_v38 = vld [vmem:[#allocation9 + $0x80] sm:$0xff] }
 0xc9c   :  { %11590 = vst [vmem:[#allocation31_spill] sm:$0xff] %v9192_v61  ;;  %3557 = vmatpush.msra.mxu0 %v9207_v38  ;;  %v9210_v61 = vld [vmem:[#allocation9 + $0x88] sm:$0xff] }
 0xc9d   :  { %11591 = vst [vmem:[#allocation22_spill] sm:$0xff] %v9195_v32  ;;  %3577 = vmatpush.msra.mxu1 %v9210_v61  ;;  %v9213_v32 = vld [vmem:[#allocation9 + $0x90] sm:$0xff] }
 0xc9e   :  { %11592 = vst [vmem:[#allocation26_spill] sm:$0xff] %v9198_v60  ;;  %3597 = vmatpush.msra.mxu2 %v9213_v32  ;;  %v9216_v60 = vld [vmem:[#allocation10 + $0x78] sm:$0xff] }
 0xc9f   :  { %11593 = vst [vmem:[#allocation30_spill] sm:$0xff] %v9201_v59  ;;  %3538 = vmatpush.msrb.mxu3 %v9216_v60  ;;  %v9219_v59 = vld [vmem:[#allocation9 + $0x60] sm:$0xff] }
 0xca0   :  { %11594 = vst [vmem:[#allocation34_spill] sm:$0xff] %v9204_v20  ;;  %3558 = vmatpush.msra.mxu0 %v9219_v59  ;;  %v9222_v20 = vld [vmem:[#allocation9 + $0x68] sm:$0xff] }
 0xca1   :  { %11595 = vst [vmem:[#allocation38_spill] sm:$0xff] %v9207_v38  ;;  %3578 = vmatpush.msra.mxu1 %v9222_v20  ;;  %v9225_v38 = vld [vmem:[#allocation9 + $0x70] sm:$0xff] }
 0xca2   :  { %11596 = vst [vmem:[#allocation41_spill] sm:$0xff] %v9210_v61  ;;  %3598 = vmatpush.msra.mxu2 %v9225_v38  ;;  %v9228_v61 = vld [vmem:[#allocation10 + $0x58] sm:$0xff] }
 0xca3   :  { %11597 = vst [vmem:[#allocation45_spill] sm:$0xff] %v9213_v32  ;;  %3539 = vmatpush.msrb.mxu3 %v9228_v61  ;;  %v9231_v32 = vld [vmem:[#allocation9 + $0x40] sm:$0xff] }
 0xca4   :  { %11598 = vst [vmem:[#allocation49_spill] sm:$0xff] %v9216_v60  ;;  %3559 = vmatpush.msra.mxu0 %v9231_v32  ;;  %v9234_v60 = vld [vmem:[#allocation9 + $0x48] sm:$0xff] }
 0xca5   :  { %11599 = vst [vmem:[#allocation53_spill] sm:$0xff] %v9219_v59  ;;  %3579 = vmatpush.msra.mxu1 %v9234_v60  ;;  %v9237_v59 = vld [vmem:[#allocation9 + $0x50] sm:$0xff] }
 0xca6   :  { %11600 = vst [vmem:[#allocation57_spill] sm:$0xff] %v9222_v20  ;;  %3599 = vmatpush.msra.mxu2 %v9237_v59  ;;  %v9240_v20 = vld [vmem:[#allocation10 + $0x38] sm:$0xff] }
 0xca7   :  { %11601 = vst [vmem:[#allocation61_spill] sm:$0xff] %v9225_v38  ;;  %3540 = vmatpush.msrb.mxu3 %v9240_v20  ;;  %v9243_v38 = vld [vmem:[#allocation9 + $0x20] sm:$0xff] }
 0xca8   :  { %11602 = vst [vmem:[#allocation65_spill] sm:$0xff] %v9228_v61  ;;  %3560 = vmatpush.msra.mxu0 %v9243_v38  ;;  %v9246_v61 = vld [vmem:[#allocation9 + $0x28] sm:$0xff] }
 0xca9   :  { %11603 = vst [vmem:[#allocation69_spill] sm:$0xff] %v9231_v32  ;;  %3580 = vmatpush.msra.mxu1 %v9246_v61  ;;  %v9249_v32 = vld [vmem:[#allocation9 + $0x30] sm:$0xff] }
 0xcaa   :  { %11604 = vst [vmem:[#allocation73_spill] sm:$0xff] %v9234_v60  ;;  %3600 = vmatpush.msra.mxu2 %v9249_v32  ;;  %v9252_v60 = vld [vmem:[#allocation10 + $0x18] sm:$0xff] }
 0xcab   :  { %11605 = vst [vmem:[#allocation77_spill] sm:$0xff] %v9237_v59  ;;  %3541 = vmatpush.msrb.mxu3 %v9252_v60  ;;  %v9255_v59 = vld [vmem:[#allocation9] sm:$0xff] }
 0xcac   :  { %11606 = vst [vmem:[#allocation83_spill] sm:$0xff] %v9240_v20  ;;  %3561 = vmatpush.msra.mxu0 %v9255_v59  ;;  %v9258_v20 = vld [vmem:[#allocation9 + $0x8] sm:$0xff] }
 0xcad   :  { %11607 = vst [vmem:[#allocation87_spill] sm:$0xff] %v9243_v38  ;;  %3581 = vmatpush.msra.mxu1 %v9258_v20  ;;  %v9261_v38 = vld [vmem:[#allocation9 + $0x10] sm:$0xff] }
 0xcae   :  { %11608 = vst [vmem:[#allocation91_spill] sm:$0xff] %v9246_v61  ;;  %3601 = vmatpush.msra.mxu2 %v9261_v38  ;;  %v3208_v61 = vpop.f32.mrf.mxu0 }
 0xcaf   :  { %11609 = vst [vmem:[#allocation95_spill] sm:$0xff] %v9249_v32 }
 0xcb0   :  { %11610 = vst [vmem:[#allocation99_spill] sm:$0xff] %v9252_v60 }
 0xcb1   :  { %11611 = vst [vmem:[#allocation106_spill] sm:$0xff] %v9255_v59 }
 0xcb2   :  { %11612 = vst [vmem:[#allocation110_spill] sm:$0xff] %v9258_v20 }
 0xcb3   :  { %11613 = vst [vmem:[#allocation111_spill] sm:$0xff] %v9261_v38 }
 0xcf9   :  { %v3288_v32 = vpop.f32.mrf.mxu0 }
 0xcfa   :  { %v3289_v45 = vadd.f32 %v3288_v32, %v3208_v61  ;;  %v3308_v32 = vpop.f32.mrf.mxu1 }
 0xcfc   :  { %v3332_v30 = vadd.f32 %v3289_v45, %v11523_v3 }
 0xcfe   :  { %v4396_v60 = vmul.f32 -1.442695, %v3332_v30 }
 0xcff   :  { %v3268_v43 = vpop.f32.mrf.mxu3 }
 0xd00   :  { %4630 = vpow2.f32 %v4396_v60  ;;  %v3269_v36 = vadd.f32 %v3268_v43, %v3188_v48  ;;  %v3328_v59 = vpop.f32.mrf.mxu2 }
 0xd01   :  { %v3329_v15 = vadd.f32 %v3328_v59, %v3248_v47 }
 0xd02   :  { %v3331_v25 = vadd.f32 %v3269_v36, %v11522_v56  ;;  %v3309_v36 = vadd.f32 %v3308_v32, %v3228_v21 }
 0xd03   :  { %v3334_v20 = vadd.f32 %v3329_v15, %v11521_v6 }
 0xd04   :  { %v4395_v4 = vmul.f32 -1.442695, %v3331_v25  ;;  %v3333_v59 = vadd.f32 %v3309_v36, %v11524_v11 }
 0xd05   :  { %v4397_v1 = vmul.f32 -1.442695, %v3334_v20 }
 0xd06   :  { %v4631_v38 = vpop.eup %4630  ;;  %4632 = vpow2.f32 %v4395_v4 }
 0xd07   :  { %v3357_v40 = vadd.f32 1.0, %v4631_v38  ;;  %4634 = vpow2.f32 %v4397_v1 }
 0xd09   :  { %4636 = vrcp.f32 %v3357_v40  ;;  %v3369_v38 = vand.u32 2147483648, %v3357_v40  ;;  %vm3363_vm13 = vweird.f32 %v3357_v40 }
 0xd0b   :  { %v3370_v32 = vor.u32 1.1754944e-38, %v3369_v38  ;;  %v11640_v38 = vld [vmem:[#allocation60_spill] sm:$0xff] }
 0xd0c   :  { %v4633_v61 = vpop.eup %4632 }
 0xd0d   :  { %v4635_v45 = vpop.eup %4634  ;;  %v3338_v30 = vadd.f32 1.0, %v4633_v61  ;;  %v3367_v61 = vand.u32 2147483647, %v3357_v40 }
 0xd0e   :  { %v3377_v60 = vadd.f32 1.0, %v4635_v45 }
 0xd0f   :  { %v4637_v43 = vpop.eup %4636  ;;  %4638 = vrcp.f32 %v3338_v30  ;;  %v3350_v45 = vand.u32 2147483648, %v3338_v30  ;;  %v3348_v21 = vand.u32 2147483647, %v3338_v30  ;;  %vm3368_vm1 = vcmp.eq.f32.partialorder %v3367_v61, 8.507059e+37 }
 0xd10   :  { %v3359_v47 = vmul.f32 %v4637_v43, %v3357_v40  ;;  %4640 = vrcp.f32 %v3377_v60  ;;  %vm3364_vm12 = vweird.f32 %v4637_v43  ;;  %vm3344_vm2 = vweird.f32 %v3338_v30 }
 0xd11   :  { %vm3365_vm0 = vmor %vm3363_vm13, %vm3364_vm12  ;;  %4642 = vtanh.f32 %v3333_v59  ;;  %vm3349_vm11 = vcmp.eq.f32.partialorder %v3348_v21, 8.507059e+37  ;;  %vm3383_vm13 = vweird.f32 %v3377_v60  ;;  %v11641_v21 = vld [vmem:[#allocation74_spill] sm:$0xff] }
 0xd12   :  { %v3360_v48 = vsub.f32 1.0, %v3359_v47 }
 0xd14   :  { %v3361_v15 = vmul.f32 %v4637_v43, %v3360_v48 }
 0xd15   :  { %v4639_v25 = vpop.eup %4638 }
 0xd16   :  { %v4641_v20 = vpop.eup %4640  ;;  %v3362_v4 = vadd.f32 %v4637_v43, %v3361_v15  ;;  %v3340_v1 = vmul.f32 %v4639_v25, %v3338_v30  ;;  %vm3345_vm15 = vweird.f32 %v4639_v25  ;;  %v3351_v15 = vor.u32 1.1754944e-38, %v3350_v45 }
 0xd17   :  { %v3379_v6 = vmul.f32 %v4641_v20, %v3377_v60  ;;  %vm3346_vm10 = vmor %vm3344_vm2, %vm3345_vm15  ;;  %v4643_v26 = vpop.eup %4642  ;;  %vm3384_vm12 = vweird.f32 %v4641_v20 }
 0xd18   :  { %v3341_v3 = vsub.f32 1.0, %v3340_v1  ;;  %v3366_v56 = vsel %vm3365_vm0, %v4637_v43, %v3362_v4  ;;  %v3389_v4 = vand.u32 2147483648, %v3377_v60  ;;  %vm3385_vm0 = vmor %vm3383_vm13, %vm3384_vm12 }
 0xd19   :  { %v3380_v47 = vsub.f32 1.0, %v3379_v6  ;;  %v3371_v48 = vsel %vm3368_vm1, %v3370_v32, %v3366_v56  ;;  %v3387_v6 = vand.u32 2147483647, %v3377_v60  ;;  %v11639_v60 = vld [vmem:[#allocation59_spill] sm:$0xff] }
 0xd1a   :  { %v3342_v12 = vmul.f32 %v4639_v25, %v3341_v3  ;;  %v3393_v59 = vmul.f32 %v3371_v48, %v8787_v22  ;;  %v9272_v22 = vld [vmem:[#allocation9 + $0x1f8] sm:$0xff] }
 0xd1b   :  { %v3381_v1 = vmul.f32 %v4641_v20, %v3380_v47  ;;  %vm3388_vm15 = vcmp.eq.f32.partialorder %v3387_v6, 8.507059e+37  ;;  %v3430_v47 = vstv %s4400_s0  ;;  %v3442_v6 = vstv %s4404_s8  ;;  %s3754_s0 = scvt.s32.f32 %s3753_s26  ;;  %s4430_s8 = sld [smem:[#allocation4 + $0x300]] }
 0xd1c   :  { %v3343_v36 = vadd.f32 %v4639_v25, %v3342_v12  ;;  %v3390_v12 = vor.u32 1.1754944e-38, %v3389_v4  ;;  %v3431_v48 = vsel %vm2242_vm4, %v3430_v47, 0  ;;  %v11662_v47 = vld [vmem:[#allocation85_spill] sm:$0xff] }
 0xd1d   :  { %v3382_v3 = vadd.f32 %v4641_v20, %v3381_v1  ;;  %v3436_v1 = vstv %s4402_s28 }
 0xd1e   :  { %v3347_v11 = vsel %vm3346_vm10, %v4639_v25, %v3343_v36 }
 0xd1f   :  { %v3352_v40 = vsel %vm3349_vm11, %v3351_v15, %v3347_v11  ;;  %v3386_v56 = vsel %vm3385_vm0, %v4641_v20, %v3382_v3  ;;  %v3433_v15 = vstv %s4401_s27  ;;  %v3439_v3 = vstv %s4403_s1  ;;  %s3757_s27 = ssub.f32 1.0, %s3754_s0 }
 0xd20   :  { %v3394_v44 = vmul.f32 %v4643_v26, %v3352_v40  ;;  %v3391_v25 = vsel %vm3388_vm15, %v3390_v12, %v3386_v56  ;;  %v9284_v26 = vld [vmem:[#allocation9 + $0x1b8] sm:$0xff]  ;;  %v3434_v40 = vsel %vm2246_vm5, %v3433_v15, %v3431_v48  ;;  %v3445_v12 = vstv %s4405_s29  ;;  %v11663_v48 = vld [vmem:[#allocation88_spill] sm:$0xff]  ;;  %v11664_v15 = vld [vmem:[#allocation102_spill] sm:$0xff]  ;;  %s4431_s29 = sld [smem:[#allocation4 + $0x301]] }
 0xd22   :  { %v9269_v43 = vadd.f32 %v3394_v44, %v3393_v59  ;;  %v9278_v44 = vld [vmem:[#allocation9 + $0x1d8] sm:$0xff]  ;;  %v3437_v59 = vsel %vm2250_vm6, %v3436_v1, %v3434_v40  ;;  %v11665_v40 = vld [vmem:[#allocation89_spill] sm:$0xff]  ;;  %v11666_v1 = vld [vmem:[#allocation92_spill] sm:$0xff] }
 0xd23   :  { %v3440_v4 = vsel %vm2254_vm7, %v3439_v3, %v3437_v59  ;;  %v11667_v59 = vld [vmem:[#allocation103_spill] sm:$0xff]  ;;  %v11668_v3 = vld [vmem:[#allocation93_spill] sm:$0xff] }
 0xd24   :  { %4644 = vtanh.f32 %v9269_v43  ;;  %v3443_v56 = vsel %vm2258_vm8, %v3442_v6, %v3440_v4  ;;  %v11669_v4 = vld [vmem:[#allocation96_spill] sm:$0xff] }
 0xd25   :  { %v11670_v6 = vld [vmem:[#allocation104_spill] sm:$0xff] }
 0xd2a   :  { %v4645_v30 = vpop.eup %4644 }
 0xd2b   :  { %v3397_v11 = vmul.f32 %v4645_v30, %v3391_v25  ;;  %v3446_v30 = vsel %vm2262_vm9, %v3445_v12, %v3443_v56  ;;  %v3448_v25 = vstv %s4406_s12  ;;  %v11671_v56 = vld [vmem:[#allocation97_spill] sm:$0xff]  ;;  %v11672_v12 = vld [vmem:[#allocation100_spill] sm:$0xff]  ;;  %s4433_s12 = sld [smem:[#allocation4 + $0x303]] }
 0xd2d   :  { %3414 = vmatmul.f32.vlgmr.msra.gmra.mxu3 %v3397_v11  ;;  %3482 = vmatmul.f32.vlgmr.msrb.gmra.mxu0 %v3397_v11 }
 0xd2e   :  { %3502 = vmatmul.f32.vlgmr.msrb.gmra.mxu1 %v3397_v11  ;;  %3522 = vmatmul.f32.vlgmr.msrb.gmra.mxu2 %v3397_v11 }
 0xd2f   :  { %3606 = vmatpush.msra.mxu3 %v9272_v22  ;;  %3693 = vmatpush.msrb.mxu0 %v8794_v42  ;;  %v9291_v42 = vld [vmem:[#allocation9 + $0x198] sm:$0xff] }
 0xd30   :  { %3761 = vmatpush.msrb.mxu1 %v8797_v35  ;;  %3781 = vmatpush.msrb.mxu2 %v8800_v19  ;;  %v9297_v35 = vld [vmem:[#allocation9 + $0x178] sm:$0xff] }
 0xd31   :  { %3607 = vmatpush.msra.mxu3 %v9278_v44  ;;  %3694 = vmatpush.msrb.mxu0 %v8807_v51  ;;  %v9303_v19 = vld [vmem:[#allocation9 + $0x158] sm:$0xff] }
 0xd32   :  { %3762 = vmatpush.msrb.mxu1 %v8810_v46  ;;  %3782 = vmatpush.msrb.mxu2 %v8813_v57  ;;  %v9309_v51 = vld [vmem:[#allocation9 + $0x138] sm:$0xff] }
 0xd33   :  { %3608 = vmatpush.msra.mxu3 %v9284_v26  ;;  %3695 = vmatpush.msrb.mxu0 %v8820_v23  ;;  %v9315_v46 = vld [vmem:[#allocation9 + $0x118] sm:$0xff] }
 0xd34   :  { %3763 = vmatpush.msrb.mxu1 %v8823_v0  ;;  %3783 = vmatpush.msrb.mxu2 %v8826_v53  ;;  %v9321_v57 = vld [vmem:[#allocation9 + $0xf8] sm:$0xff] }
 0xd35   :  { %3542 = vmatmul.f32.vlgmr.msrb.gmra.mxu3 %v3397_v11  ;;  %3696 = vmatpush.msrb.mxu0 %v8832_v24  ;;  %v9327_v23 = vld [vmem:[#allocation9 + $0xd8] sm:$0xff]  ;;  %v3449_v11 = vsel %vm2266_vm14, %v3448_v25, %v3446_v30  ;;  %v11673_v30 = vld [vmem:[#allocation105_spill] sm:$0xff] }
 0xd36   :  { %3609 = vmatpush.msra.mxu3 %v9291_v42  ;;  %3764 = vmatpush.msrb.mxu1 %v8836_v8  ;;  %v9333_v0 = vld [vmem:[#allocation9 + $0xb8] sm:$0xff]  ;;  %v11614_v8 = vld [vmem:[#allocation108_spill] sm:$0xff]  ;;  %v11674_v25 = vld [vmem:[#allocation101_spill] sm:$0xff] }
 0xd37   :  { %3697 = vmatpush.msrb.mxu0 %v8842_v14  ;;  %3784 = vmatpush.msrb.mxu2 %v8845_v55  ;;  %v9339_v53 = vld [vmem:[#allocation9 + $0x98] sm:$0xff]  ;;  %v11615_v14 = vld [vmem:[#allocation42_spill] sm:$0xff] }
 0xd38   :  { %3610 = vmatpush.msra.mxu3 %v9297_v35  ;;  %3765 = vmatpush.msrb.mxu1 %v8849_v5  ;;  %v9345_v24 = vld [vmem:[#allocation9 + $0x78] sm:$0xff]  ;;  %v11616_v5 = vld [vmem:[#allocation32_spill] sm:$0xff] }
 0xd39   :  { %3698 = vmatpush.msrb.mxu0 %v8855_v28  ;;  %3785 = vmatpush.msrb.mxu2 %v8858_v54  ;;  %v9351_v55 = vld [vmem:[#allocation9 + $0x58] sm:$0xff]  ;;  %v11617_v28 = vld [vmem:[#allocation109_spill] sm:$0xff] }
 0xd3a   :  { %3611 = vmatpush.msra.mxu3 %v9303_v19  ;;  %3766 = vmatpush.msrb.mxu1 %v8862_v50  ;;  %v11618_v54 = vld [vmem:[#allocation33_spill] sm:$0xff]  ;;  %v9357_v50 = vld [vmem:[#allocation9 + $0x38] sm:$0xff] }
 0xd3b   :  { %3699 = vmatpush.msrb.mxu0 %v8868_v34  ;;  %3786 = vmatpush.msrb.mxu2 %v8871_v18  ;;  %v11619_v34 = vld [vmem:[#allocation46_spill] sm:$0xff]  ;;  %v11620_v18 = vld [vmem:[#allocation24_spill] sm:$0xff] }
 0xd3c   :  { %3612 = vmatpush.msra.mxu3 %v9309_v51  ;;  %3767 = vmatpush.msrb.mxu1 %v8875_v58  ;;  %v11621_v58 = vld [vmem:[#allocation36_spill] sm:$0xff] }
 0xd3d   :  { %3700 = vmatpush.msrb.mxu0 %v8881_v10  ;;  %3787 = vmatpush.msrb.mxu2 %v8884_v27  ;;  %v9363_v10 = vld [vmem:[#allocation9 + $0x18] sm:$0xff]  ;;  %v11622_v27 = vld [vmem:[#allocation37_spill] sm:$0xff] }
 0xd3e   :  { %3613 = vmatpush.msra.mxu3 %v9315_v46  ;;  %3768 = vmatpush.msrb.mxu1 %v8888_v17  ;;  %v11623_v17 = vld [vmem:[#allocation50_spill] sm:$0xff] }
 0xd3f   :  { %3701 = vmatpush.msrb.mxu0 %v8894_v29  ;;  %3788 = vmatpush.msrb.mxu2 %v8897_v49  ;;  %v11624_v29 = vld [vmem:[#allocation39_spill] sm:$0xff]  ;;  %v11625_v49 = vld [vmem:[#allocation40_spill] sm:$0xff] }
 0xd40   :  { %3614 = vmatpush.msra.mxu3 %v9321_v57  ;;  %3769 = vmatpush.msrb.mxu1 %v8901_v9  ;;  %v11626_v9 = vld [vmem:[#allocation54_spill] sm:$0xff] }
 0xd41   :  { %3702 = vmatpush.msrb.mxu0 %v8907_v31  ;;  %3789 = vmatpush.msrb.mxu2 %v8910_v37  ;;  %v11627_v31 = vld [vmem:[#allocation43_spill] sm:$0xff]  ;;  %v11628_v37 = vld [vmem:[#allocation44_spill] sm:$0xff] }
 0xd42   :  { %3615 = vmatpush.msra.mxu3 %v9327_v23  ;;  %3770 = vmatpush.msrb.mxu1 %v8914_v52  ;;  %v11629_v52 = vld [vmem:[#allocation58_spill] sm:$0xff] }
 0xd43   :  { %3703 = vmatpush.msrb.mxu0 %v8920_v33  ;;  %3790 = vmatpush.msrb.mxu2 %v8923_v16  ;;  %v11630_v33 = vld [vmem:[#allocation47_spill] sm:$0xff]  ;;  %v11631_v16 = vld [vmem:[#allocation48_spill] sm:$0xff] }
 0xd44   :  { %3616 = vmatpush.msra.mxu3 %v9333_v0  ;;  %3771 = vmatpush.msrb.mxu1 %v8927_v13  ;;  %v11632_v13 = vld [vmem:[#allocation62_spill] sm:$0xff] }
 0xd45   :  { %3704 = vmatpush.msrb.mxu0 %v8933_v39  ;;  %3791 = vmatpush.msrb.mxu2 %v8936_v63  ;;  %v11633_v39 = vld [vmem:[#allocation51_spill] sm:$0xff]  ;;  %v11634_v63 = vld [vmem:[#allocation52_spill] sm:$0xff] }
 0xd46   :  { %3617 = vmatpush.msra.mxu3 %v9339_v53  ;;  %3772 = vmatpush.msrb.mxu1 %v8940_v62  ;;  %v11635_v62 = vld [vmem:[#allocation66_spill] sm:$0xff] }
 0xd47   :  { %3705 = vmatpush.msrb.mxu0 %v8946_v41  ;;  %3792 = vmatpush.msrb.mxu2 %v8949_v2  ;;  %v11636_v41 = vld [vmem:[#allocation55_spill] sm:$0xff]  ;;  %v11637_v2 = vld [vmem:[#allocation56_spill] sm:$0xff] }
 0xd48   :  { %3618 = vmatpush.msra.mxu3 %v9345_v24  ;;  %3773 = vmatpush.msrb.mxu1 %v8953_v7  ;;  %v11638_v7 = vld [vmem:[#allocation70_spill] sm:$0xff] }
 0xd49   :  { %3706 = vmatpush.msrb.mxu0 %v11614_v8  ;;  %3793 = vmatpush.msrb.mxu2 %v11615_v14  ;;  %v3451_v8 = vstv %s4407_s13  ;;  %s4434_s13 = sld [smem:[#allocation4 + $0x304]] }
 0xd4a   :  { %3619 = vmatpush.msra.mxu3 %v9351_v55  ;;  %3774 = vmatpush.msrb.mxu1 %v11616_v5  ;;  %v3452_v14 = vsel %vm2270_vm3, %v3451_v8, %v3449_v11  ;;  %v11643_v5 = vld [vmem:[#allocation107_spill] sm:$0xff]  ;;  %v11676_v8 = vld [vmem:[#allocation16_spill] sm:$0xff] }
 0xd4b   :  { %3707 = vmatpush.msrb.mxu0 %v11617_v28  ;;  %3794 = vmatpush.msrb.mxu2 %v11618_v54  ;;  %vm3453_vm2 = vcmp.eq.s32.totalorder %v11643_v5, %v3452_v14  ;;  %v11644_v28 = vmov 0.0   ;;  %v11675_v11 = vld [vmem:[#allocation23_spill] sm:$0xff]  ;;  %v11677_v14 = vld [vmem:[#allocation17_spill] sm:$0xff] }
 0xd4c   :  { %3620 = vmatpush.msra.mxu3 %v9357_v50  ;;  %3775 = vmatpush.msrb.mxu1 %v11619_v34  ;;  %v4408_v54 = vsel %vm3453_vm2, 1.0, %v11644_v28  ;;  %v3460_v34 = vstv %s3459_s15  ;;  %s4439_s15 = sld [smem:[#allocation3 + $0x6]] }
 0xd4d   :  { %3708 = vmatpush.msrb.mxu0 %v11620_v18  ;;  %3795 = vmatpush.msrb.mxu2 %v11621_v58  ;;  %v3463_v18 = vstv %s3462_s16  ;;  %s4436_s16 = sld [smem:[#allocation4 + $0x306]] }
 0xd4e   :  { %3621 = vmatpush.msra.mxu3 %v9363_v10  ;;  %3776 = vmatpush.msrb.mxu1 %v11622_v27  ;;  %v3461_v27 = vmul.f32 %v4408_v54, %v3460_v34  ;;  %v11678_v54 = vld [vmem:[#allocation18_spill] sm:$0xff]  ;;  %v11679_v34 = vld [vmem:[#allocation27_spill] sm:$0xff] }
 0xd4f   :  { %3796 = vmatpush.msrb.mxu2 %v11624_v29 }
 0xd50   :  { %3801 = vmatpush.msrb.mxu3 %v11623_v17 }
 0xd52   :  { %3802 = vmatpush.msrb.mxu3 %v11625_v49  ;;  %p4047_p6 = scmp.ne.s32.totalorder %s4439_s15, 0 }
 0xd54   :  { %3803 = vmatpush.msrb.mxu3 %v11626_v9  ;;  %v9409_v9 = vld [vmem:[#allocation10 + $0x1f8] sm:$0xff]  ;;  %s4048_s2 = scalar_select %p4047_p6, 1, 0 }
 0xd56   :  { %3804 = vmatpush.msrb.mxu3 %v11627_v31  ;;  %v11645_v31 = vld [vmem:[#allocation63_spill] sm:$0xff]  ;;  %s4049_s18 = scvt.s32.f32 %s4048_s2 }
 0xd58   :  { %3805 = vmatpush.msrb.mxu3 %v11628_v37  ;;  %v11646_v37 = vld [vmem:[#allocation64_spill] sm:$0xff]  ;;  %s4052_s4 = ssub.f32 1.0, %s4049_s18 }
 0xd5a   :  { %3806 = vmatpush.msrb.mxu3 %v11629_v52  ;;  %v11647_v52 = vld [vmem:[#allocation78_spill] sm:$0xff] }
 0xd5c   :  { %3807 = vmatpush.msrb.mxu3 %v11630_v33  ;;  %v9415_v33 = vld [vmem:[#allocation10 + $0x1d8] sm:$0xff] }
 0xd5e   :  { %3808 = vmatpush.msrb.mxu3 %v11631_v16  ;;  %v11648_v16 = vld [vmem:[#allocation67_spill] sm:$0xff] }
 0xd60   :  { %3809 = vmatpush.msrb.mxu3 %v11632_v13  ;;  %v11649_v13 = vld [vmem:[#allocation68_spill] sm:$0xff] }
 0xd62   :  { %3810 = vmatpush.msrb.mxu3 %v11633_v39  ;;  %v11650_v39 = vld [vmem:[#allocation82_spill] sm:$0xff] }
 0xd64   :  { %3811 = vmatpush.msrb.mxu3 %v11634_v63  ;;  %v11651_v63 = vld [vmem:[#allocation71_spill] sm:$0xff] }
 0xd66   :  { %3812 = vmatpush.msrb.mxu3 %v11635_v62  ;;  %v11652_v62 = vld [vmem:[#allocation72_spill] sm:$0xff] }
 0xd68   :  { %3813 = vmatpush.msrb.mxu3 %v11636_v41  ;;  %v11653_v41 = vld [vmem:[#allocation86_spill] sm:$0xff] }
 0xd6a   :  { %3814 = vmatpush.msrb.mxu3 %v11637_v2  ;;  %v11654_v2 = vld [vmem:[#allocation75_spill] sm:$0xff] }
 0xd6c   :  { %3815 = vmatpush.msrb.mxu3 %v11638_v7  ;;  %v11655_v7 = vld [vmem:[#allocation76_spill] sm:$0xff] }
 0xd6e   :  { %3816 = vmatpush.msrb.mxu3 %v11639_v60  ;;  %v11656_v60 = vld [vmem:[#allocation90_spill] sm:$0xff] }
 0xdb0   :  { %v3415_v20 = vpop.f32.mrf.mxu3 }
 0xdb1   :  { %v3416_v61 = vadd.f32 %v11640_v38, %v3415_v20  ;;  %v11657_v20 = vld [vmem:[#allocation80_spill] sm:$0xff]  ;;  %v11658_v38 = vld [vmem:[#allocation94_spill] sm:$0xff] }
 0xdb3   :  { %4398 = vst [vmem:[%s9697_s11 + $0x18] sm:$0xff] %v3416_v61  ;;  %3420 = vmax.xlane.f32.xlu0 %v3416_v61 }
 0xe26   :  { %v3421_v45 = vpop.xlane.xlu0 %3420 }
 0xe27   :  { %vm3422_vm1 = vcmp.ge.f32.partialorder %v3416_v61, %v3421_v45  ;;  %v11659_v61 = vld [vmem:[#allocation81_spill] sm:$0xff]  ;;  %v11660_v45 = vld [vmem:[#allocation84_spill] sm:$0xff] }
 0xe28   :  { %v3423_v32 = vsel %vm3422_vm1, %v11641_v21, 128.0 }
 0xe29   :  { %3424 = vmin.xlane.f32.xlu1 %v3423_v32  ;;  %v11661_v32 = vld [vmem:[#allocation98_spill] sm:$0xff] }
 0xe9c   :  { %v3425_v58 = vpop.xlane.xlu1 %3424 }
 0xe9d   :  { %vm3426_vm10 = vcmp.eq.f32.partialorder %v11641_v21, %v3425_v58  ;;  %v11681_v58 = vld [vmem:[#allocation20_spill] sm:$0xff] }
 0xe9e   :  { %v4399_v17 = vsel %vm3426_vm10, 1.0, %v11644_v28 }
 0xe9f   :  { %v3464_v29 = vmul.f32 %v4399_v17, %v3463_v18  ;;  %v11680_v18 = vld [vmem:[#allocation19_spill] sm:$0xff] }
 0xea0   :  { %v11683_v17 = vld [vmem:[#allocation31_spill] sm:$0xff] }
 0xea1   :  { %v3465_v49 = vadd.f32 %v3464_v29, %v3461_v27  ;;  %v11682_v27 = vld [vmem:[#allocation21_spill] sm:$0xff]  ;;  %v11684_v29 = vld [vmem:[#allocation22_spill] sm:$0xff] }
 0xea3   :  { %3562 = vmatmul.f32.vlgmr.msra.gmra.mxu0 %v3465_v49  ;;  %3582 = vmatmul.f32.vlgmr.msra.gmra.mxu1 %v3465_v49 }
 0xea4   :  { %3602 = vmatmul.f32.vlgmr.msra.gmra.mxu2 %v3465_v49  ;;  %3622 = vmatmul.f32.vlgmr.msra.gmra.mxu3 %v3465_v49  ;;  %v11685_v49 = vld [vmem:[#allocation26_spill] sm:$0xff] }
 0xea5   :  { %3821 = vmatpush.msra.mxu0 %v9409_v9  ;;  %3841 = vmatpush.msra.mxu1 %v11645_v31  ;;  %v11686_v31 = vld [vmem:[#allocation30_spill] sm:$0xff] }
 0xea6   :  { %3861 = vmatpush.msra.mxu2 %v11646_v37  ;;  %3881 = vmatpush.msra.mxu3 %v11647_v52  ;;  %v11687_v37 = vld [vmem:[#allocation34_spill] sm:$0xff] }
 0xea7   :  { %3822 = vmatpush.msra.mxu0 %v9415_v33  ;;  %3842 = vmatpush.msra.mxu1 %v11648_v16  ;;  %v11688_v52 = vld [vmem:[#allocation38_spill] sm:$0xff]  ;;  %v11689_v16 = vld [vmem:[#allocation41_spill] sm:$0xff] }
 0xea8   :  { %3862 = vmatpush.msra.mxu2 %v11649_v13  ;;  %3882 = vmatpush.msra.mxu3 %v11650_v39  ;;  %v11690_v13 = vld [vmem:[#allocation45_spill] sm:$0xff] }
 0xea9   :  { %3823 = vmatpush.msra.mxu0 %v11651_v63  ;;  %3843 = vmatpush.msra.mxu1 %v11652_v62  ;;  %v11691_v39 = vld [vmem:[#allocation49_spill] sm:$0xff] }
 0xeaa   :  { %3863 = vmatpush.msra.mxu2 %v11653_v41  ;;  %3883 = vmatpush.msra.mxu3 %v11654_v2  ;;  %v11692_v63 = vld [vmem:[#allocation53_spill] sm:$0xff] }
 0xeab   :  { %3824 = vmatpush.msra.mxu0 %v11655_v7  ;;  %3844 = vmatpush.msra.mxu1 %v11656_v60  ;;  %v11693_v62 = vld [vmem:[#allocation57_spill] sm:$0xff] }
 0xeac   :  { %3864 = vmatpush.msra.mxu2 %v11657_v20  ;;  %3884 = vmatpush.msra.mxu3 %v11658_v38  ;;  %v11694_v41 = vld [vmem:[#allocation61_spill] sm:$0xff]  ;;  %v11699_v38 = vld [vmem:[#allocation83_spill] sm:$0xff] }
 0xead   :  { %3825 = vmatpush.msra.mxu0 %v11659_v61  ;;  %3845 = vmatpush.msra.mxu1 %v11660_v45  ;;  %v11695_v2 = vld [vmem:[#allocation65_spill] sm:$0xff]  ;;  %v11700_v61 = vld [vmem:[#allocation87_spill] sm:$0xff] }
 0xeae   :  { %3865 = vmatpush.msra.mxu2 %v11661_v32  ;;  %3885 = vmatpush.msra.mxu3 %v11662_v47  ;;  %v11696_v7 = vld [vmem:[#allocation69_spill] sm:$0xff]  ;;  %v11701_v45 = vld [vmem:[#allocation91_spill] sm:$0xff] }
 0xeaf   :  { %3826 = vmatpush.msra.mxu0 %v11663_v48  ;;  %3846 = vmatpush.msra.mxu1 %v11664_v15  ;;  %v11697_v60 = vld [vmem:[#allocation73_spill] sm:$0xff]  ;;  %v11702_v32 = vld [vmem:[#allocation95_spill] sm:$0xff]  ;;  %v11704_v48 = vld [vmem:[#allocation106_spill] sm:$0xff] }
 0xeb0   :  { %3866 = vmatpush.msra.mxu2 %v11665_v40  ;;  %3886 = vmatpush.msra.mxu3 %v11666_v1  ;;  %v11698_v20 = vld [vmem:[#allocation77_spill] sm:$0xff]  ;;  %v11703_v47 = vld [vmem:[#allocation99_spill] sm:$0xff]  ;;  %v11705_v15 = vld [vmem:[#allocation110_spill] sm:$0xff]  ;;  %v3483_v1 = vpop.f32.mrf.mxu0 }
 0xeb1   :  { %3827 = vmatpush.msra.mxu0 %v11667_v59  ;;  %3847 = vmatpush.msra.mxu1 %v11668_v3  ;;  %v11706_v40 = vld [vmem:[#allocation111_spill] sm:$0xff]  ;;  %v3503_v59 = vpop.f32.mrf.mxu1  ;;  %v3543_v3 = vpop.f32.mrf.mxu3 }
 0xeb2   :  { %3867 = vmatpush.msra.mxu2 %v11669_v4  ;;  %3887 = vmatpush.msra.mxu3 %v11670_v6 }
 0xeb3   :  { %3828 = vmatpush.msra.mxu0 %v11671_v56  ;;  %3848 = vmatpush.msra.mxu1 %v11672_v12 }
 0xeb4   :  { %3868 = vmatpush.msra.mxu2 %v11673_v30  ;;  %3888 = vmatpush.msra.mxu3 %v11674_v25  ;;  %v11707_v30 = vld [vmem:[#allocation25_spill] sm:$0xff] }
 0xeb5   :  { %3829 = vmatpush.msra.mxu0 %v11675_v11  ;;  %3849 = vmatpush.msra.mxu1 %v11676_v8  ;;  %v11708_v11 = vld [vmem:[#allocation35_spill] sm:$0xff] }
 0xeb6   :  { %3869 = vmatpush.msra.mxu2 %v11677_v14  ;;  %3889 = vmatpush.msra.mxu3 %v11678_v54 }
 0xeb7   :  { %3830 = vmatpush.msra.mxu0 %v11679_v34  ;;  %3850 = vmatpush.msra.mxu1 %v11680_v18  ;;  %v3523_v34 = vpop.f32.mrf.mxu2 }
 0xeb8   :  { %3870 = vmatpush.msra.mxu2 %v11681_v58  ;;  %3890 = vmatpush.msra.mxu3 %v11682_v27  ;;  %v11709_v27 = vld [vmem:[#allocation28_spill] sm:$0xff] }
 0xeb9   :  { %3831 = vmatpush.msra.mxu0 %v11683_v17  ;;  %3851 = vmatpush.msra.mxu1 %v11684_v29 }
 0xeba   :  { %3871 = vmatpush.msra.mxu2 %v11685_v49  ;;  %3891 = vmatpush.msra.mxu3 %v11686_v31 }
 0xebb   :  { %3832 = vmatpush.msra.mxu0 %v11687_v37  ;;  %3852 = vmatpush.msra.mxu1 %v11688_v52 }
 0xebc   :  { %3872 = vmatpush.msra.mxu2 %v11689_v16  ;;  %3892 = vmatpush.msra.mxu3 %v11690_v13 }
 0xebd   :  { %3833 = vmatpush.msra.mxu0 %v11691_v39  ;;  %3853 = vmatpush.msra.mxu1 %v11692_v63 }
 0xebe   :  { %3873 = vmatpush.msra.mxu2 %v11693_v62  ;;  %3893 = vmatpush.msra.mxu3 %v11694_v41  ;;  %v11710_v41 = vld [vmem:[#allocation29_spill] sm:$0xff] }
 0xebf   :  { %3834 = vmatpush.msra.mxu0 %v11695_v2  ;;  %3854 = vmatpush.msra.mxu1 %v11696_v7 }
 0xec0   :  { %3874 = vmatpush.msra.mxu2 %v11697_v60  ;;  %3894 = vmatpush.msra.mxu3 %v11698_v20 }
 0xec1   :  { %3835 = vmatpush.msra.mxu0 %v11699_v38  ;;  %3855 = vmatpush.msra.mxu1 %v11700_v61 }
 0xec2   :  { %3875 = vmatpush.msra.mxu2 %v11701_v45  ;;  %3895 = vmatpush.msra.mxu3 %v11702_v32 }
 0xec3   :  { %3836 = vmatpush.msra.mxu0 %v11703_v47  ;;  %3856 = vmatpush.msra.mxu1 %v11704_v48 }
 0xec4   :  { %3876 = vmatpush.msra.mxu2 %v11705_v15  ;;  %3896 = vmatpush.msra.mxu3 %v11706_v40 }
 0xf20   :  { %v3563_v4 = vpop.f32.mrf.mxu0  ;;  %v3583_v6 = vpop.f32.mrf.mxu1 }
 0xf21   :  { %v3564_v56 = vadd.f32 %v3563_v4, %v3483_v1  ;;  %v3584_v12 = vadd.f32 %v3583_v6, %v3503_v59 }
 0xf23   :  { %v3626_v25 = vadd.f32 %v3564_v56, %v11707_v30  ;;  %v3627_v8 = vadd.f32 %v3584_v12, %v11708_v11 }
 0xf25   :  { %v4410_v14 = vmul.f32 -1.442695, %v3626_v25  ;;  %v4411_v54 = vmul.f32 -1.442695, %v3627_v8 }
 0xf27   :  { %4646 = vpow2.f32 %v4410_v14  ;;  %v3623_v18 = vpop.f32.mrf.mxu3  ;;  %v3603_v16 = vpop.f32.mrf.mxu2 }
 0xf28   :  { %4648 = vpow2.f32 %v4411_v54  ;;  %v3624_v58 = vadd.f32 %v3623_v18, %v3543_v3  ;;  %v3604_v13 = vadd.f32 %v3603_v16, %v3523_v34 }
 0xf2a   :  { %v3629_v17 = vadd.f32 %v3624_v58, %v11709_v27  ;;  %v3628_v2 = vadd.f32 %v3604_v13, %v11710_v41 }
 0xf2c   :  { %v4412_v29 = vmul.f32 -1.442695, %v3629_v17 }
 0xf2d   :  { %v4647_v49 = vpop.eup %4646 }
 0xf2e   :  { %v4649_v31 = vpop.eup %4648  ;;  %v3633_v37 = vadd.f32 1.0, %v4647_v49  ;;  %4650 = vpow2.f32 %v4412_v29 }
 0xf2f   :  { %v3652_v52 = vadd.f32 1.0, %v4649_v31 }
 0xf30   :  { %4652 = vrcp.f32 %v3633_v37  ;;  %v3645_v45 = vand.u32 2147483648, %v3633_v37  ;;  %v3643_v48 = vand.u32 2147483647, %v3633_v37  ;;  %vm3639_vm13 = vweird.f32 %v3633_v37 }
 0xf31   :  { %4654 = vrcp.f32 %v3652_v52  ;;  %v3664_v32 = vand.u32 2147483648, %v3652_v52  ;;  %v3662_v40 = vand.u32 2147483647, %v3652_v52  ;;  %vm3658_vm0 = vweird.f32 %v3652_v52 }
 0xf32   :  { %v3646_v3 = vor.u32 1.1754944e-38, %v3645_v45  ;;  %vm3644_vm2 = vcmp.eq.f32.partialorder %v3643_v48, 8.507059e+37  ;;  %v9516_v45 = vld [vmem:[%s9695_s9 + $0x58] sm:$0xff]  ;;  %v9523_v48 = vld [vmem:[%s9695_s9 + $0x50] sm:$0xff] }
 0xf33   :  { %v3665_v56 = vor.u32 1.1754944e-38, %v3664_v32  ;;  %vm3663_vm10 = vcmp.eq.f32.partialorder %v3662_v40, 8.507059e+37  ;;  %v5237_v32 = vld [vmem:[#allocation10 + $0x188] sm:$0xff] }
 0xf34   :  { %v4651_v39 = vpop.eup %4650  ;;  %v9530_v40 = vld [vmem:[%s9695_s9 + $0x48] sm:$0xff] }
 0xf35   :  { %v3672_v63 = vadd.f32 1.0, %v4651_v39 }
 0xf36   :  { %v4653_v62 = vpop.eup %4652 }
 0xf37   :  { %v4655_v7 = vpop.eup %4654  ;;  %v3635_v60 = vmul.f32 %v4653_v62, %v3633_v37  ;;  %4656 = vrcp.f32 %v3672_v63  ;;  %vm3640_vm11 = vweird.f32 %v4653_v62  ;;  %v3684_v31 = vand.u32 2147483648, %v3672_v63 }
 0xf38   :  { %v3654_v20 = vmul.f32 %v4655_v7, %v3652_v52  ;;  %4658 = vtanh.f32 %v3628_v2  ;;  %vm3659_vm12 = vweird.f32 %v4655_v7  ;;  %vm3641_vm15 = vmor %vm3639_vm13, %vm3640_vm11  ;;  %v3682_v37 = vand.u32 2147483647, %v3672_v63  ;;  %v5227_v2 = vld [vmem:[#allocation10 + $0x1e8] sm:$0xff] }
 0xf39   :  { %v3636_v38 = vsub.f32 1.0, %v3635_v60  ;;  %vm3660_vm1 = vmor %vm3658_vm0, %vm3659_vm12  ;;  %vm3678_vm12 = vweird.f32 %v3672_v63  ;;  %v3685_v16 = vor.u32 1.1754944e-38, %v3684_v31  ;;  %v5230_v60 = vld [vmem:[#allocation10 + $0x1c8] sm:$0xff]  ;;  %v5268_v31 = vld [vmem:[#allocation10 + $0x20] sm:$0xff] }
 0xf3a   :  { %v3655_v61 = vsub.f32 1.0, %v3654_v20  ;;  %vm3683_vm0 = vcmp.eq.f32.partialorder %v3682_v37, 8.507059e+37  ;;  %v9503_v20 = vld [vmem:[%s9695_s9 + $0x68] sm:$0xff]  ;;  %v9593_v37 = vld [vmem:[%s9695_s9] sm:$0xff] }
 0xf3b   :  { %v3637_v47 = vmul.f32 %v4653_v62, %v3636_v38  ;;  %v5233_v38 = vld [vmem:[#allocation10 + $0x1a8] sm:$0xff] }
 0xf3c   :  { %v3656_v15 = vmul.f32 %v4655_v7, %v3655_v61  ;;  %v9509_v61 = vld [vmem:[%s9695_s9 + $0x60] sm:$0xff] }
 0xf3d   :  { %v4657_v1 = vpop.eup %4656  ;;  %v3638_v59 = vadd.f32 %v4653_v62, %v3637_v47  ;;  %v5238_v47 = vld [vmem:[#allocation10 + $0x160] sm:$0xff] }
 0xf3e   :  { %v3657_v4 = vadd.f32 %v4655_v7, %v3656_v15  ;;  %v3674_v6 = vmul.f32 %v4657_v1, %v3672_v63  ;;  %v4659_v25 = vpop.eup %4658  ;;  %vm3679_vm11 = vweird.f32 %v4657_v1  ;;  %v5226_v63 = vld [vmem:[#allocation10 + $0x1e0] sm:$0xff] }
 0xf3f   :  { %v3642_v12 = vsel %vm3641_vm15, %v4653_v62, %v3638_v59  ;;  %vm3680_vm13 = vmor %vm3678_vm12, %vm3679_vm11  ;;  %v5241_v15 = vld [vmem:[#allocation10 + $0x140] sm:$0xff] }
 0xf40   :  { %v3647_v8 = vsel %vm3644_vm2, %v3646_v3, %v3642_v12  ;;  %v3661_v14 = vsel %vm3660_vm1, %v4655_v7, %v3657_v4  ;;  %v3675_v54 = vsub.f32 1.0, %v3674_v6  ;;  %v9496_v7 = vld [vmem:[%s9695_s9 + $0x70] sm:$0xff]  ;;  %v9537_v59 = vld [vmem:[%s9695_s9 + $0x40] sm:$0xff]  ;;  %v9544_v4 = vld [vmem:[%s9695_s9 + $0x38] sm:$0xff] }
 0xf41   :  { %v3666_v34 = vsel %vm3663_vm10, %v3665_v56, %v3661_v14  ;;  %v3689_v18 = vmul.f32 %v4659_v25, %v3647_v8  ;;  %v5247_v3 = vld [vmem:[#allocation10 + $0x100] sm:$0xff]  ;;  %v9551_v56 = vld [vmem:[%s9695_s9 + $0x30] sm:$0xff]  ;;  %v9558_v25 = vld [vmem:[%s9695_s9 + $0x28] sm:$0xff] }
 0xf42   :  { %v3688_v58 = vmul.f32 %v3666_v34, %v9269_v43  ;;  %v3676_v17 = vmul.f32 %v4657_v1, %v3675_v54  ;;  %v9489_v43 = vld [vmem:[%s9695_s9 + $0x78] sm:$0xff]  ;;  %v5250_v6 = vld [vmem:[#allocation10 + $0xe0] sm:$0xff] }
 0xf43   :  { %v5253_v12 = vld [vmem:[#allocation10 + $0xc0] sm:$0xff]  ;;  %v9572_v34 = vld [vmem:[%s9695_s9 + $0x18] sm:$0xff] }
 0xf44   :  { %v9482_v29 = vadd.f32 %v3689_v18, %v3688_v58  ;;  %v3677_v49 = vadd.f32 %v4657_v1, %v3676_v17  ;;  %v5256_v8 = vld [vmem:[#allocation10 + $0xa0] sm:$0xff]  ;;  %v9579_v58 = vld [vmem:[%s9695_s9 + $0x10] sm:$0xff] }
 0xf45   :  { %v9565_v14 = vld [vmem:[%s9695_s9 + $0x20] sm:$0xff] }
 0xf46   :  { %4660 = vtanh.f32 %v9482_v29  ;;  %v3681_v52 = vsel %vm3680_vm13, %v4657_v1, %v3677_v49  ;;  %v5244_v1 = vld [vmem:[#allocation10 + $0x120] sm:$0xff]  ;;  %v9586_v49 = vld [vmem:[%s9695_s9 + $0x8] sm:$0xff] }
 0xf47   :  { %v3686_v39 = vsel %vm3683_vm0, %v3685_v16, %v3681_v52  ;;  %v5259_v54 = vld [vmem:[#allocation10 + $0x80] sm:$0xff]  ;;  %v5272_v16 = vld [vmem:[#allocation10 + $0x1f0] sm:$0xff] }
 0xf48   :  { %v5262_v18 = vld [vmem:[#allocation10 + $0x60] sm:$0xff] }
 0xf49   :  { %v5265_v17 = vld [vmem:[#allocation10 + $0x40] sm:$0xff] }
 0xf4a   :  { %v5271_v52 = vld [vmem:[#allocation10] sm:$0xff] }
 0xf4c   :  { %v4661_v13 = vpop.eup %4660 }
 0xf4d   :  { %v3692_v62 = vmul.f32 %v4661_v13, %v3686_v39  ;;  %v5273_v13 = vld [vmem:[#allocation10 + $0x8] sm:$0xff]  ;;  %v5275_v39 = vld [vmem:[#allocation10 + $0x1b0] sm:$0xff] }
 0xf4f   :  { %3709 = vmatmul.f32.vlgmr.msrb.gmra.mxu0 %v3692_v62  ;;  %3777 = vmatmul.f32.vlgmr.msrb.gmra.mxu1 %v3692_v62 }
 0xf50   :  { %3797 = vmatmul.f32.vlgmr.msrb.gmra.mxu2 %v3692_v62  ;;  %3817 = vmatmul.f32.vlgmr.msrb.gmra.mxu3 %v3692_v62 }
 0xf51   :  { %3901 = vmatpush.msrb.mxu0 %v9272_v22  ;;  %3988 = vmatpush.msrb.mxu1 %v9489_v43  ;;  %v5229_v22 = vld [vmem:[#allocation10 + $0x1c0] sm:$0xff] }
 0xf52   :  { %4056 = vmatpush.msrb.mxu2 %v5226_v63  ;;  %4076 = vmatpush.msrb.mxu3 %v5227_v2  ;;  %v5277_v63 = vld [vmem:[#allocation10 + $0x170] sm:$0xff] }
 0xf53   :  { %3902 = vmatpush.msrb.mxu0 %v9278_v44  ;;  %3989 = vmatpush.msrb.mxu1 %v9496_v7  ;;  %v5232_v44 = vld [vmem:[#allocation10 + $0x1a0] sm:$0xff]  ;;  %v5278_v2 = vld [vmem:[#allocation10 + $0x150] sm:$0xff] }
 0xf54   :  { %4057 = vmatpush.msrb.mxu2 %v5229_v22  ;;  %4077 = vmatpush.msrb.mxu3 %v5230_v60  ;;  %v5279_v22 = vld [vmem:[#allocation10 + $0x130] sm:$0xff] }
 0xf55   :  { %3903 = vmatpush.msrb.mxu0 %v9284_v26  ;;  %3990 = vmatpush.msrb.mxu1 %v9503_v20  ;;  %v5235_v26 = vld [vmem:[#allocation10 + $0x180] sm:$0xff]  ;;  %v5280_v60 = vld [vmem:[#allocation10 + $0x110] sm:$0xff] }
 0xf56   :  { %4058 = vmatpush.msrb.mxu2 %v5232_v44  ;;  %4078 = vmatpush.msrb.mxu3 %v5233_v38  ;;  %v5282_v44 = vld [vmem:[#allocation10 + $0xd0] sm:$0xff] }
 0xf57   :  { %3837 = vmatmul.f32.vlgmr.msra.gmra.mxu0 %v3692_v62  ;;  %3991 = vmatpush.msrb.mxu1 %v9509_v61  ;;  %v5276_v62 = vld [vmem:[#allocation10 + $0x190] sm:$0xff] }
 0xf58   :  { %3904 = vmatpush.msrb.mxu0 %v9291_v42  ;;  %4059 = vmatpush.msrb.mxu2 %v5235_v26  ;;  %v5240_v42 = vld [vmem:[#allocation10 + $0x168] sm:$0xff]  ;;  %v5283_v38 = vld [vmem:[#allocation10 + $0xb0] sm:$0xff] }
 0xf59   :  { %3992 = vmatpush.msrb.mxu1 %v9516_v45  ;;  %4079 = vmatpush.msrb.mxu3 %v5237_v32  ;;  %v5284_v26 = vld [vmem:[#allocation10 + $0x90] sm:$0xff] }
 0xf5a   :  { %3905 = vmatpush.msrb.mxu0 %v9297_v35  ;;  %4060 = vmatpush.msrb.mxu2 %v5238_v47  ;;  %v5243_v35 = vld [vmem:[#allocation10 + $0x148] sm:$0xff]  ;;  %v5285_v32 = vld [vmem:[#allocation10 + $0x70] sm:$0xff] }
 0xf5b   :  { %3993 = vmatpush.msrb.mxu1 %v9523_v48  ;;  %4080 = vmatpush.msrb.mxu3 %v5240_v42  ;;  %v5286_v47 = vld [vmem:[#allocation10 + $0x50] sm:$0xff] }
 0xf5c   :  { %3906 = vmatpush.msrb.mxu0 %v9303_v19  ;;  %4061 = vmatpush.msrb.mxu2 %v5241_v15  ;;  %v5246_v19 = vld [vmem:[#allocation10 + $0x128] sm:$0xff]  ;;  %v5287_v42 = vld [vmem:[#allocation10 + $0x30] sm:$0xff] }
 0xf5d   :  { %3994 = vmatpush.msrb.mxu1 %v9530_v40  ;;  %4081 = vmatpush.msrb.mxu3 %v5243_v35  ;;  %v5288_v15 = vld [vmem:[#allocation10 + $0x10] sm:$0xff] }
 0xf5e   :  { %3907 = vmatpush.msrb.mxu0 %v9309_v51  ;;  %4062 = vmatpush.msrb.mxu2 %v5244_v1  ;;  %v5249_v51 = vld [vmem:[#allocation10 + $0x108] sm:$0xff]  ;;  %v9600_v1 = vld [vmem:[%s9696_s10] ss:$0 sm:$0xff]  ;;  %s4419_s10 = sld [smem:[#allocation4 + $0x284]] }
 0xf5f   :  { %3995 = vmatpush.msrb.mxu1 %v9537_v59  ;;  %4082 = vmatpush.msrb.mxu3 %v5246_v19 }
 0xf60   :  { %3908 = vmatpush.msrb.mxu0 %v9315_v46  ;;  %4063 = vmatpush.msrb.mxu2 %v5247_v3  ;;  %v5252_v46 = vld [vmem:[#allocation10 + $0xe8] sm:$0xff] }
 0xf61   :  { %3996 = vmatpush.msrb.mxu1 %v9544_v4  ;;  %4083 = vmatpush.msrb.mxu3 %v5249_v51 }
 0xf62   :  { %3909 = vmatpush.msrb.mxu0 %v9321_v57  ;;  %4064 = vmatpush.msrb.mxu2 %v5250_v6  ;;  %v5255_v57 = vld [vmem:[#allocation10 + $0xc8] sm:$0xff]  ;;  %v3725_v6 = vstv %s4415_s22 }
 0xf63   :  { %3997 = vmatpush.msrb.mxu1 %v9551_v56  ;;  %4084 = vmatpush.msrb.mxu3 %v5252_v46  ;;  %v3726_v46 = vsel %vm2242_vm4, %v3725_v6, 0  ;;  %v5304_v6 = vld [vmem:[#allocation10 + $0x178] sm:$0xff] }
 0xf64   :  { %3910 = vmatpush.msrb.mxu0 %v9327_v23  ;;  %4065 = vmatpush.msrb.mxu2 %v5253_v12  ;;  %v5258_v23 = vld [vmem:[#allocation10 + $0xa8] sm:$0xff]  ;;  %v3728_v12 = vstv %s4416_s3 }
 0xf65   :  { %3998 = vmatpush.msrb.mxu1 %v9558_v25  ;;  %4085 = vmatpush.msrb.mxu3 %v5255_v57  ;;  %v3729_v57 = vsel %vm2246_vm5, %v3728_v12, %v3726_v46  ;;  %v5305_v46 = vld [vmem:[#allocation9 + $0x160] sm:$0xff]  ;;  %v5306_v12 = vld [vmem:[#allocation9 + $0x168] sm:$0xff] }
 0xf66   :  { %3911 = vmatpush.msrb.mxu0 %v9333_v0  ;;  %4066 = vmatpush.msrb.mxu2 %v5256_v8  ;;  %v5261_v0 = vld [vmem:[#allocation10 + $0x88] sm:$0xff]  ;;  %v3731_v8 = vstv %s4417_s23 }
 0xf67   :  { %3999 = vmatpush.msrb.mxu1 %v9565_v14  ;;  %4086 = vmatpush.msrb.mxu3 %v5258_v23  ;;  %v3732_v23 = vsel %vm2250_vm6, %v3731_v8, %v3729_v57  ;;  %v5307_v57 = vld [vmem:[#allocation9 + $0x170] sm:$0xff]  ;;  %v5308_v8 = vld [vmem:[#allocation10 + $0x158] sm:$0xff] }
 0xf68   :  { %3912 = vmatpush.msrb.mxu0 %v9339_v53  ;;  %4067 = vmatpush.msrb.mxu2 %v5259_v54  ;;  %v5264_v53 = vld [vmem:[#allocation10 + $0x68] sm:$0xff]  ;;  %v3734_v54 = vstv %s4418_s6 }
 0xf69   :  { %4000 = vmatpush.msrb.mxu1 %v9572_v34  ;;  %4087 = vmatpush.msrb.mxu3 %v5261_v0  ;;  %v3735_v0 = vsel %vm2254_vm7, %v3734_v54, %v3732_v23  ;;  %v5309_v23 = vld [vmem:[#allocation9 + $0x140] sm:$0xff]  ;;  %v5310_v54 = vld [vmem:[#allocation9 + $0x148] sm:$0xff] }
 0xf6a   :  { %3913 = vmatpush.msrb.mxu0 %v9345_v24  ;;  %4068 = vmatpush.msrb.mxu2 %v5262_v18  ;;  %v5267_v24 = vld [vmem:[#allocation10 + $0x48] sm:$0xff]  ;;  %v3737_v18 = vstv %s4419_s10 }
 0xf6b   :  { %4001 = vmatpush.msrb.mxu1 %v9579_v58  ;;  %4088 = vmatpush.msrb.mxu3 %v5264_v53  ;;  %v3738_v53 = vsel %vm2258_vm8, %v3737_v18, %v3735_v0  ;;  %v5311_v0 = vld [vmem:[#allocation9 + $0x150] sm:$0xff]  ;;  %v5312_v18 = vld [vmem:[#allocation10 + $0x138] sm:$0xff] }
 0xf6c   :  { %3914 = vmatpush.msrb.mxu0 %v9351_v55  ;;  %4069 = vmatpush.msrb.mxu2 %v5265_v17  ;;  %v5270_v55 = vld [vmem:[#allocation10 + $0x28] sm:$0xff]  ;;  %v3740_v17 = vstv %s4420_s7 }
 0xf6d   :  { %4002 = vmatpush.msrb.mxu1 %v9586_v49  ;;  %4089 = vmatpush.msrb.mxu3 %v5267_v24  ;;  %v3741_v24 = vsel %vm2262_vm9, %v3740_v17, %v3738_v53  ;;  %v5313_v53 = vld [vmem:[#allocation9 + $0x120] sm:$0xff]  ;;  %v5314_v17 = vld [vmem:[#allocation9 + $0x128] sm:$0xff] }
 0xf6e   :  { %3915 = vmatpush.msrb.mxu0 %v9357_v50  ;;  %4070 = vmatpush.msrb.mxu2 %v5268_v31  ;;  %v5274_v50 = vld [vmem:[#allocation10 + $0x1d0] sm:$0xff]  ;;  %v3743_v31 = vstv %s4421_s25 }
 0xf6f   :  { %4003 = vmatpush.msrb.mxu1 %v9593_v37  ;;  %4090 = vmatpush.msrb.mxu3 %v5270_v55  ;;  %v3744_v55 = vsel %vm2266_vm14, %v3743_v31, %v3741_v24  ;;  %v5315_v24 = vld [vmem:[#allocation9 + $0x130] sm:$0xff]  ;;  %v5316_v31 = vld [vmem:[#allocation10 + $0x118] sm:$0xff] }
 0xf70   :  { %3916 = vmatpush.msrb.mxu0 %v9363_v10  ;;  %4071 = vmatpush.msrb.mxu2 %v5271_v52  ;;  %v5281_v10 = vld [vmem:[#allocation10 + $0xf0] sm:$0xff]  ;;  %v3746_v52 = vstv %s4422_s5 }
 0xf71   :  { %4091 = vmatpush.msrb.mxu3 %v5273_v13 }
 0xf72   :  { %4096 = vmatpush.msra.mxu0 %v5272_v16  ;;  %v3747_v16 = vsel %vm2270_vm3, %v3746_v52, %v3744_v55  ;;  %v5317_v55 = vld [vmem:[#allocation9 + $0x100] sm:$0xff]  ;;  %v5318_v52 = vld [vmem:[#allocation9 + $0x108] sm:$0xff] }
 0xf73   :  { %vm3748_vm1 = vcmp.eq.s32.totalorder %v11643_v5, %v3747_v16  ;;  %v5319_v16 = vld [vmem:[#allocation9 + $0x110] sm:$0xff] }
 0xf74   :  { %4097 = vmatpush.msra.mxu0 %v5274_v50  ;;  %v4423_v13 = vsel %vm3748_vm1, 1.0, %v11644_v28  ;;  %v3755_v50 = vstv %s3754_s0 }
 0xf76   :  { %4098 = vmatpush.msra.mxu0 %v5275_v39  ;;  %v3758_v39 = vstv %s3757_s27 }
 0xf78   :  { %4099 = vmatpush.msra.mxu0 %v5276_v62 }
 0xf7a   :  { %4100 = vmatpush.msra.mxu0 %v5277_v63  ;;  %v3756_v63 = vmul.f32 %v4423_v13, %v3755_v50  ;;  %v5320_v13 = vld [vmem:[#allocation10 + $0xf8] sm:$0xff]  ;;  %v5321_v50 = vld [vmem:[#allocation9 + $0xe0] sm:$0xff] }
 0xf7c   :  { %4101 = vmatpush.msra.mxu0 %v5278_v2 }
 0xf7e   :  { %4102 = vmatpush.msra.mxu0 %v5279_v22 }
 0xf80   :  { %4103 = vmatpush.msra.mxu0 %v5280_v60 }
 0xf82   :  { %4104 = vmatpush.msra.mxu0 %v5281_v10  ;;  %v5290_v10 = vld [vmem:[#allocation9 + $0x1e0] sm:$0xff] }
 0xf84   :  { %4105 = vmatpush.msra.mxu0 %v5282_v44  ;;  %v5291_v44 = vld [vmem:[#allocation9 + $0x1e8] sm:$0xff] }
 0xf86   :  { %4106 = vmatpush.msra.mxu0 %v5283_v38  ;;  %v5292_v38 = vld [vmem:[#allocation9 + $0x1f0] sm:$0xff] }
 0xf88   :  { %4107 = vmatpush.msra.mxu0 %v5284_v26  ;;  %v5293_v26 = vld [vmem:[#allocation9 + $0x1c0] sm:$0xff] }
 0xf8a   :  { %4108 = vmatpush.msra.mxu0 %v5285_v32  ;;  %v5294_v32 = vld [vmem:[#allocation9 + $0x1c8] sm:$0xff] }
 0xf8c   :  { %4109 = vmatpush.msra.mxu0 %v5286_v47  ;;  %v5295_v47 = vld [vmem:[#allocation9 + $0x1d0] sm:$0xff] }
 0xf8e   :  { %4110 = vmatpush.msra.mxu0 %v5287_v42  ;;  %v5296_v42 = vld [vmem:[#allocation10 + $0x1b8] sm:$0xff] }
 0xf90   :  { %4111 = vmatpush.msra.mxu0 %v5288_v15  ;;  %v5297_v15 = vld [vmem:[#allocation9 + $0x1a0] sm:$0xff] }
 0xfcc   :  { %v3710_v35 = vpop.f32.mrf.mxu0 }
 0xfcd   :  { %v3711_v19 = vadd.f32 %v9600_v1, %v3710_v35  ;;  %v5298_v35 = vld [vmem:[#allocation9 + $0x1a8] sm:$0xff] }
 0xfcf   :  { %4413 = vst [vmem:[%s9697_s11 + $0x20] sm:$0xff] %v3711_v19  ;;  %3715 = vmax.xlane.f32.xlu2 %v3711_v19 }
0x1042   :  { %v3716_v3 = vpop.xlane.xlu2 %3715 }
0x1043   :  { %vm3717_vm15 = vcmp.ge.f32.partialorder %v3711_v19, %v3716_v3  ;;  %v5300_v19 = vld [vmem:[#allocation10 + $0x198] sm:$0xff]  ;;  %v5301_v3 = vld [vmem:[#allocation9 + $0x180] sm:$0xff] }
0x1044   :  { %v3718_v51 = vsel %vm3717_vm15, %v11641_v21, 128.0 }
0x1045   :  { %3719 = vmin.xlane.f32.xlu0 %v3718_v51  ;;  %v5302_v51 = vld [vmem:[#allocation9 + $0x188] sm:$0xff] }
0x10b8   :  { %v3720_v62 = vpop.xlane.xlu0 %3719 }
0x10b9   :  { %vm3721_vm2 = vcmp.eq.f32.partialorder %v11641_v21, %v3720_v62  ;;  %v5323_v62 = vld [vmem:[#allocation9 + $0xf0] sm:$0xff] }
0x10ba   :  { %v4414_v2 = vsel %vm3721_vm2, 1.0, %v11644_v28 }
0x10bb   :  { %v3759_v22 = vmul.f32 %v4414_v2, %v3758_v39  ;;  %v5322_v39 = vld [vmem:[#allocation9 + $0xe8] sm:$0xff]  ;;  %v5325_v2 = vld [vmem:[#allocation9 + $0xc0] sm:$0xff] }
0x10bd   :  { %v3760_v60 = vadd.f32 %v3759_v22, %v3756_v63  ;;  %v5324_v63 = vld [vmem:[#allocation10 + $0xd8] sm:$0xff]  ;;  %v5326_v22 = vld [vmem:[#allocation9 + $0xc8] sm:$0xff] }
0x10bf   :  { %3857 = vmatmul.f32.vlgmr.msra.gmra.mxu1 %v3760_v60  ;;  %3877 = vmatmul.f32.vlgmr.msra.gmra.mxu2 %v3760_v60 }
0x10c0   :  { %3897 = vmatmul.f32.vlgmr.msra.gmra.mxu3 %v3760_v60  ;;  %3917 = vmatmul.f32.vlgmr.msrb.gmra.mxu0 %v3760_v60  ;;  %v5327_v60 = vld [vmem:[#allocation9 + $0xd0] sm:$0xff] }
0x10c1   :  { %4116 = vmatpush.msra.mxu1 %v9409_v9  ;;  %4136 = vmatpush.msra.mxu2 %v5290_v10  ;;  %v5299_v9 = vld [vmem:[#allocation9 + $0x1b0] sm:$0xff]  ;;  %v5328_v10 = vld [vmem:[#allocation10 + $0xb8] sm:$0xff] }
0x10c2   :  { %4156 = vmatpush.msra.mxu3 %v5291_v44  ;;  %4176 = vmatpush.msrb.mxu0 %v5292_v38  ;;  %v5329_v44 = vld [vmem:[#allocation9 + $0xa0] sm:$0xff]  ;;  %v5330_v38 = vld [vmem:[#allocation9 + $0xa8] sm:$0xff] }
0x10c3   :  { %4117 = vmatpush.msra.mxu1 %v9415_v33  ;;  %4137 = vmatpush.msra.mxu2 %v5293_v26  ;;  %v5303_v33 = vld [vmem:[#allocation9 + $0x190] sm:$0xff] }
0x10c4   :  { %4157 = vmatpush.msra.mxu3 %v5294_v32  ;;  %4177 = vmatpush.msrb.mxu0 %v5295_v47  ;;  %v5331_v26 = vld [vmem:[#allocation9 + $0xb0] sm:$0xff]  ;;  %v5332_v32 = vld [vmem:[#allocation10 + $0x98] sm:$0xff]  ;;  %v5333_v47 = vld [vmem:[#allocation9 + $0x80] sm:$0xff] }
0x10c5   :  { %4118 = vmatpush.msra.mxu1 %v5296_v42  ;;  %4138 = vmatpush.msra.mxu2 %v5297_v15  ;;  %v5334_v42 = vld [vmem:[#allocation9 + $0x88] sm:$0xff]  ;;  %v5335_v15 = vld [vmem:[#allocation9 + $0x90] sm:$0xff] }
0x10c6   :  { %4158 = vmatpush.msra.mxu3 %v5298_v35  ;;  %4178 = vmatpush.msrb.mxu0 %v5299_v9  ;;  %v5336_v35 = vld [vmem:[#allocation10 + $0x78] sm:$0xff]  ;;  %v5337_v9 = vld [vmem:[#allocation9 + $0x60] sm:$0xff] }
0x10c7   :  { %4119 = vmatpush.msra.mxu1 %v5300_v19  ;;  %4139 = vmatpush.msra.mxu2 %v5301_v3  ;;  %v5338_v19 = vld [vmem:[#allocation9 + $0x68] sm:$0xff]  ;;  %v5339_v3 = vld [vmem:[#allocation9 + $0x70] sm:$0xff] }
0x10c8   :  { %4159 = vmatpush.msra.mxu3 %v5302_v51  ;;  %4179 = vmatpush.msrb.mxu0 %v5303_v33  ;;  %v5340_v51 = vld [vmem:[#allocation10 + $0x58] sm:$0xff]  ;;  %v5341_v33 = vld [vmem:[#allocation9 + $0x40] sm:$0xff] }
0x10c9   :  { %4120 = vmatpush.msra.mxu1 %v5304_v6  ;;  %4140 = vmatpush.msra.mxu2 %v5305_v46  ;;  %v5342_v6 = vld [vmem:[#allocation9 + $0x48] sm:$0xff]  ;;  %v5343_v46 = vld [vmem:[#allocation9 + $0x50] sm:$0xff] }
0x10ca   :  { %4160 = vmatpush.msra.mxu3 %v5306_v12  ;;  %4180 = vmatpush.msrb.mxu0 %v5307_v57  ;;  %v5344_v12 = vld [vmem:[#allocation10 + $0x38] sm:$0xff]  ;;  %v5345_v57 = vld [vmem:[#allocation9 + $0x20] sm:$0xff] }
0x10cb   :  { %4121 = vmatpush.msra.mxu1 %v5308_v8  ;;  %4141 = vmatpush.msra.mxu2 %v5309_v23  ;;  %v5346_v8 = vld [vmem:[#allocation9 + $0x28] sm:$0xff]  ;;  %v5347_v23 = vld [vmem:[#allocation9 + $0x30] sm:$0xff] }
0x10cc   :  { %4161 = vmatpush.msra.mxu3 %v5310_v54  ;;  %4181 = vmatpush.msrb.mxu0 %v5311_v0  ;;  %v5348_v54 = vld [vmem:[#allocation10 + $0x18] sm:$0xff]  ;;  %v5349_v0 = vld [vmem:[#allocation9] sm:$0xff] }
0x10cd   :  { %4122 = vmatpush.msra.mxu1 %v5312_v18  ;;  %4142 = vmatpush.msra.mxu2 %v5313_v53  ;;  %v5350_v18 = vld [vmem:[#allocation9 + $0x8] sm:$0xff]  ;;  %v5351_v53 = vld [vmem:[#allocation9 + $0x10] sm:$0xff] }
0x10ce   :  { %4162 = vmatpush.msra.mxu3 %v5314_v17  ;;  %4182 = vmatpush.msrb.mxu0 %v5315_v24  ;;  %v3778_v17 = vpop.f32.mrf.mxu1  ;;  %v3838_v24 = vpop.f32.mrf.mxu0 }
0x10cf   :  { %4123 = vmatpush.msra.mxu1 %v5316_v31  ;;  %4143 = vmatpush.msra.mxu2 %v5317_v55  ;;  %v3798_v31 = vpop.f32.mrf.mxu2 }
0x10d0   :  { %4163 = vmatpush.msra.mxu3 %v5318_v52  ;;  %4183 = vmatpush.msrb.mxu0 %v5319_v16 }
0x10d1   :  { %4124 = vmatpush.msra.mxu1 %v5320_v13  ;;  %4144 = vmatpush.msra.mxu2 %v5321_v50 }
0x10d2   :  { %4164 = vmatpush.msra.mxu3 %v5322_v39  ;;  %4184 = vmatpush.msrb.mxu0 %v5323_v62 }
0x10d3   :  { %4125 = vmatpush.msra.mxu1 %v5324_v63  ;;  %4145 = vmatpush.msra.mxu2 %v5325_v2 }
0x10d4   :  { %4165 = vmatpush.msra.mxu3 %v5326_v22  ;;  %4185 = vmatpush.msrb.mxu0 %v5327_v60 }
0x10d5   :  { %4126 = vmatpush.msra.mxu1 %v5328_v10  ;;  %4146 = vmatpush.msra.mxu2 %v5329_v44 }
0x10d6   :  { %4166 = vmatpush.msra.mxu3 %v5330_v38  ;;  %4186 = vmatpush.msrb.mxu0 %v5331_v26  ;;  %v3818_v38 = vpop.f32.mrf.mxu3 }
0x10d7   :  { %4127 = vmatpush.msra.mxu1 %v5332_v32  ;;  %4147 = vmatpush.msra.mxu2 %v5333_v47 }
0x10d8   :  { %4167 = vmatpush.msra.mxu3 %v5334_v42  ;;  %4187 = vmatpush.msrb.mxu0 %v5335_v15 }
0x10d9   :  { %4128 = vmatpush.msra.mxu1 %v5336_v35  ;;  %4148 = vmatpush.msra.mxu2 %v5337_v9 }
0x10da   :  { %4168 = vmatpush.msra.mxu3 %v5338_v19  ;;  %4188 = vmatpush.msrb.mxu0 %v5339_v3 }
0x10db   :  { %4129 = vmatpush.msra.mxu1 %v5340_v51  ;;  %4149 = vmatpush.msra.mxu2 %v5341_v33 }
0x10dc   :  { %4169 = vmatpush.msra.mxu3 %v5342_v6  ;;  %4189 = vmatpush.msrb.mxu0 %v5343_v46 }
0x10dd   :  { %4130 = vmatpush.msra.mxu1 %v5344_v12  ;;  %4150 = vmatpush.msra.mxu2 %v5345_v57 }
0x10de   :  { %4170 = vmatpush.msra.mxu3 %v5346_v8  ;;  %4190 = vmatpush.msrb.mxu0 %v5347_v23 }
0x10df   :  { %4131 = vmatpush.msra.mxu1 %v5348_v54  ;;  %4151 = vmatpush.msra.mxu2 %v5349_v0 }
0x10e0   :  { %4171 = vmatpush.msra.mxu3 %v5350_v18  ;;  %4191 = vmatpush.msrb.mxu0 %v5351_v53 }
0x113c   :  { %v3858_v55 = vpop.f32.mrf.mxu1 }
0x113d   :  { %v3859_v52 = vadd.f32 %v3858_v55, %v3778_v17  ;;  %v3918_v16 = vpop.f32.mrf.mxu0 }
0x113e   :  { %v3919_v13 = vadd.f32 %v3918_v16, %v3838_v24 }
0x113f   :  { %v3921_v50 = vadd.f32 %v3859_v52, %v11707_v30 }
0x1140   :  { %v3924_v39 = vadd.f32 %v3919_v13, %v11709_v27 }
0x1141   :  { %v4425_v62 = vmul.f32 -1.442695, %v3921_v50 }
0x1142   :  { %v4427_v63 = vmul.f32 -1.442695, %v3924_v39  ;;  %v3878_v2 = vpop.f32.mrf.mxu2 }
0x1143   :  { %4662 = vpow2.f32 %v4425_v62  ;;  %v3879_v22 = vadd.f32 %v3878_v2, %v3798_v31  ;;  %v3898_v35 = vpop.f32.mrf.mxu3 }
0x1144   :  { %4664 = vpow2.f32 %v4427_v63  ;;  %v3899_v3 = vadd.f32 %v3898_v35, %v3818_v38 }
0x1145   :  { %v3922_v60 = vadd.f32 %v3879_v22, %v11708_v11 }
0x1146   :  { %v3923_v12 = vadd.f32 %v3899_v3, %v11710_v41  ;;  %v5355_v3 = vld [vmem:[#allocation9 + $0x198] sm:$0xff] }
0x1147   :  { %v4426_v10 = vmul.f32 -1.442695, %v3922_v60 }
0x1149   :  { %v4663_v44 = vpop.eup %4662  ;;  %4666 = vpow2.f32 %v4426_v10 }
0x114a   :  { %v4665_v26 = vpop.eup %4664  ;;  %v3928_v32 = vadd.f32 1.0, %v4663_v44 }
0x114b   :  { %v3967_v47 = vadd.f32 1.0, %v4665_v26 }
0x114c   :  { %4668 = vrcp.f32 %v3928_v32  ;;  %v3940_v54 = vand.u32 2147483648, %v3928_v32  ;;  %vm3934_vm11 = vweird.f32 %v3928_v32  ;;  %v3938_v18 = vand.u32 2147483647, %v3928_v32 }
0x114d   :  { %4670 = vrcp.f32 %v3967_v47  ;;  %v3979_v38 = vand.u32 2147483648, %v3967_v47  ;;  %v3977_v26 = vand.u32 2147483647, %v3967_v47 }
0x114e   :  { %v3941_v52 = vor.u32 1.1754944e-38, %v3940_v54  ;;  %vm3939_vm15 = vcmp.eq.f32.partialorder %v3938_v18, 8.507059e+37  ;;  %v4032_v54 = vstv %s4434_s13  ;;  %v4035_v18 = vstv %s4435_s14 }
0x114f   :  { %v4667_v42 = vpop.eup %4666 }
0x1150   :  { %v3947_v15 = vadd.f32 1.0, %v4667_v42  ;;  %v3980_v42 = vor.u32 1.1754944e-38, %v3979_v38 }
0x1152   :  { %v4669_v9 = vpop.eup %4668  ;;  %4672 = vrcp.f32 %v3947_v15  ;;  %v3959_v53 = vand.u32 2147483648, %v3947_v15  ;;  %v3957_v31 = vand.u32 2147483647, %v3947_v15  ;;  %vm3953_vm0 = vweird.f32 %v3947_v15 }
0x1153   :  { %v3930_v19 = vmul.f32 %v4669_v9, %v3928_v32  ;;  %v4671_v33 = vpop.eup %4670  ;;  %vm3935_vm10 = vweird.f32 %v4669_v9  ;;  %4674 = vtanh.f32 %v3923_v12  ;;  %v4026_v12 = vstv %s4432_s30 }
0x1154   :  { %v3969_v23 = vmul.f32 %v4671_v33, %v3967_v47  ;;  %vm3936_vm12 = vmor %vm3934_vm11, %vm3935_vm10  ;;  %v3960_v13 = vor.u32 1.1754944e-38, %v3959_v53  ;;  %vm3958_vm2 = vcmp.eq.f32.partialorder %v3957_v31, 8.507059e+37  ;;  %vm3974_vm10 = vweird.f32 %v4671_v33 }
0x1155   :  { %v3931_v51 = vsub.f32 1.0, %v3930_v19  ;;  %vm3973_vm11 = vweird.f32 %v3967_v47  ;;  %v5353_v19 = vld [vmem:[#allocation9 + $0x1d8] sm:$0xff]  ;;  %v4041_v31 = vstv %s4437_s17 }
0x1156   :  { %v3970_v55 = vsub.f32 1.0, %v3969_v23  ;;  %v5354_v47 = vld [vmem:[#allocation9 + $0x1b8] sm:$0xff] }
0x1157   :  { %v3932_v6 = vmul.f32 %v4669_v9, %v3931_v51  ;;  %v5356_v51 = vld [vmem:[#allocation9 + $0x178] sm:$0xff] }
0x1158   :  { %v4673_v46 = vpop.eup %4672  ;;  %v3971_v63 = vmul.f32 %v4671_v33, %v3970_v55 }
0x1159   :  { %v3949_v57 = vmul.f32 %v4673_v46, %v3947_v15  ;;  %v3933_v8 = vadd.f32 %v4669_v9, %v3932_v6  ;;  %vm3954_vm13 = vweird.f32 %v4673_v46  ;;  %v4675_v62 = vpop.eup %4674  ;;  %v4023_v6 = vstv %s4431_s29 }
0x115a   :  { %vm3955_vm1 = vmor %vm3953_vm0, %vm3954_vm13  ;;  %v3972_v44 = vadd.f32 %v4671_v33, %v3971_v63  ;;  %vm3978_vm13 = vcmp.eq.f32.partialorder %v3977_v26, 8.507059e+37 }
0x115b   :  { %v3950_v0 = vsub.f32 1.0, %v3949_v57  ;;  %v3937_v24 = vsel %vm3936_vm12, %v4669_v9, %v3933_v8  ;;  %vm3975_vm12 = vmor %vm3973_vm11, %vm3974_vm10  ;;  %v4029_v8 = vstv %s4433_s12 }
0x115c   :  { %v3942_v50 = vsel %vm3939_vm15, %v3941_v52, %v3937_v24  ;;  %v3976_v32 = vsel %vm3975_vm12, %v4671_v33, %v3972_v44 }
0x115d   :  { %v3951_v17 = vmul.f32 %v4673_v46, %v3950_v0  ;;  %v3984_v60 = vmul.f32 %v4675_v62, %v3942_v50  ;;  %v3981_v35 = vsel %vm3978_vm13, %v3980_v42, %v3976_v32 }
0x115f   :  { %v3952_v16 = vadd.f32 %v4673_v46, %v3951_v17  ;;  %v4038_v17 = vstv %s4436_s16 }
0x1161   :  { %v3956_v39 = vsel %vm3955_vm1, %v4673_v46, %v3952_v16  ;;  %v4050_v16 = vstv %s4049_s18 }
0x1162   :  { %v3961_v2 = vsel %vm3958_vm2, %v3960_v13, %v3956_v39  ;;  %v4053_v13 = vstv %s4052_s4 }
0x1163   :  { %v3983_v22 = vmul.f32 %v3961_v2, %v9482_v29  ;;  %v5352_v29 = vld [vmem:[#allocation9 + $0x1f8] sm:$0xff] }
0x1165   :  { %v9634_v10 = vadd.f32 %v3984_v60, %v3983_v22 }
0x1167   :  { %4676 = vtanh.f32 %v9634_v10 }
0x116d   :  { %v4677_v15 = vpop.eup %4676 }
0x116e   :  { %v3987_v9 = vmul.f32 %v4677_v15, %v3981_v35 }
0x1170   :  { %4004 = vmatmul.f32.vlgmr.msrb.gmra.mxu1 %v3987_v9  ;;  %4072 = vmatmul.f32.vlgmr.msrb.gmra.mxu2 %v3987_v9 }
0x1171   :  { %4092 = vmatmul.f32.vlgmr.msrb.gmra.mxu3 %v3987_v9  ;;  %4112 = vmatmul.f32.vlgmr.msra.gmra.mxu0 %v3987_v9 }
0x1172   :  { %4196 = vmatpush.msrb.mxu1 %v5352_v29  ;;  %4283 = vmatpush.msrb.mxu2 %v9489_v43  ;;  %v5357_v43 = vld [vmem:[#allocation9 + $0x158] sm:$0xff] }
0x1174   :  { %4197 = vmatpush.msrb.mxu1 %v5353_v19  ;;  %4284 = vmatpush.msrb.mxu2 %v9496_v7  ;;  %v5358_v7 = vld [vmem:[#allocation9 + $0x138] sm:$0xff] }
0x1176   :  { %4198 = vmatpush.msrb.mxu1 %v5354_v47  ;;  %4285 = vmatpush.msrb.mxu2 %v9503_v20  ;;  %v5359_v20 = vld [vmem:[#allocation9 + $0x118] sm:$0xff] }
0x1178   :  { %4132 = vmatmul.f32.vlgmr.msra.gmra.mxu1 %v3987_v9  ;;  %4286 = vmatpush.msrb.mxu2 %v9509_v61  ;;  %v5360_v61 = vld [vmem:[#allocation9 + $0xf8] sm:$0xff] }
0x1179   :  { %4199 = vmatpush.msrb.mxu1 %v5355_v3 }
0x117a   :  { %4287 = vmatpush.msrb.mxu2 %v9516_v45  ;;  %v5361_v45 = vld [vmem:[#allocation9 + $0xd8] sm:$0xff] }
0x117b   :  { %4200 = vmatpush.msrb.mxu1 %v5356_v51 }
0x117c   :  { %4288 = vmatpush.msrb.mxu2 %v9523_v48  ;;  %v5362_v48 = vld [vmem:[#allocation9 + $0xb8] sm:$0xff] }
0x117d   :  { %4201 = vmatpush.msrb.mxu1 %v5357_v43 }
0x117e   :  { %4289 = vmatpush.msrb.mxu2 %v9530_v40  ;;  %v5363_v40 = vld [vmem:[#allocation9 + $0x98] sm:$0xff] }
0x117f   :  { %4202 = vmatpush.msrb.mxu1 %v5358_v7 }
0x1180   :  { %4290 = vmatpush.msrb.mxu2 %v9537_v59  ;;  %v5364_v59 = vld [vmem:[#allocation9 + $0x78] sm:$0xff] }
0x1181   :  { %4203 = vmatpush.msrb.mxu1 %v5359_v20 }
0x1182   :  { %4291 = vmatpush.msrb.mxu2 %v9544_v4  ;;  %v5365_v4 = vld [vmem:[#allocation9 + $0x58] sm:$0xff] }
0x1183   :  { %4204 = vmatpush.msrb.mxu1 %v5360_v61 }
0x1184   :  { %4292 = vmatpush.msrb.mxu2 %v9551_v56  ;;  %v5366_v56 = vld [vmem:[#allocation9 + $0x38] sm:$0xff] }
0x1185   :  { %4205 = vmatpush.msrb.mxu1 %v5361_v45 }
0x1186   :  { %4293 = vmatpush.msrb.mxu2 %v9558_v25  ;;  %v5367_v25 = vld [vmem:[#allocation9 + $0x18] sm:$0xff] }
0x1187   :  { %4206 = vmatpush.msrb.mxu1 %v5362_v48 }
0x1188   :  { %4294 = vmatpush.msrb.mxu2 %v9565_v14 }
0x1189   :  { %4207 = vmatpush.msrb.mxu1 %v5363_v40 }
0x118a   :  { %4295 = vmatpush.msrb.mxu2 %v9572_v34 }
0x118b   :  { %4208 = vmatpush.msrb.mxu1 %v5364_v59 }
0x118c   :  { %4296 = vmatpush.msrb.mxu2 %v9579_v58 }
0x118d   :  { %4209 = vmatpush.msrb.mxu1 %v5365_v4 }
0x118e   :  { %4297 = vmatpush.msrb.mxu2 %v9586_v49  ;;  %v4020_v49 = vstv %s4430_s8 }
0x118f   :  { %4210 = vmatpush.msrb.mxu1 %v5366_v56 }
0x1190   :  { %4298 = vmatpush.msrb.mxu2 %v9593_v37  ;;  %v4021_v37 = vsel %vm2242_vm4, %v4020_v49, 0 }
0x1191   :  { %4211 = vmatpush.msrb.mxu1 %v5367_v25  ;;  %v4024_v46 = vsel %vm2246_vm5, %v4023_v6, %v4021_v37 }
0x1192   :  { %v4027_v57 = vsel %vm2250_vm6, %v4026_v12, %v4024_v46 }
0x1193   :  { %v4030_v23 = vsel %vm2254_vm7, %v4029_v8, %v4027_v57 }
0x1194   :  { %v4033_v0 = vsel %vm2258_vm8, %v4032_v54, %v4030_v23 }
0x1195   :  { %v4036_v53 = vsel %vm2262_vm9, %v4035_v18, %v4033_v0 }
0x1196   :  { %v4039_v24 = vsel %vm2266_vm14, %v4038_v17, %v4036_v53 }
0x1197   :  { %v4042_v55 = vsel %vm2270_vm3, %v4041_v31, %v4039_v24 }
0x1198   :  { %vm4043_vm4 = vcmp.eq.s32.totalorder %v11643_v5, %v4042_v55 }
0x1199   :  { %v4438_v52 = vsel %vm4043_vm4, 1.0, %v11644_v28 }
0x119a   :  { %v4051_v39 = vmul.f32 %v4438_v52, %v4050_v16 }
0x11ed   :  { %v4005_v33 = vpop.f32.mrf.mxu1 }
0x11ee   :  { %v4006_v14 = vadd.f32 %v9600_v1, %v4005_v33  ;;  %v4113_v19 = vpop.f32.mrf.mxu0 }
0x11f0   :  { %4428 = vst [vmem:[%s9697_s11 + $0x28] sm:$0xff] %v4006_v14  ;;  %4010 = vmax.xlane.f32.xlu1 %v4006_v14 }
0x11f3   :  { %v4073_v22 = vpop.f32.mrf.mxu2 }
0x11f4   :  { %v4093_v5 = vpop.f32.mrf.mxu3 }
0x11f5   :  { %v4133_v36 = vpop.f32.mrf.mxu1 }
0x1263   :  { %v4011_v34 = vpop.xlane.xlu1 %4010 }
0x1264   :  { %vm4012_vm0 = vcmp.ge.f32.partialorder %v4006_v14, %v4011_v34 }
0x1265   :  { %v4013_v58 = vsel %vm4012_vm0, %v11641_v21, 128.0 }
0x1266   :  { %4014 = vmin.xlane.f32.xlu2 %v4013_v58 }
0x12d9   :  { %v4015_v50 = vpop.xlane.xlu2 %4014 }
0x12da   :  { %vm4016_vm5 = vcmp.eq.f32.partialorder %v11641_v21, %v4015_v50 }
0x12db   :  { %v4429_v62 = vsel %vm4016_vm5, 1.0, %v11644_v28 }
0x12dc   :  { %v4054_v63 = vmul.f32 %v4429_v62, %v4053_v13 }
0x12de   :  { %v4055_v2 = vadd.f32 %v4054_v63, %v4051_v39 }
0x12e0   :  { %4152 = vmatmul.f32.vlgmr.msra.gmra.mxu2 %v4055_v2  ;;  %4172 = vmatmul.f32.vlgmr.msra.gmra.mxu3 %v4055_v2 }
0x12e1   :  { %4192 = vmatmul.f32.vlgmr.msrb.gmra.mxu0 %v4055_v2  ;;  %4212 = vmatmul.f32.vlgmr.msrb.gmra.mxu1 %v4055_v2 }
0x135e   :  { %v4213_v60 = vpop.f32.mrf.mxu1  ;;  %v4193_v7 = vpop.f32.mrf.mxu0 }
0x135f   :  { %v4214_v44 = vadd.f32 %v4213_v60, %v4133_v36  ;;  %v4194_v61 = vadd.f32 %v4193_v7, %v4113_v19 }
0x1361   :  { %v4219_v38 = vadd.f32 %v4214_v44, %v11709_v27 }
0x1363   :  { %v4442_v26 = vmul.f32 -1.442695, %v4219_v38  ;;  %v4153_v32 = vpop.f32.mrf.mxu2  ;;  %v4173_v42 = vpop.f32.mrf.mxu3 }
0x1364   :  { %v4154_v15 = vadd.f32 %v4153_v32, %v4073_v22  ;;  %v4174_v21 = vadd.f32 %v4173_v42, %v4093_v5 }
0x1365   :  { %4678 = vpow2.f32 %v4442_v26 }
0x1366   :  { %v4216_v28 = vadd.f32 %v4154_v15, %v11707_v30  ;;  %v4217_v35 = vadd.f32 %v4174_v21, %v11708_v11  ;;  %v4218_v11 = vadd.f32 %v4194_v61, %v11710_v41 }
0x1368   :  { %v4440_v9 = vmul.f32 -1.442695, %v4216_v28  ;;  %v4441_v29 = vmul.f32 -1.442695, %v4217_v35 }
0x136a   :  { %4680 = vpow2.f32 %v4440_v9 }
0x136b   :  { %v4679_v47 = vpop.eup %4678  ;;  %4682 = vpow2.f32 %v4441_v29 }
0x136c   :  { %v4262_v3 = vadd.f32 1.0, %v4679_v47 }
0x136e   :  { %4684 = vrcp.f32 %v4262_v3  ;;  %v4274_v52 = vand.u32 2147483648, %v4262_v3  ;;  %vm4268_vm10 = vweird.f32 %v4262_v3  ;;  %v4272_v16 = vand.u32 2147483647, %v4262_v3 }
0x1370   :  { %v4681_v51 = vpop.eup %4680  ;;  %v4275_v50 = vor.u32 1.1754944e-38, %v4274_v52  ;;  %vm4273_vm12 = vcmp.eq.f32.partialorder %v4272_v16, 8.507059e+37 }
0x1371   :  { %v4683_v43 = vpop.eup %4682  ;;  %v4223_v27 = vadd.f32 1.0, %v4681_v51 }
0x1372   :  { %v4242_v20 = vadd.f32 1.0, %v4683_v43 }
0x1373   :  { %4686 = vrcp.f32 %v4223_v27  ;;  %v4235_v25 = vand.u32 2147483648, %v4223_v27  ;;  %v4233_v34 = vand.u32 2147483647, %v4223_v27  ;;  %vm4229_vm8 = vweird.f32 %v4223_v27 }
0x1374   :  { %4688 = vrcp.f32 %v4242_v20  ;;  %v4685_v45 = vpop.eup %4684  ;;  %v4254_v58 = vand.u32 2147483648, %v4242_v20  ;;  %v4252_v37 = vand.u32 2147483647, %v4242_v20  ;;  %vm4248_vm14 = vweird.f32 %v4242_v20 }
0x1375   :  { %v4264_v4 = vmul.f32 %v4685_v45, %v4262_v3  ;;  %4690 = vtanh.f32 %v4218_v11  ;;  %v4236_v41 = vor.u32 1.1754944e-38, %v4235_v25  ;;  %vm4234_vm3 = vcmp.eq.f32.partialorder %v4233_v34, 8.507059e+37 }
0x1376   :  { %v4255_v8 = vor.u32 1.1754944e-38, %v4254_v58  ;;  %vm4253_vm1 = vcmp.eq.f32.partialorder %v4252_v37, 8.507059e+37  ;;  %vm4269_vm2 = vweird.f32 %v4685_v45 }
0x1377   :  { %v4265_v6 = vsub.f32 1.0, %v4264_v4  ;;  %vm4270_vm11 = vmor %vm4268_vm10, %vm4269_vm2 }
0x1379   :  { %v4687_v30 = vpop.eup %4686  ;;  %v4266_v18 = vmul.f32 %v4685_v45, %v4265_v6 }
0x137a   :  { %v4689_v48 = vpop.eup %4688  ;;  %v4225_v40 = vmul.f32 %v4687_v30, %v4223_v27  ;;  %vm4230_vm6 = vweird.f32 %v4687_v30 }
0x137b   :  { %v4244_v59 = vmul.f32 %v4689_v48, %v4242_v20  ;;  %vm4249_vm7 = vweird.f32 %v4689_v48  ;;  %vm4231_vm9 = vmor %vm4229_vm8, %vm4230_vm6  ;;  %v4691_v23 = vpop.eup %4690  ;;  %v4267_v55 = vadd.f32 %v4685_v45, %v4266_v18 }
0x137c   :  { %v4226_v56 = vsub.f32 1.0, %v4225_v40  ;;  %vm4250_vm15 = vmor %vm4248_vm14, %vm4249_vm7 }
0x137d   :  { %v4245_v33 = vsub.f32 1.0, %v4244_v59  ;;  %v4271_v13 = vsel %vm4270_vm11, %v4685_v45, %v4267_v55 }
0x137e   :  { %v4227_v14 = vmul.f32 %v4687_v30, %v4226_v56  ;;  %v4276_v62 = vsel %vm4273_vm12, %v4275_v50, %v4271_v13 }
0x137f   :  { %v4246_v49 = vmul.f32 %v4689_v48, %v4245_v33 }
0x1380   :  { %v4228_v46 = vadd.f32 %v4687_v30, %v4227_v14 }
0x1381   :  { %v4247_v12 = vadd.f32 %v4689_v48, %v4246_v49 }
0x1382   :  { %v4232_v57 = vsel %vm4231_vm9, %v4687_v30, %v4228_v46 }
0x1383   :  { %v4237_v54 = vsel %vm4234_vm3, %v4236_v41, %v4232_v57  ;;  %v4251_v0 = vsel %vm4250_vm15, %v4689_v48, %v4247_v12 }
0x1384   :  { %v4256_v53 = vsel %vm4253_vm1, %v4255_v8, %v4251_v0  ;;  %v4279_v17 = vmul.f32 %v4691_v23, %v4237_v54 }
0x1385   :  { %v4278_v24 = vmul.f32 %v4256_v53, %v9634_v10 }
0x1387   :  { %v4280_v31 = vadd.f32 %v4279_v17, %v4278_v24 }
0x1389   :  { %4692 = vtanh.f32 %v4280_v31 }
0x138f   :  { %v4693_v39 = vpop.eup %4692 }
0x1390   :  { %v4282_v63 = vmul.f32 %v4693_v39, %v4276_v62 }
0x1392   :  { %4299 = vmatmul.f32.vlgmr.msrb.gmra.mxu2 %v4282_v63 }
0x1415   :  { %v4300_v2 = vpop.f32.mrf.mxu2 }
0x1416   :  { %v4301_v36 = vadd.f32 %v9600_v1, %v4300_v2 }
0x1418   :  { %4443 = vst [vmem:[%s9697_s11 + $0x30] sm:$0xff] %v4301_v36 }
0x1419   :  { %4309 = vsyncpa [#allocation6], 1 }
0x141a   :  { %4310 = vsyncpa [#allocation8], 1 }
0x141b   :  { %4311 = vsyncpa [#allocation11], 1 }

</bundles_post_ra>
